<compile_context>
chip_gen: v7x
topology: tpu7x:2x2x1
jax: 0.10.0
libtpu: 0.0.40
codegen_flags: <defaults>
</compile_context>

<pallas_src>
import jax
import jax.numpy as jnp
import numpy as np
from jax.experimental import pallas as pl
from jax.experimental.pallas import tpu as pltpu

# ----------------------------- small config ---------------------------------
HIDDEN = 128          # hidden_size
INTER = 256           # intermediate_size
LAYERS = 2            # num_hidden_layers
HEADS = 4             # num_attention_heads
HEAD_DIM = HIDDEN // HEADS
CHANNELS = 3          # num_channels
IMG = 32              # image_size
PATCH = 8             # patch_size
EPS = 1e-6            # layer_norm_eps
NPATCH = (IMG // PATCH) ** 2          # seq_len = 16
PATCH_DIM = CHANNELS * PATCH * PATCH  # K = 192
SCALE = HEAD_DIM ** -0.5

APPROX_SOFTMAX_RECIP = True  # ~1e-3 rel. deviation from exact softmax (inference OK)


# ------------------------------ in-kernel math --------------------------------
def _layernorm(h, g, b):
    # One-pass mean / mean-of-squares: the two reductions are independent
    # (shorter serial chain than the centered two-pass formula).
    mu = jnp.mean(h, axis=-1, keepdims=True)
    ms = jnp.mean(h * h, axis=-1, keepdims=True)
    var = ms - mu * mu
    return (h - mu) * jax.lax.rsqrt(var + EPS) * g + b


def _gelu_tanh(x):
    c = 0.7978845608028654  # sqrt(2/pi)
    return 0.5 * x * (1.0 + jnp.tanh(c * (x + 0.044715 * x * x * x)))


# ------------------------------ fused kernel ----------------------------------
def siglip_fused_kernel(p_ref, pw_ref, pb_ref, pos_ref,
                        ln1g_ref, ln1b_ref, wqkv_ref, bqkv_ref, wo_ref, bo_ref,
                        ln2g_ref, ln2b_ref, w1_ref, b1_ref, w2_ref, b2_ref,
                        pg_ref, pbeta_ref, o_ref):
    M = p_ref.shape[1]            # BB * NPATCH (static)
    BB = M // NPATCH

    # ---- patch embedding (im2col matmul, M = BB*S rows) + position embedding ----
    patches = p_ref[0]                                             # (M, K) bf16
    x = jnp.dot(patches, pw_ref[...], preferred_element_type=jnp.float32)
    x = x + pb_ref[...] + pos_ref[...]                             # pos pre-tiled (M, D)

    # ---- encoder layers (statically unrolled; weights stacked on axis 0) ----
    for l in range(LAYERS):
        # --- self-attention ---
        h = _layernorm(x, ln1g_ref[l], ln1b_ref[l])
        qkv = jnp.dot(h.astype(jnp.bfloat16), wqkv_ref[l],
                      preferred_element_type=jnp.float32) + bqkv_ref[l]   # (M, 3D)
        # Cast after the bias add (consumes part of the tolerance budget; see notes).
        q = qkv[:, 0 * HIDDEN:1 * HIDDEN].astype(jnp.bfloat16)
        k = qkv[:, 1 * HIDDEN:2 * HIDDEN].astype(jnp.bfloat16)
        v = qkv[:, 2 * HIDDEN:3 * HIDDEN].astype(jnp.bfloat16)

        # Per-image attention: a tiny static loop (attention FLOPs are negligible;
        # the folded-M projections above/below are where the time goes).
        ctx_rows = []
        for i in range(BB):
            sl = slice(i * NPATCH, (i + 1) * NPATCH)
            qi = q[sl].reshape(NPATCH, HEADS, HEAD_DIM)
            ki = k[sl].reshape(NPATCH, HEADS, HEAD_DIM)
            vi = v[sl].reshape(NPATCH, HEADS, HEAD_DIM)
            # batched dot_general over heads; contraction on head_dim
            s = jnp.einsum("qhd,khd->hqk", qi, ki,
                           preferred_element_type=jnp.float32) * SCALE   # (H,S,S)
            s = s - jnp.max(s, axis=-1, keepdims=True)
            e = jnp.exp(s)
            denom = jnp.sum(e, axis=-1, keepdims=True)
            if APPROX_SOFTMAX_RECIP:
                w = e * pl.reciprocal(denom, approx=True)
            else:
                w = e / denom
            ci = jnp.einsum("hqk,khd->qhd", w.astype(jnp.bfloat16), vi,
                            preferred_element_type=jnp.float32)          # (S,H,Hd)
            ctx_rows.append(ci.reshape(NPATCH, HIDDEN))
        ctx = ctx_rows[0] if BB == 1 else jnp.concatenate(ctx_rows, axis=0)  # (M, D)

        attn = jnp.dot(ctx.astype(jnp.bfloat16), wo_ref[l],
                       preferred_element_type=jnp.float32) + bo_ref[l]
        x = x + attn

        # --- MLP ---
        h2 = _layernorm(x, ln2g_ref[l], ln2b_ref[l])
        m = jnp.dot(h2.astype(jnp.bfloat16), w1_ref[l],
                    preferred_element_type=jnp.float32) + b1_ref[l]
        m = _gelu_tanh(m)
        x = x + jnp.dot(m.astype(jnp.bfloat16), w2_ref[l],
                        preferred_element_type=jnp.float32) + b2_ref[l]

    # ---- post layernorm ----
    o_ref[0] = _layernorm(x, pg_ref[...], pbeta_ref[...])


# ------------------------------ wrappers --------------------------------------
def _w_spec(shape, single_buffer=True):
    """Constant-index-map spec for a VMEM-resident weight.

    Weights are fetched once, so single-buffering (pl.Buffered(1)) halves their
    VMEM footprint for free.  Falls back to the default spec if this JAX build
    does not accept pipeline_mode here.
    """
    nd = len(shape)
    idx = lambda g, _nd=nd: (0,) * _nd
    if single_buffer:
        try:
            return pl.BlockSpec(shape, idx, pipeline_mode=pl.Buffered(1))
        except TypeError:
            pass
    return pl.BlockSpec(shape, idx)


def extract_patches(pixel_values):
    # NCHW -> (B, N, C*P*P), flattening order (c, ph, pw) to match Conv2d weights.
    B, C, H, W = pixel_values.shape
    Hp, Wp = H // PATCH, W // PATCH
    x = pixel_values.reshape(B, C, Hp, PATCH, Wp, PATCH)
    x = jnp.transpose(x, (0, 2, 4, 1, 3, 5))           # (B, Hp, Wp, C, P, P)
    return x.reshape(B, Hp * Wp, C * PATCH * PATCH)


def prepare_kernel_params(params):
    """Stack layer weights on a leading LAYERS axis, fuse QKV, cast matmul
    weights to bf16 (biases / LN params stay f32)."""
    L = params["layers"]
    stack = lambda key: jnp.stack([lp[key] for lp in L])
    return {
        "patch_w": params["patch_w"].astype(jnp.bfloat16),
        "patch_b": params["patch_b"],
        "pos_emb": params["pos_emb"],
        "post_g": params["post_g"],
        "post_b": params["post_b"],
        "ln1_g": stack("ln1_g"), "ln1_b": stack("ln1_b"),
        "w_qkv": jnp.stack([jnp.concatenate([lp["wq"], lp["wk"], lp["wv"]], axis=1)
                            for lp in L]).astype(jnp.bfloat16),
        "b_qkv": jnp.stack([jnp.concatenate([lp["bq"], lp["bk"], lp["bv"]], axis=1)
                            for lp in L]),
        "wo": stack("wo").astype(jnp.bfloat16), "bo": stack("bo"),
        "ln2_g": stack("ln2_g"), "ln2_b": stack("ln2_b"),
        "w1": stack("w1").astype(jnp.bfloat16), "b1": stack("b1"),
        "w2": stack("w2").astype(jnp.bfloat16), "b2": stack("b2"),
    }


def siglip_vision_model(pixel_values, params, *, num_batch_blocks=1,
                        single_buffer_weights=True):
    """num_batch_blocks: 1 on single-TC v5e/v6e (whole batch, one grid step);
    2 on v7x so the "parallel" grid feeds both TensorCores."""
    kp = prepare_kernel_params(params)
    B = pixel_values.shape[0]
    D = HIDDEN
    G = num_batch_blocks
    assert B % G == 0, "batch must divide num_batch_blocks"
    BB = B // G
    M = BB * NPATCH

    # Host-side: im2col, cast activations to bf16 (halves the streamed DMA),
    # fold the batch block into the matmul M dimension, pre-tile pos embedding.
    patches = extract_patches(pixel_values).astype(jnp.bfloat16)   # (B, N, K)
    patches = patches.reshape(G, M, PATCH_DIM)
    pos = jnp.tile(kp["pos_emb"], (BB, 1))                         # (M, D) f32

    ws = lambda shape: _w_spec(shape, single_buffer=single_buffer_weights)
    in_specs = [
        pl.BlockSpec((1, M, PATCH_DIM), lambda g: (g, 0, 0)),       # patches
        ws((PATCH_DIM, D)),                                         # patch_w
        ws((1, D)),                                                 # patch_b
        ws((M, D)),                                                 # pos (pre-tiled)
        ws((LAYERS, 1, D)), ws((LAYERS, 1, D)),                     # ln1 g,b
        ws((LAYERS, D, 3 * D)), ws((LAYERS, 1, 3 * D)),             # w_qkv,b_qkv
        ws((LAYERS, D, D)), ws((LAYERS, 1, D)),                     # wo,bo
        ws((LAYERS, 1, D)), ws((LAYERS, 1, D)),                     # ln2 g,b
        ws((LAYERS, D, INTER)), ws((LAYERS, 1, INTER)),             # w1,b1
        ws((LAYERS, INTER, D)), ws((LAYERS, 1, D)),                 # w2,b2
        ws((1, D)), ws((1, D)),                                     # post g,b
    ]
    out = pl.pallas_call(
        siglip_fused_kernel,
        grid=(G,),
        in_specs=in_specs,
        out_specs=pl.BlockSpec((1, M, D), lambda g: (g, 0, 0)),
        out_shape=jax.ShapeDtypeStruct((G, M, D), jnp.float32),
        compiler_params=pltpu.CompilerParams(
            dimension_semantics=("parallel",)),    # feeds both TCs on v7x (G=2)
    )(patches, kp["patch_w"], kp["patch_b"], pos,
      kp["ln1_g"], kp["ln1_b"], kp["w_qkv"], kp["b_qkv"], kp["wo"], kp["bo"],
      kp["ln2_g"], kp["ln2_b"], kp["w1"], kp["b1"], kp["w2"], kp["b2"],
      kp["post_g"], kp["post_b"])
    return out.reshape(B, NPATCH, D)


# ------------------------- deterministic parameter init -----------------------
def init_params(key):
    std = 0.02
    ks = iter(jax.random.split(key, 64))
    params = {
        # Conv2d(D, C, P, P) flattened to (C*P*P, D) so that patches @ W == conv
        "patch_w": jax.random.normal(next(ks), (PATCH_DIM, HIDDEN), jnp.float32) * std,
        "patch_b": jax.random.normal(next(ks), (1, HIDDEN), jnp.float32) * std,
        "pos_emb": jax.random.normal(next(ks), (NPATCH, HIDDEN), jnp.float32) * std,
        "post_g": jnp.ones((1, HIDDEN), jnp.float32),
        "post_b": jnp.zeros((1, HIDDEN), jnp.float32),
        "layers": [],
    }
    for _ in range(LAYERS):
        lp = {
            "ln1_g": jnp.ones((1, HIDDEN), jnp.float32),
            "ln1_b": jnp.zeros((1, HIDDEN), jnp.float32),
            "wq": jax.random.normal(next(ks), (HIDDEN, HIDDEN), jnp.float32) * std,
            "bq": jax.random.normal(next(ks), (1, HIDDEN), jnp.float32) * std,
            "wk": jax.random.normal(next(ks), (HIDDEN, HIDDEN), jnp.float32) * std,
            "bk": jax.random.normal(next(ks), (1, HIDDEN), jnp.float32) * std,
            "wv": jax.random.normal(next(ks), (HIDDEN, HIDDEN), jnp.float32) * std,
            "bv": jax.random.normal(next(ks), (1, HIDDEN), jnp.float32) * std,
            "wo": jax.random.normal(next(ks), (HIDDEN, HIDDEN), jnp.float32) * std,
            "bo": jax.random.normal(next(ks), (1, HIDDEN), jnp.float32) * std,
            "ln2_g": jnp.ones((1, HIDDEN), jnp.float32),
            "ln2_b": jnp.zeros((1, HIDDEN), jnp.float32),
            "w1": jax.random.normal(next(ks), (HIDDEN, INTER), jnp.float32) * std,
            "b1": jax.random.normal(next(ks), (1, INTER), jnp.float32) * std,
            "w2": jax.random.normal(next(ks), (INTER, HIDDEN), jnp.float32) * std,
            "b2": jax.random.normal(next(ks), (1, HIDDEN), jnp.float32) * std,
        }
        params["layers"].append(lp)
    return params


# --------------------------- pure-JAX f32 reference ----------------------------
def _ref_ln(h, g, b):
    mu = jnp.mean(h, axis=-1, keepdims=True)
    var = jnp.mean((h - mu) ** 2, axis=-1, keepdims=True)
    return (h - mu) / jnp.sqrt(var + EPS) * g + b


def reference_model(pixel_values, params):
    patches = extract_patches(pixel_values)
    h = patches @ params["patch_w"] + params["patch_b"] + params["pos_emb"]
    for p in params["layers"]:
        res = h
        x = _ref_ln(h, p["ln1_g"], p["ln1_b"])
        q = x @ p["wq"] + p["bq"]
        k = x @ p["wk"] + p["bk"]
        v = x @ p["wv"] + p["bv"]
        B, S, _ = q.shape
        q = q.reshape(B, S, HEADS, HEAD_DIM).transpose(0, 2, 1, 3)
        k = k.reshape(B, S, HEADS, HEAD_DIM).transpose(0, 2, 1, 3)
        v = v.reshape(B, S, HEADS, HEAD_DIM).transpose(0, 2, 1, 3)
        scores = jnp.einsum("bhqd,bhkd->bhqk", q, k) * SCALE
        w = jax.nn.softmax(scores, axis=-1)
        ctx = jnp.einsum("bhqk,bhkd->bhqd", w, v)
        ctx = ctx.transpose(0, 2, 1, 3).reshape(B, S, HIDDEN)
        h = res + (ctx @ p["wo"] + p["bo"])
        res = h
        x = _ref_ln(h, p["ln2_g"], p["ln2_b"])
        m = x @ p["w1"] + p["b1"]
        c = 0.7978845608028654
        m = 0.5 * m * (1.0 + jnp.tanh(c * (m + 0.044715 * m ** 3)))
        h = res + (m @ p["w2"] + p["b2"])
    return _ref_ln(h, params["post_g"], params["post_b"])


# ------------------------------------ main -------------------------------------
if __name__ == "__main__":
    key = jax.random.PRNGKey(0)
    k_img, k_par = jax.random.split(key)
    pixel_values = jax.random.normal(k_img, (2, CHANNELS, IMG, IMG), jnp.float32)
    params = init_params(k_par)

    def run(single_buffer):
        fwd = jax.jit(lambda pv, pr: siglip_vision_model(
            pv, pr, num_batch_blocks=1,           # pass 2 on v7x (one shard per TC)
            single_buffer_weights=single_buffer))
        return jax.block_until_ready(fwd(pixel_values, params))

    try:
        out = run(True)
    except Exception:
        # Fallback if this JAX build rejects pl.Buffered(1) on weight specs.
        out = run(False)

    ref = jax.block_until_ready(reference_model(pixel_values, params))
    # bf16 matmul operands (f32 accumulation) + approx softmax reciprocal vs
    # f32 reference -> modest tolerance.
    np.testing.assert_allclose(np.asarray(out), np.asarray(ref), rtol=3e-2, atol=3e-2)

    assert out.shape == (2, NPATCH, HIDDEN)
    print("KERNEL_OK")
</pallas_src>

<mosaic_0001>
module attributes {stable_mosaic.version = 11 : i64} {
  func.func @siglip_fused_kernel(%arg0: i32, %arg1: memref<1x32x192xbf16, #tpu.memory_space<vmem>>, %arg2: memref<192x128xbf16, #tpu.memory_space<vmem>>, %arg3: memref<1x128xf32, #tpu.memory_space<vmem>>, %arg4: memref<32x128xf32, #tpu.memory_space<vmem>>, %arg5: memref<2x1x128xf32, #tpu.memory_space<vmem>>, %arg6: memref<2x1x128xf32, #tpu.memory_space<vmem>>, %arg7: memref<2x128x384xbf16, #tpu.memory_space<vmem>>, %arg8: memref<2x1x384xf32, #tpu.memory_space<vmem>>, %arg9: memref<2x128x128xbf16, #tpu.memory_space<vmem>>, %arg10: memref<2x1x128xf32, #tpu.memory_space<vmem>>, %arg11: memref<2x1x128xf32, #tpu.memory_space<vmem>>, %arg12: memref<2x1x128xf32, #tpu.memory_space<vmem>>, %arg13: memref<2x128x256xbf16, #tpu.memory_space<vmem>>, %arg14: memref<2x1x256xf32, #tpu.memory_space<vmem>>, %arg15: memref<2x256x128xbf16, #tpu.memory_space<vmem>>, %arg16: memref<2x1x128xf32, #tpu.memory_space<vmem>>, %arg17: memref<1x128xf32, #tpu.memory_space<vmem>>, %arg18: memref<1x128xf32, #tpu.memory_space<vmem>>, %arg19: memref<1x32x128xf32, #tpu.memory_space<vmem>>) attributes {dimension_semantics = [#tpu.dimension_semantics<parallel>], iteration_bounds = array<i64: 1>, scalar_prefetch = 0 : i64, scratch_operands = 0 : i64, tpu.core_type = #tpu.core_type<tc>, window_params = [{transform_indices = @transform_0, window_bounds = array<i64: 1, 32, 192>}, {pipeline_mode = #tpu.pipeline_mode<synchronous>, transform_indices = @transform_1, window_bounds = array<i64: 192, 128>}, {pipeline_mode = #tpu.pipeline_mode<synchronous>, transform_indices = @transform_2, window_bounds = array<i64: 1, 128>}, {pipeline_mode = #tpu.pipeline_mode<synchronous>, transform_indices = @transform_3, window_bounds = array<i64: 32, 128>}, {pipeline_mode = #tpu.pipeline_mode<synchronous>, transform_indices = @transform_4, window_bounds = array<i64: 2, 1, 128>}, {pipeline_mode = #tpu.pipeline_mode<synchronous>, transform_indices = @transform_5, window_bounds = array<i64: 2, 1, 128>}, {pipeline_mode = #tpu.pipeline_mode<synchronous>, transform_indices = @transform_6, window_bounds = array<i64: 2, 128, 384>}, {pipeline_mode = #tpu.pipeline_mode<synchronous>, transform_indices = @transform_7, window_bounds = array<i64: 2, 1, 384>}, {pipeline_mode = #tpu.pipeline_mode<synchronous>, transform_indices = @transform_8, window_bounds = array<i64: 2, 128, 128>}, {pipeline_mode = #tpu.pipeline_mode<synchronous>, transform_indices = @transform_9, window_bounds = array<i64: 2, 1, 128>}, {pipeline_mode = #tpu.pipeline_mode<synchronous>, transform_indices = @transform_10, window_bounds = array<i64: 2, 1, 128>}, {pipeline_mode = #tpu.pipeline_mode<synchronous>, transform_indices = @transform_11, window_bounds = array<i64: 2, 1, 128>}, {pipeline_mode = #tpu.pipeline_mode<synchronous>, transform_indices = @transform_12, window_bounds = array<i64: 2, 128, 256>}, {pipeline_mode = #tpu.pipeline_mode<synchronous>, transform_indices = @transform_13, window_bounds = array<i64: 2, 1, 256>}, {pipeline_mode = #tpu.pipeline_mode<synchronous>, transform_indices = @transform_14, window_bounds = array<i64: 2, 256, 128>}, {pipeline_mode = #tpu.pipeline_mode<synchronous>, transform_indices = @transform_15, window_bounds = array<i64: 2, 1, 128>}, {pipeline_mode = #tpu.pipeline_mode<synchronous>, transform_indices = @transform_16, window_bounds = array<i64: 1, 128>}, {pipeline_mode = #tpu.pipeline_mode<synchronous>, transform_indices = @transform_17, window_bounds = array<i64: 1, 128>}, {transform_indices = @transform_18, window_bounds = array<i64: 1, 32, 128>}]} {
    %c0 = arith.constant 0 : index
    %c0_0 = arith.constant 0 : index
    %c0_1 = arith.constant 0 : index
    %0 = vector.load %arg1[%c0, %c0_0, %c0_1] : memref<1x32x192xbf16, #tpu.memory_space<vmem>>, vector<1x32x192xbf16>
    %1 = vector.shape_cast %0 : vector<1x32x192xbf16> to vector<32x192xbf16>
    %c0_2 = arith.constant 0 : index
    %c0_3 = arith.constant 0 : index
    %2 = vector.load %arg2[%c0_2, %c0_3] : memref<192x128xbf16, #tpu.memory_space<vmem>>, vector<192x128xbf16>
    %cst = arith.constant dense<0.000000e+00> : vector<32x128xf32>
    %3 = tpu.matmul %1, %2, %cst {dimension_numbers = #tpu.dot_dimension_numbers<[1], [0], [0], [1], [0, 0, 1, 1], [], []>} : vector<32x192xbf16>, vector<192x128xbf16>, vector<32x128xf32> -> vector<32x128xf32>
    %c0_4 = arith.constant 0 : index
    %c0_5 = arith.constant 0 : index
    %4 = vector.load %arg3[%c0_4, %c0_5] : memref<1x128xf32, #tpu.memory_space<vmem>>, vector<1x128xf32>
    %5 = vector.broadcast %4 : vector<1x128xf32> to vector<32x128xf32>
    %6 = arith.addf %3, %5 : vector<32x128xf32>
    %c0_6 = arith.constant 0 : index
    %c0_7 = arith.constant 0 : index
    %7 = vector.load %arg4[%c0_6, %c0_7] : memref<32x128xf32, #tpu.memory_space<vmem>>, vector<32x128xf32>
    %8 = arith.addf %6, %7 : vector<32x128xf32>
    %c0_8 = arith.constant 0 : index
    %c0_9 = arith.constant 0 : index
    %c0_10 = arith.constant 0 : index
    %9 = vector.load %arg5[%c0_8, %c0_9, %c0_10] : memref<2x1x128xf32, #tpu.memory_space<vmem>>, vector<1x1x128xf32>
    %10 = vector.shape_cast %9 : vector<1x1x128xf32> to vector<1x128xf32>
    %c0_11 = arith.constant 0 : index
    %c0_12 = arith.constant 0 : index
    %c0_13 = arith.constant 0 : index
    %11 = vector.load %arg6[%c0_11, %c0_12, %c0_13] : memref<2x1x128xf32, #tpu.memory_space<vmem>>, vector<1x1x128xf32>
    %12 = vector.shape_cast %11 : vector<1x1x128xf32> to vector<1x128xf32>
    %cst_14 = arith.constant dense<0.000000e+00> : vector<32xf32>
    %13 = vector.multi_reduction <add>, %8, %cst_14 [1] : vector<32x128xf32> to vector<32xf32>
    %14 = vector.shape_cast %13 : vector<32xf32> to vector<32x1xf32>
    %cst_15 = arith.constant 1.280000e+02 : f32
    %15 = vector.broadcast %cst_15 : f32 to vector<32x1xf32>
    %16 = arith.divf %14, %15 : vector<32x1xf32>
    %17 = arith.mulf %8, %8 : vector<32x128xf32>
    %cst_16 = arith.constant dense<0.000000e+00> : vector<32xf32>
    %18 = vector.multi_reduction <add>, %17, %cst_16 [1] : vector<32x128xf32> to vector<32xf32>
    %19 = vector.shape_cast %18 : vector<32xf32> to vector<32x1xf32>
    %cst_17 = arith.constant 1.280000e+02 : f32
    %20 = vector.broadcast %cst_17 : f32 to vector<32x1xf32>
    %21 = arith.divf %19, %20 : vector<32x1xf32>
    %22 = arith.mulf %16, %16 : vector<32x1xf32>
    %23 = arith.subf %21, %22 : vector<32x1xf32>
    %24 = vector.broadcast %16 : vector<32x1xf32> to vector<32x128xf32>
    %25 = arith.subf %8, %24 : vector<32x128xf32>
    %cst_18 = arith.constant 9.99999997E-7 : f32
    %26 = vector.broadcast %cst_18 : f32 to vector<32x1xf32>
    %27 = arith.addf %23, %26 : vector<32x1xf32>
    %28 = math.rsqrt %27 : vector<32x1xf32>
    %29 = vector.broadcast %28 : vector<32x1xf32> to vector<32x128xf32>
    %30 = arith.mulf %25, %29 : vector<32x128xf32>
    %31 = vector.broadcast %10 : vector<1x128xf32> to vector<32x128xf32>
    %32 = arith.mulf %30, %31 : vector<32x128xf32>
    %33 = vector.broadcast %12 : vector<1x128xf32> to vector<32x128xf32>
    %34 = arith.addf %32, %33 : vector<32x128xf32>
    %35 = arith.truncf %34 : vector<32x128xf32> to vector<32x128xbf16>
    %c0_19 = arith.constant 0 : index
    %c0_20 = arith.constant 0 : index
    %c0_21 = arith.constant 0 : index
    %36 = vector.load %arg7[%c0_19, %c0_20, %c0_21] : memref<2x128x384xbf16, #tpu.memory_space<vmem>>, vector<1x128x384xbf16>
    %37 = vector.shape_cast %36 : vector<1x128x384xbf16> to vector<128x384xbf16>
    %cst_22 = arith.constant dense<0.000000e+00> : vector<32x384xf32>
    %38 = tpu.matmul %35, %37, %cst_22 {dimension_numbers = #tpu.dot_dimension_numbers<[1], [0], [0], [1], [0, 0, 1, 1], [], []>} : vector<32x128xbf16>, vector<128x384xbf16>, vector<32x384xf32> -> vector<32x384xf32>
    %c0_23 = arith.constant 0 : index
    %c0_24 = arith.constant 0 : index
    %c0_25 = arith.constant 0 : index
    %39 = vector.load %arg8[%c0_23, %c0_24, %c0_25] : memref<2x1x384xf32, #tpu.memory_space<vmem>>, vector<1x1x384xf32>
    %40 = vector.shape_cast %39 : vector<1x1x384xf32> to vector<1x384xf32>
    %41 = vector.broadcast %40 : vector<1x384xf32> to vector<32x384xf32>
    %42 = arith.addf %38, %41 : vector<32x384xf32>
    %43 = vector.extract_strided_slice %42 {offsets = [0, 0], sizes = [32, 128], strides = [1, 1]} : vector<32x384xf32> to vector<32x128xf32>
    %44 = arith.truncf %43 : vector<32x128xf32> to vector<32x128xbf16>
    %45 = vector.extract_strided_slice %42 {offsets = [0, 128], sizes = [32, 128], strides = [1, 1]} : vector<32x384xf32> to vector<32x128xf32>
    %46 = arith.truncf %45 : vector<32x128xf32> to vector<32x128xbf16>
    %47 = vector.extract_strided_slice %42 {offsets = [0, 256], sizes = [32, 128], strides = [1, 1]} : vector<32x384xf32> to vector<32x128xf32>
    %48 = arith.truncf %47 : vector<32x128xf32> to vector<32x128xbf16>
    %49 = vector.extract_strided_slice %44 {offsets = [0, 0], sizes = [16, 128], strides = [1, 1]} : vector<32x128xbf16> to vector<16x128xbf16>
    %50 = vector.shape_cast %49 : vector<16x128xbf16> to vector<16x4x32xbf16>
    %51 = vector.extract_strided_slice %46 {offsets = [0, 0], sizes = [16, 128], strides = [1, 1]} : vector<32x128xbf16> to vector<16x128xbf16>
    %52 = vector.shape_cast %51 : vector<16x128xbf16> to vector<16x4x32xbf16>
    %53 = vector.extract_strided_slice %48 {offsets = [0, 0], sizes = [16, 128], strides = [1, 1]} : vector<32x128xbf16> to vector<16x128xbf16>
    %54 = vector.shape_cast %53 : vector<16x128xbf16> to vector<16x4x32xbf16>
    "tpu.trace_start"() <{level = 10 : i32, message = "qhd,khd->hqk"}> : () -> ()
    %cst_26 = arith.constant dense<0.000000e+00> : vector<4x16x16xf32>
    %55 = tpu.matmul %50, %52, %cst_26 {dimension_numbers = #tpu.dot_dimension_numbers<[2], [2], [0], [0], [0, 1, 0, 0, 1, 0], [1], [1]>} : vector<16x4x32xbf16>, vector<16x4x32xbf16>, vector<4x16x16xf32> -> vector<4x16x16xf32>
    "tpu.trace_stop"() : () -> ()
    %cst_27 = arith.constant 0.176776692 : f32
    %56 = vector.broadcast %cst_27 : f32 to vector<4x16x16xf32>
    %57 = arith.mulf %55, %56 : vector<4x16x16xf32>
    %cst_28 = arith.constant dense<0xFF800000> : vector<4x16xf32>
    %58 = vector.multi_reduction <maximumf>, %57, %cst_28 [2] : vector<4x16x16xf32> to vector<4x16xf32>
    %59 = vector.shape_cast %58 : vector<4x16xf32> to vector<4x16x1xf32>
    %60 = vector.broadcast %59 : vector<4x16x1xf32> to vector<4x16x16xf32>
    %61 = arith.subf %57, %60 : vector<4x16x16xf32>
    %62 = math.exp %61 : vector<4x16x16xf32>
    %cst_29 = arith.constant dense<0.000000e+00> : vector<4x16xf32>
    %63 = vector.multi_reduction <add>, %62, %cst_29 [2] : vector<4x16x16xf32> to vector<4x16xf32>
    %64 = vector.shape_cast %63 : vector<4x16xf32> to vector<4x16x1xf32>
    %65 = tpu.reciprocal %64 {approx = true} : vector<4x16x1xf32> -> vector<4x16x1xf32>
    %66 = vector.broadcast %65 : vector<4x16x1xf32> to vector<4x16x16xf32>
    %67 = arith.mulf %62, %66 : vector<4x16x16xf32>
    %68 = arith.truncf %67 : vector<4x16x16xf32> to vector<4x16x16xbf16>
    "tpu.trace_start"() <{level = 10 : i32, message = "hqk,khd->qhd"}> : () -> ()
    %cst_30 = arith.constant dense<0.000000e+00> : vector<4x32x16xf32>
    %69 = tpu.matmul %54, %68, %cst_30 {dimension_numbers = #tpu.dot_dimension_numbers<[0], [2], [2], [1], [0, 1, 0, 2, 1, 1], [1], [0]>} : vector<16x4x32xbf16>, vector<4x16x16xbf16>, vector<4x32x16xf32> -> vector<4x32x16xf32>
    %70 = tpu.transpose %69, [2, 0, 1] : vector<4x32x16xf32> -> vector<16x4x32xf32>
    "tpu.trace_stop"() : () -> ()
    %71 = vector.shape_cast %70 : vector<16x4x32xf32> to vector<16x128xf32>
    %72 = vector.extract_strided_slice %44 {offsets = [16, 0], sizes = [16, 128], strides = [1, 1]} : vector<32x128xbf16> to vector<16x128xbf16>
    %73 = vector.shape_cast %72 : vector<16x128xbf16> to vector<16x4x32xbf16>
    %74 = vector.extract_strided_slice %46 {offsets = [16, 0], sizes = [16, 128], strides = [1, 1]} : vector<32x128xbf16> to vector<16x128xbf16>
    %75 = vector.shape_cast %74 : vector<16x128xbf16> to vector<16x4x32xbf16>
    %76 = vector.extract_strided_slice %48 {offsets = [16, 0], sizes = [16, 128], strides = [1, 1]} : vector<32x128xbf16> to vector<16x128xbf16>
    %77 = vector.shape_cast %76 : vector<16x128xbf16> to vector<16x4x32xbf16>
    "tpu.trace_start"() <{level = 10 : i32, message = "qhd,khd->hqk"}> : () -> ()
    %cst_31 = arith.constant dense<0.000000e+00> : vector<4x16x16xf32>
    %78 = tpu.matmul %73, %75, %cst_31 {dimension_numbers = #tpu.dot_dimension_numbers<[2], [2], [0], [0], [0, 1, 0, 0, 1, 0], [1], [1]>} : vector<16x4x32xbf16>, vector<16x4x32xbf16>, vector<4x16x16xf32> -> vector<4x16x16xf32>
    "tpu.trace_stop"() : () -> ()
    %cst_32 = arith.constant 0.176776692 : f32
    %79 = vector.broadcast %cst_32 : f32 to vector<4x16x16xf32>
    %80 = arith.mulf %78, %79 : vector<4x16x16xf32>
    %cst_33 = arith.constant dense<0xFF800000> : vector<4x16xf32>
    %81 = vector.multi_reduction <maximumf>, %80, %cst_33 [2] : vector<4x16x16xf32> to vector<4x16xf32>
    %82 = vector.shape_cast %81 : vector<4x16xf32> to vector<4x16x1xf32>
    %83 = vector.broadcast %82 : vector<4x16x1xf32> to vector<4x16x16xf32>
    %84 = arith.subf %80, %83 : vector<4x16x16xf32>
    %85 = math.exp %84 : vector<4x16x16xf32>
    %cst_34 = arith.constant dense<0.000000e+00> : vector<4x16xf32>
    %86 = vector.multi_reduction <add>, %85, %cst_34 [2] : vector<4x16x16xf32> to vector<4x16xf32>
    %87 = vector.shape_cast %86 : vector<4x16xf32> to vector<4x16x1xf32>
    %88 = tpu.reciprocal %87 {approx = true} : vector<4x16x1xf32> -> vector<4x16x1xf32>
    %89 = vector.broadcast %88 : vector<4x16x1xf32> to vector<4x16x16xf32>
    %90 = arith.mulf %85, %89 : vector<4x16x16xf32>
    %91 = arith.truncf %90 : vector<4x16x16xf32> to vector<4x16x16xbf16>
    "tpu.trace_start"() <{level = 10 : i32, message = "hqk,khd->qhd"}> : () -> ()
    %cst_35 = arith.constant dense<0.000000e+00> : vector<4x32x16xf32>
    %92 = tpu.matmul %77, %91, %cst_35 {dimension_numbers = #tpu.dot_dimension_numbers<[0], [2], [2], [1], [0, 1, 0, 2, 1, 1], [1], [0]>} : vector<16x4x32xbf16>, vector<4x16x16xbf16>, vector<4x32x16xf32> -> vector<4x32x16xf32>
    %93 = tpu.transpose %92, [2, 0, 1] : vector<4x32x16xf32> -> vector<16x4x32xf32>
    "tpu.trace_stop"() : () -> ()
    %94 = vector.shape_cast %93 : vector<16x4x32xf32> to vector<16x128xf32>
    %95 = tpu.concatenate %71, %94 in 0 : vector<16x128xf32>, vector<16x128xf32> -> vector<32x128xf32>
    %96 = arith.truncf %95 : vector<32x128xf32> to vector<32x128xbf16>
    %c0_36 = arith.constant 0 : index
    %c0_37 = arith.constant 0 : index
    %c0_38 = arith.constant 0 : index
    %97 = vector.load %arg9[%c0_36, %c0_37, %c0_38] : memref<2x128x128xbf16, #tpu.memory_space<vmem>>, vector<1x128x128xbf16>
    %98 = vector.shape_cast %97 : vector<1x128x128xbf16> to vector<128x128xbf16>
    %cst_39 = arith.constant dense<0.000000e+00> : vector<32x128xf32>
    %99 = tpu.matmul %96, %98, %cst_39 {dimension_numbers = #tpu.dot_dimension_numbers<[1], [0], [0], [1], [0, 0, 1, 1], [], []>} : vector<32x128xbf16>, vector<128x128xbf16>, vector<32x128xf32> -> vector<32x128xf32>
    %c0_40 = arith.constant 0 : index
    %c0_41 = arith.constant 0 : index
    %c0_42 = arith.constant 0 : index
    %100 = vector.load %arg10[%c0_40, %c0_41, %c0_42] : memref<2x1x128xf32, #tpu.memory_space<vmem>>, vector<1x1x128xf32>
    %101 = vector.shape_cast %100 : vector<1x1x128xf32> to vector<1x128xf32>
    %102 = vector.broadcast %101 : vector<1x128xf32> to vector<32x128xf32>
    %103 = arith.addf %99, %102 : vector<32x128xf32>
    %104 = arith.addf %8, %103 : vector<32x128xf32>
    %c0_43 = arith.constant 0 : index
    %c0_44 = arith.constant 0 : index
    %c0_45 = arith.constant 0 : index
    %105 = vector.load %arg11[%c0_43, %c0_44, %c0_45] : memref<2x1x128xf32, #tpu.memory_space<vmem>>, vector<1x1x128xf32>
    %106 = vector.shape_cast %105 : vector<1x1x128xf32> to vector<1x128xf32>
    %c0_46 = arith.constant 0 : index
    %c0_47 = arith.constant 0 : index
    %c0_48 = arith.constant 0 : index
    %107 = vector.load %arg12[%c0_46, %c0_47, %c0_48] : memref<2x1x128xf32, #tpu.memory_space<vmem>>, vector<1x1x128xf32>
    %108 = vector.shape_cast %107 : vector<1x1x128xf32> to vector<1x128xf32>
    %cst_49 = arith.constant dense<0.000000e+00> : vector<32xf32>
    %109 = vector.multi_reduction <add>, %104, %cst_49 [1] : vector<32x128xf32> to vector<32xf32>
    %110 = vector.shape_cast %109 : vector<32xf32> to vector<32x1xf32>
    %cst_50 = arith.constant 1.280000e+02 : f32
    %111 = vector.broadcast %cst_50 : f32 to vector<32x1xf32>
    %112 = arith.divf %110, %111 : vector<32x1xf32>
    %113 = arith.mulf %104, %104 : vector<32x128xf32>
    %cst_51 = arith.constant dense<0.000000e+00> : vector<32xf32>
    %114 = vector.multi_reduction <add>, %113, %cst_51 [1] : vector<32x128xf32> to vector<32xf32>
    %115 = vector.shape_cast %114 : vector<32xf32> to vector<32x1xf32>
    %cst_52 = arith.constant 1.280000e+02 : f32
    %116 = vector.broadcast %cst_52 : f32 to vector<32x1xf32>
    %117 = arith.divf %115, %116 : vector<32x1xf32>
    %118 = arith.mulf %112, %112 : vector<32x1xf32>
    %119 = arith.subf %117, %118 : vector<32x1xf32>
    %120 = vector.broadcast %112 : vector<32x1xf32> to vector<32x128xf32>
    %121 = arith.subf %104, %120 : vector<32x128xf32>
    %cst_53 = arith.constant 9.99999997E-7 : f32
    %122 = vector.broadcast %cst_53 : f32 to vector<32x1xf32>
    %123 = arith.addf %119, %122 : vector<32x1xf32>
    %124 = math.rsqrt %123 : vector<32x1xf32>
    %125 = vector.broadcast %124 : vector<32x1xf32> to vector<32x128xf32>
    %126 = arith.mulf %121, %125 : vector<32x128xf32>
    %127 = vector.broadcast %106 : vector<1x128xf32> to vector<32x128xf32>
    %128 = arith.mulf %126, %127 : vector<32x128xf32>
    %129 = vector.broadcast %108 : vector<1x128xf32> to vector<32x128xf32>
    %130 = arith.addf %128, %129 : vector<32x128xf32>
    %131 = arith.truncf %130 : vector<32x128xf32> to vector<32x128xbf16>
    %c0_54 = arith.constant 0 : index
    %c0_55 = arith.constant 0 : index
    %c0_56 = arith.constant 0 : index
    %132 = vector.load %arg13[%c0_54, %c0_55, %c0_56] : memref<2x128x256xbf16, #tpu.memory_space<vmem>>, vector<1x128x256xbf16>
    %133 = vector.shape_cast %132 : vector<1x128x256xbf16> to vector<128x256xbf16>
    %cst_57 = arith.constant dense<0.000000e+00> : vector<32x256xf32>
    %134 = tpu.matmul %131, %133, %cst_57 {dimension_numbers = #tpu.dot_dimension_numbers<[1], [0], [0], [1], [0, 0, 1, 1], [], []>} : vector<32x128xbf16>, vector<128x256xbf16>, vector<32x256xf32> -> vector<32x256xf32>
    %c0_58 = arith.constant 0 : index
    %c0_59 = arith.constant 0 : index
    %c0_60 = arith.constant 0 : index
    %135 = vector.load %arg14[%c0_58, %c0_59, %c0_60] : memref<2x1x256xf32, #tpu.memory_space<vmem>>, vector<1x1x256xf32>
    %136 = vector.shape_cast %135 : vector<1x1x256xf32> to vector<1x256xf32>
    %137 = vector.broadcast %136 : vector<1x256xf32> to vector<32x256xf32>
    %138 = arith.addf %134, %137 : vector<32x256xf32>
    %cst_61 = arith.constant 5.000000e-01 : f32
    %139 = vector.broadcast %cst_61 : f32 to vector<32x256xf32>
    %140 = arith.mulf %139, %138 : vector<32x256xf32>
    %cst_62 = arith.constant 4.471500e-02 : f32
    %141 = vector.broadcast %cst_62 : f32 to vector<32x256xf32>
    %142 = arith.mulf %141, %138 : vector<32x256xf32>
    %143 = arith.mulf %142, %138 : vector<32x256xf32>
    %144 = arith.mulf %143, %138 : vector<32x256xf32>
    %145 = arith.addf %138, %144 : vector<32x256xf32>
    %cst_63 = arith.constant 0.797884583 : f32
    %146 = vector.broadcast %cst_63 : f32 to vector<32x256xf32>
    %147 = arith.mulf %146, %145 : vector<32x256xf32>
    %148 = math.tanh %147 : vector<32x256xf32>
    %cst_64 = arith.constant 1.000000e+00 : f32
    %149 = vector.broadcast %cst_64 : f32 to vector<32x256xf32>
    %150 = arith.addf %149, %148 : vector<32x256xf32>
    %151 = arith.mulf %140, %150 : vector<32x256xf32>
    %152 = arith.truncf %151 : vector<32x256xf32> to vector<32x256xbf16>
    %c0_65 = arith.constant 0 : index
    %c0_66 = arith.constant 0 : index
    %c0_67 = arith.constant 0 : index
    %153 = vector.load %arg15[%c0_65, %c0_66, %c0_67] : memref<2x256x128xbf16, #tpu.memory_space<vmem>>, vector<1x256x128xbf16>
    %154 = vector.shape_cast %153 : vector<1x256x128xbf16> to vector<256x128xbf16>
    %cst_68 = arith.constant dense<0.000000e+00> : vector<32x128xf32>
    %155 = tpu.matmul %152, %154, %cst_68 {dimension_numbers = #tpu.dot_dimension_numbers<[1], [0], [0], [1], [0, 0, 1, 1], [], []>} : vector<32x256xbf16>, vector<256x128xbf16>, vector<32x128xf32> -> vector<32x128xf32>
    %156 = arith.addf %104, %155 : vector<32x128xf32>
    %c0_69 = arith.constant 0 : index
    %c0_70 = arith.constant 0 : index
    %c0_71 = arith.constant 0 : index
    %157 = vector.load %arg16[%c0_69, %c0_70, %c0_71] : memref<2x1x128xf32, #tpu.memory_space<vmem>>, vector<1x1x128xf32>
    %158 = vector.shape_cast %157 : vector<1x1x128xf32> to vector<1x128xf32>
    %159 = vector.broadcast %158 : vector<1x128xf32> to vector<32x128xf32>
    %160 = arith.addf %156, %159 : vector<32x128xf32>
    %c1 = arith.constant 1 : index
    %c0_72 = arith.constant 0 : index
    %c0_73 = arith.constant 0 : index
    %161 = vector.load %arg5[%c1, %c0_72, %c0_73] : memref<2x1x128xf32, #tpu.memory_space<vmem>>, vector<1x1x128xf32>
    %162 = vector.shape_cast %161 : vector<1x1x128xf32> to vector<1x128xf32>
    %c1_74 = arith.constant 1 : index
    %c0_75 = arith.constant 0 : index
    %c0_76 = arith.constant 0 : index
    %163 = vector.load %arg6[%c1_74, %c0_75, %c0_76] : memref<2x1x128xf32, #tpu.memory_space<vmem>>, vector<1x1x128xf32>
    %164 = vector.shape_cast %163 : vector<1x1x128xf32> to vector<1x128xf32>
    %cst_77 = arith.constant dense<0.000000e+00> : vector<32xf32>
    %165 = vector.multi_reduction <add>, %160, %cst_77 [1] : vector<32x128xf32> to vector<32xf32>
    %166 = vector.shape_cast %165 : vector<32xf32> to vector<32x1xf32>
    %cst_78 = arith.constant 1.280000e+02 : f32
    %167 = vector.broadcast %cst_78 : f32 to vector<32x1xf32>
    %168 = arith.divf %166, %167 : vector<32x1xf32>
    %169 = arith.mulf %160, %160 : vector<32x128xf32>
    %cst_79 = arith.constant dense<0.000000e+00> : vector<32xf32>
    %170 = vector.multi_reduction <add>, %169, %cst_79 [1] : vector<32x128xf32> to vector<32xf32>
    %171 = vector.shape_cast %170 : vector<32xf32> to vector<32x1xf32>
    %cst_80 = arith.constant 1.280000e+02 : f32
    %172 = vector.broadcast %cst_80 : f32 to vector<32x1xf32>
    %173 = arith.divf %171, %172 : vector<32x1xf32>
    %174 = arith.mulf %168, %168 : vector<32x1xf32>
    %175 = arith.subf %173, %174 : vector<32x1xf32>
    %176 = vector.broadcast %168 : vector<32x1xf32> to vector<32x128xf32>
    %177 = arith.subf %160, %176 : vector<32x128xf32>
    %cst_81 = arith.constant 9.99999997E-7 : f32
    %178 = vector.broadcast %cst_81 : f32 to vector<32x1xf32>
    %179 = arith.addf %175, %178 : vector<32x1xf32>
    %180 = math.rsqrt %179 : vector<32x1xf32>
    %181 = vector.broadcast %180 : vector<32x1xf32> to vector<32x128xf32>
    %182 = arith.mulf %177, %181 : vector<32x128xf32>
    %183 = vector.broadcast %162 : vector<1x128xf32> to vector<32x128xf32>
    %184 = arith.mulf %182, %183 : vector<32x128xf32>
    %185 = vector.broadcast %164 : vector<1x128xf32> to vector<32x128xf32>
    %186 = arith.addf %184, %185 : vector<32x128xf32>
    %187 = arith.truncf %186 : vector<32x128xf32> to vector<32x128xbf16>
    %c1_82 = arith.constant 1 : index
    %c0_83 = arith.constant 0 : index
    %c0_84 = arith.constant 0 : index
    %188 = vector.load %arg7[%c1_82, %c0_83, %c0_84] : memref<2x128x384xbf16, #tpu.memory_space<vmem>>, vector<1x128x384xbf16>
    %189 = vector.shape_cast %188 : vector<1x128x384xbf16> to vector<128x384xbf16>
    %cst_85 = arith.constant dense<0.000000e+00> : vector<32x384xf32>
    %190 = tpu.matmul %187, %189, %cst_85 {dimension_numbers = #tpu.dot_dimension_numbers<[1], [0], [0], [1], [0, 0, 1, 1], [], []>} : vector<32x128xbf16>, vector<128x384xbf16>, vector<32x384xf32> -> vector<32x384xf32>
    %c1_86 = arith.constant 1 : index
    %c0_87 = arith.constant 0 : index
    %c0_88 = arith.constant 0 : index
    %191 = vector.load %arg8[%c1_86, %c0_87, %c0_88] : memref<2x1x384xf32, #tpu.memory_space<vmem>>, vector<1x1x384xf32>
    %192 = vector.shape_cast %191 : vector<1x1x384xf32> to vector<1x384xf32>
    %193 = vector.broadcast %192 : vector<1x384xf32> to vector<32x384xf32>
    %194 = arith.addf %190, %193 : vector<32x384xf32>
    %195 = vector.extract_strided_slice %194 {offsets = [0, 0], sizes = [32, 128], strides = [1, 1]} : vector<32x384xf32> to vector<32x128xf32>
    %196 = arith.truncf %195 : vector<32x128xf32> to vector<32x128xbf16>
    %197 = vector.extract_strided_slice %194 {offsets = [0, 128], sizes = [32, 128], strides = [1, 1]} : vector<32x384xf32> to vector<32x128xf32>
    %198 = arith.truncf %197 : vector<32x128xf32> to vector<32x128xbf16>
    %199 = vector.extract_strided_slice %194 {offsets = [0, 256], sizes = [32, 128], strides = [1, 1]} : vector<32x384xf32> to vector<32x128xf32>
    %200 = arith.truncf %199 : vector<32x128xf32> to vector<32x128xbf16>
    %201 = vector.extract_strided_slice %196 {offsets = [0, 0], sizes = [16, 128], strides = [1, 1]} : vector<32x128xbf16> to vector<16x128xbf16>
    %202 = vector.shape_cast %201 : vector<16x128xbf16> to vector<16x4x32xbf16>
    %203 = vector.extract_strided_slice %198 {offsets = [0, 0], sizes = [16, 128], strides = [1, 1]} : vector<32x128xbf16> to vector<16x128xbf16>
    %204 = vector.shape_cast %203 : vector<16x128xbf16> to vector<16x4x32xbf16>
    %205 = vector.extract_strided_slice %200 {offsets = [0, 0], sizes = [16, 128], strides = [1, 1]} : vector<32x128xbf16> to vector<16x128xbf16>
    %206 = vector.shape_cast %205 : vector<16x128xbf16> to vector<16x4x32xbf16>
    "tpu.trace_start"() <{level = 10 : i32, message = "qhd,khd->hqk"}> : () -> ()
    %cst_89 = arith.constant dense<0.000000e+00> : vector<4x16x16xf32>
    %207 = tpu.matmul %202, %204, %cst_89 {dimension_numbers = #tpu.dot_dimension_numbers<[2], [2], [0], [0], [0, 1, 0, 0, 1, 0], [1], [1]>} : vector<16x4x32xbf16>, vector<16x4x32xbf16>, vector<4x16x16xf32> -> vector<4x16x16xf32>
    "tpu.trace_stop"() : () -> ()
    %cst_90 = arith.constant 0.176776692 : f32
    %208 = vector.broadcast %cst_90 : f32 to vector<4x16x16xf32>
    %209 = arith.mulf %207, %208 : vector<4x16x16xf32>
    %cst_91 = arith.constant dense<0xFF800000> : vector<4x16xf32>
    %210 = vector.multi_reduction <maximumf>, %209, %cst_91 [2] : vector<4x16x16xf32> to vector<4x16xf32>
    %211 = vector.shape_cast %210 : vector<4x16xf32> to vector<4x16x1xf32>
    %212 = vector.broadcast %211 : vector<4x16x1xf32> to vector<4x16x16xf32>
    %213 = arith.subf %209, %212 : vector<4x16x16xf32>
    %214 = math.exp %213 : vector<4x16x16xf32>
    %cst_92 = arith.constant dense<0.000000e+00> : vector<4x16xf32>
    %215 = vector.multi_reduction <add>, %214, %cst_92 [2] : vector<4x16x16xf32> to vector<4x16xf32>
    %216 = vector.shape_cast %215 : vector<4x16xf32> to vector<4x16x1xf32>
    %217 = tpu.reciprocal %216 {approx = true} : vector<4x16x1xf32> -> vector<4x16x1xf32>
    %218 = vector.broadcast %217 : vector<4x16x1xf32> to vector<4x16x16xf32>
    %219 = arith.mulf %214, %218 : vector<4x16x16xf32>
    %220 = arith.truncf %219 : vector<4x16x16xf32> to vector<4x16x16xbf16>
    "tpu.trace_start"() <{level = 10 : i32, message = "hqk,khd->qhd"}> : () -> ()
    %cst_93 = arith.constant dense<0.000000e+00> : vector<4x32x16xf32>
    %221 = tpu.matmul %206, %220, %cst_93 {dimension_numbers = #tpu.dot_dimension_numbers<[0], [2], [2], [1], [0, 1, 0, 2, 1, 1], [1], [0]>} : vector<16x4x32xbf16>, vector<4x16x16xbf16>, vector<4x32x16xf32> -> vector<4x32x16xf32>
    %222 = tpu.transpose %221, [2, 0, 1] : vector<4x32x16xf32> -> vector<16x4x32xf32>
    "tpu.trace_stop"() : () -> ()
    %223 = vector.shape_cast %222 : vector<16x4x32xf32> to vector<16x128xf32>
    %224 = vector.extract_strided_slice %196 {offsets = [16, 0], sizes = [16, 128], strides = [1, 1]} : vector<32x128xbf16> to vector<16x128xbf16>
    %225 = vector.shape_cast %224 : vector<16x128xbf16> to vector<16x4x32xbf16>
    %226 = vector.extract_strided_slice %198 {offsets = [16, 0], sizes = [16, 128], strides = [1, 1]} : vector<32x128xbf16> to vector<16x128xbf16>
    %227 = vector.shape_cast %226 : vector<16x128xbf16> to vector<16x4x32xbf16>
    %228 = vector.extract_strided_slice %200 {offsets = [16, 0], sizes = [16, 128], strides = [1, 1]} : vector<32x128xbf16> to vector<16x128xbf16>
    %229 = vector.shape_cast %228 : vector<16x128xbf16> to vector<16x4x32xbf16>
    "tpu.trace_start"() <{level = 10 : i32, message = "qhd,khd->hqk"}> : () -> ()
    %cst_94 = arith.constant dense<0.000000e+00> : vector<4x16x16xf32>
    %230 = tpu.matmul %225, %227, %cst_94 {dimension_numbers = #tpu.dot_dimension_numbers<[2], [2], [0], [0], [0, 1, 0, 0, 1, 0], [1], [1]>} : vector<16x4x32xbf16>, vector<16x4x32xbf16>, vector<4x16x16xf32> -> vector<4x16x16xf32>
    "tpu.trace_stop"() : () -> ()
    %cst_95 = arith.constant 0.176776692 : f32
    %231 = vector.broadcast %cst_95 : f32 to vector<4x16x16xf32>
    %232 = arith.mulf %230, %231 : vector<4x16x16xf32>
    %cst_96 = arith.constant dense<0xFF800000> : vector<4x16xf32>
    %233 = vector.multi_reduction <maximumf>, %232, %cst_96 [2] : vector<4x16x16xf32> to vector<4x16xf32>
    %234 = vector.shape_cast %233 : vector<4x16xf32> to vector<4x16x1xf32>
    %235 = vector.broadcast %234 : vector<4x16x1xf32> to vector<4x16x16xf32>
    %236 = arith.subf %232, %235 : vector<4x16x16xf32>
    %237 = math.exp %236 : vector<4x16x16xf32>
    %cst_97 = arith.constant dense<0.000000e+00> : vector<4x16xf32>
    %238 = vector.multi_reduction <add>, %237, %cst_97 [2] : vector<4x16x16xf32> to vector<4x16xf32>
    %239 = vector.shape_cast %238 : vector<4x16xf32> to vector<4x16x1xf32>
    %240 = tpu.reciprocal %239 {approx = true} : vector<4x16x1xf32> -> vector<4x16x1xf32>
    %241 = vector.broadcast %240 : vector<4x16x1xf32> to vector<4x16x16xf32>
    %242 = arith.mulf %237, %241 : vector<4x16x16xf32>
    %243 = arith.truncf %242 : vector<4x16x16xf32> to vector<4x16x16xbf16>
    "tpu.trace_start"() <{level = 10 : i32, message = "hqk,khd->qhd"}> : () -> ()
    %cst_98 = arith.constant dense<0.000000e+00> : vector<4x32x16xf32>
    %244 = tpu.matmul %229, %243, %cst_98 {dimension_numbers = #tpu.dot_dimension_numbers<[0], [2], [2], [1], [0, 1, 0, 2, 1, 1], [1], [0]>} : vector<16x4x32xbf16>, vector<4x16x16xbf16>, vector<4x32x16xf32> -> vector<4x32x16xf32>
    %245 = tpu.transpose %244, [2, 0, 1] : vector<4x32x16xf32> -> vector<16x4x32xf32>
    "tpu.trace_stop"() : () -> ()
    %246 = vector.shape_cast %245 : vector<16x4x32xf32> to vector<16x128xf32>
    %247 = tpu.concatenate %223, %246 in 0 : vector<16x128xf32>, vector<16x128xf32> -> vector<32x128xf32>
    %248 = arith.truncf %247 : vector<32x128xf32> to vector<32x128xbf16>
    %c1_99 = arith.constant 1 : index
    %c0_100 = arith.constant 0 : index
    %c0_101 = arith.constant 0 : index
    %249 = vector.load %arg9[%c1_99, %c0_100, %c0_101] : memref<2x128x128xbf16, #tpu.memory_space<vmem>>, vector<1x128x128xbf16>
    %250 = vector.shape_cast %249 : vector<1x128x128xbf16> to vector<128x128xbf16>
    %cst_102 = arith.constant dense<0.000000e+00> : vector<32x128xf32>
    %251 = tpu.matmul %248, %250, %cst_102 {dimension_numbers = #tpu.dot_dimension_numbers<[1], [0], [0], [1], [0, 0, 1, 1], [], []>} : vector<32x128xbf16>, vector<128x128xbf16>, vector<32x128xf32> -> vector<32x128xf32>
    %c1_103 = arith.constant 1 : index
    %c0_104 = arith.constant 0 : index
    %c0_105 = arith.constant 0 : index
    %252 = vector.load %arg10[%c1_103, %c0_104, %c0_105] : memref<2x1x128xf32, #tpu.memory_space<vmem>>, vector<1x1x128xf32>
    %253 = vector.shape_cast %252 : vector<1x1x128xf32> to vector<1x128xf32>
    %254 = vector.broadcast %253 : vector<1x128xf32> to vector<32x128xf32>
    %255 = arith.addf %251, %254 : vector<32x128xf32>
    %256 = arith.addf %160, %255 : vector<32x128xf32>
    %c1_106 = arith.constant 1 : index
    %c0_107 = arith.constant 0 : index
    %c0_108 = arith.constant 0 : index
    %257 = vector.load %arg11[%c1_106, %c0_107, %c0_108] : memref<2x1x128xf32, #tpu.memory_space<vmem>>, vector<1x1x128xf32>
    %258 = vector.shape_cast %257 : vector<1x1x128xf32> to vector<1x128xf32>
    %c1_109 = arith.constant 1 : index
    %c0_110 = arith.constant 0 : index
    %c0_111 = arith.constant 0 : index
    %259 = vector.load %arg12[%c1_109, %c0_110, %c0_111] : memref<2x1x128xf32, #tpu.memory_space<vmem>>, vector<1x1x128xf32>
    %260 = vector.shape_cast %259 : vector<1x1x128xf32> to vector<1x128xf32>
    %cst_112 = arith.constant dense<0.000000e+00> : vector<32xf32>
    %261 = vector.multi_reduction <add>, %256, %cst_112 [1] : vector<32x128xf32> to vector<32xf32>
    %262 = vector.shape_cast %261 : vector<32xf32> to vector<32x1xf32>
    %cst_113 = arith.constant 1.280000e+02 : f32
    %263 = vector.broadcast %cst_113 : f32 to vector<32x1xf32>
    %264 = arith.divf %262, %263 : vector<32x1xf32>
    %265 = arith.mulf %256, %256 : vector<32x128xf32>
    %cst_114 = arith.constant dense<0.000000e+00> : vector<32xf32>
    %266 = vector.multi_reduction <add>, %265, %cst_114 [1] : vector<32x128xf32> to vector<32xf32>
    %267 = vector.shape_cast %266 : vector<32xf32> to vector<32x1xf32>
    %cst_115 = arith.constant 1.280000e+02 : f32
    %268 = vector.broadcast %cst_115 : f32 to vector<32x1xf32>
    %269 = arith.divf %267, %268 : vector<32x1xf32>
    %270 = arith.mulf %264, %264 : vector<32x1xf32>
    %271 = arith.subf %269, %270 : vector<32x1xf32>
    %272 = vector.broadcast %264 : vector<32x1xf32> to vector<32x128xf32>
    %273 = arith.subf %256, %272 : vector<32x128xf32>
    %cst_116 = arith.constant 9.99999997E-7 : f32
    %274 = vector.broadcast %cst_116 : f32 to vector<32x1xf32>
    %275 = arith.addf %271, %274 : vector<32x1xf32>
    %276 = math.rsqrt %275 : vector<32x1xf32>
    %277 = vector.broadcast %276 : vector<32x1xf32> to vector<32x128xf32>
    %278 = arith.mulf %273, %277 : vector<32x128xf32>
    %279 = vector.broadcast %258 : vector<1x128xf32> to vector<32x128xf32>
    %280 = arith.mulf %278, %279 : vector<32x128xf32>
    %281 = vector.broadcast %260 : vector<1x128xf32> to vector<32x128xf32>
    %282 = arith.addf %280, %281 : vector<32x128xf32>
    %283 = arith.truncf %282 : vector<32x128xf32> to vector<32x128xbf16>
    %c1_117 = arith.constant 1 : index
    %c0_118 = arith.constant 0 : index
    %c0_119 = arith.constant 0 : index
    %284 = vector.load %arg13[%c1_117, %c0_118, %c0_119] : memref<2x128x256xbf16, #tpu.memory_space<vmem>>, vector<1x128x256xbf16>
    %285 = vector.shape_cast %284 : vector<1x128x256xbf16> to vector<128x256xbf16>
    %cst_120 = arith.constant dense<0.000000e+00> : vector<32x256xf32>
    %286 = tpu.matmul %283, %285, %cst_120 {dimension_numbers = #tpu.dot_dimension_numbers<[1], [0], [0], [1], [0, 0, 1, 1], [], []>} : vector<32x128xbf16>, vector<128x256xbf16>, vector<32x256xf32> -> vector<32x256xf32>
    %c1_121 = arith.constant 1 : index
    %c0_122 = arith.constant 0 : index
    %c0_123 = arith.constant 0 : index
    %287 = vector.load %arg14[%c1_121, %c0_122, %c0_123] : memref<2x1x256xf32, #tpu.memory_space<vmem>>, vector<1x1x256xf32>
    %288 = vector.shape_cast %287 : vector<1x1x256xf32> to vector<1x256xf32>
    %289 = vector.broadcast %288 : vector<1x256xf32> to vector<32x256xf32>
    %290 = arith.addf %286, %289 : vector<32x256xf32>
    %cst_124 = arith.constant 5.000000e-01 : f32
    %291 = vector.broadcast %cst_124 : f32 to vector<32x256xf32>
    %292 = arith.mulf %291, %290 : vector<32x256xf32>
    %cst_125 = arith.constant 4.471500e-02 : f32
    %293 = vector.broadcast %cst_125 : f32 to vector<32x256xf32>
    %294 = arith.mulf %293, %290 : vector<32x256xf32>
    %295 = arith.mulf %294, %290 : vector<32x256xf32>
    %296 = arith.mulf %295, %290 : vector<32x256xf32>
    %297 = arith.addf %290, %296 : vector<32x256xf32>
    %cst_126 = arith.constant 0.797884583 : f32
    %298 = vector.broadcast %cst_126 : f32 to vector<32x256xf32>
    %299 = arith.mulf %298, %297 : vector<32x256xf32>
    %300 = math.tanh %299 : vector<32x256xf32>
    %cst_127 = arith.constant 1.000000e+00 : f32
    %301 = vector.broadcast %cst_127 : f32 to vector<32x256xf32>
    %302 = arith.addf %301, %300 : vector<32x256xf32>
    %303 = arith.mulf %292, %302 : vector<32x256xf32>
    %304 = arith.truncf %303 : vector<32x256xf32> to vector<32x256xbf16>
    %c1_128 = arith.constant 1 : index
    %c0_129 = arith.constant 0 : index
    %c0_130 = arith.constant 0 : index
    %305 = vector.load %arg15[%c1_128, %c0_129, %c0_130] : memref<2x256x128xbf16, #tpu.memory_space<vmem>>, vector<1x256x128xbf16>
    %306 = vector.shape_cast %305 : vector<1x256x128xbf16> to vector<256x128xbf16>
    %cst_131 = arith.constant dense<0.000000e+00> : vector<32x128xf32>
    %307 = tpu.matmul %304, %306, %cst_131 {dimension_numbers = #tpu.dot_dimension_numbers<[1], [0], [0], [1], [0, 0, 1, 1], [], []>} : vector<32x256xbf16>, vector<256x128xbf16>, vector<32x128xf32> -> vector<32x128xf32>
    %308 = arith.addf %256, %307 : vector<32x128xf32>
    %c1_132 = arith.constant 1 : index
    %c0_133 = arith.constant 0 : index
    %c0_134 = arith.constant 0 : index
    %309 = vector.load %arg16[%c1_132, %c0_133, %c0_134] : memref<2x1x128xf32, #tpu.memory_space<vmem>>, vector<1x1x128xf32>
    %310 = vector.shape_cast %309 : vector<1x1x128xf32> to vector<1x128xf32>
    %311 = vector.broadcast %310 : vector<1x128xf32> to vector<32x128xf32>
    %312 = arith.addf %308, %311 : vector<32x128xf32>
    %c0_135 = arith.constant 0 : index
    %c0_136 = arith.constant 0 : index
    %313 = vector.load %arg17[%c0_135, %c0_136] : memref<1x128xf32, #tpu.memory_space<vmem>>, vector<1x128xf32>
    %c0_137 = arith.constant 0 : index
    %c0_138 = arith.constant 0 : index
    %314 = vector.load %arg18[%c0_137, %c0_138] : memref<1x128xf32, #tpu.memory_space<vmem>>, vector<1x128xf32>
    %cst_139 = arith.constant dense<0.000000e+00> : vector<32xf32>
    %315 = vector.multi_reduction <add>, %312, %cst_139 [1] : vector<32x128xf32> to vector<32xf32>
    %316 = vector.shape_cast %315 : vector<32xf32> to vector<32x1xf32>
    %cst_140 = arith.constant 1.280000e+02 : f32
    %317 = vector.broadcast %cst_140 : f32 to vector<32x1xf32>
    %318 = arith.divf %316, %317 : vector<32x1xf32>
    %319 = arith.mulf %312, %312 : vector<32x128xf32>
    %cst_141 = arith.constant dense<0.000000e+00> : vector<32xf32>
    %320 = vector.multi_reduction <add>, %319, %cst_141 [1] : vector<32x128xf32> to vector<32xf32>
    %321 = vector.shape_cast %320 : vector<32xf32> to vector<32x1xf32>
    %cst_142 = arith.constant 1.280000e+02 : f32
    %322 = vector.broadcast %cst_142 : f32 to vector<32x1xf32>
    %323 = arith.divf %321, %322 : vector<32x1xf32>
    %324 = arith.mulf %318, %318 : vector<32x1xf32>
    %325 = arith.subf %323, %324 : vector<32x1xf32>
    %326 = vector.broadcast %318 : vector<32x1xf32> to vector<32x128xf32>
    %327 = arith.subf %312, %326 : vector<32x128xf32>
    %cst_143 = arith.constant 9.99999997E-7 : f32
    %328 = vector.broadcast %cst_143 : f32 to vector<32x1xf32>
    %329 = arith.addf %325, %328 : vector<32x1xf32>
    %330 = math.rsqrt %329 : vector<32x1xf32>
    %331 = vector.broadcast %330 : vector<32x1xf32> to vector<32x128xf32>
    %332 = arith.mulf %327, %331 : vector<32x128xf32>
    %333 = vector.broadcast %313 : vector<1x128xf32> to vector<32x128xf32>
    %334 = arith.mulf %332, %333 : vector<32x128xf32>
    %335 = vector.broadcast %314 : vector<1x128xf32> to vector<32x128xf32>
    %336 = arith.addf %334, %335 : vector<32x128xf32>
    %c0_144 = arith.constant 0 : index
    %c0_145 = arith.constant 0 : index
    %c0_146 = arith.constant 0 : index
    %337 = vector.load %arg19[%c0_144, %c0_145, %c0_146] : memref<1x32x128xf32, #tpu.memory_space<vmem>>, vector<1x32x128xf32>
    %338 = vector.shape_cast %337 : vector<1x32x128xf32> to vector<32x128xf32>
    %339 = vector.shape_cast %336 : vector<32x128xf32> to vector<1x32x128xf32>
    tpu.vector_store %arg19[%c0_144, %c0_145, %c0_146], %339 {strides = array<i32>} : memref<1x32x128xf32, #tpu.memory_space<vmem>>, vector<1x32x128xf32>,
    return
  }
  func.func @transform_0(%arg0: i32) -> (i32, i32, i32) {
    %c0_i32 = arith.constant 0 : i32
    %c0_i32_0 = arith.constant 0 : i32
    %c0_i32_1 = arith.constant 0 : i32
    return %arg0, %c0_i32, %c0_i32_0 : i32, i32, i32
  }
  func.func @transform_1(%arg0: i32) -> (i32, i32) {
    %c0_i32 = arith.constant 0 : i32
    %c0_i32_0 = arith.constant 0 : i32
    %c0_i32_1 = arith.constant 0 : i32
    return %c0_i32, %c0_i32_0 : i32, i32
  }
  func.func @transform_2(%arg0: i32) -> (i32, i32) {
    %c0_i32 = arith.constant 0 : i32
    %c0_i32_0 = arith.constant 0 : i32
    %c0_i32_1 = arith.constant 0 : i32
    return %c0_i32, %c0_i32_0 : i32, i32
  }
  func.func @transform_3(%arg0: i32) -> (i32, i32) {
    %c0_i32 = arith.constant 0 : i32
    %c0_i32_0 = arith.constant 0 : i32
    %c0_i32_1 = arith.constant 0 : i32
    return %c0_i32, %c0_i32_0 : i32, i32
  }
  func.func @transform_4(%arg0: i32) -> (i32, i32, i32) {
    %c0_i32 = arith.constant 0 : i32
    %c0_i32_0 = arith.constant 0 : i32
    %c0_i32_1 = arith.constant 0 : i32
    %c0_i32_2 = arith.constant 0 : i32
    return %c0_i32, %c0_i32_0, %c0_i32_1 : i32, i32, i32
  }
  func.func @transform_5(%arg0: i32) -> (i32, i32, i32) {
    %c0_i32 = arith.constant 0 : i32
    %c0_i32_0 = arith.constant 0 : i32
    %c0_i32_1 = arith.constant 0 : i32
    %c0_i32_2 = arith.constant 0 : i32
    return %c0_i32, %c0_i32_0, %c0_i32_1 : i32, i32, i32
  }
  func.func @transform_6(%arg0: i32) -> (i32, i32, i32) {
    %c0_i32 = arith.constant 0 : i32
    %c0_i32_0 = arith.constant 0 : i32
    %c0_i32_1 = arith.constant 0 : i32
    %c0_i32_2 = arith.constant 0 : i32
    return %c0_i32, %c0_i32_0, %c0_i32_1 : i32, i32, i32
  }
  func.func @transform_7(%arg0: i32) -> (i32, i32, i32) {
    %c0_i32 = arith.constant 0 : i32
    %c0_i32_0 = arith.constant 0 : i32
    %c0_i32_1 = arith.constant 0 : i32
    %c0_i32_2 = arith.constant 0 : i32
    return %c0_i32, %c0_i32_0, %c0_i32_1 : i32, i32, i32
  }
  func.func @transform_8(%arg0: i32) -> (i32, i32, i32) {
    %c0_i32 = arith.constant 0 : i32
    %c0_i32_0 = arith.constant 0 : i32
    %c0_i32_1 = arith.constant 0 : i32
    %c0_i32_2 = arith.constant 0 : i32
    return %c0_i32, %c0_i32_0, %c0_i32_1 : i32, i32, i32
  }
  func.func @transform_9(%arg0: i32) -> (i32, i32, i32) {
    %c0_i32 = arith.constant 0 : i32
    %c0_i32_0 = arith.constant 0 : i32
    %c0_i32_1 = arith.constant 0 : i32
    %c0_i32_2 = arith.constant 0 : i32
    return %c0_i32, %c0_i32_0, %c0_i32_1 : i32, i32, i32
  }
  func.func @transform_10(%arg0: i32) -> (i32, i32, i32) {
    %c0_i32 = arith.constant 0 : i32
    %c0_i32_0 = arith.constant 0 : i32
    %c0_i32_1 = arith.constant 0 : i32
    %c0_i32_2 = arith.constant 0 : i32
    return %c0_i32, %c0_i32_0, %c0_i32_1 : i32, i32, i32
  }
  func.func @transform_11(%arg0: i32) -> (i32, i32, i32) {
    %c0_i32 = arith.constant 0 : i32
    %c0_i32_0 = arith.constant 0 : i32
    %c0_i32_1 = arith.constant 0 : i32
    %c0_i32_2 = arith.constant 0 : i32
    return %c0_i32, %c0_i32_0, %c0_i32_1 : i32, i32, i32
  }
  func.func @transform_12(%arg0: i32) -> (i32, i32, i32) {
    %c0_i32 = arith.constant 0 : i32
    %c0_i32_0 = arith.constant 0 : i32
    %c0_i32_1 = arith.constant 0 : i32
    %c0_i32_2 = arith.constant 0 : i32
    return %c0_i32, %c0_i32_0, %c0_i32_1 : i32, i32, i32
  }
  func.func @transform_13(%arg0: i32) -> (i32, i32, i32) {
    %c0_i32 = arith.constant 0 : i32
    %c0_i32_0 = arith.constant 0 : i32
    %c0_i32_1 = arith.constant 0 : i32
    %c0_i32_2 = arith.constant 0 : i32
    return %c0_i32, %c0_i32_0, %c0_i32_1 : i32, i32, i32
  }
  func.func @transform_14(%arg0: i32) -> (i32, i32, i32) {
    %c0_i32 = arith.constant 0 : i32
    %c0_i32_0 = arith.constant 0 : i32
    %c0_i32_1 = arith.constant 0 : i32
    %c0_i32_2 = arith.constant 0 : i32
    return %c0_i32, %c0_i32_0, %c0_i32_1 : i32, i32, i32
  }
  func.func @transform_15(%arg0: i32) -> (i32, i32, i32) {
    %c0_i32 = arith.constant 0 : i32
    %c0_i32_0 = arith.constant 0 : i32
    %c0_i32_1 = arith.constant 0 : i32
    %c0_i32_2 = arith.constant 0 : i32
    return %c0_i32, %c0_i32_0, %c0_i32_1 : i32, i32, i32
  }
  func.func @transform_16(%arg0: i32) -> (i32, i32) {
    %c0_i32 = arith.constant 0 : i32
    %c0_i32_0 = arith.constant 0 : i32
    %c0_i32_1 = arith.constant 0 : i32
    return %c0_i32, %c0_i32_0 : i32, i32
  }
  func.func @transform_17(%arg0: i32) -> (i32, i32) {
    %c0_i32 = arith.constant 0 : i32
    %c0_i32_0 = arith.constant 0 : i32
    %c0_i32_1 = arith.constant 0 : i32
    return %c0_i32, %c0_i32_0 : i32, i32
  }
  func.func @transform_18(%arg0: i32) -> (i32, i32, i32) {
    %c0_i32 = arith.constant 0 : i32
    %c0_i32_0 = arith.constant 0 : i32
    %c0_i32_1 = arith.constant 0 : i32
    return %arg0, %c0_i32, %c0_i32_0 : i32, i32, i32
  }
}

module attributes {stable_mosaic.version = 11 : i64} {
  func.func @siglip_fused_kernel(%arg0: i32, %arg1: memref<1x32x192xbf16, #tpu.memory_space<vmem>>, %arg2: memref<192x128xbf16, #tpu.memory_space<vmem>>, %arg3: memref<1x128xf32, #tpu.memory_space<vmem>>, %arg4: memref<32x128xf32, #tpu.memory_space<vmem>>, %arg5: memref<2x1x128xf32, #tpu.memory_space<vmem>>, %arg6: memref<2x1x128xf32, #tpu.memory_space<vmem>>, %arg7: memref<2x128x384xbf16, #tpu.memory_space<vmem>>, %arg8: memref<2x1x384xf32, #tpu.memory_space<vmem>>, %arg9: memref<2x128x128xbf16, #tpu.memory_space<vmem>>, %arg10: memref<2x1x128xf32, #tpu.memory_space<vmem>>, %arg11: memref<2x1x128xf32, #tpu.memory_space<vmem>>, %arg12: memref<2x1x128xf32, #tpu.memory_space<vmem>>, %arg13: memref<2x128x256xbf16, #tpu.memory_space<vmem>>, %arg14: memref<2x1x256xf32, #tpu.memory_space<vmem>>, %arg15: memref<2x256x128xbf16, #tpu.memory_space<vmem>>, %arg16: memref<2x1x128xf32, #tpu.memory_space<vmem>>, %arg17: memref<1x128xf32, #tpu.memory_space<vmem>>, %arg18: memref<1x128xf32, #tpu.memory_space<vmem>>, %arg19: memref<1x32x128xf32, #tpu.memory_space<vmem>>) attributes {dimension_semantics = [#tpu.dimension_semantics<parallel>], iteration_bounds = array<i64: 1>, scalar_prefetch = 0 : i64, scratch_operands = 0 : i64, tpu.core_type = #tpu.core_type<tc>, window_params = [{transform_indices = @transform_0, window_bounds = array<i64: 1, 32, 192>}, {pipeline_mode = #tpu.pipeline_mode<synchronous>, transform_indices = @transform_1, window_bounds = array<i64: 192, 128>}, {pipeline_mode = #tpu.pipeline_mode<synchronous>, transform_indices = @transform_2, window_bounds = array<i64: 1, 128>}, {pipeline_mode = #tpu.pipeline_mode<synchronous>, transform_indices = @transform_3, window_bounds = array<i64: 32, 128>}, {pipeline_mode = #tpu.pipeline_mode<synchronous>, transform_indices = @transform_4, window_bounds = array<i64: 2, 1, 128>}, {pipeline_mode = #tpu.pipeline_mode<synchronous>, transform_indices = @transform_5, window_bounds = array<i64: 2, 1, 128>}, {pipeline_mode = #tpu.pipeline_mode<synchronous>, transform_indices = @transform_6, window_bounds = array<i64: 2, 128, 384>}, {pipeline_mode = #tpu.pipeline_mode<synchronous>, transform_indices = @transform_7, window_bounds = array<i64: 2, 1, 384>}, {pipeline_mode = #tpu.pipeline_mode<synchronous>, transform_indices = @transform_8, window_bounds = array<i64: 2, 128, 128>}, {pipeline_mode = #tpu.pipeline_mode<synchronous>, transform_indices = @transform_9, window_bounds = array<i64: 2, 1, 128>}, {pipeline_mode = #tpu.pipeline_mode<synchronous>, transform_indices = @transform_10, window_bounds = array<i64: 2, 1, 128>}, {pipeline_mode = #tpu.pipeline_mode<synchronous>, transform_indices = @transform_11, window_bounds = array<i64: 2, 1, 128>}, {pipeline_mode = #tpu.pipeline_mode<synchronous>, transform_indices = @transform_12, window_bounds = array<i64: 2, 128, 256>}, {pipeline_mode = #tpu.pipeline_mode<synchronous>, transform_indices = @transform_13, window_bounds = array<i64: 2, 1, 256>}, {pipeline_mode = #tpu.pipeline_mode<synchronous>, transform_indices = @transform_14, window_bounds = array<i64: 2, 256, 128>}, {pipeline_mode = #tpu.pipeline_mode<synchronous>, transform_indices = @transform_15, window_bounds = array<i64: 2, 1, 128>}, {pipeline_mode = #tpu.pipeline_mode<synchronous>, transform_indices = @transform_16, window_bounds = array<i64: 1, 128>}, {pipeline_mode = #tpu.pipeline_mode<synchronous>, transform_indices = @transform_17, window_bounds = array<i64: 1, 128>}, {transform_indices = @transform_18, window_bounds = array<i64: 1, 32, 128>}]} {
    %c0 = arith.constant 0 : index
    %c0_0 = arith.constant 0 : index
    %c0_1 = arith.constant 0 : index
    %0 = vector.load %arg1[%c0, %c0_0, %c0_1] : memref<1x32x192xbf16, #tpu.memory_space<vmem>>, vector<1x32x192xbf16>
    %1 = vector.shape_cast %0 : vector<1x32x192xbf16> to vector<32x192xbf16>
    %c0_2 = arith.constant 0 : index
    %c0_3 = arith.constant 0 : index
    %2 = vector.load %arg2[%c0_2, %c0_3] : memref<192x128xbf16, #tpu.memory_space<vmem>>, vector<192x128xbf16>
    %cst = arith.constant dense<0.000000e+00> : vector<32x128xf32>
    %3 = tpu.matmul %1, %2, %cst {dimension_numbers = #tpu.dot_dimension_numbers<[1], [0], [0], [1], [0, 0, 1, 1], [], []>} : vector<32x192xbf16>, vector<192x128xbf16>, vector<32x128xf32> -> vector<32x128xf32>
    %c0_4 = arith.constant 0 : index
    %c0_5 = arith.constant 0 : index
    %4 = vector.load %arg3[%c0_4, %c0_5] : memref<1x128xf32, #tpu.memory_space<vmem>>, vector<1x128xf32>
    %5 = vector.broadcast %4 : vector<1x128xf32> to vector<32x128xf32>
    %6 = arith.addf %3, %5 : vector<32x128xf32>
    %c0_6 = arith.constant 0 : index
    %c0_7 = arith.constant 0 : index
    %7 = vector.load %arg4[%c0_6, %c0_7] : memref<32x128xf32, #tpu.memory_space<vmem>>, vector<32x128xf32>
    %8 = arith.addf %6, %7 : vector<32x128xf32>
    %c0_8 = arith.constant 0 : index
    %c0_9 = arith.constant 0 : index
    %c0_10 = arith.constant 0 : index
    %9 = vector.load %arg5[%c0_8, %c0_9, %c0_10] : memref<2x1x128xf32, #tpu.memory_space<vmem>>, vector<1x1x128xf32>
    %10 = vector.shape_cast %9 : vector<1x1x128xf32> to vector<1x128xf32>
    %c0_11 = arith.constant 0 : index
    %c0_12 = arith.constant 0 : index
    %c0_13 = arith.constant 0 : index
    %11 = vector.load %arg6[%c0_11, %c0_12, %c0_13] : memref<2x1x128xf32, #tpu.memory_space<vmem>>, vector<1x1x128xf32>
    %12 = vector.shape_cast %11 : vector<1x1x128xf32> to vector<1x128xf32>
    %cst_14 = arith.constant dense<0.000000e+00> : vector<32xf32>
    %13 = vector.multi_reduction <add>, %8, %cst_14 [1] : vector<32x128xf32> to vector<32xf32>
    %14 = vector.shape_cast %13 : vector<32xf32> to vector<32x1xf32>
    %cst_15 = arith.constant 1.280000e+02 : f32
    %15 = vector.broadcast %cst_15 : f32 to vector<32x1xf32>
    %16 = arith.divf %14, %15 : vector<32x1xf32>
    %17 = arith.mulf %8, %8 : vector<32x128xf32>
    %cst_16 = arith.constant dense<0.000000e+00> : vector<32xf32>
    %18 = vector.multi_reduction <add>, %17, %cst_16 [1] : vector<32x128xf32> to vector<32xf32>
    %19 = vector.shape_cast %18 : vector<32xf32> to vector<32x1xf32>
    %cst_17 = arith.constant 1.280000e+02 : f32
    %20 = vector.broadcast %cst_17 : f32 to vector<32x1xf32>
    %21 = arith.divf %19, %20 : vector<32x1xf32>
    %22 = arith.mulf %16, %16 : vector<32x1xf32>
    %23 = arith.subf %21, %22 : vector<32x1xf32>
    %24 = vector.broadcast %16 : vector<32x1xf32> to vector<32x128xf32>
    %25 = arith.subf %8, %24 : vector<32x128xf32>
    %cst_18 = arith.constant 9.99999997E-7 : f32
    %26 = vector.broadcast %cst_18 : f32 to vector<32x1xf32>
    %27 = arith.addf %23, %26 : vector<32x1xf32>
    %28 = math.rsqrt %27 : vector<32x1xf32>
    %29 = vector.broadcast %28 : vector<32x1xf32> to vector<32x128xf32>
    %30 = arith.mulf %25, %29 : vector<32x128xf32>
    %31 = vector.broadcast %10 : vector<1x128xf32> to vector<32x128xf32>
    %32 = arith.mulf %30, %31 : vector<32x128xf32>
    %33 = vector.broadcast %12 : vector<1x128xf32> to vector<32x128xf32>
    %34 = arith.addf %32, %33 : vector<32x128xf32>
    %35 = arith.truncf %34 : vector<32x128xf32> to vector<32x128xbf16>
    %c0_19 = arith.constant 0 : index
    %c0_20 = arith.constant 0 : index
    %c0_21 = arith.constant 0 : index
    %36 = vector.load %arg7[%c0_19, %c0_20, %c0_21] : memref<2x128x384xbf16, #tpu.memory_space<vmem>>, vector<1x128x384xbf16>
    %37 = vector.shape_cast %36 : vector<1x128x384xbf16> to vector<128x384xbf16>
    %cst_22 = arith.constant dense<0.000000e+00> : vector<32x384xf32>
    %38 = tpu.matmul %35, %37, %cst_22 {dimension_numbers = #tpu.dot_dimension_numbers<[1], [0], [0], [1], [0, 0, 1, 1], [], []>} : vector<32x128xbf16>, vector<128x384xbf16>, vector<32x384xf32> -> vector<32x384xf32>
    %c0_23 = arith.constant 0 : index
    %c0_24 = arith.constant 0 : index
    %c0_25 = arith.constant 0 : index
    %39 = vector.load %arg8[%c0_23, %c0_24, %c0_25] : memref<2x1x384xf32, #tpu.memory_space<vmem>>, vector<1x1x384xf32>
    %40 = vector.shape_cast %39 : vector<1x1x384xf32> to vector<1x384xf32>
    %41 = vector.broadcast %40 : vector<1x384xf32> to vector<32x384xf32>
    %42 = arith.addf %38, %41 : vector<32x384xf32>
    %43 = vector.extract_strided_slice %42 {offsets = [0, 0], sizes = [32, 128], strides = [1, 1]} : vector<32x384xf32> to vector<32x128xf32>
    %44 = arith.truncf %43 : vector<32x128xf32> to vector<32x128xbf16>
    %45 = vector.extract_strided_slice %42 {offsets = [0, 128], sizes = [32, 128], strides = [1, 1]} : vector<32x384xf32> to vector<32x128xf32>
    %46 = arith.truncf %45 : vector<32x128xf32> to vector<32x128xbf16>
    %47 = vector.extract_strided_slice %42 {offsets = [0, 256], sizes = [32, 128], strides = [1, 1]} : vector<32x384xf32> to vector<32x128xf32>
    %48 = arith.truncf %47 : vector<32x128xf32> to vector<32x128xbf16>
    %49 = vector.extract_strided_slice %44 {offsets = [0, 0], sizes = [16, 128], strides = [1, 1]} : vector<32x128xbf16> to vector<16x128xbf16>
    %50 = vector.shape_cast %49 : vector<16x128xbf16> to vector<16x4x32xbf16>
    %51 = vector.extract_strided_slice %46 {offsets = [0, 0], sizes = [16, 128], strides = [1, 1]} : vector<32x128xbf16> to vector<16x128xbf16>
    %52 = vector.shape_cast %51 : vector<16x128xbf16> to vector<16x4x32xbf16>
    %53 = vector.extract_strided_slice %48 {offsets = [0, 0], sizes = [16, 128], strides = [1, 1]} : vector<32x128xbf16> to vector<16x128xbf16>
    %54 = vector.shape_cast %53 : vector<16x128xbf16> to vector<16x4x32xbf16>
    "tpu.trace_start"() <{level = 10 : i32, message = "qhd,khd->hqk"}> : () -> ()
    %cst_26 = arith.constant dense<0.000000e+00> : vector<4x16x16xf32>
    %55 = tpu.matmul %50, %52, %cst_26 {dimension_numbers = #tpu.dot_dimension_numbers<[2], [2], [0], [0], [0, 1, 0, 0, 1, 0], [1], [1]>} : vector<16x4x32xbf16>, vector<16x4x32xbf16>, vector<4x16x16xf32> -> vector<4x16x16xf32>
    "tpu.trace_stop"() : () -> ()
    %cst_27 = arith.constant 0.176776692 : f32
    %56 = vector.broadcast %cst_27 : f32 to vector<4x16x16xf32>
    %57 = arith.mulf %55, %56 : vector<4x16x16xf32>
    %cst_28 = arith.constant dense<0xFF800000> : vector<4x16xf32>
    %58 = vector.multi_reduction <maximumf>, %57, %cst_28 [2] : vector<4x16x16xf32> to vector<4x16xf32>
    %59 = vector.shape_cast %58 : vector<4x16xf32> to vector<4x16x1xf32>
    %60 = vector.broadcast %59 : vector<4x16x1xf32> to vector<4x16x16xf32>
    %61 = arith.subf %57, %60 : vector<4x16x16xf32>
    %62 = math.exp %61 : vector<4x16x16xf32>
    %cst_29 = arith.constant dense<0.000000e+00> : vector<4x16xf32>
    %63 = vector.multi_reduction <add>, %62, %cst_29 [2] : vector<4x16x16xf32> to vector<4x16xf32>
    %64 = vector.shape_cast %63 : vector<4x16xf32> to vector<4x16x1xf32>
    %65 = tpu.reciprocal %64 {approx = true} : vector<4x16x1xf32> -> vector<4x16x1xf32>
    %66 = vector.broadcast %65 : vector<4x16x1xf32> to vector<4x16x16xf32>
    %67 = arith.mulf %62, %66 : vector<4x16x16xf32>
    %68 = arith.truncf %67 : vector<4x16x16xf32> to vector<4x16x16xbf16>
    "tpu.trace_start"() <{level = 10 : i32, message = "hqk,khd->qhd"}> : () -> ()
    %cst_30 = arith.constant dense<0.000000e+00> : vector<4x32x16xf32>
    %69 = tpu.matmul %54, %68, %cst_30 {dimension_numbers = #tpu.dot_dimension_numbers<[0], [2], [2], [1], [0, 1, 0, 2, 1, 1], [1], [0]>} : vector<16x4x32xbf16>, vector<4x16x16xbf16>, vector<4x32x16xf32> -> vector<4x32x16xf32>
    %70 = tpu.transpose %69, [2, 0, 1] : vector<4x32x16xf32> -> vector<16x4x32xf32>
    "tpu.trace_stop"() : () -> ()
    %71 = vector.shape_cast %70 : vector<16x4x32xf32> to vector<16x128xf32>
    %72 = vector.extract_strided_slice %44 {offsets = [16, 0], sizes = [16, 128], strides = [1, 1]} : vector<32x128xbf16> to vector<16x128xbf16>
    %73 = vector.shape_cast %72 : vector<16x128xbf16> to vector<16x4x32xbf16>
    %74 = vector.extract_strided_slice %46 {offsets = [16, 0], sizes = [16, 128], strides = [1, 1]} : vector<32x128xbf16> to vector<16x128xbf16>
    %75 = vector.shape_cast %74 : vector<16x128xbf16> to vector<16x4x32xbf16>
    %76 = vector.extract_strided_slice %48 {offsets = [16, 0], sizes = [16, 128], strides = [1, 1]} : vector<32x128xbf16> to vector<16x128xbf16>
    %77 = vector.shape_cast %76 : vector<16x128xbf16> to vector<16x4x32xbf16>
    "tpu.trace_start"() <{level = 10 : i32, message = "qhd,khd->hqk"}> : () -> ()
    %cst_31 = arith.constant dense<0.000000e+00> : vector<4x16x16xf32>
    %78 = tpu.matmul %73, %75, %cst_31 {dimension_numbers = #tpu.dot_dimension_numbers<[2], [2], [0], [0], [0, 1, 0, 0, 1, 0], [1], [1]>} : vector<16x4x32xbf16>, vector<16x4x32xbf16>, vector<4x16x16xf32> -> vector<4x16x16xf32>
    "tpu.trace_stop"() : () -> ()
    %cst_32 = arith.constant 0.176776692 : f32
    %79 = vector.broadcast %cst_32 : f32 to vector<4x16x16xf32>
    %80 = arith.mulf %78, %79 : vector<4x16x16xf32>
    %cst_33 = arith.constant dense<0xFF800000> : vector<4x16xf32>
    %81 = vector.multi_reduction <maximumf>, %80, %cst_33 [2] : vector<4x16x16xf32> to vector<4x16xf32>
    %82 = vector.shape_cast %81 : vector<4x16xf32> to vector<4x16x1xf32>
    %83 = vector.broadcast %82 : vector<4x16x1xf32> to vector<4x16x16xf32>
    %84 = arith.subf %80, %83 : vector<4x16x16xf32>
    %85 = math.exp %84 : vector<4x16x16xf32>
    %cst_34 = arith.constant dense<0.000000e+00> : vector<4x16xf32>
    %86 = vector.multi_reduction <add>, %85, %cst_34 [2] : vector<4x16x16xf32> to vector<4x16xf32>
    %87 = vector.shape_cast %86 : vector<4x16xf32> to vector<4x16x1xf32>
    %88 = tpu.reciprocal %87 {approx = true} : vector<4x16x1xf32> -> vector<4x16x1xf32>
    %89 = vector.broadcast %88 : vector<4x16x1xf32> to vector<4x16x16xf32>
    %90 = arith.mulf %85, %89 : vector<4x16x16xf32>
    %91 = arith.truncf %90 : vector<4x16x16xf32> to vector<4x16x16xbf16>
    "tpu.trace_start"() <{level = 10 : i32, message = "hqk,khd->qhd"}> : () -> ()
    %cst_35 = arith.constant dense<0.000000e+00> : vector<4x32x16xf32>
    %92 = tpu.matmul %77, %91, %cst_35 {dimension_numbers = #tpu.dot_dimension_numbers<[0], [2], [2], [1], [0, 1, 0, 2, 1, 1], [1], [0]>} : vector<16x4x32xbf16>, vector<4x16x16xbf16>, vector<4x32x16xf32> -> vector<4x32x16xf32>
    %93 = tpu.transpose %92, [2, 0, 1] : vector<4x32x16xf32> -> vector<16x4x32xf32>
    "tpu.trace_stop"() : () -> ()
    %94 = vector.shape_cast %93 : vector<16x4x32xf32> to vector<16x128xf32>
    %95 = tpu.concatenate %71, %94 in 0 : vector<16x128xf32>, vector<16x128xf32> -> vector<32x128xf32>
    %96 = arith.truncf %95 : vector<32x128xf32> to vector<32x128xbf16>
    %c0_36 = arith.constant 0 : index
    %c0_37 = arith.constant 0 : index
    %c0_38 = arith.constant 0 : index
    %97 = vector.load %arg9[%c0_36, %c0_37, %c0_38] : memref<2x128x128xbf16, #tpu.memory_space<vmem>>, vector<1x128x128xbf16>
    %98 = vector.shape_cast %97 : vector<1x128x128xbf16> to vector<128x128xbf16>
    %cst_39 = arith.constant dense<0.000000e+00> : vector<32x128xf32>
    %99 = tpu.matmul %96, %98, %cst_39 {dimension_numbers = #tpu.dot_dimension_numbers<[1], [0], [0], [1], [0, 0, 1, 1], [], []>} : vector<32x128xbf16>, vector<128x128xbf16>, vector<32x128xf32> -> vector<32x128xf32>
    %c0_40 = arith.constant 0 : index
    %c0_41 = arith.constant 0 : index
    %c0_42 = arith.constant 0 : index
    %100 = vector.load %arg10[%c0_40, %c0_41, %c0_42] : memref<2x1x128xf32, #tpu.memory_space<vmem>>, vector<1x1x128xf32>
    %101 = vector.shape_cast %100 : vector<1x1x128xf32> to vector<1x128xf32>
    %102 = vector.broadcast %101 : vector<1x128xf32> to vector<32x128xf32>
    %103 = arith.addf %99, %102 : vector<32x128xf32>
    %104 = arith.addf %8, %103 : vector<32x128xf32>
    %c0_43 = arith.constant 0 : index
    %c0_44 = arith.constant 0 : index
    %c0_45 = arith.constant 0 : index
    %105 = vector.load %arg11[%c0_43, %c0_44, %c0_45] : memref<2x1x128xf32, #tpu.memory_space<vmem>>, vector<1x1x128xf32>
    %106 = vector.shape_cast %105 : vector<1x1x128xf32> to vector<1x128xf32>
    %c0_46 = arith.constant 0 : index
    %c0_47 = arith.constant 0 : index
    %c0_48 = arith.constant 0 : index
    %107 = vector.load %arg12[%c0_46, %c0_47, %c0_48] : memref<2x1x128xf32, #tpu.memory_space<vmem>>, vector<1x1x128xf32>
    %108 = vector.shape_cast %107 : vector<1x1x128xf32> to vector<1x128xf32>
    %cst_49 = arith.constant dense<0.000000e+00> : vector<32xf32>
    %109 = vector.multi_reduction <add>, %104, %cst_49 [1] : vector<32x128xf32> to vector<32xf32>
    %110 = vector.shape_cast %109 : vector<32xf32> to vector<32x1xf32>
    %cst_50 = arith.constant 1.280000e+02 : f32
    %111 = vector.broadcast %cst_50 : f32 to vector<32x1xf32>
    %112 = arith.divf %110, %111 : vector<32x1xf32>
    %113 = arith.mulf %104, %104 : vector<32x128xf32>
    %cst_51 = arith.constant dense<0.000000e+00> : vector<32xf32>
    %114 = vector.multi_reduction <add>, %113, %cst_51 [1] : vector<32x128xf32> to vector<32xf32>
    %115 = vector.shape_cast %114 : vector<32xf32> to vector<32x1xf32>
    %cst_52 = arith.constant 1.280000e+02 : f32
    %116 = vector.broadcast %cst_52 : f32 to vector<32x1xf32>
    %117 = arith.divf %115, %116 : vector<32x1xf32>
    %118 = arith.mulf %112, %112 : vector<32x1xf32>
    %119 = arith.subf %117, %118 : vector<32x1xf32>
    %120 = vector.broadcast %112 : vector<32x1xf32> to vector<32x128xf32>
    %121 = arith.subf %104, %120 : vector<32x128xf32>
    %cst_53 = arith.constant 9.99999997E-7 : f32
    %122 = vector.broadcast %cst_53 : f32 to vector<32x1xf32>
    %123 = arith.addf %119, %122 : vector<32x1xf32>
    %124 = math.rsqrt %123 : vector<32x1xf32>
    %125 = vector.broadcast %124 : vector<32x1xf32> to vector<32x128xf32>
    %126 = arith.mulf %121, %125 : vector<32x128xf32>
    %127 = vector.broadcast %106 : vector<1x128xf32> to vector<32x128xf32>
    %128 = arith.mulf %126, %127 : vector<32x128xf32>
    %129 = vector.broadcast %108 : vector<1x128xf32> to vector<32x128xf32>
    %130 = arith.addf %128, %129 : vector<32x128xf32>
    %131 = arith.truncf %130 : vector<32x128xf32> to vector<32x128xbf16>
    %c0_54 = arith.constant 0 : index
    %c0_55 = arith.constant 0 : index
    %c0_56 = arith.constant 0 : index
    %132 = vector.load %arg13[%c0_54, %c0_55, %c0_56] : memref<2x128x256xbf16, #tpu.memory_space<vmem>>, vector<1x128x256xbf16>
    %133 = vector.shape_cast %132 : vector<1x128x256xbf16> to vector<128x256xbf16>
    %cst_57 = arith.constant dense<0.000000e+00> : vector<32x256xf32>
    %134 = tpu.matmul %131, %133, %cst_57 {dimension_numbers = #tpu.dot_dimension_numbers<[1], [0], [0], [1], [0, 0, 1, 1], [], []>} : vector<32x128xbf16>, vector<128x256xbf16>, vector<32x256xf32> -> vector<32x256xf32>
    %c0_58 = arith.constant 0 : index
    %c0_59 = arith.constant 0 : index
    %c0_60 = arith.constant 0 : index
    %135 = vector.load %arg14[%c0_58, %c0_59, %c0_60] : memref<2x1x256xf32, #tpu.memory_space<vmem>>, vector<1x1x256xf32>
    %136 = vector.shape_cast %135 : vector<1x1x256xf32> to vector<1x256xf32>
    %137 = vector.broadcast %136 : vector<1x256xf32> to vector<32x256xf32>
    %138 = arith.addf %134, %137 : vector<32x256xf32>
    %cst_61 = arith.constant 5.000000e-01 : f32
    %139 = vector.broadcast %cst_61 : f32 to vector<32x256xf32>
    %140 = arith.mulf %139, %138 : vector<32x256xf32>
    %cst_62 = arith.constant 4.471500e-02 : f32
    %141 = vector.broadcast %cst_62 : f32 to vector<32x256xf32>
    %142 = arith.mulf %141, %138 : vector<32x256xf32>
    %143 = arith.mulf %142, %138 : vector<32x256xf32>
    %144 = arith.mulf %143, %138 : vector<32x256xf32>
    %145 = arith.addf %138, %144 : vector<32x256xf32>
    %cst_63 = arith.constant 0.797884583 : f32
    %146 = vector.broadcast %cst_63 : f32 to vector<32x256xf32>
    %147 = arith.mulf %146, %145 : vector<32x256xf32>
    %148 = math.tanh %147 : vector<32x256xf32>
    %cst_64 = arith.constant 1.000000e+00 : f32
    %149 = vector.broadcast %cst_64 : f32 to vector<32x256xf32>
    %150 = arith.addf %149, %148 : vector<32x256xf32>
    %151 = arith.mulf %140, %150 : vector<32x256xf32>
    %152 = arith.truncf %151 : vector<32x256xf32> to vector<32x256xbf16>
    %c0_65 = arith.constant 0 : index
    %c0_66 = arith.constant 0 : index
    %c0_67 = arith.constant 0 : index
    %153 = vector.load %arg15[%c0_65, %c0_66, %c0_67] : memref<2x256x128xbf16, #tpu.memory_space<vmem>>, vector<1x256x128xbf16>
    %154 = vector.shape_cast %153 : vector<1x256x128xbf16> to vector<256x128xbf16>
    %cst_68 = arith.constant dense<0.000000e+00> : vector<32x128xf32>
    %155 = tpu.matmul %152, %154, %cst_68 {dimension_numbers = #tpu.dot_dimension_numbers<[1], [0], [0], [1], [0, 0, 1, 1], [], []>} : vector<32x256xbf16>, vector<256x128xbf16>, vector<32x128xf32> -> vector<32x128xf32>
    %156 = arith.addf %104, %155 : vector<32x128xf32>
    %c0_69 = arith.constant 0 : index
    %c0_70 = arith.constant 0 : index
    %c0_71 = arith.constant 0 : index
    %157 = vector.load %arg16[%c0_69, %c0_70, %c0_71] : memref<2x1x128xf32, #tpu.memory_space<vmem>>, vector<1x1x128xf32>
    %158 = vector.shape_cast %157 : vector<1x1x128xf32> to vector<1x128xf32>
    %159 = vector.broadcast %158 : vector<1x128xf32> to vector<32x128xf32>
    %160 = arith.addf %156, %159 : vector<32x128xf32>
    %c1 = arith.constant 1 : index
    %c0_72 = arith.constant 0 : index
    %c0_73 = arith.constant 0 : index
    %161 = vector.load %arg5[%c1, %c0_72, %c0_73] : memref<2x1x128xf32, #tpu.memory_space<vmem>>, vector<1x1x128xf32>
    %162 = vector.shape_cast %161 : vector<1x1x128xf32> to vector<1x128xf32>
    %c1_74 = arith.constant 1 : index
    %c0_75 = arith.constant 0 : index
    %c0_76 = arith.constant 0 : index
    %163 = vector.load %arg6[%c1_74, %c0_75, %c0_76] : memref<2x1x128xf32, #tpu.memory_space<vmem>>, vector<1x1x128xf32>
    %164 = vector.shape_cast %163 : vector<1x1x128xf32> to vector<1x128xf32>
    %cst_77 = arith.constant dense<0.000000e+00> : vector<32xf32>
    %165 = vector.multi_reduction <add>, %160, %cst_77 [1] : vector<32x128xf32> to vector<32xf32>
    %166 = vector.shape_cast %165 : vector<32xf32> to vector<32x1xf32>
    %cst_78 = arith.constant 1.280000e+02 : f32
    %167 = vector.broadcast %cst_78 : f32 to vector<32x1xf32>
    %168 = arith.divf %166, %167 : vector<32x1xf32>
    %169 = arith.mulf %160, %160 : vector<32x128xf32>
    %cst_79 = arith.constant dense<0.000000e+00> : vector<32xf32>
    %170 = vector.multi_reduction <add>, %169, %cst_79 [1] : vector<32x128xf32> to vector<32xf32>
    %171 = vector.shape_cast %170 : vector<32xf32> to vector<32x1xf32>
    %cst_80 = arith.constant 1.280000e+02 : f32
    %172 = vector.broadcast %cst_80 : f32 to vector<32x1xf32>
    %173 = arith.divf %171, %172 : vector<32x1xf32>
    %174 = arith.mulf %168, %168 : vector<32x1xf32>
    %175 = arith.subf %173, %174 : vector<32x1xf32>
    %176 = vector.broadcast %168 : vector<32x1xf32> to vector<32x128xf32>
    %177 = arith.subf %160, %176 : vector<32x128xf32>
    %cst_81 = arith.constant 9.99999997E-7 : f32
    %178 = vector.broadcast %cst_81 : f32 to vector<32x1xf32>
    %179 = arith.addf %175, %178 : vector<32x1xf32>
    %180 = math.rsqrt %179 : vector<32x1xf32>
    %181 = vector.broadcast %180 : vector<32x1xf32> to vector<32x128xf32>
    %182 = arith.mulf %177, %181 : vector<32x128xf32>
    %183 = vector.broadcast %162 : vector<1x128xf32> to vector<32x128xf32>
    %184 = arith.mulf %182, %183 : vector<32x128xf32>
    %185 = vector.broadcast %164 : vector<1x128xf32> to vector<32x128xf32>
    %186 = arith.addf %184, %185 : vector<32x128xf32>
    %187 = arith.truncf %186 : vector<32x128xf32> to vector<32x128xbf16>
    %c1_82 = arith.constant 1 : index
    %c0_83 = arith.constant 0 : index
    %c0_84 = arith.constant 0 : index
    %188 = vector.load %arg7[%c1_82, %c0_83, %c0_84] : memref<2x128x384xbf16, #tpu.memory_space<vmem>>, vector<1x128x384xbf16>
    %189 = vector.shape_cast %188 : vector<1x128x384xbf16> to vector<128x384xbf16>
    %cst_85 = arith.constant dense<0.000000e+00> : vector<32x384xf32>
    %190 = tpu.matmul %187, %189, %cst_85 {dimension_numbers = #tpu.dot_dimension_numbers<[1], [0], [0], [1], [0, 0, 1, 1], [], []>} : vector<32x128xbf16>, vector<128x384xbf16>, vector<32x384xf32> -> vector<32x384xf32>
    %c1_86 = arith.constant 1 : index
    %c0_87 = arith.constant 0 : index
    %c0_88 = arith.constant 0 : index
    %191 = vector.load %arg8[%c1_86, %c0_87, %c0_88] : memref<2x1x384xf32, #tpu.memory_space<vmem>>, vector<1x1x384xf32>
    %192 = vector.shape_cast %191 : vector<1x1x384xf32> to vector<1x384xf32>
    %193 = vector.broadcast %192 : vector<1x384xf32> to vector<32x384xf32>
    %194 = arith.addf %190, %193 : vector<32x384xf32>
    %195 = vector.extract_strided_slice %194 {offsets = [0, 0], sizes = [32, 128], strides = [1, 1]} : vector<32x384xf32> to vector<32x128xf32>
    %196 = arith.truncf %195 : vector<32x128xf32> to vector<32x128xbf16>
    %197 = vector.extract_strided_slice %194 {offsets = [0, 128], sizes = [32, 128], strides = [1, 1]} : vector<32x384xf32> to vector<32x128xf32>
    %198 = arith.truncf %197 : vector<32x128xf32> to vector<32x128xbf16>
    %199 = vector.extract_strided_slice %194 {offsets = [0, 256], sizes = [32, 128], strides = [1, 1]} : vector<32x384xf32> to vector<32x128xf32>
    %200 = arith.truncf %199 : vector<32x128xf32> to vector<32x128xbf16>
    %201 = vector.extract_strided_slice %196 {offsets = [0, 0], sizes = [16, 128], strides = [1, 1]} : vector<32x128xbf16> to vector<16x128xbf16>
    %202 = vector.shape_cast %201 : vector<16x128xbf16> to vector<16x4x32xbf16>
    %203 = vector.extract_strided_slice %198 {offsets = [0, 0], sizes = [16, 128], strides = [1, 1]} : vector<32x128xbf16> to vector<16x128xbf16>
    %204 = vector.shape_cast %203 : vector<16x128xbf16> to vector<16x4x32xbf16>
    %205 = vector.extract_strided_slice %200 {offsets = [0, 0], sizes = [16, 128], strides = [1, 1]} : vector<32x128xbf16> to vector<16x128xbf16>
    %206 = vector.shape_cast %205 : vector<16x128xbf16> to vector<16x4x32xbf16>
    "tpu.trace_start"() <{level = 10 : i32, message = "qhd,khd->hqk"}> : () -> ()
    %cst_89 = arith.constant dense<0.000000e+00> : vector<4x16x16xf32>
    %207 = tpu.matmul %202, %204, %cst_89 {dimension_numbers = #tpu.dot_dimension_numbers<[2], [2], [0], [0], [0, 1, 0, 0, 1, 0], [1], [1]>} : vector<16x4x32xbf16>, vector<16x4x32xbf16>, vector<4x16x16xf32> -> vector<4x16x16xf32>
    "tpu.trace_stop"() : () -> ()
    %cst_90 = arith.constant 0.176776692 : f32
    %208 = vector.broadcast %cst_90 : f32 to vector<4x16x16xf32>
    %209 = arith.mulf %207, %208 : vector<4x16x16xf32>
    %cst_91 = arith.constant dense<0xFF800000> : vector<4x16xf32>
    %210 = vector.multi_reduction <maximumf>, %209, %cst_91 [2] : vector<4x16x16xf32> to vector<4x16xf32>
    %211 = vector.shape_cast %210 : vector<4x16xf32> to vector<4x16x1xf32>
    %212 = vector.broadcast %211 : vector<4x16x1xf32> to vector<4x16x16xf32>
    %213 = arith.subf %209, %212 : vector<4x16x16xf32>
    %214 = math.exp %213 : vector<4x16x16xf32>
    %cst_92 = arith.constant dense<0.000000e+00> : vector<4x16xf32>
    %215 = vector.multi_reduction <add>, %214, %cst_92 [2] : vector<4x16x16xf32> to vector<4x16xf32>
    %216 = vector.shape_cast %215 : vector<4x16xf32> to vector<4x16x1xf32>
    %217 = tpu.reciprocal %216 {approx = true} : vector<4x16x1xf32> -> vector<4x16x1xf32>
    %218 = vector.broadcast %217 : vector<4x16x1xf32> to vector<4x16x16xf32>
    %219 = arith.mulf %214, %218 : vector<4x16x16xf32>
    %220 = arith.truncf %219 : vector<4x16x16xf32> to vector<4x16x16xbf16>
    "tpu.trace_start"() <{level = 10 : i32, message = "hqk,khd->qhd"}> : () -> ()
    %cst_93 = arith.constant dense<0.000000e+00> : vector<4x32x16xf32>
    %221 = tpu.matmul %206, %220, %cst_93 {dimension_numbers = #tpu.dot_dimension_numbers<[0], [2], [2], [1], [0, 1, 0, 2, 1, 1], [1], [0]>} : vector<16x4x32xbf16>, vector<4x16x16xbf16>, vector<4x32x16xf32> -> vector<4x32x16xf32>
    %222 = tpu.transpose %221, [2, 0, 1] : vector<4x32x16xf32> -> vector<16x4x32xf32>
    "tpu.trace_stop"() : () -> ()
    %223 = vector.shape_cast %222 : vector<16x4x32xf32> to vector<16x128xf32>
    %224 = vector.extract_strided_slice %196 {offsets = [16, 0], sizes = [16, 128], strides = [1, 1]} : vector<32x128xbf16> to vector<16x128xbf16>
    %225 = vector.shape_cast %224 : vector<16x128xbf16> to vector<16x4x32xbf16>
    %226 = vector.extract_strided_slice %198 {offsets = [16, 0], sizes = [16, 128], strides = [1, 1]} : vector<32x128xbf16> to vector<16x128xbf16>
    %227 = vector.shape_cast %226 : vector<16x128xbf16> to vector<16x4x32xbf16>
    %228 = vector.extract_strided_slice %200 {offsets = [16, 0], sizes = [16, 128], strides = [1, 1]} : vector<32x128xbf16> to vector<16x128xbf16>
    %229 = vector.shape_cast %228 : vector<16x128xbf16> to vector<16x4x32xbf16>
    "tpu.trace_start"() <{level = 10 : i32, message = "qhd,khd->hqk"}> : () -> ()
    %cst_94 = arith.constant dense<0.000000e+00> : vector<4x16x16xf32>
    %230 = tpu.matmul %225, %227, %cst_94 {dimension_numbers = #tpu.dot_dimension_numbers<[2], [2], [0], [0], [0, 1, 0, 0, 1, 0], [1], [1]>} : vector<16x4x32xbf16>, vector<16x4x32xbf16>, vector<4x16x16xf32> -> vector<4x16x16xf32>
    "tpu.trace_stop"() : () -> ()
    %cst_95 = arith.constant 0.176776692 : f32
    %231 = vector.broadcast %cst_95 : f32 to vector<4x16x16xf32>
    %232 = arith.mulf %230, %231 : vector<4x16x16xf32>
    %cst_96 = arith.constant dense<0xFF800000> : vector<4x16xf32>
    %233 = vector.multi_reduction <maximumf>, %232, %cst_96 [2] : vector<4x16x16xf32> to vector<4x16xf32>
    %234 = vector.shape_cast %233 : vector<4x16xf32> to vector<4x16x1xf32>
    %235 = vector.broadcast %234 : vector<4x16x1xf32> to vector<4x16x16xf32>
    %236 = arith.subf %232, %235 : vector<4x16x16xf32>
    %237 = math.exp %236 : vector<4x16x16xf32>
    %cst_97 = arith.constant dense<0.000000e+00> : vector<4x16xf32>
    %238 = vector.multi_reduction <add>, %237, %cst_97 [2] : vector<4x16x16xf32> to vector<4x16xf32>
    %239 = vector.shape_cast %238 : vector<4x16xf32> to vector<4x16x1xf32>
    %240 = tpu.reciprocal %239 {approx = true} : vector<4x16x1xf32> -> vector<4x16x1xf32>
    %241 = vector.broadcast %240 : vector<4x16x1xf32> to vector<4x16x16xf32>
    %242 = arith.mulf %237, %241 : vector<4x16x16xf32>
    %243 = arith.truncf %242 : vector<4x16x16xf32> to vector<4x16x16xbf16>
    "tpu.trace_start"() <{level = 10 : i32, message = "hqk,khd->qhd"}> : () -> ()
    %cst_98 = arith.constant dense<0.000000e+00> : vector<4x32x16xf32>
    %244 = tpu.matmul %229, %243, %cst_98 {dimension_numbers = #tpu.dot_dimension_numbers<[0], [2], [2], [1], [0, 1, 0, 2, 1, 1], [1], [0]>} : vector<16x4x32xbf16>, vector<4x16x16xbf16>, vector<4x32x16xf32> -> vector<4x32x16xf32>
    %245 = tpu.transpose %244, [2, 0, 1] : vector<4x32x16xf32> -> vector<16x4x32xf32>
    "tpu.trace_stop"() : () -> ()
    %246 = vector.shape_cast %245 : vector<16x4x32xf32> to vector<16x128xf32>
    %247 = tpu.concatenate %223, %246 in 0 : vector<16x128xf32>, vector<16x128xf32> -> vector<32x128xf32>
    %248 = arith.truncf %247 : vector<32x128xf32> to vector<32x128xbf16>
    %c1_99 = arith.constant 1 : index
    %c0_100 = arith.constant 0 : index
    %c0_101 = arith.constant 0 : index
    %249 = vector.load %arg9[%c1_99, %c0_100, %c0_101] : memref<2x128x128xbf16, #tpu.memory_space<vmem>>, vector<1x128x128xbf16>
    %250 = vector.shape_cast %249 : vector<1x128x128xbf16> to vector<128x128xbf16>
    %cst_102 = arith.constant dense<0.000000e+00> : vector<32x128xf32>
    %251 = tpu.matmul %248, %250, %cst_102 {dimension_numbers = #tpu.dot_dimension_numbers<[1], [0], [0], [1], [0, 0, 1, 1], [], []>} : vector<32x128xbf16>, vector<128x128xbf16>, vector<32x128xf32> -> vector<32x128xf32>
    %c1_103 = arith.constant 1 : index
    %c0_104 = arith.constant 0 : index
    %c0_105 = arith.constant 0 : index
    %252 = vector.load %arg10[%c1_103, %c0_104, %c0_105] : memref<2x1x128xf32, #tpu.memory_space<vmem>>, vector<1x1x128xf32>
    %253 = vector.shape_cast %252 : vector<1x1x128xf32> to vector<1x128xf32>
    %254 = vector.broadcast %253 : vector<1x128xf32> to vector<32x128xf32>
    %255 = arith.addf %251, %254 : vector<32x128xf32>
    %256 = arith.addf %160, %255 : vector<32x128xf32>
    %c1_106 = arith.constant 1 : index
    %c0_107 = arith.constant 0 : index
    %c0_108 = arith.constant 0 : index
    %257 = vector.load %arg11[%c1_106, %c0_107, %c0_108] : memref<2x1x128xf32, #tpu.memory_space<vmem>>, vector<1x1x128xf32>
    %258 = vector.shape_cast %257 : vector<1x1x128xf32> to vector<1x128xf32>
    %c1_109 = arith.constant 1 : index
    %c0_110 = arith.constant 0 : index
    %c0_111 = arith.constant 0 : index
    %259 = vector.load %arg12[%c1_109, %c0_110, %c0_111] : memref<2x1x128xf32, #tpu.memory_space<vmem>>, vector<1x1x128xf32>
    %260 = vector.shape_cast %259 : vector<1x1x128xf32> to vector<1x128xf32>
    %cst_112 = arith.constant dense<0.000000e+00> : vector<32xf32>
    %261 = vector.multi_reduction <add>, %256, %cst_112 [1] : vector<32x128xf32> to vector<32xf32>
    %262 = vector.shape_cast %261 : vector<32xf32> to vector<32x1xf32>
    %cst_113 = arith.constant 1.280000e+02 : f32
    %263 = vector.broadcast %cst_113 : f32 to vector<32x1xf32>
    %264 = arith.divf %262, %263 : vector<32x1xf32>
    %265 = arith.mulf %256, %256 : vector<32x128xf32>
    %cst_114 = arith.constant dense<0.000000e+00> : vector<32xf32>
    %266 = vector.multi_reduction <add>, %265, %cst_114 [1] : vector<32x128xf32> to vector<32xf32>
    %267 = vector.shape_cast %266 : vector<32xf32> to vector<32x1xf32>
    %cst_115 = arith.constant 1.280000e+02 : f32
    %268 = vector.broadcast %cst_115 : f32 to vector<32x1xf32>
    %269 = arith.divf %267, %268 : vector<32x1xf32>
    %270 = arith.mulf %264, %264 : vector<32x1xf32>
    %271 = arith.subf %269, %270 : vector<32x1xf32>
    %272 = vector.broadcast %264 : vector<32x1xf32> to vector<32x128xf32>
    %273 = arith.subf %256, %272 : vector<32x128xf32>
    %cst_116 = arith.constant 9.99999997E-7 : f32
    %274 = vector.broadcast %cst_116 : f32 to vector<32x1xf32>
    %275 = arith.addf %271, %274 : vector<32x1xf32>
    %276 = math.rsqrt %275 : vector<32x1xf32>
    %277 = vector.broadcast %276 : vector<32x1xf32> to vector<32x128xf32>
    %278 = arith.mulf %273, %277 : vector<32x128xf32>
    %279 = vector.broadcast %258 : vector<1x128xf32> to vector<32x128xf32>
    %280 = arith.mulf %278, %279 : vector<32x128xf32>
    %281 = vector.broadcast %260 : vector<1x128xf32> to vector<32x128xf32>
    %282 = arith.addf %280, %281 : vector<32x128xf32>
    %283 = arith.truncf %282 : vector<32x128xf32> to vector<32x128xbf16>
    %c1_117 = arith.constant 1 : index
    %c0_118 = arith.constant 0 : index
    %c0_119 = arith.constant 0 : index
    %284 = vector.load %arg13[%c1_117, %c0_118, %c0_119] : memref<2x128x256xbf16, #tpu.memory_space<vmem>>, vector<1x128x256xbf16>
    %285 = vector.shape_cast %284 : vector<1x128x256xbf16> to vector<128x256xbf16>
    %cst_120 = arith.constant dense<0.000000e+00> : vector<32x256xf32>
    %286 = tpu.matmul %283, %285, %cst_120 {dimension_numbers = #tpu.dot_dimension_numbers<[1], [0], [0], [1], [0, 0, 1, 1], [], []>} : vector<32x128xbf16>, vector<128x256xbf16>, vector<32x256xf32> -> vector<32x256xf32>
    %c1_121 = arith.constant 1 : index
    %c0_122 = arith.constant 0 : index
    %c0_123 = arith.constant 0 : index
    %287 = vector.load %arg14[%c1_121, %c0_122, %c0_123] : memref<2x1x256xf32, #tpu.memory_space<vmem>>, vector<1x1x256xf32>
    %288 = vector.shape_cast %287 : vector<1x1x256xf32> to vector<1x256xf32>
    %289 = vector.broadcast %288 : vector<1x256xf32> to vector<32x256xf32>
    %290 = arith.addf %286, %289 : vector<32x256xf32>
    %cst_124 = arith.constant 5.000000e-01 : f32
    %291 = vector.broadcast %cst_124 : f32 to vector<32x256xf32>
    %292 = arith.mulf %291, %290 : vector<32x256xf32>
    %cst_125 = arith.constant 4.471500e-02 : f32
    %293 = vector.broadcast %cst_125 : f32 to vector<32x256xf32>
    %294 = arith.mulf %293, %290 : vector<32x256xf32>
    %295 = arith.mulf %294, %290 : vector<32x256xf32>
    %296 = arith.mulf %295, %290 : vector<32x256xf32>
    %297 = arith.addf %290, %296 : vector<32x256xf32>
    %cst_126 = arith.constant 0.797884583 : f32
    %298 = vector.broadcast %cst_126 : f32 to vector<32x256xf32>
    %299 = arith.mulf %298, %297 : vector<32x256xf32>
    %300 = math.tanh %299 : vector<32x256xf32>
    %cst_127 = arith.constant 1.000000e+00 : f32
    %301 = vector.broadcast %cst_127 : f32 to vector<32x256xf32>
    %302 = arith.addf %301, %300 : vector<32x256xf32>
    %303 = arith.mulf %292, %302 : vector<32x256xf32>
    %304 = arith.truncf %303 : vector<32x256xf32> to vector<32x256xbf16>
    %c1_128 = arith.constant 1 : index
    %c0_129 = arith.constant 0 : index
    %c0_130 = arith.constant 0 : index
    %305 = vector.load %arg15[%c1_128, %c0_129, %c0_130] : memref<2x256x128xbf16, #tpu.memory_space<vmem>>, vector<1x256x128xbf16>
    %306 = vector.shape_cast %305 : vector<1x256x128xbf16> to vector<256x128xbf16>
    %cst_131 = arith.constant dense<0.000000e+00> : vector<32x128xf32>
    %307 = tpu.matmul %304, %306, %cst_131 {dimension_numbers = #tpu.dot_dimension_numbers<[1], [0], [0], [1], [0, 0, 1, 1], [], []>} : vector<32x256xbf16>, vector<256x128xbf16>, vector<32x128xf32> -> vector<32x128xf32>
    %308 = arith.addf %256, %307 : vector<32x128xf32>
    %c1_132 = arith.constant 1 : index
    %c0_133 = arith.constant 0 : index
    %c0_134 = arith.constant 0 : index
    %309 = vector.load %arg16[%c1_132, %c0_133, %c0_134] : memref<2x1x128xf32, #tpu.memory_space<vmem>>, vector<1x1x128xf32>
    %310 = vector.shape_cast %309 : vector<1x1x128xf32> to vector<1x128xf32>
    %311 = vector.broadcast %310 : vector<1x128xf32> to vector<32x128xf32>
    %312 = arith.addf %308, %311 : vector<32x128xf32>
    %c0_135 = arith.constant 0 : index
    %c0_136 = arith.constant 0 : index
    %313 = vector.load %arg17[%c0_135, %c0_136] : memref<1x128xf32, #tpu.memory_space<vmem>>, vector<1x128xf32>
    %c0_137 = arith.constant 0 : index
    %c0_138 = arith.constant 0 : index
    %314 = vector.load %arg18[%c0_137, %c0_138] : memref<1x128xf32, #tpu.memory_space<vmem>>, vector<1x128xf32>
    %cst_139 = arith.constant dense<0.000000e+00> : vector<32xf32>
    %315 = vector.multi_reduction <add>, %312, %cst_139 [1] : vector<32x128xf32> to vector<32xf32>
    %316 = vector.shape_cast %315 : vector<32xf32> to vector<32x1xf32>
    %cst_140 = arith.constant 1.280000e+02 : f32
    %317 = vector.broadcast %cst_140 : f32 to vector<32x1xf32>
    %318 = arith.divf %316, %317 : vector<32x1xf32>
    %319 = arith.mulf %312, %312 : vector<32x128xf32>
    %cst_141 = arith.constant dense<0.000000e+00> : vector<32xf32>
    %320 = vector.multi_reduction <add>, %319, %cst_141 [1] : vector<32x128xf32> to vector<32xf32>
    %321 = vector.shape_cast %320 : vector<32xf32> to vector<32x1xf32>
    %cst_142 = arith.constant 1.280000e+02 : f32
    %322 = vector.broadcast %cst_142 : f32 to vector<32x1xf32>
    %323 = arith.divf %321, %322 : vector<32x1xf32>
    %324 = arith.mulf %318, %318 : vector<32x1xf32>
    %325 = arith.subf %323, %324 : vector<32x1xf32>
    %326 = vector.broadcast %318 : vector<32x1xf32> to vector<32x128xf32>
    %327 = arith.subf %312, %326 : vector<32x128xf32>
    %cst_143 = arith.constant 9.99999997E-7 : f32
    %328 = vector.broadcast %cst_143 : f32 to vector<32x1xf32>
    %329 = arith.addf %325, %328 : vector<32x1xf32>
    %330 = math.rsqrt %329 : vector<32x1xf32>
    %331 = vector.broadcast %330 : vector<32x1xf32> to vector<32x128xf32>
    %332 = arith.mulf %327, %331 : vector<32x128xf32>
    %333 = vector.broadcast %313 : vector<1x128xf32> to vector<32x128xf32>
    %334 = arith.mulf %332, %333 : vector<32x128xf32>
    %335 = vector.broadcast %314 : vector<1x128xf32> to vector<32x128xf32>
    %336 = arith.addf %334, %335 : vector<32x128xf32>
    %c0_144 = arith.constant 0 : index
    %c0_145 = arith.constant 0 : index
    %c0_146 = arith.constant 0 : index
    %337 = vector.load %arg19[%c0_144, %c0_145, %c0_146] : memref<1x32x128xf32, #tpu.memory_space<vmem>>, vector<1x32x128xf32>
    %338 = vector.shape_cast %337 : vector<1x32x128xf32> to vector<32x128xf32>
    %339 = vector.shape_cast %336 : vector<32x128xf32> to vector<1x32x128xf32>
    tpu.vector_store %arg19[%c0_144, %c0_145, %c0_146], %339 {strides = array<i32>} : memref<1x32x128xf32, #tpu.memory_space<vmem>>, vector<1x32x128xf32>,
    return
  }
  func.func @transform_0(%arg0: i32) -> (i32, i32, i32) {
    %c0_i32 = arith.constant 0 : i32
    %c0_i32_0 = arith.constant 0 : i32
    %c0_i32_1 = arith.constant 0 : i32
    return %arg0, %c0_i32, %c0_i32_0 : i32, i32, i32
  }
  func.func @transform_1(%arg0: i32) -> (i32, i32) {
    %c0_i32 = arith.constant 0 : i32
    %c0_i32_0 = arith.constant 0 : i32
    %c0_i32_1 = arith.constant 0 : i32
    return %c0_i32, %c0_i32_0 : i32, i32
  }
  func.func @transform_2(%arg0: i32) -> (i32, i32) {
    %c0_i32 = arith.constant 0 : i32
    %c0_i32_0 = arith.constant 0 : i32
    %c0_i32_1 = arith.constant 0 : i32
    return %c0_i32, %c0_i32_0 : i32, i32
  }
  func.func @transform_3(%arg0: i32) -> (i32, i32) {
    %c0_i32 = arith.constant 0 : i32
    %c0_i32_0 = arith.constant 0 : i32
    %c0_i32_1 = arith.constant 0 : i32
    return %c0_i32, %c0_i32_0 : i32, i32
  }
  func.func @transform_4(%arg0: i32) -> (i32, i32, i32) {
    %c0_i32 = arith.constant 0 : i32
    %c0_i32_0 = arith.constant 0 : i32
    %c0_i32_1 = arith.constant 0 : i32
    %c0_i32_2 = arith.constant 0 : i32
    return %c0_i32, %c0_i32_0, %c0_i32_1 : i32, i32, i32
  }
  func.func @transform_5(%arg0: i32) -> (i32, i32, i32) {
    %c0_i32 = arith.constant 0 : i32
    %c0_i32_0 = arith.constant 0 : i32
    %c0_i32_1 = arith.constant 0 : i32
    %c0_i32_2 = arith.constant 0 : i32
    return %c0_i32, %c0_i32_0, %c0_i32_1 : i32, i32, i32
  }
  func.func @transform_6(%arg0: i32) -> (i32, i32, i32) {
    %c0_i32 = arith.constant 0 : i32
    %c0_i32_0 = arith.constant 0 : i32
    %c0_i32_1 = arith.constant 0 : i32
    %c0_i32_2 = arith.constant 0 : i32
    return %c0_i32, %c0_i32_0, %c0_i32_1 : i32, i32, i32
  }
  func.func @transform_7(%arg0: i32) -> (i32, i32, i32) {
    %c0_i32 = arith.constant 0 : i32
    %c0_i32_0 = arith.constant 0 : i32
    %c0_i32_1 = arith.constant 0 : i32
    %c0_i32_2 = arith.constant 0 : i32
    return %c0_i32, %c0_i32_0, %c0_i32_1 : i32, i32, i32
  }
  func.func @transform_8(%arg0: i32) -> (i32, i32, i32) {
    %c0_i32 = arith.constant 0 : i32
    %c0_i32_0 = arith.constant 0 : i32
    %c0_i32_1 = arith.constant 0 : i32
    %c0_i32_2 = arith.constant 0 : i32
    return %c0_i32, %c0_i32_0, %c0_i32_1 : i32, i32, i32
  }
  func.func @transform_9(%arg0: i32) -> (i32, i32, i32) {
    %c0_i32 = arith.constant 0 : i32
    %c0_i32_0 = arith.constant 0 : i32
    %c0_i32_1 = arith.constant 0 : i32
    %c0_i32_2 = arith.constant 0 : i32
    return %c0_i32, %c0_i32_0, %c0_i32_1 : i32, i32, i32
  }
  func.func @transform_10(%arg0: i32) -> (i32, i32, i32) {
    %c0_i32 = arith.constant 0 : i32
    %c0_i32_0 = arith.constant 0 : i32
    %c0_i32_1 = arith.constant 0 : i32
    %c0_i32_2 = arith.constant 0 : i32
    return %c0_i32, %c0_i32_0, %c0_i32_1 : i32, i32, i32
  }
  func.func @transform_11(%arg0: i32) -> (i32, i32, i32) {
    %c0_i32 = arith.constant 0 : i32
    %c0_i32_0 = arith.constant 0 : i32
    %c0_i32_1 = arith.constant 0 : i32
    %c0_i32_2 = arith.constant 0 : i32
    return %c0_i32, %c0_i32_0, %c0_i32_1 : i32, i32, i32
  }
  func.func @transform_12(%arg0: i32) -> (i32, i32, i32) {
    %c0_i32 = arith.constant 0 : i32
    %c0_i32_0 = arith.constant 0 : i32
    %c0_i32_1 = arith.constant 0 : i32
    %c0_i32_2 = arith.constant 0 : i32
    return %c0_i32, %c0_i32_0, %c0_i32_1 : i32, i32, i32
  }
  func.func @transform_13(%arg0: i32) -> (i32, i32, i32) {
    %c0_i32 = arith.constant 0 : i32
    %c0_i32_0 = arith.constant 0 : i32
    %c0_i32_1 = arith.constant 0 : i32
    %c0_i32_2 = arith.constant 0 : i32
    return %c0_i32, %c0_i32_0, %c0_i32_1 : i32, i32, i32
  }
  func.func @transform_14(%arg0: i32) -> (i32, i32, i32) {
    %c0_i32 = arith.constant 0 : i32
    %c0_i32_0 = arith.constant 0 : i32
    %c0_i32_1 = arith.constant 0 : i32
    %c0_i32_2 = arith.constant 0 : i32
    return %c0_i32, %c0_i32_0, %c0_i32_1 : i32, i32, i32
  }
  func.func @transform_15(%arg0: i32) -> (i32, i32, i32) {
    %c0_i32 = arith.constant 0 : i32
    %c0_i32_0 = arith.constant 0 : i32
    %c0_i32_1 = arith.constant 0 : i32
    %c0_i32_2 = arith.constant 0 : i32
    return %c0_i32, %c0_i32_0, %c0_i32_1 : i32, i32, i32
  }
  func.func @transform_16(%arg0: i32) -> (i32, i32) {
    %c0_i32 = arith.constant 0 : i32
    %c0_i32_0 = arith.constant 0 : i32
    %c0_i32_1 = arith.constant 0 : i32
    return %c0_i32, %c0_i32_0 : i32, i32
  }
  func.func @transform_17(%arg0: i32) -> (i32, i32) {
    %c0_i32 = arith.constant 0 : i32
    %c0_i32_0 = arith.constant 0 : i32
    %c0_i32_1 = arith.constant 0 : i32
    return %c0_i32, %c0_i32_0 : i32, i32
  }
  func.func @transform_18(%arg0: i32) -> (i32, i32, i32) {
    %c0_i32 = arith.constant 0 : i32
    %c0_i32_0 = arith.constant 0 : i32
    %c0_i32_1 = arith.constant 0 : i32
    return %arg0, %c0_i32, %c0_i32_0 : i32, i32, i32
  }
}

</mosaic_0001>

<bundles_post_ra>
// kernel: _lambda_.1
= control target key start
LH: loop header
LB: loop body
LE: loop exit
PB: predicated region body
PF: predicated region fallthrough
CT: control target
= control target key end

     0   :  { %s9592_s0 = inlined_call_operand.vmem [shape: bf16[1,32,192], index: 0, kind: input, shape index: {}]   ;;  %s9593_s1 = inlined_call_operand.vmem [shape: bf16[192,128], index: 1, kind: input, shape index: {}]   ;;  %s9594_s2 = inlined_call_operand.vmem [shape: f32[1,128], index: 2, kind: input, shape index: {}]   ;;  %s9595_s3 = inlined_call_operand.vmem [shape: f32[32,128], index: 3, kind: input, shape index: {}]   ;;  %s9596_s4 = inlined_call_operand.vmem [shape: f32[2,1,128], index: 4, kind: input, shape index: {}]   ;;  %s9597_s5 = inlined_call_operand.vmem [shape: f32[2,1,128], index: 5, kind: input, shape index: {}]   ;;  %s9598_s6 = inlined_call_operand.vmem [shape: bf16[2,128,384], index: 6, kind: input, shape index: {}]   ;;  %s9599_s7 = inlined_call_operand.vmem [shape: f32[2,1,384], index: 7, kind: input, shape index: {}]   ;;  %s9600_s8 = inlined_call_operand.vmem [shape: bf16[2,128,128], index: 8, kind: input, shape index: {}]   ;;  %s9601_s9 = inlined_call_operand.vmem [shape: f32[2,1,128], index: 9, kind: input, shape index: {}]   ;;  %s9602_s10 = inlined_call_operand.vmem [shape: f32[2,1,128], index: 10, kind: input, shape index: {}]   ;;  %s9603_s11 = inlined_call_operand.vmem [shape: f32[2,1,128], index: 11, kind: input, shape index: {}]   ;;  %s9604_s12 = inlined_call_operand.vmem [shape: bf16[2,128,256], index: 12, kind: input, shape index: {}]   ;;  %s9605_s13 = inlined_call_operand.vmem [shape: f32[2,1,256], index: 13, kind: input, shape index: {}]   ;;  %s9606_s14 = inlined_call_operand.vmem [shape: bf16[2,256,128], index: 14, kind: input, shape index: {}]   ;;  %s9607_s15 = inlined_call_operand.vmem [shape: f32[2,1,128], index: 15, kind: input, shape index: {}]   ;;  %s9608_s16 = inlined_call_operand.vmem [shape: f32[1,128], index: 16, kind: input, shape index: {}]   ;;  %s9609_s17 = inlined_call_operand.vmem [shape: f32[1,128], index: 17, kind: input, shape index: {}]   ;;  %s9610_s18 = inlined_call_operand.hbm [shape: f32[1,32,128], index: 18, kind: output, shape index: {}]  }
   0x1   :  { %9613 = sst [smem:[#allocation5_spill]] %s9592_s0 }
   0x2   :  { %9614 = sst [smem:[#allocation6_spill]] %s9593_s1 }
   0x3   :  { %9615 = sst [smem:[#allocation7_spill]] %s9594_s2 }
   0x4   :  { %s9616_s29 = sld [smem:[#allocation6_spill]]  ;;  %v8030_v1 = vmov 0   ;;  %vm186_vm0 = vcmask 523264   ;;  %s9617_s23 = sld [smem:[#allocation5_spill]] }
   0x5   :  { %193 = vmatprep.subr.bf16.mxu0 %v8030_v1  ;;  %536 = vmatprep.mubr.bf16.mxu1 %v8030_v1 }
   0xa   :  { %v7628_v0 = vld [vmem:[%s9616_s29] sm:$0xff]   ;;  %v7629_v2 = vld [vmem:[%s9616_s29 + $0x8] sm:$0xff]   ;;  %v7630_v3 = vld [vmem:[%s9616_s29 + $0x10] sm:$0xff]  }
   0xb   :  { %194 = vmatpush1.bf16.msra.mxu0 %v7628_v0  ;;  %v7631_v4 = vld [vmem:[%s9616_s29 + $0x18] sm:$0xff]   ;;  %v7642_v5 = vld [vmem:[%s9617_s23 + $0x4] ss:$8 sps:$4 sm:$0xff]   ;;  %v7634_v8 = vld [vmem:[%s9616_s29 + $0x30] sm:$0xff]  }
   0xc   :  { %195 = vmatprep.subr.bf16.mxu0 %v8030_v1  ;;  %v7632_v6 = vld [vmem:[%s9616_s29 + $0x20] sm:$0xff]   ;;  %6733 = vmatprep.mubr.msk.bf16.mxu0 %vm186_vm0, %v7642_v5  ;;  %v7633_v7 = vld [vmem:[%s9616_s29 + $0x28] sm:$0xff]   ;;  %v7635_v9 = vld [vmem:[%s9616_s29 + $0x38] sm:$0xff]  }
   0xd   :  { %v7636_v10 = vld [vmem:[%s9616_s29 + $0x40] sm:$0xff]   ;;  %v7637_v11 = vld [vmem:[%s9616_s29 + $0x48] sm:$0xff]   ;;  %v7638_v12 = vld [vmem:[%s9616_s29 + $0x50] sm:$0xff]  }
   0xe   :  { %v7639_v13 = vld [vmem:[%s9616_s29 + $0x58] sm:$0xff]   ;;  %v7640_v14 = vld [vmem:[%s9617_s23] ss:$8 sps:$4 sm:$0xff]  }
   0xf   :  { %196 = vmatpush1.bf16.msra.mxu0 %v7629_v2  ;;  %v7643_v15 = vld [vmem:[%s9617_s23 + $0x14] ss:$8 sps:$4 sm:$0xff]   ;;  %v7645_v16 = vld [vmem:[%s9617_s23 + $0x10] ss:$8 sps:$4 sm:$0xff]  }
  0x10   :  { %197 = vmatprep.subr.bf16.mxu0 %v8030_v1 }
  0x13   :  { %198 = vmatpush1.bf16.msra.mxu0 %v7630_v3 }
  0x14   :  { %199 = vmatprep.subr.bf16.mxu0 %v8030_v1 }
  0x17   :  { %200 = vmatpush1.bf16.msra.mxu0 %v7631_v4 }
  0x18   :  { %201 = vmatprep.subr.bf16.mxu0 %v8030_v1 }
  0x1b   :  { %202 = vmatpush1.bf16.msra.mxu0 %v7632_v6 }
  0x1c   :  { %203 = vmatprep.subr.bf16.mxu0 %v8030_v1 }
  0x1f   :  { %204 = vmatpush1.bf16.msra.mxu0 %v7633_v7 }
  0x20   :  { %205 = vmatprep.subr.bf16.mxu0 %v8030_v1 }
  0x23   :  { %206 = vmatpush1.bf16.msra.mxu0 %v7634_v8 }
  0x24   :  { %207 = vmatprep.subr.bf16.mxu0 %v8030_v1 }
  0x27   :  { %208 = vmatpush1.bf16.msra.mxu0 %v7635_v9 }
  0x28   :  { %209 = vmatprep.subr.bf16.mxu0 %v8030_v1 }
  0x2b   :  { %210 = vmatpush1.bf16.msra.mxu0 %v7636_v10 }
  0x2c   :  { %211 = vmatprep.subr.bf16.mxu0 %v8030_v1 }
  0x2f   :  { %212 = vmatpush1.bf16.msra.mxu0 %v7637_v11 }
  0x30   :  { %213 = vmatprep.subr.bf16.mxu0 %v8030_v1 }
  0x33   :  { %214 = vmatpush1.bf16.msra.mxu0 %v7638_v12 }
  0x34   :  { %215 = vmatprep.subr.bf16.mxu0 %v8030_v1 }
  0x37   :  { %216 = vmatpush1.bf16.msra.mxu0 %v7639_v13 }
  0x3a   :  { %226 = vmatmul.mubr.bf16.vlgmr.msra.gmra.mrb[0].mxu0 %v7640_v14 }
  0x3b   :  { %6734 = vmatprep.mubr.msk.bf16.mxu0 %vm186_vm0, %v7643_v15 }
  0x42   :  { %234 = vmatmul.mubr.bf16.gmra.mrb[4].mxu0 %v7645_v16 }
  0x43   :  { %23 = vsyncpa [#allocation3], 0  ;;  %v7646_v17 = vld [vmem:[%s9598_s6 + $0x4] ss:$12 sps:$4 sm:$0xff]   ;;  %s9618_s2 = sld [smem:[#allocation7_spill]]  ;;  %v243_v24 = vld [vmem:[%s9595_s3 + $0x8] sm:$0xff] }
  0x44   :  { %504 = vmatprep.subr.bf16.mxu1 %v7646_v17  ;;  %v242_v20 = vld [vmem:[%s9595_s3] sm:$0xff]  ;;  %v244_v31 = vld [vmem:[%s9595_s3 + $0x10] sm:$0xff]  ;;  %v245_v36 = vld [vmem:[%s9595_s3 + $0x18] sm:$0xff]  ;;  %s8031_s20 = smov 64   ;;  %s8032_s21 = smov 96   ;;  %vm8035_vm1 = vmmov 0  }
  0x45   :  { %v7648_v43 = vld [vmem:[%s9598_s6] ss:$12 sps:$4 sm:$0xff]   ;;  %v7649_v44 = vld [vmem:[%s9598_s6 + $0x1c] ss:$12 sps:$4 sm:$0xff]   ;;  %v7651_v45 = vld [vmem:[%s9598_s6 + $0x18] ss:$12 sps:$4 sm:$0xff]  }
  0x46   :  { %505 = vmatpush1.bf16.msra.mxu1 %v7648_v43  ;;  %v7652_v46 = vld [vmem:[%s9598_s6 + $0x34] ss:$12 sps:$4 sm:$0xff]   ;;  %v7654_v47 = vld [vmem:[%s9598_s6 + $0x30] ss:$12 sps:$4 sm:$0xff]   ;;  %v7655_v48 = vld [vmem:[%s9598_s6 + $0x4c] ss:$12 sps:$4 sm:$0xff]  }
  0x47   :  { %506 = vmatprep.subr.bf16.mxu1 %v7649_v44  ;;  %v7657_v49 = vld [vmem:[%s9598_s6 + $0x48] ss:$12 sps:$4 sm:$0xff]   ;;  %v7658_v50 = vld [vmem:[%s9598_s6 + $0x64] ss:$12 sps:$4 sm:$0xff]   ;;  %v7660_v51 = vld [vmem:[%s9598_s6 + $0x60] ss:$12 sps:$4 sm:$0xff]  }
  0x48   :  { %v7661_v52 = vld [vmem:[%s9598_s6 + $0x7c] ss:$12 sps:$4 sm:$0xff]   ;;  %v7663_v53 = vld [vmem:[%s9598_s6 + $0x78] ss:$12 sps:$4 sm:$0xff]   ;;  %v7664_v54 = vld [vmem:[%s9598_s6 + $0x94] ss:$12 sps:$4 sm:$0xff]  }
  0x49   :  { %v6716_v18 = vld [vmem:[%s9618_s2] ss:$0 sm:$0xff]  ;;  %v7666_v55 = vld [vmem:[%s9598_s6 + $0x90] ss:$12 sps:$4 sm:$0xff]   ;;  %v7667_v56 = vld [vmem:[%s9598_s6 + $0xac] ss:$12 sps:$4 sm:$0xff]  }
  0x4a   :  { %507 = vmatpush1.bf16.msra.mxu1 %v7651_v45  ;;  %v7669_v57 = vld [vmem:[%s9598_s6 + $0xa8] ss:$12 sps:$4 sm:$0xff]   ;;  %v7671_v45 = vld [vmem:[%s9598_s6 + $0x20] ss:$12 sps:$4 sm:$0xff]   ;;  %s8034_s22 = smov 32   ;;  %vm703_vm2 = vcmask 261120  }
  0x4b   :  { %508 = vmatprep.subr.bf16.mxu1 %v7652_v46  ;;  %v7670_v58 = vld [vmem:[%s9598_s6 + $0x8] ss:$12 sps:$4 sm:$0xff]   ;;  %vm888_vm3 = vcmask 130048   ;;  %vm1705_vm4 = vcmask 785408  }
  0x4e   :  { %509 = vmatpush1.bf16.msra.mxu1 %v7654_v47 }
  0x4f   :  { %510 = vmatprep.subr.bf16.mxu1 %v7655_v48 }
  0x52   :  { %511 = vmatpush1.bf16.msra.mxu1 %v7657_v49 }
  0x53   :  { %512 = vmatprep.subr.bf16.mxu1 %v7658_v50 }
  0x56   :  { %513 = vmatpush1.bf16.msra.mxu1 %v7660_v51  ;;  %v7672_v51 = vld [vmem:[%s9598_s6 + $0x38] ss:$12 sps:$4 sm:$0xff]  }
  0x57   :  { %514 = vmatprep.subr.bf16.mxu1 %v7661_v52 }
  0x5a   :  { %515 = vmatpush1.bf16.msra.mxu1 %v7663_v53 }
  0x5b   :  { %516 = vmatprep.subr.bf16.mxu1 %v7664_v54  ;;  %v7673_v54 = vld [vmem:[%s9598_s6 + $0x50] ss:$12 sps:$4 sm:$0xff]  }
  0x5e   :  { %517 = vmatpush1.bf16.msra.mxu1 %v7666_v55  ;;  %v7674_v55 = vld [vmem:[%s9598_s6 + $0x68] ss:$12 sps:$4 sm:$0xff]  }
  0x5f   :  { %518 = vmatprep.subr.bf16.mxu1 %v7667_v56  ;;  %v7675_v56 = vld [vmem:[%s9598_s6 + $0x80] ss:$12 sps:$4 sm:$0xff]  }
  0x62   :  { %519 = vmatpush1.bf16.msra.mxu1 %v7669_v57  ;;  %v7676_v57 = vld [vmem:[%s9598_s6 + $0x98] ss:$12 sps:$4 sm:$0xff]  }
  0x63   :  { %7237 = vmatprep.subr.bf16.mxu1 %v7670_v58 }
 0x10d   :  { %v227_v19 = vpop.f32.mrb[0].mxu0 }
 0x10e   :  { %v228_v21 = vadd.f32 %v6716_v18, %v227_v19  ;;  %v229_v22 = vpop.f32.mrb[1].mxu0 }
 0x10f   :  { %v230_v23 = vpop.f32.mrb[2].mxu0 }
 0x110   :  { %v8211_v25 = vadd.f32 %v242_v20, %v228_v21  ;;  %v231_v26 = vadd.f32 %v6716_v18, %v230_v23  ;;  %v232_v27 = vpop.f32.mrb[3].mxu0 }
 0x112   :  { %v8213_v28 = vadd.f32 %v243_v24, %v231_v26  ;;  %252 = vadd.xlane.f32.xlu0 %v8211_v25  ;;  %v265_v29 = vmul.f32 %v8211_v25, %v8211_v25 }
 0x114   :  { %269 = vadd.xlane.f32.xlu1 %v265_v29  ;;  %v266_v34 = vmul.f32 %v8213_v28, %v8213_v28  ;;  %v6735_v29 = vld [vmem:[%s9596_s4] ss:$0 sm:$0xff] }
 0x115   :  { %v235_v30 = vpop.f32.mrb[4].mxu0 }
 0x116   :  { %v236_v32 = vadd.f32 %v6716_v18, %v235_v30  ;;  %v237_v33 = vpop.f32.mrb[5].mxu0  ;;  %254 = vadd.xlane.f32.xlu0 %v8213_v28 }
 0x117   :  { %v238_v35 = vpop.f32.mrb[6].mxu0 }
 0x118   :  { %v8227_v37 = vadd.f32 %v244_v31, %v236_v32  ;;  %v239_v38 = vadd.f32 %v6716_v18, %v238_v35  ;;  %271 = vadd.xlane.f32.xlu1 %v266_v34  ;;  %v240_v39 = vpop.f32.mrb[7].mxu0  ;;  %v6736_v34 = vld [vmem:[%s9597_s5] ss:$0 sm:$0xff] }
 0x11a   :  { %v8229_v40 = vadd.f32 %v245_v36, %v239_v38  ;;  %256 = vadd.xlane.f32.xlu0 %v8227_v37  ;;  %v267_v41 = vmul.f32 %v8227_v37, %v8227_v37 }
 0x11c   :  { %258 = vadd.xlane.f32.xlu1 %v8229_v40  ;;  %v268_v42 = vmul.f32 %v8229_v40, %v8229_v40 }
 0x11e   :  { %273 = vadd.xlane.f32.xlu0 %v267_v41 }
 0x120   :  { %275 = vadd.xlane.f32.xlu1 %v268_v42 }
 0x19f   :  { %v253_v59 = vpop.xlane.xlu0 %252 }
 0x1a0   :  { %v261_v60 = vmul.f32 0.0078125, %v253_v59  ;;  %v361_v59 = vlaneseq }
 0x1a1   :  { %v270_v61 = vpop.xlane.xlu1 %269 }
 0x1a2   :  { %v281_v62 = vmul.f32 %v261_v60, %v261_v60  ;;  %v277_v63 = vmul.f32 0.0078125, %v270_v61  ;;  %v289_v23 = vsub.f32 %v8211_v25, %v261_v60  ;;  %v8317_v60 = vshrl.u32 %v361_v59, 7 }
 0x1a3   :  { %v255_v0 = vpop.xlane.xlu0 %254 }
 0x1a4   :  { %v285_v2 = vsub.f32 %v277_v63, %v281_v62  ;;  %v262_v3 = vmul.f32 0.0078125, %v255_v0  ;;  %v8320_v61 = vsub.s32 0, %v8317_v60  ;;  %v359_v62 = vld [vmem:[%s9599_s7] sm:$0x7]  ;;  %v8326_v63 = vsub.s32 1, %v8317_v60 }
 0x1a5   :  { %v272_v4 = vpop.xlane.xlu1 %271 }
 0x1a6   :  { %v293_v5 = vadd.f32 1e-06, %v285_v2  ;;  %v282_v6 = vmul.f32 %v262_v3, %v262_v3  ;;  %v278_v7 = vmul.f32 0.0078125, %v272_v4  ;;  %v290_v30 = vsub.f32 %v8213_v28, %v262_v3 }
 0x1a7   :  { %v257_v8 = vpop.xlane.xlu0 %256  ;;  %v364_v0 = vrot.slane %v359_v62, %v8320_v61  ;;  %v368_v3 = vrot.slane %v359_v62, %v8326_v63 }
 0x1a8   :  { %7806 = vrsqrt.f32 %v293_v5  ;;  %v286_v9 = vsub.f32 %v278_v7, %v282_v6  ;;  %v263_v10 = vmul.f32 0.0078125, %v257_v8 }
 0x1a9   :  { %v259_v11 = vpop.xlane.xlu1 %258 }
 0x1aa   :  { %v294_v12 = vadd.f32 1e-06, %v286_v9  ;;  %v283_v13 = vmul.f32 %v263_v10, %v263_v10  ;;  %v264_v14 = vmul.f32 0.0078125, %v259_v11  ;;  %v291_v35 = vsub.f32 %v8227_v37, %v263_v10 }
 0x1ab   :  { %v274_v15 = vpop.xlane.xlu0 %273 }
 0x1ac   :  { %7808 = vrsqrt.f32 %v294_v12  ;;  %v284_v16 = vmul.f32 %v264_v14, %v264_v14  ;;  %v279_v17 = vmul.f32 0.0078125, %v274_v15  ;;  %v292_v38 = vsub.f32 %v8229_v40, %v264_v14 }
 0x1ad   :  { %v276_v18 = vpop.xlane.xlu1 %275 }
 0x1ae   :  { %v287_v19 = vsub.f32 %v279_v17, %v283_v13  ;;  %v280_v20 = vmul.f32 0.0078125, %v276_v18  ;;  %v8033_v13 = vmov 0.0  }
 0x1af   :  { %7281 = vmatprep.subr.bf16.mxu0 %v8033_v13  ;;  %7285 = vmatprep.mubr.msk.bf16.mxu0 %vm8035_vm1, %v8033_v13 }
 0x1b0   :  { %v295_v21 = vadd.f32 1e-06, %v287_v19  ;;  %v288_v22 = vsub.f32 %v280_v20, %v284_v16 }
 0x1b2   :  { %v7807_v24 = vpop.eup %7806  ;;  %7810 = vrsqrt.f32 %v295_v21  ;;  %v296_v26 = vadd.f32 1e-06, %v288_v22 }
 0x1b3   :  { %v301_v27 = vmul.f32 %v7807_v24, %v289_v23  ;;  %v371_v24 = vsub.s32 2, %v8317_v60 }
 0x1b4   :  { %7812 = vrsqrt.f32 %v296_v26 }
 0x1b5   :  { %v311_v33 = vmul.f32 %v6735_v29, %v301_v27  ;;  %v372_v26 = vrot.slane %v359_v62, %v371_v24 }
 0x1b6   :  { %v7809_v31 = vpop.eup %7808 }
 0x1b7   :  { %v302_v32 = vmul.f32 %v7809_v31, %v290_v30  ;;  %v321_v39 = vadd.f32 %v6736_v34, %v311_v33 }
 0x1b9   :  { %v312_v36 = vmul.f32 %v6735_v29, %v302_v32 }
 0x1bb   :  { %v322_v41 = vadd.f32 %v6736_v34, %v312_v36 }
 0x1bc   :  { %v7811_v42 = vpop.eup %7810 }
 0x1bd   :  { %v325_v43 = vpack.c.bf16 %v322_v41, %v321_v39  ;;  %v303_v44 = vmul.f32 %v7811_v42, %v291_v35 }
 0x1be   :  { %v7813_v46 = vpop.eup %7812 }
 0x1bf   :  { %537 = vmatmul.mubr.bf16.vlgmr.msra.gmra.mrb[0].mxu1 %v325_v43  ;;  %v304_v47 = vmul.f32 %v7813_v46, %v292_v38  ;;  %v313_v48 = vmul.f32 %v6735_v29, %v303_v44 }
 0x1c0   :  { %546 = vmatprep.mubr.bf16.mxu1 %v8030_v1  ;;  %7238 = vmatpush3.bf16.msra.mxu1 %v7670_v58  ;;  %v7677_v58 = vld [vmem:[%s9598_s6 + $0xb0] ss:$12 sps:$4 sm:$0xff]  }
 0x1c1   :  { %v314_v49 = vmul.f32 %v6735_v29, %v304_v47  ;;  %v323_v50 = vadd.f32 %v6736_v34, %v313_v48  ;;  %7239 = vmatprep.subr.bf16.mxu1 %v7671_v45 }
 0x1c3   :  { %v324_v52 = vadd.f32 %v6736_v34, %v314_v49 }
 0x1c4   :  { %7240 = vmatpush3.bf16.msra.mxu1 %v7671_v45 }
 0x1c5   :  { %v326_v53 = vpack.c.bf16 %v324_v52, %v323_v50  ;;  %7241 = vmatprep.subr.bf16.mxu1 %v7672_v51 }
 0x1c7   :  { %547 = vmatmul.mubr.bf16.gmra.mrb[4].mxu1 %v326_v53 }
 0x1c8   :  { %7253 = vmatprep.mubr.bf16.mxu1 %v325_v43  ;;  %7242 = vmatpush3.bf16.msra.mxu1 %v7672_v51 }
 0x1c9   :  { %7243 = vmatprep.subr.bf16.mxu1 %v7673_v54 }
 0x1cc   :  { %7244 = vmatpush3.bf16.msra.mxu1 %v7673_v54 }
 0x1cd   :  { %7245 = vmatprep.subr.bf16.mxu1 %v7674_v55 }
 0x1d0   :  { %7246 = vmatpush3.bf16.msra.mxu1 %v7674_v55 }
 0x1d1   :  { %7247 = vmatprep.subr.bf16.mxu1 %v7675_v56 }
 0x1d4   :  { %7248 = vmatpush3.bf16.msra.mxu1 %v7675_v56 }
 0x1d5   :  { %7249 = vmatprep.subr.bf16.mxu1 %v7676_v57 }
 0x1d8   :  { %7250 = vmatpush3.bf16.msra.mxu1 %v7676_v57 }
 0x1d9   :  { %7251 = vmatprep.subr.bf16.mxu1 %v7677_v58 }
 0x1dc   :  { %7252 = vmatpush3.bf16.msra.mxu1 %v7677_v58 }
 0x1dd   :  { %7257 = vmatprep.subr.bf16.mxu1 %v8033_v13 }
 0x1df   :  { %7254 = vmatmul.mubr.bf16.vlgmr.msra.gmra.mrb[8].mxu1 %v326_v53 }
 0x1e0   :  { %7261 = vmatprep.mubr.msk.bf16.mxu1 %vm8035_vm1, %v8033_v13 }
 0x292   :  { %v538_v2 = vpop.f32.mrb[0].mxu1 }
 0x293   :  { %v540_v4 = vpop.f32.mrb[1].mxu1  ;;  %v539_v6 = vadd.f32 %v538_v2, %v364_v0 }
 0x294   :  { %v542_v5 = vpop.f32.mrb[2].mxu1  ;;  %v541_v9 = vadd.f32 %v540_v4, %v368_v3 }
 0x295   :  { %v543_v7 = vadd.f32 %v542_v5, %v364_v0  ;;  %v544_v8 = vpop.f32.mrb[3].mxu1 }
 0x296   :  { %v545_v10 = vadd.f32 %v544_v8, %v368_v3 }
 0x297   :  { %v606_v11 = vpack.c.bf16 %v543_v7, %v539_v6 }
 0x298   :  { %v608_v12 = vpack.c.bf16 %v545_v10, %v541_v9 }
 0x29a   :  { %623 = vrot.lane.b32.xlu1 %v608_v12, %s8031_s20  ;;  %620 = vrot.lane.b32.xlu0 %v608_v12, %s8032_s21  ;;  %v548_v14 = vpop.f32.mrb[4].mxu1 }
 0x29b   :  { %v549_v15 = vadd.f32 %v548_v14, %v364_v0  ;;  %v550_v16 = vpop.f32.mrb[5].mxu1 }
 0x29c   :  { %v551_v17 = vadd.f32 %v550_v16, %v368_v3  ;;  %v552_v18 = vpop.f32.mrb[6].mxu1 }
 0x29d   :  { %v553_v19 = vadd.f32 %v552_v18, %v364_v0  ;;  %v554_v20 = vpop.f32.mrb[7].mxu1 }
 0x29e   :  { %626 = vrot.lane.b32.xlu1 %v608_v12, %s8034_s22  ;;  %v555_v21 = vadd.f32 %v554_v20, %v368_v3 }
 0x29f   :  { %v8342_v22 = vpack.c.bf16 %v553_v19, %v549_v15 }
 0x2a0   :  { %v8344_v23 = vpack.c.bf16 %v555_v21, %v551_v17 }
 0x2a2   :  { %613 = vrot.lane.b32.xlu1 %v606_v11, %s8032_s21 }
 0x2a6   :  { %615 = vrot.lane.b32.xlu1 %v606_v11, %s8031_s20 }
 0x2aa   :  { %617 = vrot.lane.b32.xlu1 %v606_v11, %s8034_s22 }
 0x2b2   :  { %v7255_v27 = vpop.f32.mrb[8].mxu1 }
 0x2b3   :  { %v600_v29 = vadd.f32 %v7255_v27, %v372_v26  ;;  %v591_v30 = vpop.f32.mrb[9].mxu1 }
 0x2b4   :  { %v592_v31 = vadd.f32 %v591_v30, %v372_v26  ;;  %v7256_v32 = vpop.f32.mrb[10].mxu1 }
 0x2b5   :  { %v603_v33 = vadd.f32 %v7256_v32, %v372_v26  ;;  %v594_v34 = vpop.f32.mrb[11].mxu1 }
 0x2b6   :  { %v595_v35 = vadd.f32 %v594_v34, %v372_v26 }
 0x2b7   :  { %v8349_v36 = vpack.c.bf16 %v603_v33, %v600_v29 }
 0x2b8   :  { %639 = vxpose.xlu0.c.b16.start.end [1/1] (short) (narrow) %v608_v12, 32  ;;  %v8351_v38 = vpack.c.bf16 %v595_v35, %v592_v31 }
 0x30c   :  { %v621_v39 = vpop.permute.xlu0 %620  ;;  %v624_v41 = vpop.permute.xlu1 %623 }
 0x30d   :  { %655 = vxpose.xlu1.c.b16.start.end [1/1] (short) (narrow) %v621_v39, 32  ;;  %671 = vxpose.xlu0.c.b16.start.end [1/1] (short) (narrow) %v624_v41, 32 }
 0x310   :  { %v627_v42 = vpop.permute.xlu1 %626 }
 0x312   :  { %687 = vxpose.xlu0.c.b16.start.end [1/1] (short) (narrow) %v627_v42, 32  ;;  %981 = vxpose.xlu1.c.b16.start.end [1/1] (short) (narrow) %v8351_v38, 32 }
 0x314   :  { %v614_v45 = vpop.permute.xlu1 %613 }
 0x318   :  { %v616_v46 = vpop.permute.xlu1 %615 }
 0x31a   :  { %630 = vrot.lane.b32.xlu1 %v8351_v38, %s8032_s21 }
 0x31c   :  { %v618_v47 = vpop.permute.xlu1 %617 }
 0x31e   :  { %v647_v43 = vpop.trf.xlu0 }
 0x31f   :  { %7258 = vmatpush3.bf16.msra.mxu1 %v647_v43 }
 0x320   :  { %7259 = vmatprep.subr.bf16.mxu1 %v8033_v13 }
 0x322   :  { %v648_v44 = vpop.trf.xlu0 }
 0x323   :  { %7260 = vmatpush3.bf16.msra.mxu1 %v648_v44 }
 0x324   :  { %7265 = vmatprep.subr.bf16.mxu1 %v8033_v13 }
 0x326   :  { %7262 = vmatmul.mubr.msk.bf16.vlgmr.msra.gmra.mrb[12].mxu1 %vm703_vm2, %v606_v11 }
 0x327   :  { %7269 = vmatprep.mubr.msk.bf16.mxu1 %vm8035_vm1, %v8033_v13 }
 0x373   :  { %v679_v48 = vpop.trf.xlu0  ;;  %v663_v49 = vpop.trf.xlu1 }
 0x374   :  { %7266 = vmatpush3.bf16.msra.mxu1 %v663_v49 }
 0x375   :  { %7267 = vmatprep.subr.bf16.mxu1 %v8033_v13 }
 0x377   :  { %v680_v50 = vpop.trf.xlu0  ;;  %v664_v51 = vpop.trf.xlu1 }
 0x378   :  { %7268 = vmatpush3.bf16.msra.mxu1 %v664_v51 }
 0x379   :  { %7273 = vmatprep.subr.bf16.mxu1 %v8033_v13 }
 0x37b   :  { %v695_v52 = vpop.trf.xlu0  ;;  %7270 = vmatmul.mubr.msk.bf16.vlgmr.msra.gmra.mrb[16].mxu1 %vm703_vm2, %v614_v45  ;;  %v989_v54 = vpop.trf.xlu1 }
 0x37c   :  { %7274 = vmatpush3.bf16.msra.mxu1 %v679_v48  ;;  %7282 = vmatpush3.bf16.msra.mxu0 %v695_v52 }
 0x37d   :  { %7283 = vmatprep.subr.bf16.mxu0 %v8033_v13  ;;  %7275 = vmatprep.subr.bf16.mxu1 %v8033_v13 }
 0x37e   :  { %7277 = vmatprep.mubr.msk.bf16.mxu1 %vm8035_vm1, %v8033_v13 }
 0x37f   :  { %v696_v53 = vpop.trf.xlu0  ;;  %v8387_v33 = vpop.trf.xlu1 }
 0x380   :  { %7276 = vmatpush3.bf16.msra.mxu1 %v680_v50  ;;  %7284 = vmatpush3.bf16.msra.mxu0 %v696_v53 }
 0x383   :  { %7278 = vmatmul.mubr.msk.bf16.vlgmr.msra.gmra.mrb[20].mxu1 %vm703_vm2, %v616_v46  ;;  %7286 = vmatmul.mubr.msk.bf16.vlgmr.msra.gmra.mrb[8].mxu0 %vm703_vm2, %v618_v47 }
 0x384   :  { %7291 = vmatprep.mubr.msk.bf16.mxu1 %vm888_vm3, %v989_v54 }
 0x38c   :  { %v631_v34 = vpop.permute.xlu1 %630 }
 0x3f9   :  { %v741_v55 = vpop.f32.mrb[12].mxu1 }
 0x3fa   :  { %v880_v56 = vmul.f32 0.17677669, %v741_v55  ;;  %v7263_v57 = vpop.f32.mrb[13].mxu1 }
 0x3fb   :  { %v744_v58 = vpop.f32.mrb[14].mxu1 }
 0x3fc   :  { %v881_v59 = vmul.f32 0.17677669, %v744_v58  ;;  %v7264_v62 = vpop.f32.mrb[15].mxu1  ;;  %v889_v0 = vsel %vm888_vm3, %v880_v56, -inf }
 0x3fd   :  { %890 = vmax.xlane.f32.xlu0 %v889_v0 }
 0x3fe   :  { %v892_v2 = vsel %vm888_vm3, %v881_v59, -inf }
 0x3ff   :  { %893 = vmax.xlane.f32.xlu1 %v892_v2 }
 0x44e   :  { %v785_v3 = vpop.f32.mrb[16].mxu1 }
 0x44f   :  { %v882_v4 = vmul.f32 0.17677669, %v785_v3  ;;  %v7271_v5 = vpop.f32.mrb[17].mxu1 }
 0x450   :  { %v788_v6 = vpop.f32.mrb[18].mxu1 }
 0x451   :  { %v883_v7 = vmul.f32 0.17677669, %v788_v6  ;;  %v7272_v8 = vpop.f32.mrb[19].mxu1  ;;  %v895_v9 = vsel %vm888_vm3, %v882_v4, -inf }
 0x452   :  { %896 = vmax.xlane.f32.xlu0 %v895_v9 }
 0x453   :  { %v898_v10 = vsel %vm888_vm3, %v883_v7, -inf }
 0x456   :  { %v873_v11 = vpop.f32.mrb[8].mxu0  ;;  %899 = vmax.xlane.f32.xlu0 %v898_v10  ;;  %v829_v12 = vpop.f32.mrb[20].mxu1 }
 0x457   :  { %v886_v14 = vmul.f32 0.17677669, %v873_v11  ;;  %v7279_v15 = vpop.f32.mrb[21].mxu1  ;;  %v7287_v16 = vpop.f32.mrb[9].mxu0  ;;  %v884_v26 = vmul.f32 0.17677669, %v829_v12 }
 0x458   :  { %v832_v17 = vpop.f32.mrb[22].mxu1  ;;  %v876_v18 = vpop.f32.mrb[10].mxu0 }
 0x459   :  { %v887_v19 = vmul.f32 0.17677669, %v876_v18  ;;  %v7280_v20 = vpop.f32.mrb[23].mxu1  ;;  %v7288_v21 = vpop.f32.mrb[11].mxu0  ;;  %v907_v27 = vsel %vm888_vm3, %v886_v14, -inf  ;;  %v901_v31 = vsel %vm888_vm3, %v884_v26, -inf }
 0x45a   :  { %v885_v29 = vmul.f32 0.17677669, %v832_v17  ;;  %908 = vmax.xlane.f32.xlu1 %v907_v27 }
 0x45b   :  { %v910_v30 = vsel %vm888_vm3, %v887_v19, -inf }
 0x45c   :  { %911 = vmax.xlane.f32.xlu0 %v910_v30  ;;  %v904_v32 = vsel %vm888_vm3, %v885_v29, -inf }
 0x45e   :  { %902 = vmax.xlane.f32.xlu1 %v901_v31 }
 0x460   :  { %905 = vmax.xlane.f32.xlu0 %v904_v32 }
 0x46f   :  { %633 = vrot.lane.b32.xlu1 %v8351_v38, %s8031_s20 }
 0x473   :  { %1716 = vrot.lane.b32.xlu1 %v8344_v23, %s8032_s21 }
 0x477   :  { %1722 = vrot.lane.b32.xlu1 %v8344_v23, %s8034_s22 }
 0x47b   :  { %1709 = vrot.lane.b32.xlu1 %v8342_v22, %s8032_s21 }
 0x48a   :  { %v891_v35 = vpop.xlane.xlu0 %890 }
 0x48b   :  { %v913_v39 = vsub.f32 %v880_v56, %v891_v35 }
 0x48c   :  { %v894_v41 = vpop.xlane.xlu1 %893 }
 0x48d   :  { %997 = vxpose.xlu0.c.b16.start.end [1/1] (short) (narrow) %v631_v34, 32  ;;  %v921_v42 = vmul.f32 1.442695, %v913_v39  ;;  %v914_v43 = vsub.f32 %v881_v59, %v894_v41 }
 0x48f   :  { %7814 = vpow2.f32 %v921_v42  ;;  %v923_v44 = vmul.f32 1.442695, %v914_v43 }
 0x491   :  { %7816 = vpow2.f32 %v923_v44 }
 0x499   :  { %v8393_v45 = vpop.eup %7814 }
 0x49a   :  { %636 = vrot.lane.b32.xlu0 %v8351_v38, %s8034_s22  ;;  %v937_v46 = vsel %vm888_vm3, %v8393_v45, 0.0 }
 0x49b   :  { %v8397_v47 = vpop.eup %7816 }
 0x49c   :  { %v940_v38 = vsel %vm888_vm3, %v8397_v47, 0.0 }
 0x49e   :  { %1719 = vrot.lane.b32.xlu0 %v8344_v23, %s8031_s20 }
 0x4bd   :  { %938 = vadd.xlane.f32.xlu0 %v937_v46 }
 0x4c1   :  { %941 = vadd.xlane.f32.xlu0 %v940_v38 }
 0x4df   :  { %v897_v48 = vpop.xlane.xlu0 %896 }
 0x4e0   :  { %v915_v49 = vsub.f32 %v882_v4, %v897_v48 }
 0x4e2   :  { %v925_v50 = vmul.f32 1.442695, %v915_v49 }
 0x4e3   :  { %v900_v51 = vpop.xlane.xlu0 %899 }
 0x4e4   :  { %7818 = vpow2.f32 %v925_v50  ;;  %v916_v52 = vsub.f32 %v883_v7, %v900_v51 }
 0x4e6   :  { %v927_v53 = vmul.f32 1.442695, %v916_v52 }
 0x4e7   :  { %v909_v54 = vpop.xlane.xlu1 %908 }
 0x4e8   :  { %7820 = vpow2.f32 %v927_v53  ;;  %v919_v55 = vsub.f32 %v886_v14, %v909_v54 }
 0x4e9   :  { %v912_v56 = vpop.xlane.xlu0 %911 }
 0x4ea   :  { %v920_v57 = vsub.f32 %v887_v19, %v912_v56  ;;  %v933_v58 = vmul.f32 1.442695, %v919_v55 }
 0x4eb   :  { %v903_v62 = vpop.xlane.xlu1 %902 }
 0x4ec   :  { %v935_v59 = vmul.f32 1.442695, %v920_v57  ;;  %7822 = vpow2.f32 %v933_v58  ;;  %v917_v0 = vsub.f32 %v884_v26, %v903_v62 }
 0x4ed   :  { %v906_v2 = vpop.xlane.xlu0 %905 }
 0x4ee   :  { %v8401_v3 = vpop.eup %7818  ;;  %v918_v5 = vsub.f32 %v885_v29, %v906_v2  ;;  %7824 = vpow2.f32 %v935_v59  ;;  %v929_v4 = vmul.f32 1.442695, %v917_v0 }
 0x4ef   :  { %v943_v6 = vsel %vm888_vm3, %v8401_v3, 0.0  ;;  %v634_v26 = vpop.permute.xlu1 %633 }
 0x4f0   :  { %v931_v7 = vmul.f32 1.442695, %v918_v5  ;;  %944 = vadd.xlane.f32.xlu0 %v943_v6 }
 0x4f2   :  { %v7821_v8 = vpop.eup %7820  ;;  %7826 = vpow2.f32 %v931_v7 }
 0x4f3   :  { %7828 = vpow2.f32 %v929_v4  ;;  %v946_v9 = vsel %vm888_vm3, %v7821_v8, 0.0  ;;  %v1005_v10 = vpop.trf.xlu0  ;;  %v1717_v27 = vpop.permute.xlu1 %1716 }
 0x4f4   :  { %947 = vadd.xlane.f32.xlu0 %v946_v9  ;;  %7297 = vmatprep.mubr.msk.bf16.mxu0 %vm888_vm3, %v1005_v10 }
 0x4f6   :  { %v8407_v11 = vpop.eup %7822 }
 0x4f7   :  { %v955_v12 = vsel %vm888_vm3, %v8407_v11, 0.0  ;;  %v1006_v20 = vpop.trf.xlu0  ;;  %v1723_v30 = vpop.permute.xlu1 %1722 }
 0x4f8   :  { %v7825_v14 = vpop.eup %7824  ;;  %956 = vadd.xlane.f32.xlu1 %v955_v12 }
 0x4f9   :  { %v958_v16 = vsel %vm888_vm3, %v7825_v14, 0.0 }
 0x4fb   :  { %v1710_v46 = vpop.permute.xlu1 %1709 }
 0x4fc   :  { %v8411_v15 = vpop.eup %7826  ;;  %959 = vadd.xlane.f32.xlu1 %v958_v16 }
 0x4fd   :  { %v8414_v17 = vpop.eup %7828  ;;  %v952_v18 = vsel %vm888_vm3, %v8411_v15, 0.0 }
 0x4fe   :  { %953 = vadd.xlane.f32.xlu0 %v952_v18  ;;  %v949_v19 = vsel %vm888_vm3, %v8414_v17, 0.0 }
 0x500   :  { %950 = vadd.xlane.f32.xlu1 %v949_v19 }
 0x50c   :  { %v637_v21 = vpop.permute.xlu0 %636 }
 0x510   :  { %v1720_v29 = vpop.permute.xlu0 %1719 }
 0x511   :  { %1713 = vrot.lane.b32.xlu1 %v8342_v22, %s8034_s22 }
 0x514   :  { %1711 = vrot.lane.b32.xlu0 %v8342_v22, %s8031_s20 }
 0x532   :  { %1029 = vxpose.xlu0.c.b16.start.end [1/1] (short) (narrow) %v637_v21, 32 }
 0x534   :  { %1013 = vxpose.xlu1.c.b16.start.end [1/1] (short) (narrow) %v634_v26, 32 }
 0x537   :  { %1735 = vxpose.xlu0.c.b16.start.end [1/1] (short) (narrow) %v8344_v23, 32 }
 0x539   :  { %1751 = vxpose.xlu1.c.b16.start.end [1/1] (short) (narrow) %v1717_v27, 32 }
 0x53c   :  { %1767 = vxpose.xlu0.c.b16.start.end [1/1] (short) (narrow) %v1720_v29, 32 }
 0x53e   :  { %1783 = vxpose.xlu1.c.b16.start.end [1/1] (short) (narrow) %v1723_v30, 32 }
 0x54a   :  { %v939_v31 = vpop.xlane.xlu0 %938 }
 0x54b   :  { %7830 = vrcp.f32 %v939_v31 }
 0x54e   :  { %v942_v32 = vpop.xlane.xlu0 %941 }
 0x54f   :  { %7832 = vrcp.f32 %v942_v32 }
 0x555   :  { %v7831_v34 = vpop.eup %7830 }
 0x556   :  { %v969_v39 = vmul.f32 %v7831_v34, %v8393_v45 }
 0x559   :  { %v7833_v35 = vpop.eup %7832 }
 0x55a   :  { %v970_v41 = vmul.f32 %v7833_v35, %v8397_v47 }
 0x55c   :  { %v977_v42 = vpack.c.bf16 %v970_v41, %v969_v39 }
 0x55e   :  { %7541 = vmatprep.subr.msk.bf16.mxu1 %vm888_vm3, %v977_v42  ;;  %v1052_v23 = vsel %vm888_vm3, %v977_v42, 0 }
 0x55f   :  { %7290 = vmatpush3.bf16.xpose.msra.mxu1 %v1052_v23 }
 0x566   :  { %7292 = vmatmul.mubr.msk.bf16.vlgmr.msra.gmra.mrb[24].mxu1 %vm888_vm3, %v8387_v33 }
 0x57d   :  { %v945_v43 = vpop.xlane.xlu0 %944 }
 0x57e   :  { %7834 = vrcp.f32 %v945_v43 }
 0x581   :  { %v948_v44 = vpop.xlane.xlu0 %947 }
 0x582   :  { %7836 = vrcp.f32 %v948_v44 }
 0x585   :  { %v957_v38 = vpop.xlane.xlu1 %956 }
 0x586   :  { %7838 = vrcp.f32 %v957_v38 }
 0x588   :  { %v7835_v48 = vpop.eup %7834 }
 0x589   :  { %v960_v45 = vpop.xlane.xlu1 %959  ;;  %v971_v50 = vmul.f32 %v7835_v48, %v8401_v3 }
 0x58a   :  { %7840 = vrcp.f32 %v960_v45 }
 0x58b   :  { %v954_v47 = vpop.xlane.xlu0 %953 }
 0x58c   :  { %v7837_v49 = vpop.eup %7836  ;;  %7842 = vrcp.f32 %v954_v47 }
 0x58d   :  { %v972_v51 = vmul.f32 %v7837_v49, %v7821_v8  ;;  %v951_v52 = vpop.xlane.xlu1 %950 }
 0x58e   :  { %7844 = vrcp.f32 %v951_v52 }
 0x58f   :  { %v978_v53 = vpack.c.bf16 %v972_v51, %v971_v50  ;;  %v1712_v55 = vpop.permute.xlu0 %1711 }
 0x590   :  { %v7839_v54 = vpop.eup %7838 }
 0x591   :  { %7542 = vmatprep.subr.msk.bf16.mxu0 %vm888_vm3, %v978_v53  ;;  %v1110_v33 = vsel %vm888_vm3, %v978_v53, 0  ;;  %v975_v57 = vmul.f32 %v7839_v54, %v8407_v11  ;;  %v1714_v62 = vpop.permute.xlu1 %1713 }
 0x592   :  { %7296 = vmatpush3.bf16.xpose.msra.mxu0 %v1110_v33 }
 0x594   :  { %v7841_v56 = vpop.eup %7840 }
 0x595   :  { %v976_v58 = vmul.f32 %v7841_v56, %v7825_v14 }
 0x596   :  { %v7843_v59 = vpop.eup %7842 }
 0x597   :  { %v980_v0 = vpack.c.bf16 %v976_v58, %v975_v57  ;;  %v974_v6 = vmul.f32 %v7843_v59, %v8411_v15 }
 0x598   :  { %v1037_v2 = vpop.trf.xlu0  ;;  %v7845_v3 = vpop.eup %7844 }
 0x599   :  { %7298 = vmatmul.mubr.msk.bf16.vlgmr.msra.gmra.mrb[12].mxu0 %vm888_vm3, %v1006_v20  ;;  %7544 = vmatprep.subr.msk.bf16.mxu0 %vm888_vm3, %v980_v0  ;;  %v1226_v5 = vsel %vm888_vm3, %v980_v0, 0  ;;  %v973_v4 = vmul.f32 %v7845_v3, %v8414_v17 }
 0x59a   :  { %7309 = vmatprep.mubr.msk.bf16.mxu0 %vm888_vm3, %v1037_v2  ;;  %7308 = vmatpush3.bf16.xpose.msra.mxu0 %v1226_v5  ;;  %v1021_v7 = vpop.trf.xlu1 }
 0x59b   :  { %v979_v8 = vpack.c.bf16 %v974_v6, %v973_v4  ;;  %7321 = vmatprep.subr.bf16.mxu0 %v8033_v13  ;;  %7303 = vmatprep.mubr.msk.bf16.mxu1 %vm888_vm3, %v1021_v7 }
 0x59c   :  { %v1038_v9 = vpop.trf.xlu0 }
 0x59d   :  { %7543 = vmatprep.subr.msk.bf16.mxu1 %vm888_vm3, %v979_v8  ;;  %v1168_v10 = vsel %vm888_vm3, %v979_v8, 0 }
 0x59e   :  { %7302 = vmatpush3.bf16.xpose.msra.mxu1 %v1168_v10  ;;  %v1022_v11 = vpop.trf.xlu1 }
 0x59f   :  { %7313 = vmatprep.subr.bf16.mxu1 %v8033_v13 }
 0x5a0   :  { %v1743_v12 = vpop.trf.xlu0 }
 0x5a1   :  { %7310 = vmatmul.mubr.msk.bf16.vlgmr.msra.gmra.mrb[16].mxu0 %vm888_vm3, %v1038_v9 }
 0x5a2   :  { %v1759_v14 = vpop.trf.xlu1  ;;  %7325 = vmatprep.mubr.msk.bf16.mxu0 %vm8035_vm1, %v8033_v13 }
 0x5a3   :  { %7322 = vmatpush3.bf16.msra.mxu0 %v1759_v14 }
 0x5a4   :  { %v1744_v15 = vpop.trf.xlu0  ;;  %7323 = vmatprep.subr.bf16.mxu0 %v8033_v13 }
 0x5a5   :  { %7304 = vmatmul.mubr.msk.bf16.vlgmr.msra.gmra.mrb[28].mxu1 %vm888_vm3, %v1022_v11 }
 0x5a6   :  { %7314 = vmatpush3.bf16.msra.mxu1 %v1743_v12  ;;  %v1760_v16 = vpop.trf.xlu1  ;;  %7317 = vmatprep.mubr.msk.bf16.mxu1 %vm8035_vm1, %v8033_v13 }
 0x5a7   :  { %7324 = vmatpush3.bf16.msra.mxu0 %v1760_v16  ;;  %7315 = vmatprep.subr.bf16.mxu1 %v8033_v13 }
 0x5a8   :  { %7337 = vmatprep.subr.bf16.mxu0 %v8033_v13  ;;  %v1775_v17 = vpop.trf.xlu0 }
 0x5aa   :  { %7316 = vmatpush3.bf16.msra.mxu1 %v1744_v15  ;;  %7326 = vmatmul.mubr.msk.bf16.vlgmr.msra.gmra.mrb[20].mxu0 %vm703_vm2, %v1710_v46  ;;  %v1791_v18 = vpop.trf.xlu1 }
 0x5ab   :  { %7338 = vmatpush3.bf16.msra.mxu0 %v1791_v18  ;;  %7329 = vmatprep.subr.bf16.mxu1 %v8033_v13 }
 0x5ac   :  { %7339 = vmatprep.subr.bf16.mxu0 %v8033_v13  ;;  %7341 = vmatprep.mubr.msk.bf16.mxu0 %vm8035_vm1, %v8033_v13  ;;  %v1776_v20 = vpop.trf.xlu0 }
 0x5ad   :  { %7318 = vmatmul.mubr.msk.bf16.vlgmr.msra.gmra.mrb[32].mxu1 %vm703_vm2, %v8342_v22 }
 0x5ae   :  { %7330 = vmatpush3.bf16.msra.mxu1 %v1775_v17  ;;  %v1792_v19 = vpop.trf.xlu1  ;;  %7333 = vmatprep.mubr.msk.bf16.mxu1 %vm8035_vm1, %v8033_v13 }
 0x5af   :  { %7340 = vmatpush3.bf16.msra.mxu0 %v1792_v19  ;;  %7331 = vmatprep.subr.bf16.mxu1 %v8033_v13 }
 0x5b2   :  { %7332 = vmatpush3.bf16.msra.mxu1 %v1776_v20  ;;  %7342 = vmatmul.mubr.msk.bf16.vlgmr.msra.gmra.mrb[24].mxu0 %vm703_vm2, %v1714_v62 }
 0x5b5   :  { %7334 = vmatmul.mubr.msk.bf16.vlgmr.msra.gmra.mrb[36].mxu1 %vm703_vm2, %v1712_v55 }
 0x639   :  { %v8467_v21 = vpop.f32.mrb[24].mxu1 }
 0x63a   :  { %v8469_v26 = vpop.f32.mrb[25].mxu1 }
 0x63b   :  { %v8471_v27 = vpop.f32.mrb[26].mxu1 }
 0x63c   :  { %v8473_v22 = vpop.f32.mrb[27].mxu1 }
 0x66c   :  { %v8475_v29 = vpop.f32.mrb[12].mxu0 }
 0x66d   :  { %v8477_v30 = vpop.f32.mrb[13].mxu0 }
 0x66e   :  { %v8479_v31 = vpop.f32.mrb[14].mxu0 }
 0x66f   :  { %v8481_v32 = vpop.f32.mrb[15].mxu0 }
 0x674   :  { %v8483_v34 = vpop.f32.mrb[16].mxu0 }
 0x675   :  { %v8485_v35 = vpop.f32.mrb[17].mxu0 }
 0x676   :  { %v8487_v39 = vpop.f32.mrb[18].mxu0 }
 0x677   :  { %v8489_v41 = vpop.f32.mrb[19].mxu0 }
 0x678   :  { %v8491_v42 = vpop.f32.mrb[28].mxu1 }
 0x679   :  { %v8493_v23 = vpop.f32.mrb[29].mxu1 }
 0x67a   :  { %v8495_v43 = vpop.f32.mrb[30].mxu1 }
 0x67b   :  { %v8497_v44 = vpop.f32.mrb[31].mxu1 }
 0x67d   :  { %v1880_v46 = vpop.f32.mrb[20].mxu0 }
 0x67e   :  { %v7327_v38 = vpop.f32.mrb[21].mxu0  ;;  %v1977_v52 = vmul.f32 0.17677669, %v1880_v46 }
 0x67f   :  { %v1883_v48 = vpop.f32.mrb[22].mxu0 }
 0x680   :  { %v1836_v45 = vpop.f32.mrb[32].mxu1  ;;  %v7328_v47 = vpop.f32.mrb[23].mxu0  ;;  %v1978_v55 = vmul.f32 0.17677669, %v1883_v48  ;;  %v1989_v62 = vsel %vm888_vm3, %v1977_v52, -inf }
 0x681   :  { %v1975_v49 = vmul.f32 0.17677669, %v1836_v45  ;;  %v7319_v50 = vpop.f32.mrb[33].mxu1 }
 0x682   :  { %v1839_v51 = vpop.f32.mrb[34].mxu1  ;;  %v1992_v4 = vsel %vm888_vm3, %v1978_v55, -inf }
 0x683   :  { %v1976_v53 = vmul.f32 0.17677669, %v1839_v51  ;;  %v7320_v33 = vpop.f32.mrb[35].mxu1  ;;  %v1983_v54 = vsel %vm888_vm3, %v1975_v49, -inf }
 0x684   :  { %1984 = vmax.xlane.f32.xlu0 %v1983_v54 }
 0x685   :  { %v1968_v56 = vpop.f32.mrb[24].mxu0  ;;  %v1986_v57 = vsel %vm888_vm3, %v1976_v53, -inf }
 0x686   :  { %1987 = vmax.xlane.f32.xlu1 %v1986_v57  ;;  %v7343_v58 = vpop.f32.mrb[25].mxu0  ;;  %v1981_v7 = vmul.f32 0.17677669, %v1968_v56 }
 0x687   :  { %v1971_v59 = vpop.f32.mrb[26].mxu0 }
 0x688   :  { %v1924_v0 = vpop.f32.mrb[36].mxu1  ;;  %1990 = vmax.xlane.f32.xlu0 %v1989_v62  ;;  %v7344_v2 = vpop.f32.mrb[27].mxu0  ;;  %v1982_v11 = vmul.f32 0.17677669, %v1971_v59  ;;  %v2001_v14 = vsel %vm888_vm3, %v1981_v7, -inf }
 0x689   :  { %v1979_v3 = vmul.f32 0.17677669, %v1924_v0  ;;  %v7335_v5 = vpop.f32.mrb[37].mxu1 }
 0x68a   :  { %v1927_v6 = vpop.f32.mrb[38].mxu1  ;;  %1993 = vmax.xlane.f32.xlu1 %v1992_v4  ;;  %v2004_v15 = vsel %vm888_vm3, %v1982_v11, -inf }
 0x68b   :  { %v8503_v8 = vmul.f32 0.17677669, %v1927_v6  ;;  %v7336_v9 = vpop.f32.mrb[39].mxu1  ;;  %v1995_v10 = vsel %vm888_vm3, %v1979_v3, -inf }
 0x68c   :  { %1996 = vmax.xlane.f32.xlu0 %v1995_v10 }
 0x68d   :  { %v1998_v12 = vsel %vm888_vm3, %v8503_v8, -inf }
 0x68e   :  { %1999 = vmax.xlane.f32.xlu1 %v1998_v12 }
 0x690   :  { %2002 = vmax.xlane.f32.xlu0 %v2001_v14 }
 0x692   :  { %2005 = vmax.xlane.f32.xlu1 %v2004_v15 }
 0x6a6   :  { %1726 = vrot.lane.b32.xlu0 %v8349_v36, %s8032_s21 }
 0x6aa   :  { %1732 = vrot.lane.b32.xlu0 %v8349_v36, %s8034_s22 }
 0x711   :  { %v1985_v16 = vpop.xlane.xlu0 %1984 }
 0x712   :  { %v2007_v17 = vsub.f32 %v1975_v49, %v1985_v16 }
 0x713   :  { %v1988_v18 = vpop.xlane.xlu1 %1987 }
 0x714   :  { %v2015_v19 = vmul.f32 1.442695, %v2007_v17  ;;  %v2008_v20 = vsub.f32 %v1976_v53, %v1988_v18 }
 0x715   :  { %v1991_v46 = vpop.xlane.xlu0 %1990 }
 0x716   :  { %7846 = vpow2.f32 %v2015_v19  ;;  %v2009_v38 = vsub.f32 %v1977_v52, %v1991_v46  ;;  %v2017_v45 = vmul.f32 1.442695, %v2008_v20 }
 0x717   :  { %v1994_v48 = vpop.xlane.xlu1 %1993 }
 0x718   :  { %v2019_v47 = vmul.f32 1.442695, %v2009_v38  ;;  %v2010_v50 = vsub.f32 %v1978_v55, %v1994_v48 }
 0x719   :  { %v1997_v51 = vpop.xlane.xlu0 %1996 }
 0x71a   :  { %7848 = vpow2.f32 %v2019_v47  ;;  %v2011_v33 = vsub.f32 %v1979_v3, %v1997_v51  ;;  %v2021_v56 = vmul.f32 1.442695, %v2010_v50 }
 0x71b   :  { %v2000_v54 = vpop.xlane.xlu1 %1999  ;;  %7850 = vpow2.f32 %v2017_v45 }
 0x71c   :  { %v2023_v57 = vmul.f32 1.442695, %v2011_v33  ;;  %v2012_v16 = vsub.f32 %v8503_v8, %v2000_v54 }
 0x71d   :  { %v2003_v58 = vpop.xlane.xlu0 %2002 }
 0x71e   :  { %7852 = vpow2.f32 %v2023_v57  ;;  %v2013_v49 = vsub.f32 %v1981_v7, %v2003_v58  ;;  %v2025_v17 = vmul.f32 1.442695, %v2012_v16 }
 0x71f   :  { %v2006_v59 = vpop.xlane.xlu1 %2005  ;;  %7854 = vpow2.f32 %v2021_v56 }
 0x720   :  { %v8514_v62 = vpop.eup %7846  ;;  %v2027_v53 = vmul.f32 1.442695, %v2013_v49  ;;  %v2014_v52 = vsub.f32 %v1982_v11, %v2006_v59 }
 0x721   :  { %v2031_v0 = vsel %vm888_vm3, %v8514_v62, 0.0  ;;  %v1727_v20 = vpop.permute.xlu0 %1726 }
 0x722   :  { %7856 = vpow2.f32 %v2027_v53  ;;  %v2029_v55 = vmul.f32 1.442695, %v2014_v52  ;;  %2032 = vadd.xlane.f32.xlu1 %v2031_v0 }
 0x724   :  { %v8518_v2 = vpop.eup %7848  ;;  %7858 = vpow2.f32 %v2029_v55 }
 0x725   :  { %v2037_v3 = vsel %vm888_vm3, %v8518_v2, 0.0  ;;  %v7851_v5 = vpop.eup %7850  ;;  %7860 = vpow2.f32 %v2025_v17 }
 0x726   :  { %2038 = vadd.xlane.f32.xlu1 %v2037_v3  ;;  %v2034_v7 = vsel %vm888_vm3, %v7851_v5, 0.0 }
 0x728   :  { %v8522_v4 = vpop.eup %7852 }
 0x729   :  { %v2043_v6 = vsel %vm888_vm3, %v8522_v4, 0.0  ;;  %v7855_v9 = vpop.eup %7854 }
 0x72a   :  { %2044 = vadd.xlane.f32.xlu0 %v2043_v6  ;;  %2035 = vadd.xlane.f32.xlu1 %v2034_v7  ;;  %v2040_v12 = vsel %vm888_vm3, %v7855_v9, 0.0 }
 0x72c   :  { %v7857_v10 = vpop.eup %7856 }
 0x72d   :  { %v2049_v11 = vsel %vm888_vm3, %v7857_v10, 0.0 }
 0x72e   :  { %v7859_v14 = vpop.eup %7858  ;;  %2050 = vadd.xlane.f32.xlu0 %v2049_v11  ;;  %2041 = vadd.xlane.f32.xlu1 %v2040_v12 }
 0x72f   :  { %v2052_v15 = vsel %vm888_vm3, %v7859_v14, 0.0  ;;  %v8533_v18 = vpop.eup %7860 }
 0x730   :  { %v2046_v19 = vsel %vm888_vm3, %v8533_v18, 0.0 }
 0x732   :  { %2053 = vadd.xlane.f32.xlu0 %v2052_v15 }
 0x73f   :  { %1729 = vrot.lane.b32.xlu1 %v8349_v36, %s8031_s20 }
 0x75f   :  { %2075 = vxpose.xlu0.c.b16.start.end [1/1] (short) (narrow) %v8349_v36, 32  ;;  %v1733_v36 = vpop.permute.xlu0 %1732 }
 0x763   :  { %2047 = vadd.xlane.f32.xlu1 %v2046_v19 }
 0x790   :  { %2091 = vxpose.xlu1.c.b16.start.end [1/1] (short) (narrow) %v1727_v20, 32 }
 0x79e   :  { %1277 = vxpose.xlu1.b32.start [1/4] (short) (narrow) %v8469_v26, 16 }
 0x7a2   :  { %1278 = vxpose.xlu1.b32.cont [2/4] (short) (narrow) %v8473_v22, 16 }
 0x7a6   :  { %1279 = vxpose.xlu1.b32.cont [3/4] (short) (narrow) %v8467_v21, 16 }
 0x7aa   :  { %1280 = vxpose.xlu1.b32.end [4/4] (short) (narrow) %v8471_v27, 16 }
 0x7ae   :  { %1373 = vxpose.xlu1.b32.start [1/4] (short) (narrow) %v8485_v35, 16 }
 0x7af   :  { %v2033_v8 = vpop.xlane.xlu1 %2032 }
 0x7b0   :  { %7862 = vrcp.f32 %v2033_v8 }
 0x7b2   :  { %1374 = vxpose.xlu1.b32.cont [2/4] (short) (narrow) %v8489_v41, 16 }
 0x7b3   :  { %v2039_v46 = vpop.xlane.xlu1 %2038 }
 0x7b6   :  { %1375 = vxpose.xlu1.b32.cont [3/4] (short) (narrow) %v8483_v34, 16 }
 0x7b7   :  { %v2045_v38 = vpop.xlane.xlu0 %2044  ;;  %v2036_v48 = vpop.xlane.xlu1 %2035 }
 0x7b8   :  { %7864 = vrcp.f32 %v2036_v48 }
 0x7b9   :  { %7866 = vrcp.f32 %v2039_v46  ;;  %v8036_v46 = vmov 1983009808  }
 0x7ba   :  { %1376 = vxpose.xlu1.b32.end [4/4] (short) (narrow) %v8487_v39, 16  ;;  %v7863_v35 = vpop.eup %7862 }
 0x7bb   :  { %v2051_v26 = vpop.xlane.xlu0 %2050  ;;  %v2042_v21 = vpop.xlane.xlu1 %2041  ;;  %v2063_v45 = vmul.f32 %v7863_v35, %v8514_v62 }
 0x7bc   :  { %7868 = vrcp.f32 %v2042_v21 }
 0x7bd   :  { %7870 = vrcp.f32 %v2051_v26 }
 0x7bf   :  { %v2054_v27 = vpop.xlane.xlu0 %2053  ;;  %v1730_v22 = vpop.permute.xlu1 %1729 }
 0x7c0   :  { %7872 = vrcp.f32 %v2054_v27  ;;  %2107 = vxpose.xlu0.c.b16.start.end [1/1] (short) (narrow) %v1730_v22, 32 }
 0x7c1   :  { %7874 = vrcp.f32 %v2045_v38  ;;  %v1408_v38 = vunpack.c.l.s4 %v8036_v46 }
 0x7c2   :  { %v7865_v41 = vpop.eup %7864 }
 0x7c3   :  { %v2064_v34 = vmul.f32 %v7865_v41, %v7851_v5  ;;  %v7867_v47 = vpop.eup %7866  ;;  %v1409_v22 = vunpack.c.0.s8 %v1408_v38 }
 0x7c4   :  { %v2065_v56 = vmul.f32 %v7867_v47, %v8518_v2 }
 0x7c5   :  { %2123 = vxpose.xlu0.c.b16.start.end [1/1] (short) (narrow) %v1733_v36, 32  ;;  %v2083_v50 = vpop.trf.xlu0  ;;  %v2071_v51 = vpack.c.bf16 %v2064_v34, %v2063_v45  ;;  %v8576_v47 = vsub.s32 %v1409_v22, %v8317_v60 }
 0x7c6   :  { %7347 = vmatprep.mubr.msk.bf16.mxu1 %vm888_vm3, %v2083_v50  ;;  %v7869_v39 = vpop.eup %7868  ;;  %v8037_v50 = vmov 1934713408  }
 0x7c7   :  { %v7871_v33 = vpop.eup %7870  ;;  %7545 = vmatprep.subr.msk.bf16.mxu1 %vm888_vm3, %v2071_v51  ;;  %v2146_v54 = vsel %vm888_vm3, %v2071_v51, 0  ;;  %v2066_v57 = vmul.f32 %v7869_v39, %v7855_v9  ;;  %v1440_v51 = vunpack.c.l.s4 %v8037_v50 }
 0x7c8   :  { %7346 = vmatpush3.bf16.xpose.msra.mxu1 %v2146_v54  ;;  %v2069_v59 = vmul.f32 %v7871_v33, %v7857_v10 }
 0x7c9   :  { %v2072_v49 = vpack.c.bf16 %v2066_v57, %v2065_v56  ;;  %v2084_v0 = vpop.trf.xlu0 }
 0x7ca   :  { %v7873_v58 = vpop.eup %7872 }
 0x7cb   :  { %v2070_v62 = vmul.f32 %v7873_v58, %v7859_v14  ;;  %7546 = vmatprep.subr.msk.bf16.mxu0 %vm888_vm3, %v2072_v49  ;;  %v2204_v53 = vsel %vm888_vm3, %v2072_v49, 0  ;;  %v7875_v2 = vpop.eup %7874 }
 0x7cc   :  { %7352 = vmatpush3.bf16.xpose.msra.mxu0 %v2204_v53 }
 0x7cd   :  { %1309 = vxpose.xlu0.b32.start [1/4] (short) (narrow) %v8477_v30, 16  ;;  %v2074_v52 = vpack.c.bf16 %v2070_v62, %v2069_v59 }
 0x7cf   :  { %7548 = vmatprep.subr.msk.bf16.mxu0 %vm888_vm3, %v2074_v52  ;;  %7348 = vmatmul.mubr.msk.bf16.vlgmr.msra.gmra.mrb[40].mxu1 %vm888_vm3, %v2084_v0 }
 0x7d1   :  { %1310 = vxpose.xlu0.b32.cont [2/4] (short) (narrow) %v8481_v32, 16 }
 0x7d5   :  { %1311 = vxpose.xlu0.b32.cont [3/4] (short) (narrow) %v8475_v29, 16  ;;  %v2320_v29 = vsel %vm888_vm3, %v2074_v52, 0  ;;  %v1441_v52 = vunpack.c.0.s8 %v1440_v51 }
 0x7d9   :  { %1312 = vxpose.xlu0.b32.end [4/4] (short) (narrow) %v8479_v31, 16  ;;  %v2067_v31 = vmul.f32 %v7875_v2, %v8522_v4 }
 0x7dd   :  { %1341 = vxpose.xlu0.b32.start [1/4] (short) (narrow) %v8493_v23, 16 }
 0x7e1   :  { %1342 = vxpose.xlu0.b32.cont [2/4] (short) (narrow) %v8497_v44, 16 }
 0x7e5   :  { %1343 = vxpose.xlu0.b32.cont [3/4] (short) (narrow) %v8491_v42, 16 }
 0x7e9   :  { %1344 = vxpose.xlu0.b32.end [4/4] (short) (narrow) %v8495_v43, 16 }
 0x7f0   :  { %v2048_v30 = vpop.xlane.xlu1 %2047 }
 0x7f1   :  { %7876 = vrcp.f32 %v2048_v30 }
 0x7f6   :  { %v2099_v55 = vpop.trf.xlu1 }
 0x7f7   :  { %7353 = vmatprep.mubr.msk.bf16.mxu0 %vm888_vm3, %v2099_v55 }
 0x7fa   :  { %v2100_v32 = vpop.trf.xlu1 }
 0x7fb   :  { %v7877_v3 = vpop.eup %7876  ;;  %7354 = vmatmul.mubr.msk.bf16.vlgmr.msra.gmra.mrb[28].mxu0 %vm888_vm3, %v2100_v32 }
 0x7fc   :  { %7364 = vmatpush3.bf16.xpose.msra.mxu0 %v2320_v29  ;;  %v2068_v42 = vmul.f32 %v7877_v3, %v8533_v18 }
 0x7fe   :  { %v2073_v23 = vpack.c.bf16 %v2068_v42, %v2067_v31  ;;  %v8587_v42 = vsub.s32 %v1441_v52, %v8317_v60 }
 0x800   :  { %7547 = vmatprep.subr.msk.bf16.mxu1 %vm888_vm3, %v2073_v23  ;;  %v2262_v43 = vsel %vm888_vm3, %v2073_v23, 0 }
 0x801   :  { %7358 = vmatpush3.bf16.xpose.msra.mxu1 %v2262_v43 }
 0x81e   :  { %v1293_v18 = vpop.trf.xlu1 }
 0x822   :  { %v1294_v20 = vpop.trf.xlu1 }
 0x826   :  { %v2115_v44 = vpop.trf.xlu0 }
 0x827   :  { %7359 = vmatprep.mubr.msk.bf16.mxu1 %vm888_vm3, %v2115_v44 }
 0x82a   :  { %v2116_v5 = vpop.trf.xlu0 }
 0x82b   :  { %7360 = vmatmul.mubr.msk.bf16.vlgmr.msra.gmra.mrb[44].mxu1 %vm888_vm3, %v2116_v5 }
 0x82e   :  { %v2131_v6 = vpop.trf.xlu0  ;;  %v1389_v27 = vpop.trf.xlu1 }
 0x82f   :  { %7365 = vmatprep.mubr.msk.bf16.mxu0 %vm888_vm3, %v2131_v6 }
 0x832   :  { %v2132_v7 = vpop.trf.xlu0  ;;  %v1390_v34 = vpop.trf.xlu1 }
 0x833   :  { %7366 = vmatmul.mubr.msk.bf16.vlgmr.msra.gmra.mrb[32].mxu0 %vm888_vm3, %v2132_v7 }
 0x834   :  { %3143 = vmatprep.mubr.bf16.mxu0 %v8030_v1 }
 0x84d   :  { %v1325_v17 = vpop.trf.xlu0 }
 0x84e   :  { %v1421_v57 = vcombine.low %v1325_v17, %v1389_v27  ;;  %v1422_v58 = vcombine.high %v1325_v17, %v1389_v27 }
 0x850   :  { %v1429_v55 = vrot.slane %v1421_v57, %v8576_v47  ;;  %v1436_v2 = vrot.slane %v1422_v58, %v8576_v47 }
 0x851   :  { %v1326_v19 = vpop.trf.xlu0 }
 0x852   :  { %v1489_v62 = vcombine.low %v1326_v19, %v1390_v34  ;;  %v1490_v53 = vcombine.high %v1326_v19, %v1390_v34 }
 0x854   :  { %v1497_v29 = vrot.slane %v1489_v62, %v8576_v47  ;;  %v1504_v31 = vrot.slane %v1490_v53, %v8576_v47 }
 0x85d   :  { %v1357_v26 = vpop.trf.xlu0 }
 0x85e   :  { %v1405_v54 = vcombine.low %v1293_v18, %v1357_v26  ;;  %v1406_v56 = vcombine.high %v1293_v18, %v1357_v26 }
 0x860   :  { %v1413_v0 = vrot.slane %v1405_v54, %v8576_v47  ;;  %v1420_v30 = vrot.slane %v1406_v56, %v8576_v47 }
 0x861   :  { %v1358_v41 = vpop.trf.xlu0 }
 0x862   :  { %v1473_v49 = vcombine.low %v1294_v20, %v1358_v41  ;;  %v1474_v59 = vcombine.high %v1294_v20, %v1358_v41  ;;  %v1437_v23 = vcombine.low %v1413_v0, %v1429_v55  ;;  %v1438_v43 = vcombine.high %v1413_v0, %v1429_v55 }
 0x863   :  { %v1453_v44 = vcombine.low %v1420_v30, %v1436_v2  ;;  %v1454_v5 = vcombine.high %v1420_v30, %v1436_v2 }
 0x864   :  { %v1481_v32 = vrot.slane %v1473_v49, %v8576_v47  ;;  %v1488_v3 = vrot.slane %v1474_v59, %v8576_v47 }
 0x866   :  { %v1505_v6 = vcombine.low %v1481_v32, %v1497_v29  ;;  %v1506_v7 = vcombine.high %v1481_v32, %v1497_v29 }
 0x8a2   :  { %v7349_v4 = vpop.f32.mrb[40].mxu1 }
 0x8a3   :  { %v2182_v9 = vpop.f32.mrb[41].mxu1 }
 0x8a4   :  { %2371 = vxpose.xlu0.b32.start [1/4] (short) (narrow) %v2182_v9, 16  ;;  %v7350_v10 = vpop.f32.mrb[42].mxu1  ;;  %v1522_v9 = vcombine.high %v1488_v3, %v1504_v31 }
 0x8a5   :  { %v2185_v11 = vpop.f32.mrb[43].mxu1 }
 0x8a6   :  { %v1536_v18 = vrot.slane %v1522_v9, %v8587_v42  ;;  %v7680_v9 = vld [vmem:[%s9600_s8 + $0x10] sm:$0xff]  }
 0x8a8   :  { %2372 = vxpose.xlu0.b32.cont [2/4] (short) (narrow) %v2185_v11, 16  ;;  %v1452_v11 = vrot.slane %v1438_v43, %v8587_v42 }
 0x8ac   :  { %2373 = vxpose.xlu0.b32.cont [3/4] (short) (narrow) %v7349_v4, 16  ;;  %v1521_v4 = vcombine.low %v1488_v3, %v1504_v31 }
 0x8ae   :  { %v1529_v17 = vrot.slane %v1521_v4, %v8587_v42 }
 0x8b0   :  { %2374 = vxpose.xlu0.b32.end [4/4] (short) (narrow) %v7350_v10, 16  ;;  %v1445_v10 = vrot.slane %v1437_v23, %v8587_v42  ;;  %v6776_v26 = vcombine.high %v1529_v17, %v1536_v18 }
 0x8b2   :  { %v1541_v19 = vcombine.low %v1445_v10, %v1452_v11  ;;  %v6773_v20 = vcombine.high %v1445_v10, %v1452_v11  ;;  %v1640_v50 = vrot.slane %v6776_v26, %v8576_v47  ;;  %v7681_v10 = vld [vmem:[%s9600_s8 + $0x18] sm:$0xff]   ;;  %v7682_v11 = vld [vmem:[%s9600_s8 + $0x20] sm:$0xff]  }
 0x8b4   :  { %v1556_v27 = vrot.slane %v6773_v20, %v8576_v47 }
 0x8ce   :  { %v7355_v12 = vpop.f32.mrb[28].mxu0 }
 0x8cf   :  { %v2240_v14 = vpop.f32.mrb[29].mxu0 }
 0x8d0   :  { %2403 = vxpose.xlu1.b32.start [1/4] (short) (narrow) %v2240_v14, 16  ;;  %v7356_v15 = vpop.f32.mrb[30].mxu0  ;;  %v1468_v14 = vrot.slane %v1454_v5, %v8587_v42  ;;  %v7678_v5 = vld [vmem:[%s9600_s8] sm:$0xff]  }
 0x8d1   :  { %v2243_v16 = vpop.f32.mrb[31].mxu0  ;;  %7369 = vmatprep.subr.bf16.mxu1 %v7678_v5 }
 0x8d2   :  { %7370 = vmatpush3.bf16.msra.mxu1 %v7678_v5 }
 0x8d4   :  { %2404 = vxpose.xlu1.b32.cont [2/4] (short) (narrow) %v2243_v16, 16  ;;  %v1520_v16 = vrot.slane %v1506_v7, %v8587_v42 }
 0x8d8   :  { %2405 = vxpose.xlu1.b32.cont [3/4] (short) (narrow) %v7355_v12, 16  ;;  %v1461_v12 = vrot.slane %v1453_v44, %v8587_v42 }
 0x8dc   :  { %2406 = vxpose.xlu1.b32.end [4/4] (short) (narrow) %v7356_v15, 16  ;;  %v1513_v15 = vrot.slane %v1505_v6, %v8587_v42  ;;  %v7679_v6 = vld [vmem:[%s9600_s8 + $0x8] sm:$0xff]  }
 0x8dd   :  { %7371 = vmatprep.subr.bf16.mxu1 %v7679_v6 }
 0x8de   :  { %v1609_v46 = vcombine.low %v1513_v15, %v1520_v16  ;;  %v6775_v38 = vcombine.high %v1513_v15, %v1520_v16  ;;  %7372 = vmatpush3.bf16.msra.mxu1 %v7679_v6 }
 0x8df   :  { %7373 = vmatprep.subr.bf16.mxu1 %v7680_v9 }
 0x8e0   :  { %v1616_v41 = vrot.slane %v1609_v46, %v8576_v47 }
 0x8e2   :  { %7374 = vmatpush3.bf16.msra.mxu1 %v7680_v9 }
 0x8e3   :  { %7375 = vmatprep.subr.bf16.mxu1 %v7681_v10 }
 0x8e6   :  { %7376 = vmatpush3.bf16.msra.mxu1 %v7681_v10 }
 0x8e7   :  { %7377 = vmatprep.subr.bf16.mxu1 %v7682_v11 }
 0x8ea   :  { %7378 = vmatpush3.bf16.msra.mxu1 %v7682_v11 }
 0x8fe   :  { %v7361_v8 = vpop.f32.mrb[44].mxu1 }
 0x8ff   :  { %v2298_v36 = vpop.f32.mrb[45].mxu1 }
 0x900   :  { %2435 = vxpose.xlu0.b32.start [1/4] (short) (narrow) %v2298_v36, 16  ;;  %v7362_v48 = vpop.f32.mrb[46].mxu1  ;;  %v6774_v36 = vcombine.high %v1461_v12, %v1468_v14 }
 0x901   :  { %v2301_v21 = vpop.f32.mrb[47].mxu1 }
 0x904   :  { %2436 = vxpose.xlu0.b32.cont [2/4] (short) (narrow) %v2301_v21, 16  ;;  %v1548_v21 = vrot.slane %v1541_v19, %v8576_v47 }
 0x906   :  { %v7367_v35 = vpop.f32.mrb[32].mxu0  ;;  %v1574_v51 = vcombine.high %v1548_v21, %v1556_v27  ;;  %v1573_v56 = vcombine.low %v1548_v21, %v1556_v27 }
 0x907   :  { %v2356_v45 = vpop.f32.mrb[33].mxu0 }
 0x908   :  { %2437 = vxpose.xlu0.b32.cont [3/4] (short) (narrow) %v7361_v8, 16  ;;  %2467 = vxpose.xlu1.b32.start [1/4] (short) (narrow) %v2356_v45, 16  ;;  %v7368_v39 = vpop.f32.mrb[34].mxu0  ;;  %v1557_v8 = vcombine.low %v1461_v12, %v1468_v14  ;;  %v1624_v45 = vrot.slane %v6775_v38, %v8576_v47  ;;  %v1588_v59 = vrot.slane %v1574_v51, %v8587_v42  ;;  %v7683_v12 = vld [vmem:[%s9600_s8 + $0x28] sm:$0xff]  }
 0x909   :  { %v2359_v33 = vpop.f32.mrb[35].mxu0  ;;  %v8610_v0 = vrot.slane %v1573_v56, %v8587_v42  ;;  %7379 = vmatprep.subr.bf16.mxu1 %v7683_v12 }
 0x90a   :  { %v1564_v22 = vrot.slane %v1557_v8, %v8576_v47  ;;  %v1641_v58 = vcombine.low %v1616_v41, %v1624_v45  ;;  %7380 = vmatpush3.bf16.msra.mxu1 %v7683_v12 }
 0x90c   :  { %2438 = vxpose.xlu0.b32.end [4/4] (short) (narrow) %v7362_v48, 16  ;;  %2468 = vxpose.xlu1.b32.cont [2/4] (short) (narrow) %v2359_v33, 16  ;;  %v1625_v48 = vcombine.low %v1529_v17, %v1536_v18  ;;  %v1642_v33 = vcombine.high %v1616_v41, %v1624_v45  ;;  %v8616_v55 = vrot.slane %v1641_v58, %v8587_v42 }
 0x90e   :  { %v1632_v34 = vrot.slane %v1625_v48, %v8576_v47  ;;  %v1656_v53 = vrot.slane %v1642_v33, %v8587_v42 }
 0x910   :  { %2469 = vxpose.xlu1.b32.cont [3/4] (short) (narrow) %v7367_v35, 16  ;;  %v1572_v35 = vrot.slane %v6774_v36, %v8576_v47  ;;  %v1658_v54 = vcombine.high %v1632_v34, %v1640_v50  ;;  %v1657_v49 = vcombine.low %v1632_v34, %v1640_v50 }
 0x912   :  { %v1589_v57 = vcombine.low %v1564_v22, %v1572_v35  ;;  %v1672_v52 = vrot.slane %v1658_v54, %v8587_v42  ;;  %v8619_v2 = vrot.slane %v1657_v49, %v8587_v42 }
 0x914   :  { %2470 = vxpose.xlu1.b32.end [4/4] (short) (narrow) %v7368_v39, 16  ;;  %v1590_v39 = vcombine.high %v1564_v22, %v1572_v35  ;;  %v8613_v30 = vrot.slane %v1589_v57, %v8587_v42  ;;  %v1675_v3 = vcombine.low %v1656_v53, %v1672_v52  ;;  %v1674_v31 = vcombine.high %v8616_v55, %v8619_v2 }
 0x915   :  { %v1676_v44 = vcombine.high %v1656_v53, %v1672_v52 }
 0x916   :  { %v1604_v62 = vrot.slane %v1590_v39, %v8587_v42  ;;  %v1606_v29 = vcombine.high %v8610_v0, %v8613_v30 }
 0x918   :  { %v1607_v32 = vcombine.low %v1588_v59, %v1604_v62  ;;  %v1608_v43 = vcombine.high %v1588_v59, %v1604_v62  ;;  %v7568_v7 = vpack.i.bf16 %v1674_v31, %v1606_v29 }
 0x91a   :  { %v7573_v23 = vpack.i.bf16 %v1675_v3, %v1607_v32  ;;  %v7578_v4 = vpack.i.bf16 %v1676_v44, %v1608_v43 }
 0x924   :  { %v2387_v14 = vpop.trf.xlu0 }
 0x928   :  { %v2388_v16 = vpop.trf.xlu0 }
 0x932   :  { %7574 = vrot.lane.b32.xlu1 %v7573_v23, %s8031_s20 }
 0x935   :  { %7569 = vrot.lane.b32.xlu0 %v7568_v7, %s8034_s22 }
 0x936   :  { %7579 = vrot.lane.b32.xlu1 %v7578_v4, %s8032_s21 }
 0x950   :  { %v2419_v15 = vpop.trf.xlu1 }
 0x954   :  { %v2420_v17 = vpop.trf.xlu1 }
 0x980   :  { %v2451_v18 = vpop.trf.xlu0 }
 0x981   :  { %v2499_v19 = vcombine.low %v2387_v14, %v2451_v18  ;;  %v2500_v20 = vcombine.high %v2387_v14, %v2451_v18  ;;  %v7684_v18 = vld [vmem:[%s9600_s8 + $0x30] sm:$0xff]  }
 0x982   :  { %7381 = vmatprep.subr.bf16.mxu1 %v7684_v18 }
 0x983   :  { %v2507_v48 = vrot.slane %v2499_v19, %v8576_v47  ;;  %v2514_v26 = vrot.slane %v2500_v20, %v8576_v47  ;;  %7382 = vmatpush3.bf16.msra.mxu1 %v7684_v18 }
 0x984   :  { %v2452_v38 = vpop.trf.xlu0 }
 0x985   :  { %v2567_v22 = vcombine.low %v2388_v16, %v2452_v38  ;;  %v2568_v35 = vcombine.high %v2388_v16, %v2452_v38 }
 0x987   :  { %v2575_v49 = vrot.slane %v2567_v22, %v8576_v47  ;;  %v2582_v59 = vrot.slane %v2568_v35, %v8576_v47 }
 0x988   :  { %v2483_v8 = vpop.trf.xlu1 }
 0x989   :  { %v2515_v36 = vcombine.low %v2419_v15, %v2483_v8  ;;  %v2516_v46 = vcombine.high %v2419_v15, %v2483_v8 }
 0x98b   :  { %v2523_v21 = vrot.slane %v2515_v36, %v8576_v47  ;;  %v2530_v27 = vrot.slane %v2516_v46, %v8576_v47 }
 0x98c   :  { %v2484_v41 = vpop.trf.xlu1 }
 0x98d   :  { %v2531_v45 = vcombine.low %v2507_v48, %v2523_v21  ;;  %v2532_v34 = vcombine.high %v2507_v48, %v2523_v21  ;;  %v2547_v50 = vcombine.low %v2514_v26, %v2530_v27  ;;  %v2548_v51 = vcombine.high %v2514_v26, %v2530_v27 }
 0x98e   :  { %v2583_v39 = vcombine.low %v2420_v17, %v2484_v41  ;;  %v2584_v33 = vcombine.high %v2420_v17, %v2484_v41 }
 0x98f   :  { %v2539_v54 = vrot.slane %v2531_v45, %v8587_v42  ;;  %v2546_v56 = vrot.slane %v2532_v34, %v8587_v42  ;;  %v2555_v57 = vrot.slane %v2547_v50, %v8587_v42  ;;  %v2562_v58 = vrot.slane %v2548_v51, %v8587_v42  ;;  %v7685_v45 = vld [vmem:[%s9600_s8 + $0x38] sm:$0xff]  }
 0x990   :  { %v2591_v62 = vrot.slane %v2583_v39, %v8576_v47  ;;  %v2598_v53 = vrot.slane %v2584_v33, %v8576_v47  ;;  %7383 = vmatprep.subr.bf16.mxu1 %v7685_v45 }
 0x991   :  { %v2635_v52 = vcombine.low %v2539_v54, %v2546_v56  ;;  %v6789_v32 = vcombine.high %v2539_v54, %v2546_v56  ;;  %v2651_v3 = vcombine.low %v2555_v57, %v2562_v58  ;;  %v6790_v29 = vcombine.high %v2555_v57, %v2562_v58  ;;  %7384 = vmatpush3.bf16.msra.mxu1 %v7685_v45 }
 0x992   :  { %v2599_v31 = vcombine.low %v2575_v49, %v2591_v62  ;;  %v2600_v23 = vcombine.high %v2575_v49, %v2591_v62  ;;  %v2615_v43 = vcombine.low %v2582_v59, %v2598_v53  ;;  %v2616_v44 = vcombine.high %v2582_v59, %v2598_v53 }
 0x993   :  { %v2642_v5 = vrot.slane %v2635_v52, %v8576_v47  ;;  %v2650_v6 = vrot.slane %v6789_v32, %v8576_v47  ;;  %v2658_v7 = vrot.slane %v2651_v3, %v8576_v47  ;;  %v2666_v4 = vrot.slane %v6790_v29, %v8576_v47 }
 0x994   :  { %v2607_v9 = vrot.slane %v2599_v31, %v8587_v42  ;;  %v2614_v10 = vrot.slane %v2600_v23, %v8587_v42  ;;  %v2623_v11 = vrot.slane %v2615_v43, %v8587_v42  ;;  %v2630_v12 = vrot.slane %v2616_v44, %v8587_v42 }
 0x995   :  { %v2668_v14 = vcombine.high %v2642_v5, %v2650_v6  ;;  %v2684_v15 = vcombine.high %v2658_v7, %v2666_v4  ;;  %v2667_v16 = vcombine.low %v2642_v5, %v2650_v6  ;;  %v2683_v17 = vcombine.low %v2658_v7, %v2666_v4 }
 0x996   :  { %v2703_v19 = vcombine.low %v2607_v9, %v2614_v10  ;;  %v6791_v20 = vcombine.high %v2607_v9, %v2614_v10  ;;  %v2719_v8 = vcombine.low %v2623_v11, %v2630_v12  ;;  %v6792_v36 = vcombine.high %v2623_v11, %v2630_v12 }
 0x997   :  { %v8670_v46 = vrot.slane %v2667_v16, %v8587_v42  ;;  %v8673_v38 = vrot.slane %v2683_v17, %v8587_v42  ;;  %v2682_v22 = vrot.slane %v2668_v14, %v8587_v42  ;;  %v2698_v35 = vrot.slane %v2684_v15, %v8587_v42 }
 0x998   :  { %v2710_v48 = vrot.slane %v2703_v19, %v8576_v47  ;;  %v2718_v26 = vrot.slane %v6791_v20, %v8576_v47  ;;  %v2726_v21 = vrot.slane %v2719_v8, %v8576_v47  ;;  %v2734_v27 = vrot.slane %v6792_v36, %v8576_v47 }
 0x999   :  { %v2699_v41 = vcombine.low %v8670_v46, %v8673_v38  ;;  %v2702_v58 = vcombine.high %v2682_v22, %v2698_v35  ;;  %v2700_v59 = vcombine.high %v8670_v46, %v8673_v38  ;;  %v2701_v29 = vcombine.low %v2682_v22, %v2698_v35 }
 0x99a   :  { %v2736_v34 = vcombine.high %v2710_v48, %v2718_v26  ;;  %v2752_v50 = vcombine.high %v2726_v21, %v2734_v27  ;;  %v2735_v51 = vcombine.low %v2710_v48, %v2718_v26  ;;  %v2751_v39 = vcombine.low %v2726_v21, %v2734_v27 }
 0x99b   :  { %v1605_v6 = vcombine.low %v8610_v0, %v8613_v30  ;;  %v1673_v9 = vcombine.low %v8616_v55, %v8619_v2 }
 0x99c   :  { %v2750_v33 = vrot.slane %v2736_v34, %v8587_v42  ;;  %v2766_v54 = vrot.slane %v2752_v50, %v8587_v42  ;;  %v2743_v56 = vrot.slane %v2735_v51, %v8587_v42  ;;  %v2759_v57 = vrot.slane %v2751_v39, %v8587_v42  ;;  %v6793_v50 = vld [vmem:[%s9601_s9] ss:$0 sm:$0xff] }
 0x99e   :  { %v2770_v49 = vcombine.high %v2750_v33, %v2766_v54  ;;  %v2768_v62 = vcombine.high %v2743_v56, %v2759_v57  ;;  %v2767_v53 = vcombine.low %v2743_v56, %v2759_v57  ;;  %v2769_v3 = vcombine.low %v2750_v33, %v2766_v54 }
 0x9a0   :  { %v7593_v52 = vpack.i.bf16 %v2770_v49, %v2702_v58  ;;  %v7583_v32 = vpack.i.bf16 %v2768_v62, %v2700_v59  ;;  %v7588_v31 = vpack.i.bf16 %v2769_v3, %v2701_v29  ;;  %v7686_v3 = vld [vmem:[%s9604_s12] ss:$8 sps:$4 sm:$0xff]   ;;  %v7689_v29 = vld [vmem:[%s9604_s12 + $0x10] ss:$8 sps:$4 sm:$0xff]  }
 0x9a2   :  { %7594 = vrot.lane.b32.xlu0 %v7593_v52, %s8032_s21  ;;  %7584 = vrot.lane.b32.xlu1 %v7583_v32, %s8034_s22  ;;  %v7688_v52 = vld [vmem:[%s9604_s12 + $0x4] ss:$8 sps:$4 sm:$0xff]  }
 0x9a3   :  { %3111 = vmatprep.subr.bf16.mxu0 %v7688_v52 }
 0x9a4   :  { %v7575_v23 = vpop.permute.xlu1 %7574  ;;  %3112 = vmatpush1.bf16.msra.mxu0 %v7686_v3  ;;  %v6803_v3 = vld [vmem:[%s9603_s11] ss:$0 sm:$0xff] }
 0x9a5   :  { %v7577_v43 = vunpack.i.h.bf16 %v7575_v23  ;;  %v7576_v44 = vunpack.i.l.bf16 %v7575_v23  ;;  %v7692_v23 = vld [vmem:[%s9604_s12 + $0x20] ss:$8 sps:$4 sm:$0xff]  }
 0x9a6   :  { %7589 = vrot.lane.b32.xlu1 %v7588_v31, %s8031_s20  ;;  %v7694_v31 = vld [vmem:[%s9604_s12 + $0x24] ss:$8 sps:$4 sm:$0xff]  }
 0x9a7   :  { %v7570_v5 = vpop.permute.xlu0 %7569 }
 0x9a8   :  { %v7572_v7 = vunpack.i.h.bf16 %v7570_v5  ;;  %v7571_v4 = vunpack.i.l.bf16 %v7570_v5  ;;  %v7580_v10 = vpop.permute.xlu1 %7579  ;;  %v7700_v5 = vld [vmem:[%s9604_s12 + $0x44] ss:$8 sps:$4 sm:$0xff]  }
 0x9a9   :  { %v7582_v11 = vunpack.i.h.bf16 %v7580_v10  ;;  %v7581_v12 = vunpack.i.l.bf16 %v7580_v10  ;;  %v7706_v10 = vld [vmem:[%s9604_s12 + $0x64] ss:$8 sps:$4 sm:$0xff]  }
 0x9aa   :  { %v1701_v14 = vsel %vm703_vm2, %v1605_v6, %v7571_v4  ;;  %v1702_v15 = vsel %vm703_vm2, %v1673_v9, %v7572_v7  ;;  %v7698_v6 = vld [vmem:[%s9604_s12 + $0x40] ss:$8 sps:$4 sm:$0xff]   ;;  %v7703_v7 = vld [vmem:[%s9604_s12 + $0x54] ss:$8 sps:$4 sm:$0xff]   ;;  %v7701_v4 = vld [vmem:[%s9604_s12 + $0x50] ss:$8 sps:$4 sm:$0xff]  }
 0x9ab   :  { %v1703_v16 = vsel %vm186_vm0, %v1701_v14, %v7576_v44  ;;  %v1704_v17 = vsel %vm186_vm0, %v1702_v15, %v7577_v43  ;;  %v7697_v43 = vld [vmem:[%s9604_s12 + $0x34] ss:$8 sps:$4 sm:$0xff]   ;;  %v7695_v44 = vld [vmem:[%s9604_s12 + $0x30] ss:$8 sps:$4 sm:$0xff]   ;;  %v7704_v9 = vld [vmem:[%s9604_s12 + $0x60] ss:$8 sps:$4 sm:$0xff]  }
 0x9ac   :  { %v1706_v18 = vsel %vm1705_vm4, %v1703_v16, %v7581_v12  ;;  %v1707_v0 = vsel %vm1705_vm4, %v1704_v17, %v7582_v11  ;;  %v7709_v11 = vld [vmem:[%s9604_s12 + $0x74] ss:$8 sps:$4 sm:$0xff]   ;;  %v7707_v12 = vld [vmem:[%s9604_s12 + $0x70] ss:$8 sps:$4 sm:$0xff]  }
 0x9ad   :  { %v2801_v30 = vpack.c.bf16 %v1707_v0, %v1706_v18 }
 0x9af   :  { %7385 = vmatprep.mubr.bf16.mxu1 %v2801_v30 }
 0xa14   :  { %v7585_v19 = vpop.permute.xlu1 %7584  ;;  %v7595_v20 = vpop.permute.xlu0 %7594 }
 0xa15   :  { %v7587_v55 = vunpack.i.h.bf16 %v7585_v19  ;;  %v7586_v2 = vunpack.i.l.bf16 %v7585_v19  ;;  %v7597_v38 = vunpack.i.h.bf16 %v7595_v20  ;;  %v7596_v48 = vunpack.i.l.bf16 %v7595_v20 }
 0xa17   :  { %v2796_v26 = vsel %vm703_vm2, %v2767_v53, %v7587_v55  ;;  %v2795_v21 = vsel %vm703_vm2, %v2699_v41, %v7586_v2 }
 0xa18   :  { %v7590_v8 = vpop.permute.xlu1 %7589 }
 0xa19   :  { %v7592_v36 = vunpack.i.h.bf16 %v7590_v8  ;;  %v7591_v46 = vunpack.i.l.bf16 %v7590_v8 }
 0xa1b   :  { %v2797_v27 = vsel %vm186_vm0, %v2795_v21, %v7591_v46  ;;  %v2798_v22 = vsel %vm186_vm0, %v2796_v26, %v7592_v36 }
 0xa1c   :  { %v2799_v35 = vsel %vm1705_vm4, %v2797_v27, %v7596_v48  ;;  %v2800_v45 = vsel %vm1705_vm4, %v2798_v22, %v7597_v38 }
 0xa1d   :  { %v2802_v34 = vpack.c.bf16 %v2800_v45, %v2799_v35 }
 0xa1f   :  { %7386 = vmatmul.mubr.bf16.vlgmr.msra.gmra.mrb[48].mxu1 %v2802_v34 }
 0xaf2   :  { %v7387_v51 = vpop.f32.mrb[48].mxu1 }
 0xaf3   :  { %v2908_v39 = vpop.f32.mrb[49].mxu1  ;;  %v2917_v41 = vadd.f32 %v7387_v51, %v6793_v50 }
 0xaf4   :  { %v2909_v33 = vadd.f32 %v6793_v50, %v2908_v39  ;;  %v7388_v54 = vpop.f32.mrb[50].mxu1 }
 0xaf5   :  { %v2911_v56 = vpop.f32.mrb[51].mxu1  ;;  %v8722_v59 = vadd.f32 %v2917_v41, %v8227_v37  ;;  %v2920_v53 = vadd.f32 %v7388_v54, %v6793_v50 }
 0xaf6   :  { %v8715_v57 = vadd.f32 %v2909_v33, %v8211_v25  ;;  %v2912_v58 = vadd.f32 %v6793_v50, %v2911_v56 }
 0xaf7   :  { %v2943_v25 = vmul.f32 %v8722_v59, %v8722_v59  ;;  %v8733_v37 = vadd.f32 %v2920_v53, %v8229_v40  ;;  %v7691_v40 = vld [vmem:[%s9604_s12 + $0x14] ss:$8 sps:$4 sm:$0xff]  }
 0xaf8   :  { %v8718_v49 = vadd.f32 %v2912_v58, %v8213_v28  ;;  %2929 = vadd.xlane.f32.xlu1 %v8715_v57  ;;  %v2941_v62 = vmul.f32 %v8715_v57, %v8715_v57  ;;  %3113 = vmatprep.subr.bf16.mxu0 %v7691_v40 }
 0xaf9   :  { %v2944_v32 = vmul.f32 %v8733_v37, %v8733_v37  ;;  %3114 = vmatpush1.bf16.msra.mxu0 %v7689_v29 }
 0xafa   :  { %2931 = vadd.xlane.f32.xlu0 %v8718_v49  ;;  %v2942_v28 = vmul.f32 %v8718_v49, %v8718_v49  ;;  %3115 = vmatprep.subr.bf16.mxu0 %v7694_v31 }
 0xafc   :  { %2933 = vadd.xlane.f32.xlu1 %v8722_v59 }
 0xafd   :  { %3116 = vmatpush1.bf16.msra.mxu0 %v7692_v23 }
 0xafe   :  { %2945 = vadd.xlane.f32.xlu0 %v2941_v62  ;;  %3117 = vmatprep.subr.bf16.mxu0 %v7697_v43  ;;  %v6802_v62 = vld [vmem:[%s9602_s10] ss:$0 sm:$0xff] }
 0xb00   :  { %2949 = vadd.xlane.f32.xlu1 %v2943_v25 }
 0xb01   :  { %3118 = vmatpush1.bf16.msra.mxu0 %v7695_v44 }
 0xb02   :  { %2947 = vadd.xlane.f32.xlu0 %v2942_v28  ;;  %3119 = vmatprep.subr.bf16.mxu0 %v7700_v5 }
 0xb05   :  { %3120 = vmatpush1.bf16.msra.mxu0 %v7698_v6 }
 0xb06   :  { %2935 = vadd.xlane.f32.xlu0 %v8733_v37  ;;  %3121 = vmatprep.subr.bf16.mxu0 %v7703_v7 }
 0xb09   :  { %3122 = vmatpush1.bf16.msra.mxu0 %v7701_v4 }
 0xb0a   :  { %2951 = vadd.xlane.f32.xlu0 %v2944_v32  ;;  %3123 = vmatprep.subr.bf16.mxu0 %v7706_v10 }
 0xb0d   :  { %3124 = vmatpush1.bf16.msra.mxu0 %v7704_v9 }
 0xb0e   :  { %3125 = vmatprep.subr.bf16.mxu0 %v7709_v11 }
 0xb11   :  { %3126 = vmatpush1.bf16.msra.mxu0 %v7707_v12 }
 0xb85   :  { %v2930_v14 = vpop.xlane.xlu1 %2929 }
 0xb86   :  { %v2937_v16 = vmul.f32 0.0078125, %v2930_v14  ;;  %v7710_v14 = vld [vmem:[%s9606_s14 + $0x40] sm:$0xff]  }
 0xb87   :  { %v2932_v15 = vpop.xlane.xlu0 %2931  ;;  %7113 = vmatprep.subr.bf16.mxu1 %v7710_v14 }
 0xb88   :  { %v2957_v30 = vmul.f32 %v2937_v16, %v2937_v16  ;;  %v2938_v19 = vmul.f32 0.0078125, %v2932_v15  ;;  %v2965_v54 = vsub.f32 %v8715_v57, %v2937_v16  ;;  %v7711_v15 = vld [vmem:[%s9606_s14] sm:$0xff]   ;;  %v7712_v16 = vld [vmem:[%s9606_s14 + $0x48] sm:$0xff]  }
 0xb89   :  { %v2934_v17 = vpop.xlane.xlu1 %2933  ;;  %7114 = vmatpush3.bf16.msra.mxu1 %v7711_v15 }
 0xb8a   :  { %v2939_v18 = vmul.f32 0.0078125, %v2934_v17  ;;  %v2958_v38 = vmul.f32 %v2938_v19, %v2938_v19  ;;  %v2966_v25 = vsub.f32 %v8718_v49, %v2938_v19  ;;  %v7713_v17 = vld [vmem:[%s9606_s14 + $0x8] sm:$0xff]   ;;  %7115 = vmatprep.subr.bf16.mxu1 %v7712_v16  ;;  %v7717_v19 = vld [vmem:[%s9606_s14 + $0x18] sm:$0xff]  }
 0xb8b   :  { %v2946_v0 = vpop.xlane.xlu0 %2945 }
 0xb8c   :  { %v2953_v55 = vmul.f32 0.0078125, %v2946_v0  ;;  %v2959_v20 = vmul.f32 %v2939_v18, %v2939_v18  ;;  %v2967_v40 = vsub.f32 %v8722_v59, %v2939_v18  ;;  %v7714_v18 = vld [vmem:[%s9606_s14 + $0x50] sm:$0xff]  }
 0xb8d   :  { %v2950_v2 = vpop.xlane.xlu1 %2949  ;;  %7116 = vmatpush3.bf16.msra.mxu1 %v7713_v17  ;;  %v7715_v0 = vld [vmem:[%s9606_s14 + $0x10] sm:$0xff]  }
 0xb8e   :  { %v2961_v8 = vsub.f32 %v2953_v55, %v2957_v30  ;;  %v2955_v36 = vmul.f32 0.0078125, %v2950_v2  ;;  %7117 = vmatprep.subr.bf16.mxu1 %v7714_v18  ;;  %v7716_v30 = vld [vmem:[%s9606_s14 + $0x58] sm:$0xff]   ;;  %v7718_v55 = vld [vmem:[%s9606_s14 + $0x60] sm:$0xff]  }
 0xb8f   :  { %v2948_v46 = vpop.xlane.xlu0 %2947  ;;  %v7719_v2 = vld [vmem:[%s9606_s14 + $0x20] sm:$0xff]  }
 0xb90   :  { %v2969_v48 = vadd.f32 1e-06, %v2961_v8  ;;  %v2963_v26 = vsub.f32 %v2955_v36, %v2959_v20  ;;  %v2954_v21 = vmul.f32 0.0078125, %v2948_v46  ;;  %v7720_v20 = vld [vmem:[%s9606_s14 + $0x68] sm:$0xff]   ;;  %v7722_v36 = vld [vmem:[%s9606_s14 + $0x70] sm:$0xff]  }
 0xb91   :  { %7118 = vmatpush3.bf16.msra.mxu1 %v7715_v0  ;;  %v7721_v8 = vld [vmem:[%s9606_s14 + $0x28] sm:$0xff]   ;;  %v7723_v46 = vld [vmem:[%s9606_s14 + $0x30] sm:$0xff]  }
 0xb92   :  { %7878 = vrsqrt.f32 %v2969_v48  ;;  %v2962_v27 = vsub.f32 %v2954_v21, %v2958_v38  ;;  %v2971_v35 = vadd.f32 1e-06, %v2963_v26  ;;  %7119 = vmatprep.subr.bf16.mxu1 %v7716_v30  ;;  %v7724_v38 = vld [vmem:[%s9606_s14 + $0x78] sm:$0xff]   ;;  %v3019_v26 = vld [vmem:[%s9605_s13] sm:$0x3] }
 0xb93   :  { %v2936_v22 = vpop.xlane.xlu0 %2935  ;;  %v7725_v48 = vld [vmem:[%s9606_s14 + $0x38] sm:$0xff]   ;;  %v3024_v21 = vrot.slane %v3019_v26, %v8320_v61 }
 0xb94   :  { %v2970_v45 = vadd.f32 1e-06, %v2962_v27  ;;  %v2940_v34 = vmul.f32 0.0078125, %v2936_v22  ;;  %v3028_v27 = vrot.slane %v3019_v26, %v8326_v63 }
 0xb95   :  { %7120 = vmatpush3.bf16.msra.mxu1 %v7717_v19 }
 0xb96   :  { %7880 = vrsqrt.f32 %v2970_v45  ;;  %v2960_v51 = vmul.f32 %v2940_v34, %v2940_v34  ;;  %v2968_v44 = vsub.f32 %v8733_v37, %v2940_v34  ;;  %7121 = vmatprep.subr.bf16.mxu1 %v7718_v55 }
 0xb97   :  { %v2952_v50 = vpop.xlane.xlu0 %2951  ;;  %7882 = vrsqrt.f32 %v2971_v35 }
 0xb98   :  { %v2956_v39 = vmul.f32 0.0078125, %v2952_v50 }
 0xb99   :  { %7122 = vmatpush3.bf16.msra.mxu1 %v7719_v2 }
 0xb9a   :  { %v2964_v33 = vsub.f32 %v2956_v39, %v2960_v51  ;;  %7123 = vmatprep.subr.bf16.mxu1 %v7720_v20 }
 0xb9c   :  { %v7879_v56 = vpop.eup %7878  ;;  %v2972_v41 = vadd.f32 1e-06, %v2964_v33 }
 0xb9d   :  { %v2977_v58 = vmul.f32 %v7879_v56, %v2965_v54  ;;  %7124 = vmatpush3.bf16.msra.mxu1 %v7721_v8 }
 0xb9e   :  { %7884 = vrsqrt.f32 %v2972_v41  ;;  %7125 = vmatprep.subr.bf16.mxu1 %v7722_v36 }
 0xb9f   :  { %v2987_v52 = vmul.f32 %v6802_v62, %v2977_v58 }
 0xba0   :  { %v7881_v53 = vpop.eup %7880 }
 0xba1   :  { %v2978_v28 = vmul.f32 %v7881_v53, %v2966_v25  ;;  %v7883_v32 = vpop.eup %7882  ;;  %v2997_v31 = vadd.f32 %v6803_v3, %v2987_v52  ;;  %7126 = vmatpush3.bf16.msra.mxu1 %v7723_v46 }
 0xba2   :  { %v2979_v43 = vmul.f32 %v7883_v32, %v2967_v40  ;;  %7127 = vmatprep.subr.bf16.mxu1 %v7724_v38 }
 0xba3   :  { %v2988_v29 = vmul.f32 %v6802_v62, %v2978_v28 }
 0xba4   :  { %v2989_v4 = vmul.f32 %v6802_v62, %v2979_v43 }
 0xba5   :  { %v2998_v23 = vadd.f32 %v6803_v3, %v2988_v29  ;;  %7128 = vmatpush3.bf16.msra.mxu1 %v7725_v48 }
 0xba6   :  { %v2999_v10 = vadd.f32 %v6803_v3, %v2989_v4 }
 0xba7   :  { %v3001_v5 = vpack.c.bf16 %v2998_v23, %v2997_v31 }
 0xba8   :  { %v7885_v6 = vpop.eup %7884 }
 0xba9   :  { %3144 = vmatmul.mubr.bf16.vlgmr.msra.gmra.mrb[36].mxu0 %v3001_v5  ;;  %v2980_v7 = vmul.f32 %v7885_v6, %v2968_v44 }
 0xbaa   :  { %3153 = vmatprep.mubr.bf16.mxu0 %v8030_v1 }
 0xbab   :  { %v2990_v9 = vmul.f32 %v6802_v62, %v2980_v7 }
 0xbad   :  { %v3000_v11 = vadd.f32 %v6803_v3, %v2990_v9 }
 0xbaf   :  { %v3002_v12 = vpack.c.bf16 %v3000_v11, %v2999_v10 }
 0xbb1   :  { %3154 = vmatmul.mubr.bf16.gmra.mrb[40].mxu0 %v3002_v12 }
 0xbb2   :  { %3721 = vmatprep.mubr.bf16.mxu0 %v8030_v1 }
 0xc7c   :  { %v3145_v22 = vpop.f32.mrb[36].mxu0 }
 0xc7d   :  { %v8851_v35 = vadd.f32 %v3145_v22, %v3024_v21  ;;  %v3147_v45 = vpop.f32.mrb[37].mxu0 }
 0xc7e   :  { %v8853_v34 = vadd.f32 %v3147_v45, %v3028_v27  ;;  %v3149_v50 = vpop.f32.mrb[38].mxu0 }
 0xc7f   :  { %v3172_v51 = vmul.f32 0.044715, %v8851_v35  ;;  %v8856_v39 = vadd.f32 %v3149_v50, %v3024_v21  ;;  %v3151_v33 = vpop.f32.mrb[39].mxu0 }
 0xc80   :  { %v3173_v54 = vmul.f32 0.044715, %v8853_v34  ;;  %v8859_v56 = vadd.f32 %v3151_v33, %v3028_v27 }
 0xc81   :  { %v3180_v41 = vmul.f32 %v3172_v51, %v8851_v35  ;;  %v3174_v58 = vmul.f32 0.044715, %v8856_v39 }
 0xc82   :  { %v3181_v62 = vmul.f32 %v3173_v54, %v8853_v34  ;;  %v3175_v25 = vmul.f32 0.044715, %v8859_v56 }
 0xc83   :  { %v3188_v53 = vmul.f32 %v3180_v41, %v8851_v35  ;;  %v3182_v28 = vmul.f32 %v3174_v58, %v8856_v39 }
 0xc84   :  { %v3189_v52 = vmul.f32 %v3181_v62, %v8853_v34  ;;  %v3183_v32 = vmul.f32 %v3175_v25, %v8859_v56  ;;  %v3155_v3 = vpop.f32.mrb[40].mxu0 }
 0xc85   :  { %v3196_v40 = vadd.f32 %v3188_v53, %v8851_v35  ;;  %v3190_v29 = vmul.f32 %v3182_v28, %v8856_v39  ;;  %v8871_v31 = vadd.f32 %v3155_v3, %v3024_v21  ;;  %v3157_v23 = vpop.f32.mrb[41].mxu0  ;;  %v3164_v53 = vmul.f32 0.5, %v8851_v35 }
 0xc86   :  { %v3191_v43 = vmul.f32 %v3183_v32, %v8859_v56  ;;  %v8874_v44 = vadd.f32 %v3157_v23, %v3028_v27  ;;  %v3159_v5 = vpop.f32.mrb[42].mxu0  ;;  %v3197_v6 = vadd.f32 %v3189_v52, %v8853_v34  ;;  %v3166_v28 = vmul.f32 0.5, %v8856_v39 }
 0xc87   :  { %v3204_v7 = vmul.f32 0.7978846, %v3196_v40  ;;  %v3198_v4 = vadd.f32 %v3190_v29, %v8856_v39  ;;  %v3176_v9 = vmul.f32 0.044715, %v8871_v31  ;;  %v3160_v10 = vadd.f32 %v3159_v5, %v3024_v21  ;;  %v3161_v11 = vpop.f32.mrb[43].mxu0 }
 0xc88   :  { %v3177_v12 = vmul.f32 0.044715, %v8874_v44  ;;  %v3162_v14 = vadd.f32 %v3161_v11, %v3028_v27  ;;  %v3199_v15 = vadd.f32 %v3191_v43, %v8859_v56  ;;  %v3205_v16 = vmul.f32 0.7978846, %v3197_v6 }
 0xc89   :  { %7886 = vtanh.f32 %v3204_v7  ;;  %v3206_v17 = vmul.f32 0.7978846, %v3198_v4  ;;  %v3184_v18 = vmul.f32 %v3176_v9, %v8871_v31  ;;  %v3178_v0 = vmul.f32 0.044715, %v3160_v10 }
 0xc8a   :  { %v3185_v30 = vmul.f32 %v3177_v12, %v8874_v44  ;;  %v3179_v19 = vmul.f32 0.044715, %v3162_v14  ;;  %v3207_v55 = vmul.f32 0.7978846, %v3199_v15  ;;  %7888 = vtanh.f32 %v3205_v16 }
 0xc8b   :  { %7890 = vtanh.f32 %v3206_v17  ;;  %v3192_v2 = vmul.f32 %v3184_v18, %v8871_v31  ;;  %v3186_v20 = vmul.f32 %v3178_v0, %v3160_v10  ;;  %v3165_v32 = vmul.f32 0.5, %v8853_v34 }
 0xc8c   :  { %v3193_v8 = vmul.f32 %v3185_v30, %v8874_v44  ;;  %v3187_v36 = vmul.f32 %v3179_v19, %v3162_v14  ;;  %7892 = vtanh.f32 %v3207_v55  ;;  %v3167_v3 = vmul.f32 0.5, %v8859_v56 }
 0xc8d   :  { %v3194_v46 = vmul.f32 %v3186_v20, %v3160_v10  ;;  %v3200_v38 = vadd.f32 %v3192_v2, %v8871_v31  ;;  %v3168_v39 = vmul.f32 0.5, %v8871_v31  ;;  %v3170_v34 = vmul.f32 0.5, %v3160_v10  ;;  %v7728_v31 = vld [vmem:[%s9598_s6 + $0xc4] ss:$12 sps:$4 sm:$0xff]  }
 0xc8e   :  { %v3195_v48 = vmul.f32 %v3187_v36, %v3162_v14  ;;  %v3201_v26 = vadd.f32 %v3193_v8, %v8874_v44  ;;  %v3169_v56 = vmul.f32 0.5, %v8874_v44  ;;  %v3171_v17 = vmul.f32 0.5, %v3162_v14  ;;  %v7726_v8 = vld [vmem:[%s9598_s6 + $0xc0] ss:$12 sps:$4 sm:$0xff]   ;;  %3689 = vmatprep.subr.bf16.mxu0 %v7728_v31 }
 0xc8f   :  { %v3202_v21 = vadd.f32 %v3194_v46, %v3160_v10  ;;  %v3208_v27 = vmul.f32 0.7978846, %v3200_v38  ;;  %3690 = vmatpush1.bf16.msra.mxu0 %v7726_v8  ;;  %v6836_v46 = vld [vmem:[%s9607_s15] ss:$0 sm:$0xff] }
 0xc90   :  { %v3203_v22 = vadd.f32 %v3195_v48, %v3162_v14  ;;  %v3209_v45 = vmul.f32 0.7978846, %v3201_v26 }
 0xc91   :  { %v3210_v50 = vmul.f32 0.7978846, %v3202_v21  ;;  %7894 = vtanh.f32 %v3208_v27 }
 0xc92   :  { %v3211_v51 = vmul.f32 0.7978846, %v3203_v22  ;;  %7896 = vtanh.f32 %v3209_v45 }
 0xc93   :  { %v7887_v33 = vpop.eup %7886  ;;  %7898 = vtanh.f32 %v3210_v50 }
 0xc94   :  { %v7889_v54 = vpop.eup %7888  ;;  %v3220_v41 = vadd.f32 1.0, %v7887_v33  ;;  %7900 = vtanh.f32 %v3211_v51 }
 0xc95   :  { %v7891_v58 = vpop.eup %7890  ;;  %v3221_v62 = vadd.f32 1.0, %v7889_v54 }
 0xc96   :  { %v7893_v25 = vpop.eup %7892  ;;  %v3222_v52 = vadd.f32 1.0, %v7891_v58  ;;  %v3228_v29 = vmul.f32 %v3220_v41, %v3164_v53 }
 0xc97   :  { %v3223_v40 = vadd.f32 1.0, %v7893_v25  ;;  %v3229_v43 = vmul.f32 %v3221_v62, %v3165_v32  ;;  %v7734_v32 = vld [vmem:[%s9598_s6 + $0xf4] ss:$12 sps:$4 sm:$0xff]  }
 0xc98   :  { %v3230_v23 = vmul.f32 %v3222_v52, %v3166_v28  ;;  %v7729_v52 = vld [vmem:[%s9598_s6 + $0xd8] ss:$12 sps:$4 sm:$0xff]  }
 0xc99   :  { %v3231_v5 = vmul.f32 %v3223_v40, %v3167_v3  ;;  %v7735_v3 = vld [vmem:[%s9598_s6 + $0xc8] ss:$12 sps:$4 sm:$0xff]   ;;  %v7732_v40 = vld [vmem:[%s9598_s6 + $0xf0] ss:$12 sps:$4 sm:$0xff]  }
 0xc9a   :  { %v3236_v6 = vpack.c.bf16 %v3230_v23, %v3228_v29  ;;  %7389 = vmatprep.subr.bf16.mxu1 %v7735_v3  ;;  %v7738_v29 = vld [vmem:[%s9598_s6 + $0x10c] ss:$12 sps:$4 sm:$0xff]  }
 0xc9b   :  { %v7895_v7 = vpop.eup %7894  ;;  %v3237_v4 = vpack.c.bf16 %v3231_v5, %v3229_v43  ;;  %v7739_v23 = vld [vmem:[%s9598_s6 + $0xe0] ss:$12 sps:$4 sm:$0xff]   ;;  %v7736_v43 = vld [vmem:[%s9598_s6 + $0x108] ss:$12 sps:$4 sm:$0xff]   ;;  %v7742_v5 = vld [vmem:[%s9598_s6 + $0x124] ss:$12 sps:$4 sm:$0xff]  }
 0xc9c   :  { %v7897_v9 = vpop.eup %7896  ;;  %v3224_v11 = vadd.f32 1.0, %v7895_v7  ;;  %v7740_v7 = vld [vmem:[%s9598_s6 + $0x120] ss:$12 sps:$4 sm:$0xff]  }
 0xc9d   :  { %v7899_v12 = vpop.eup %7898  ;;  %3400 = vmatprep.mubr.bf16.mxu1 %v3237_v4  ;;  %v3225_v35 = vadd.f32 1.0, %v7897_v9  ;;  %v7744_v4 = vld [vmem:[%s9598_s6 + $0x138] ss:$12 sps:$4 sm:$0xff]   ;;  %v7746_v9 = vld [vmem:[%s9598_s6 + $0x13c] ss:$12 sps:$4 sm:$0xff]  }
 0xc9e   :  { %v7901_v15 = vpop.eup %7900  ;;  %3401 = vmatmul.mubr.bf16.vlgmr.msra.gmra.mrb[52].mxu1 %v3236_v6  ;;  %v3226_v16 = vadd.f32 1.0, %v7899_v12  ;;  %v3232_v0 = vmul.f32 %v3224_v11, %v3168_v39  ;;  %v7743_v6 = vld [vmem:[%s9598_s6 + $0xf8] ss:$12 sps:$4 sm:$0xff]   ;;  %v7747_v11 = vld [vmem:[%s9598_s6 + $0x110] ss:$12 sps:$4 sm:$0xff]  }
 0xc9f   :  { %v3227_v18 = vadd.f32 1.0, %v7901_v15  ;;  %v3233_v19 = vmul.f32 %v3225_v35, %v3169_v56  ;;  %7390 = vmatpush3.bf16.msra.mxu1 %v7735_v3  ;;  %v7750_v12 = vld [vmem:[%s9598_s6 + $0x154] ss:$12 sps:$4 sm:$0xff]   ;;  %v7748_v15 = vld [vmem:[%s9598_s6 + $0x150] ss:$12 sps:$4 sm:$0xff]  }
 0xca0   :  { %v3234_v30 = vmul.f32 %v3226_v16, %v3170_v34  ;;  %7391 = vmatprep.subr.bf16.mxu1 %v7739_v23  ;;  %v7751_v35 = vld [vmem:[%s9598_s6 + $0x128] ss:$12 sps:$4 sm:$0xff]   ;;  %v7754_v39 = vld [vmem:[%s9598_s6 + $0x16c] ss:$12 sps:$4 sm:$0xff]  }
 0xca1   :  { %v3235_v55 = vmul.f32 %v3227_v18, %v3171_v17  ;;  %v7755_v34 = vld [vmem:[%s9598_s6 + $0x140] ss:$12 sps:$4 sm:$0xff]   ;;  %v7752_v16 = vld [vmem:[%s9598_s6 + $0x168] ss:$12 sps:$4 sm:$0xff]   ;;  %v7756_v56 = vld [vmem:[%s9598_s6 + $0x158] ss:$12 sps:$4 sm:$0xff]  }
 0xca2   :  { %v3238_v2 = vpack.c.bf16 %v3234_v30, %v3232_v0  ;;  %v7757_v17 = vld [vmem:[%s9598_s6 + $0x170] ss:$12 sps:$4 sm:$0xff]  }
 0xca3   :  { %v3239_v20 = vpack.c.bf16 %v3235_v55, %v3233_v19  ;;  %7392 = vmatpush3.bf16.msra.mxu1 %v7739_v23  ;;  %v6840_v23 = vld [vmem:[%s9597_s5 + $0x1] ss:$0 sm:$0xff] }
 0xca4   :  { %7393 = vmatprep.subr.bf16.mxu1 %v7743_v6 }
 0xca5   :  { %3408 = vmatprep.mubr.bf16.mxu1 %v3239_v20 }
 0xca6   :  { %3409 = vmatmul.mubr.bf16.gmra.mrb[56].mxu1 %v3238_v2 }
 0xca7   :  { %7394 = vmatpush3.bf16.msra.mxu1 %v7743_v6 }
 0xca8   :  { %7395 = vmatprep.subr.bf16.mxu1 %v7747_v11 }
 0xcab   :  { %7396 = vmatpush3.bf16.msra.mxu1 %v7747_v11 }
 0xcac   :  { %7397 = vmatprep.subr.bf16.mxu1 %v7751_v35 }
 0xcaf   :  { %7398 = vmatpush3.bf16.msra.mxu1 %v7751_v35 }
 0xcb0   :  { %7399 = vmatprep.subr.bf16.mxu1 %v7755_v34 }
 0xcb3   :  { %7400 = vmatpush3.bf16.msra.mxu1 %v7755_v34 }
 0xcb4   :  { %7401 = vmatprep.subr.bf16.mxu1 %v7756_v56 }
 0xcb7   :  { %7402 = vmatpush3.bf16.msra.mxu1 %v7756_v56 }
 0xcb8   :  { %7403 = vmatprep.subr.bf16.mxu1 %v7757_v17 }
 0xcbb   :  { %7404 = vmatpush3.bf16.msra.mxu1 %v7757_v17 }
 0xcbc   :  { %7433 = vmatprep.subr.bf16.mxu1 %v8033_v13 }
 0xd71   :  { %v7129_v44 = vpop.f32.mrb[52].mxu1 }
 0xd72   :  { %v7130_v10 = vpop.f32.mrb[53].mxu1 }
 0xd73   :  { %v7131_v14 = vadd.f32 %v7130_v10, %v7129_v44  ;;  %v7132_v36 = vpop.f32.mrb[54].mxu1 }
 0xd74   :  { %v7133_v38 = vpop.f32.mrb[55].mxu1 }
 0xd75   :  { %v3417_v48 = vadd.f32 %v7131_v14, %v8715_v57  ;;  %v7134_v26 = vadd.f32 %v7133_v38, %v7132_v36 }
 0xd77   :  { %v8903_v21 = vadd.f32 %v6836_v46, %v3417_v48  ;;  %v3418_v27 = vadd.f32 %v7134_v26, %v8718_v49 }
 0xd79   :  { %v8906_v22 = vadd.f32 %v6836_v46, %v3418_v27  ;;  %3436 = vadd.xlane.f32.xlu1 %v8903_v21  ;;  %v7135_v45 = vpop.f32.mrb[56].mxu1  ;;  %v3448_v54 = vmul.f32 %v8903_v21, %v8903_v21 }
 0xd7a   :  { %v7136_v50 = vpop.f32.mrb[57].mxu1 }
 0xd7b   :  { %v7137_v51 = vadd.f32 %v7136_v50, %v7135_v45  ;;  %3438 = vadd.xlane.f32.xlu0 %v8906_v22  ;;  %v7138_v33 = vpop.f32.mrb[58].mxu1  ;;  %v3449_v49 = vmul.f32 %v8906_v22, %v8906_v22 }
 0xd7c   :  { %v7139_v41 = vpop.f32.mrb[59].mxu1 }
 0xd7d   :  { %v3419_v57 = vadd.f32 %v7137_v51, %v8722_v59  ;;  %v7140_v58 = vadd.f32 %v7139_v41, %v7138_v33  ;;  %3452 = vadd.xlane.f32.xlu1 %v3448_v54 }
 0xd7f   :  { %v8915_v62 = vadd.f32 %v6836_v46, %v3419_v57  ;;  %v3420_v25 = vadd.f32 %v7140_v58, %v8733_v37  ;;  %3454 = vadd.xlane.f32.xlu0 %v3449_v49  ;;  %v7731_v37 = vld [vmem:[%s9598_s6 + $0xdc] ss:$12 sps:$4 sm:$0xff]  }
 0xd80   :  { %3691 = vmatprep.subr.bf16.mxu0 %v7731_v37 }
 0xd81   :  { %v8918_v53 = vadd.f32 %v6836_v46, %v3420_v25  ;;  %3440 = vadd.xlane.f32.xlu1 %v8915_v62  ;;  %v3450_v28 = vmul.f32 %v8915_v62, %v8915_v62  ;;  %3692 = vmatpush1.bf16.msra.mxu0 %v7729_v52  ;;  %v6839_v52 = vld [vmem:[%s9596_s4 + $0x1] ss:$0 sm:$0xff] }
 0xd82   :  { %3693 = vmatprep.subr.bf16.mxu0 %v7734_v32 }
 0xd83   :  { %3442 = vadd.xlane.f32.xlu0 %v8918_v53  ;;  %v3451_v59 = vmul.f32 %v8918_v53, %v8918_v53 }
 0xd85   :  { %3456 = vadd.xlane.f32.xlu1 %v3450_v28  ;;  %3694 = vmatpush1.bf16.msra.mxu0 %v7732_v40 }
 0xd86   :  { %3695 = vmatprep.subr.bf16.mxu0 %v7738_v29 }
 0xd87   :  { %3458 = vadd.xlane.f32.xlu0 %v3451_v59 }
 0xd89   :  { %3696 = vmatpush1.bf16.msra.mxu0 %v7736_v43 }
 0xd8a   :  { %3697 = vmatprep.subr.bf16.mxu0 %v7742_v5 }
 0xd8d   :  { %3698 = vmatpush1.bf16.msra.mxu0 %v7740_v7 }
 0xd8e   :  { %3699 = vmatprep.subr.bf16.mxu0 %v7746_v9 }
 0xd91   :  { %3700 = vmatpush1.bf16.msra.mxu0 %v7744_v4 }
 0xd92   :  { %3701 = vmatprep.subr.bf16.mxu0 %v7750_v12 }
 0xd95   :  { %3702 = vmatpush1.bf16.msra.mxu0 %v7748_v15 }
 0xd96   :  { %3703 = vmatprep.subr.bf16.mxu0 %v7754_v39 }
 0xd99   :  { %3704 = vmatpush1.bf16.msra.mxu0 %v7752_v16 }
 0xd9a   :  { %7409 = vmatprep.subr.bf16.mxu0 %v8033_v13 }
 0xe06   :  { %v3437_v18 = vpop.xlane.xlu1 %3436 }
 0xe07   :  { %v3444_v0 = vmul.f32 0.0078125, %v3437_v18  ;;  %v6873_v18 = vld [vmem:[%s9599_s7 + $0x3] sm:$0x7] }
 0xe08   :  { %v3439_v30 = vpop.xlane.xlu0 %3438 }
 0xe09   :  { %v3445_v19 = vmul.f32 0.0078125, %v3439_v30  ;;  %v3464_v2 = vmul.f32 %v3444_v0, %v3444_v0  ;;  %v3472_v28 = vsub.f32 %v8903_v21, %v3444_v0  ;;  %v3549_v0 = vrot.slane %v6873_v18, %v8320_v61 }
 0xe0a   :  { %v3453_v55 = vpop.xlane.xlu1 %3452 }
 0xe0b   :  { %v3460_v20 = vmul.f32 0.0078125, %v3453_v55  ;;  %v3465_v31 = vmul.f32 %v3445_v19, %v3445_v19  ;;  %v3473_v37 = vsub.f32 %v8906_v22, %v3445_v19  ;;  %v3553_v19 = vrot.slane %v6873_v18, %v8326_v63 }
 0xe0c   :  { %v3455_v8 = vpop.xlane.xlu0 %3454 }
 0xe0d   :  { %v3468_v44 = vsub.f32 %v3460_v20, %v3464_v2  ;;  %v3461_v10 = vmul.f32 0.0078125, %v3455_v8 }
 0xe0e   :  { %v3441_v14 = vpop.xlane.xlu1 %3440 }
 0xe0f   :  { %v3476_v36 = vadd.f32 1e-06, %v3468_v44  ;;  %v3469_v46 = vsub.f32 %v3461_v10, %v3465_v31  ;;  %v3446_v38 = vmul.f32 0.0078125, %v3441_v14 }
 0xe10   :  { %v3443_v48 = vpop.xlane.xlu0 %3442 }
 0xe11   :  { %7902 = vrsqrt.f32 %v3476_v36  ;;  %v3477_v26 = vadd.f32 1e-06, %v3469_v46  ;;  %v3447_v27 = vmul.f32 0.0078125, %v3443_v48  ;;  %v3466_v50 = vmul.f32 %v3446_v38, %v3446_v38 }
 0xe12   :  { %v3457_v45 = vpop.xlane.xlu1 %3456  ;;  %v3474_v5 = vsub.f32 %v8915_v62, %v3446_v38  ;;  %v3557_v36 = vrot.slane %v6873_v18, %v371_v24 }
 0xe13   :  { %7904 = vrsqrt.f32 %v3477_v26  ;;  %v3462_v51 = vmul.f32 0.0078125, %v3457_v45  ;;  %v3467_v54 = vmul.f32 %v3447_v27, %v3447_v27  ;;  %v3475_v9 = vsub.f32 %v8918_v53, %v3447_v27 }
 0xe14   :  { %v3459_v33 = vpop.xlane.xlu0 %3458 }
 0xe15   :  { %v3470_v41 = vsub.f32 %v3462_v51, %v3466_v50  ;;  %v3463_v57 = vmul.f32 0.0078125, %v3459_v33 }
 0xe17   :  { %v3478_v58 = vadd.f32 1e-06, %v3470_v41  ;;  %v3471_v49 = vsub.f32 %v3463_v57, %v3467_v54 }
 0xe19   :  { %7906 = vrsqrt.f32 %v3478_v58  ;;  %v3479_v25 = vadd.f32 1e-06, %v3471_v49 }
 0xe1b   :  { %v7903_v59 = vpop.eup %7902  ;;  %7908 = vrsqrt.f32 %v3479_v25 }
 0xe1c   :  { %v3484_v32 = vmul.f32 %v7903_v59, %v3472_v28 }
 0xe1d   :  { %v7905_v3 = vpop.eup %7904 }
 0xe1e   :  { %v3485_v40 = vmul.f32 %v7905_v3, %v3473_v37  ;;  %v3494_v29 = vmul.f32 %v6839_v52, %v3484_v32 }
 0xe20   :  { %v3495_v43 = vmul.f32 %v6839_v52, %v3485_v40  ;;  %v3504_v6 = vadd.f32 %v6840_v23, %v3494_v29 }
 0xe22   :  { %v3505_v7 = vadd.f32 %v6840_v23, %v3495_v43 }
 0xe23   :  { %v7907_v4 = vpop.eup %7906 }
 0xe24   :  { %v3508_v11 = vpack.c.bf16 %v3505_v7, %v3504_v6  ;;  %v3486_v12 = vmul.f32 %v7907_v4, %v3474_v5 }
 0xe25   :  { %v7909_v35 = vpop.eup %7908 }
 0xe26   :  { %3722 = vmatmul.mubr.bf16.vlgmr.msra.gmra.mrb[44].mxu0 %v3508_v11  ;;  %7405 = vmatprep.mubr.bf16.mxu1 %v3508_v11  ;;  %v3487_v15 = vmul.f32 %v7909_v35, %v3475_v9  ;;  %v3496_v39 = vmul.f32 %v6839_v52, %v3486_v12 }
 0xe27   :  { %3731 = vmatprep.mubr.bf16.mxu0 %v8030_v1 }
 0xe28   :  { %v3497_v34 = vmul.f32 %v6839_v52, %v3487_v15  ;;  %v3506_v16 = vadd.f32 %v6840_v23, %v3496_v39 }
 0xe2a   :  { %v3507_v56 = vadd.f32 %v6840_v23, %v3497_v34 }
 0xe2c   :  { %v3509_v17 = vpack.c.bf16 %v3507_v56, %v3506_v16 }
 0xe2e   :  { %3732 = vmatmul.mubr.bf16.gmra.mrb[48].mxu0 %v3509_v17  ;;  %7406 = vmatmul.mubr.bf16.vlgmr.msra.gmra.mrb[60].mxu1 %v3509_v17 }
 0xe2f   :  { %7413 = vmatprep.mubr.msk.bf16.mxu0 %vm8035_vm1, %v8033_v13  ;;  %7437 = vmatprep.mubr.msk.bf16.mxu1 %vm8035_vm1, %v8033_v13 }
 0xef9   :  { %v3723_v30 = vpop.f32.mrb[44].mxu0 }
 0xefa   :  { %v3725_v55 = vpop.f32.mrb[45].mxu0  ;;  %v3724_v20 = vadd.f32 %v3723_v30, %v3549_v0 }
 0xefb   :  { %v3727_v2 = vpop.f32.mrb[46].mxu0  ;;  %v3726_v44 = vadd.f32 %v3725_v55, %v3553_v19 }
 0xefc   :  { %v3728_v8 = vadd.f32 %v3727_v2, %v3549_v0  ;;  %v3729_v31 = vpop.f32.mrb[47].mxu0 }
 0xefd   :  { %v3730_v10 = vadd.f32 %v3729_v31, %v3553_v19 }
 0xefe   :  { %v3791_v14 = vpack.c.bf16 %v3728_v8, %v3724_v20 }
 0xeff   :  { %v3793_v46 = vpack.c.bf16 %v3730_v10, %v3726_v44 }
 0xf01   :  { %3808 = vrot.lane.b32.xlu0 %v3793_v46, %s8031_s20  ;;  %3805 = vrot.lane.b32.xlu1 %v3793_v46, %s8032_s21  ;;  %v3733_v38 = vpop.f32.mrb[48].mxu0  ;;  %v7407_v48 = vpop.f32.mrb[60].mxu1 }
 0xf02   :  { %v3734_v26 = vadd.f32 %v3733_v38, %v3549_v0  ;;  %v3785_v27 = vadd.f32 %v7407_v48, %v3557_v36  ;;  %v3735_v45 = vpop.f32.mrb[49].mxu0  ;;  %v3776_v50 = vpop.f32.mrb[61].mxu1 }
 0xf03   :  { %v3736_v51 = vadd.f32 %v3735_v45, %v3553_v19  ;;  %v3737_v33 = vpop.f32.mrb[50].mxu0  ;;  %v7408_v54 = vpop.f32.mrb[62].mxu1  ;;  %v3777_v60 = vadd.f32 %v3776_v50, %v3557_v36 }
 0xf04   :  { %v3738_v41 = vadd.f32 %v3737_v33, %v3549_v0  ;;  %v3788_v57 = vadd.f32 %v7408_v54, %v3557_v36  ;;  %v3739_v58 = vpop.f32.mrb[51].mxu0  ;;  %v3779_v49 = vpop.f32.mrb[63].mxu1 }
 0xf05   :  { %v3740_v24 = vadd.f32 %v3739_v58, %v3553_v19  ;;  %v3780_v25 = vadd.f32 %v3779_v49, %v3557_v36  ;;  %3811 = vrot.lane.b32.xlu1 %v3793_v46, %s8034_s22  ;;  %3800 = vrot.lane.b32.xlu0 %v3791_v14, %s8031_s20 }
 0xf06   :  { %v9020_v28 = vpack.c.bf16 %v3738_v41, %v3734_v26  ;;  %v9022_v59 = vpack.c.bf16 %v3788_v57, %v3785_v27 }
 0xf07   :  { %v9024_v52 = vpack.c.bf16 %v3740_v24, %v3736_v51  ;;  %v9026_v37 = vpack.c.bf16 %v3780_v25, %v3777_v60 }
 0xf09   :  { %3802 = vrot.lane.b32.xlu0 %v3791_v14, %s8034_s22  ;;  %3798 = vrot.lane.b32.xlu1 %v3791_v14, %s8032_s21 }
 0xf2c   :  { %3824 = vxpose.xlu1.c.b16.start.end [1/1] (short) (narrow) %v3793_v46, 32 }
 0xf73   :  { %v3806_v32 = vpop.permute.xlu1 %3805  ;;  %v3809_v3 = vpop.permute.xlu0 %3808 }
 0xf74   :  { %3840 = vxpose.xlu0.c.b16.start.end [1/1] (short) (narrow) %v3806_v32, 32  ;;  %3856 = vxpose.xlu1.c.b16.start.end [1/1] (short) (narrow) %v3809_v3, 32 }
 0xf77   :  { %v3812_v40 = vpop.permute.xlu1 %3811  ;;  %v3801_v5 = vpop.permute.xlu0 %3800 }
 0xf79   :  { %3872 = vxpose.xlu0.c.b16.start.end [1/1] (short) (narrow) %v3812_v40, 32  ;;  %4164 = vxpose.xlu1.c.b16.start.end [1/1] (short) (narrow) %v9026_v37, 32 }
 0xf7b   :  { %v3799_v29 = vpop.permute.xlu1 %3798  ;;  %v3803_v6 = vpop.permute.xlu0 %3802 }
 0xf81   :  { %3815 = vrot.lane.b32.xlu1 %v9026_v37, %s8032_s21 }
 0xf92   :  { %v3832_v23 = vpop.trf.xlu1 }
 0xf93   :  { %7410 = vmatpush3.bf16.msra.mxu0 %v3832_v23 }
 0xf94   :  { %7411 = vmatprep.subr.bf16.mxu0 %v8033_v13 }
 0xf96   :  { %v3833_v43 = vpop.trf.xlu1 }
 0xf97   :  { %7412 = vmatpush3.bf16.msra.mxu0 %v3833_v43 }
 0xf98   :  { %7417 = vmatprep.subr.bf16.mxu0 %v8033_v13 }
 0xf9a   :  { %7414 = vmatmul.mubr.msk.bf16.vlgmr.msra.gmra.mrb[52].mxu0 %vm703_vm2, %v3791_v14 }
 0xf9b   :  { %7421 = vmatprep.mubr.msk.bf16.mxu0 %vm8035_vm1, %v8033_v13 }
 0xfda   :  { %v3848_v7 = vpop.trf.xlu0  ;;  %v3864_v9 = vpop.trf.xlu1 }
 0xfdb   :  { %7418 = vmatpush3.bf16.msra.mxu0 %v3848_v7 }
 0xfdc   :  { %7419 = vmatprep.subr.bf16.mxu0 %v8033_v13 }
 0xfde   :  { %v3849_v4 = vpop.trf.xlu0  ;;  %v3865_v12 = vpop.trf.xlu1 }
 0xfdf   :  { %7420 = vmatpush3.bf16.msra.mxu0 %v3849_v4 }
 0xfe0   :  { %7425 = vmatprep.subr.bf16.mxu0 %v8033_v13 }
 0xfe2   :  { %7422 = vmatmul.mubr.msk.bf16.vlgmr.msra.gmra.mrb[56].mxu0 %vm703_vm2, %v3799_v29  ;;  %v3880_v11 = vpop.trf.xlu0  ;;  %v4172_v15 = vpop.trf.xlu1 }
 0xfe3   :  { %7426 = vmatpush3.bf16.msra.mxu0 %v3864_v9  ;;  %7434 = vmatpush3.bf16.msra.mxu1 %v3880_v11 }
 0xfe4   :  { %7427 = vmatprep.subr.bf16.mxu0 %v8033_v13  ;;  %7435 = vmatprep.subr.bf16.mxu1 %v8033_v13 }
 0xfe5   :  { %7429 = vmatprep.mubr.msk.bf16.mxu0 %vm8035_vm1, %v8033_v13 }
 0xfe6   :  { %v3881_v35 = vpop.trf.xlu0  ;;  %v9064_v60 = vpop.trf.xlu1 }
 0xfe7   :  { %7428 = vmatpush3.bf16.msra.mxu0 %v3865_v12  ;;  %7436 = vmatpush3.bf16.msra.mxu1 %v3881_v35 }
 0xfea   :  { %7430 = vmatmul.mubr.msk.bf16.vlgmr.msra.gmra.mrb[60].mxu0 %vm703_vm2, %v3801_v5  ;;  %7438 = vmatmul.mubr.msk.bf16.vlgmr.msra.gmra.mrb[64].mxu1 %vm703_vm2, %v3803_v6 }
 0xfeb   :  { %7443 = vmatprep.mubr.msk.bf16.mxu0 %vm888_vm3, %v4172_v15 }
 0xff3   :  { %v3816_v24 = vpop.permute.xlu1 %3815 }
0x106d   :  { %v3925_v39 = vpop.f32.mrb[52].mxu0 }
0x106e   :  { %v4064_v34 = vmul.f32 0.17677669, %v3925_v39  ;;  %v7415_v16 = vpop.f32.mrb[53].mxu0 }
0x106f   :  { %v3928_v56 = vpop.f32.mrb[54].mxu0 }
0x1070   :  { %v4065_v17 = vmul.f32 0.17677669, %v3928_v56  ;;  %v7416_v18 = vpop.f32.mrb[55].mxu0  ;;  %v4072_v0 = vsel %vm888_vm3, %v4064_v34, -inf }
0x1071   :  { %4073 = vmax.xlane.f32.xlu1 %v4072_v0 }
0x1072   :  { %v4075_v30 = vsel %vm888_vm3, %v4065_v17, -inf }
0x1073   :  { %4076 = vmax.xlane.f32.xlu0 %v4075_v30 }
0x10b5   :  { %v3969_v19 = vpop.f32.mrb[56].mxu0 }
0x10b6   :  { %v4066_v55 = vmul.f32 0.17677669, %v3969_v19  ;;  %v7423_v2 = vpop.f32.mrb[57].mxu0 }
0x10b7   :  { %v3972_v20 = vpop.f32.mrb[58].mxu0 }
0x10b8   :  { %v4067_v8 = vmul.f32 0.17677669, %v3972_v20  ;;  %v7424_v31 = vpop.f32.mrb[59].mxu0  ;;  %v4078_v44 = vsel %vm888_vm3, %v4066_v55, -inf }
0x10b9   :  { %4079 = vmax.xlane.f32.xlu1 %v4078_v44 }
0x10ba   :  { %v4081_v10 = vsel %vm888_vm3, %v4067_v8, -inf }
0x10bb   :  { %4082 = vmax.xlane.f32.xlu0 %v4081_v10 }
0x10bd   :  { %v4013_v14 = vpop.f32.mrb[60].mxu0  ;;  %v4057_v36 = vpop.f32.mrb[64].mxu1 }
0x10be   :  { %v4070_v46 = vmul.f32 0.17677669, %v4057_v36  ;;  %v7431_v38 = vpop.f32.mrb[61].mxu0  ;;  %v7439_v48 = vpop.f32.mrb[65].mxu1  ;;  %v4068_v33 = vmul.f32 0.17677669, %v4013_v14 }
0x10bf   :  { %v4016_v26 = vpop.f32.mrb[62].mxu0  ;;  %v4060_v27 = vpop.f32.mrb[66].mxu1 }
0x10c0   :  { %v4071_v45 = vmul.f32 0.17677669, %v4060_v27  ;;  %v7432_v50 = vpop.f32.mrb[63].mxu0  ;;  %v7440_v51 = vpop.f32.mrb[67].mxu1  ;;  %v4090_v54 = vsel %vm888_vm3, %v4070_v46, -inf  ;;  %v4084_v58 = vsel %vm888_vm3, %v4068_v33, -inf }
0x10c1   :  { %v4069_v41 = vmul.f32 0.17677669, %v4016_v26  ;;  %4091 = vmax.xlane.f32.xlu1 %v4090_v54 }
0x10c2   :  { %v4093_v57 = vsel %vm888_vm3, %v4071_v45, -inf }
0x10c3   :  { %4094 = vmax.xlane.f32.xlu0 %v4093_v57  ;;  %v4087_v49 = vsel %vm888_vm3, %v4069_v41, -inf }
0x10c5   :  { %4085 = vmax.xlane.f32.xlu1 %v4084_v58 }
0x10c7   :  { %4088 = vmax.xlane.f32.xlu0 %v4087_v49 }
0x10d6   :  { %3818 = vrot.lane.b32.xlu1 %v9026_v37, %s8031_s20 }
0x10da   :  { %4898 = vrot.lane.b32.xlu1 %v9024_v52, %s8032_s21 }
0x10de   :  { %4904 = vrot.lane.b32.xlu1 %v9024_v52, %s8034_s22 }
0x10e2   :  { %4891 = vrot.lane.b32.xlu1 %v9020_v28, %s8032_s21 }
0x10f4   :  { %4180 = vxpose.xlu0.c.b16.start.end [1/1] (short) (narrow) %v3816_v24, 32 }
0x10fe   :  { %v4074_v25 = vpop.xlane.xlu1 %4073 }
0x10ff   :  { %v4096_v32 = vsub.f32 %v4064_v34, %v4074_v25 }
0x1100   :  { %v4077_v3 = vpop.xlane.xlu0 %4076 }
0x1101   :  { %3821 = vrot.lane.b32.xlu0 %v9026_v37, %s8034_s22  ;;  %v4104_v40 = vmul.f32 1.442695, %v4096_v32  ;;  %v4097_v29 = vsub.f32 %v4065_v17, %v4077_v3 }
0x1103   :  { %7910 = vpow2.f32 %v4104_v40  ;;  %v4106_v23 = vmul.f32 1.442695, %v4097_v29 }
0x1105   :  { %4901 = vrot.lane.b32.xlu0 %v9024_v52, %s8031_s20  ;;  %7912 = vpow2.f32 %v4106_v23 }
0x110d   :  { %v9070_v43 = vpop.eup %7910 }
0x110e   :  { %v4120_v5 = vsel %vm888_vm3, %v9070_v43, 0.0 }
0x110f   :  { %v9074_v6 = vpop.eup %7912 }
0x1110   :  { %v4123_v37 = vsel %vm888_vm3, %v9074_v6, 0.0 }
0x1124   :  { %4121 = vadd.xlane.f32.xlu0 %v4120_v5 }
0x1128   :  { %4124 = vadd.xlane.f32.xlu0 %v4123_v37 }
0x1146   :  { %v4080_v7 = vpop.xlane.xlu1 %4079 }
0x1147   :  { %v4098_v4 = vsub.f32 %v4066_v55, %v4080_v7 }
0x1148   :  { %v4083_v9 = vpop.xlane.xlu0 %4082 }
0x1149   :  { %v4108_v11 = vmul.f32 1.442695, %v4098_v4  ;;  %v4099_v12 = vsub.f32 %v4067_v8, %v4083_v9 }
0x114b   :  { %7914 = vpow2.f32 %v4108_v11  ;;  %v4110_v35 = vmul.f32 1.442695, %v4099_v12 }
0x114d   :  { %7916 = vpow2.f32 %v4110_v35 }
0x114e   :  { %v4092_v15 = vpop.xlane.xlu1 %4091 }
0x114f   :  { %v4102_v39 = vsub.f32 %v4070_v46, %v4092_v15 }
0x1150   :  { %v4095_v34 = vpop.xlane.xlu0 %4094 }
0x1151   :  { %v4103_v16 = vsub.f32 %v4071_v45, %v4095_v34  ;;  %v4116_v56 = vmul.f32 1.442695, %v4102_v39 }
0x1152   :  { %v4086_v18 = vpop.xlane.xlu1 %4085 }
0x1153   :  { %v4118_v17 = vmul.f32 1.442695, %v4103_v16  ;;  %7918 = vpow2.f32 %v4116_v56  ;;  %v4100_v0 = vsub.f32 %v4068_v33, %v4086_v18 }
0x1154   :  { %v4089_v30 = vpop.xlane.xlu0 %4088 }
0x1155   :  { %v9078_v19 = vpop.eup %7914  ;;  %v4101_v2 = vsub.f32 %v4069_v41, %v4089_v30  ;;  %7920 = vpow2.f32 %v4118_v17  ;;  %v4112_v55 = vmul.f32 1.442695, %v4100_v0 }
0x1156   :  { %v4126_v20 = vsel %vm888_vm3, %v9078_v19, 0.0  ;;  %v3819_v33 = vpop.permute.xlu1 %3818 }
0x1157   :  { %v7917_v8 = vpop.eup %7916  ;;  %v4114_v31 = vmul.f32 1.442695, %v4101_v2  ;;  %4127 = vadd.xlane.f32.xlu0 %v4126_v20 }
0x1158   :  { %v4129_v44 = vsel %vm888_vm3, %v7917_v8, 0.0 }
0x1159   :  { %7922 = vpow2.f32 %v4114_v31 }
0x115a   :  { %7924 = vpow2.f32 %v4112_v55  ;;  %v4188_v10 = vpop.trf.xlu0  ;;  %v4899_v54 = vpop.permute.xlu1 %4898 }
0x115b   :  { %4130 = vadd.xlane.f32.xlu0 %v4129_v44  ;;  %7449 = vmatprep.mubr.msk.bf16.mxu1 %vm888_vm3, %v4188_v10 }
0x115d   :  { %v9084_v14 = vpop.eup %7918 }
0x115e   :  { %v4138_v36 = vsel %vm888_vm3, %v9084_v14, 0.0  ;;  %v4189_v50 = vpop.trf.xlu0  ;;  %v4905_v57 = vpop.permute.xlu1 %4904 }
0x115f   :  { %v7921_v46 = vpop.eup %7920  ;;  %4139 = vadd.xlane.f32.xlu1 %v4138_v36 }
0x1160   :  { %v4141_v48 = vsel %vm888_vm3, %v7921_v46, 0.0 }
0x1162   :  { %v4892_v5 = vpop.permute.xlu1 %4891 }
0x1163   :  { %v9088_v38 = vpop.eup %7922  ;;  %4142 = vadd.xlane.f32.xlu1 %v4141_v48 }
0x1164   :  { %v9091_v26 = vpop.eup %7924  ;;  %v4135_v27 = vsel %vm888_vm3, %v9088_v38, 0.0 }
0x1165   :  { %4136 = vadd.xlane.f32.xlu0 %v4135_v27  ;;  %v4132_v45 = vsel %vm888_vm3, %v9091_v26, 0.0 }
0x1167   :  { %4133 = vadd.xlane.f32.xlu1 %v4132_v45 }
0x1173   :  { %v3822_v51 = vpop.permute.xlu0 %3821 }
0x1177   :  { %v4902_v41 = vpop.permute.xlu0 %4901 }
0x1178   :  { %4895 = vrot.lane.b32.xlu1 %v9020_v28, %s8034_s22 }
0x117b   :  { %4893 = vrot.lane.b32.xlu0 %v9020_v28, %s8031_s20 }
0x1199   :  { %4212 = vxpose.xlu0.c.b16.start.end [1/1] (short) (narrow) %v3822_v51, 32 }
0x119b   :  { %4196 = vxpose.xlu1.c.b16.start.end [1/1] (short) (narrow) %v3819_v33, 32 }
0x119e   :  { %4917 = vxpose.xlu0.c.b16.start.end [1/1] (short) (narrow) %v9024_v52, 32 }
0x11a0   :  { %4933 = vxpose.xlu1.c.b16.start.end [1/1] (short) (narrow) %v4899_v54, 32 }
0x11a3   :  { %4949 = vxpose.xlu0.c.b16.start.end [1/1] (short) (narrow) %v4902_v41, 32 }
0x11a5   :  { %4965 = vxpose.xlu1.c.b16.start.end [1/1] (short) (narrow) %v4905_v57, 32 }
0x11b1   :  { %v4122_v58 = vpop.xlane.xlu0 %4121 }
0x11b2   :  { %7926 = vrcp.f32 %v4122_v58 }
0x11b5   :  { %v4125_v49 = vpop.xlane.xlu0 %4124 }
0x11b6   :  { %7928 = vrcp.f32 %v4125_v49 }
0x11bc   :  { %v7927_v24 = vpop.eup %7926 }
0x11bd   :  { %v4152_v32 = vmul.f32 %v7927_v24, %v9070_v43 }
0x11c0   :  { %v7929_v25 = vpop.eup %7928 }
0x11c1   :  { %v4153_v3 = vmul.f32 %v7929_v25, %v9074_v6 }
0x11c3   :  { %v4160_v40 = vpack.c.bf16 %v4153_v3, %v4152_v32 }
0x11c5   :  { %7549 = vmatprep.subr.msk.bf16.mxu0 %vm888_vm3, %v4160_v40  ;;  %v4235_v52 = vsel %vm888_vm3, %v4160_v40, 0 }
0x11c6   :  { %7442 = vmatpush3.bf16.xpose.msra.mxu0 %v4235_v52 }
0x11cd   :  { %7444 = vmatmul.mubr.msk.bf16.vlgmr.msra.gmra.mrb[64].mxu0 %vm888_vm3, %v9064_v60 }
0x11e4   :  { %v4128_v29 = vpop.xlane.xlu0 %4127 }
0x11e5   :  { %7930 = vrcp.f32 %v4128_v29 }
0x11e8   :  { %v4131_v23 = vpop.xlane.xlu0 %4130 }
0x11e9   :  { %7932 = vrcp.f32 %v4131_v23 }
0x11ec   :  { %v4140_v37 = vpop.xlane.xlu1 %4139 }
0x11ed   :  { %7934 = vrcp.f32 %v4140_v37 }
0x11ef   :  { %v7931_v7 = vpop.eup %7930 }
0x11f0   :  { %v4143_v43 = vpop.xlane.xlu1 %4142  ;;  %v4154_v9 = vmul.f32 %v7931_v7, %v9078_v19 }
0x11f1   :  { %7936 = vrcp.f32 %v4143_v43 }
0x11f2   :  { %v4137_v6 = vpop.xlane.xlu0 %4136 }
0x11f3   :  { %v7933_v4 = vpop.eup %7932  ;;  %7938 = vrcp.f32 %v4137_v6 }
0x11f4   :  { %v4155_v11 = vmul.f32 %v7933_v4, %v7917_v8  ;;  %v4134_v12 = vpop.xlane.xlu1 %4133 }
0x11f5   :  { %7940 = vrcp.f32 %v4134_v12 }
0x11f6   :  { %v4161_v35 = vpack.c.bf16 %v4155_v11, %v4154_v9  ;;  %v4894_v39 = vpop.permute.xlu0 %4893 }
0x11f7   :  { %v7935_v15 = vpop.eup %7934 }
0x11f8   :  { %7550 = vmatprep.subr.msk.bf16.mxu1 %vm888_vm3, %v4161_v35  ;;  %v4293_v60 = vsel %vm888_vm3, %v4161_v35, 0  ;;  %v4158_v16 = vmul.f32 %v7935_v15, %v9084_v14  ;;  %v4896_v18 = vpop.permute.xlu1 %4895 }
0x11f9   :  { %7448 = vmatpush3.bf16.xpose.msra.mxu1 %v4293_v60 }
0x11fb   :  { %v7937_v34 = vpop.eup %7936 }
0x11fc   :  { %v4159_v56 = vmul.f32 %v7937_v34, %v7921_v46 }
0x11fd   :  { %v7939_v17 = vpop.eup %7938 }
0x11fe   :  { %v4163_v0 = vpack.c.bf16 %v4159_v56, %v4158_v16  ;;  %v4157_v20 = vmul.f32 %v7939_v17, %v9088_v38 }
0x11ff   :  { %v4220_v30 = vpop.trf.xlu0  ;;  %v7941_v19 = vpop.eup %7940 }
0x1200   :  { %7450 = vmatmul.mubr.msk.bf16.vlgmr.msra.gmra.mrb[68].mxu1 %vm888_vm3, %v4189_v50  ;;  %7552 = vmatprep.subr.msk.bf16.mxu1 %vm888_vm3, %v4163_v0  ;;  %v4409_v2 = vsel %vm888_vm3, %v4163_v0, 0  ;;  %v4156_v55 = vmul.f32 %v7941_v19, %v9091_v26 }
0x1201   :  { %7461 = vmatprep.mubr.msk.bf16.mxu1 %vm888_vm3, %v4220_v30  ;;  %v4204_v8 = vpop.trf.xlu1  ;;  %7460 = vmatpush3.bf16.xpose.msra.mxu1 %v4409_v2 }
0x1202   :  { %v4162_v31 = vpack.c.bf16 %v4157_v20, %v4156_v55  ;;  %7473 = vmatprep.subr.bf16.mxu1 %v8033_v13  ;;  %7455 = vmatprep.mubr.msk.bf16.mxu0 %vm888_vm3, %v4204_v8 }
0x1203   :  { %v4221_v44 = vpop.trf.xlu0 }
0x1204   :  { %7551 = vmatprep.subr.msk.bf16.mxu0 %vm888_vm3, %v4162_v31  ;;  %v4351_v10 = vsel %vm888_vm3, %v4162_v31, 0 }
0x1205   :  { %v4205_v14 = vpop.trf.xlu1  ;;  %7454 = vmatpush3.bf16.xpose.msra.mxu0 %v4351_v10 }
0x1206   :  { %7465 = vmatprep.subr.bf16.mxu0 %v8033_v13 }
0x1207   :  { %v4925_v36 = vpop.trf.xlu0 }
0x1208   :  { %7462 = vmatmul.mubr.msk.bf16.vlgmr.msra.gmra.mrb[72].mxu1 %vm888_vm3, %v4221_v44 }
0x1209   :  { %v4941_v46 = vpop.trf.xlu1  ;;  %7477 = vmatprep.mubr.msk.bf16.mxu1 %vm8035_vm1, %v8033_v13 }
0x120a   :  { %7474 = vmatpush3.bf16.msra.mxu1 %v4941_v46 }
0x120b   :  { %v4926_v38 = vpop.trf.xlu0  ;;  %7475 = vmatprep.subr.bf16.mxu1 %v8033_v13 }
0x120c   :  { %7456 = vmatmul.mubr.msk.bf16.vlgmr.msra.gmra.mrb[68].mxu0 %vm888_vm3, %v4205_v14 }
0x120d   :  { %v4942_v48 = vpop.trf.xlu1  ;;  %7466 = vmatpush3.bf16.msra.mxu0 %v4925_v36  ;;  %7469 = vmatprep.mubr.msk.bf16.mxu0 %vm8035_vm1, %v8033_v13 }
0x120e   :  { %7476 = vmatpush3.bf16.msra.mxu1 %v4942_v48  ;;  %7467 = vmatprep.subr.bf16.mxu0 %v8033_v13 }
0x120f   :  { %7489 = vmatprep.subr.bf16.mxu1 %v8033_v13  ;;  %v4957_v26 = vpop.trf.xlu0 }
0x1211   :  { %v4973_v27 = vpop.trf.xlu1  ;;  %7468 = vmatpush3.bf16.msra.mxu0 %v4926_v38  ;;  %7478 = vmatmul.mubr.msk.bf16.vlgmr.msra.gmra.mrb[76].mxu1 %vm703_vm2, %v4892_v5 }
0x1212   :  { %7490 = vmatpush3.bf16.msra.mxu1 %v4973_v27  ;;  %7481 = vmatprep.subr.bf16.mxu0 %v8033_v13 }
0x1213   :  { %7491 = vmatprep.subr.bf16.mxu1 %v8033_v13  ;;  %7493 = vmatprep.mubr.msk.bf16.mxu1 %vm8035_vm1, %v8033_v13  ;;  %v4958_v50 = vpop.trf.xlu0 }
0x1214   :  { %7470 = vmatmul.mubr.msk.bf16.vlgmr.msra.gmra.mrb[72].mxu0 %vm703_vm2, %v9020_v28 }
0x1215   :  { %v4974_v45 = vpop.trf.xlu1  ;;  %7482 = vmatpush3.bf16.msra.mxu0 %v4957_v26  ;;  %7485 = vmatprep.mubr.msk.bf16.mxu0 %vm8035_vm1, %v8033_v13 }
0x1216   :  { %7492 = vmatpush3.bf16.msra.mxu1 %v4974_v45  ;;  %7483 = vmatprep.subr.bf16.mxu0 %v8033_v13 }
0x1219   :  { %7484 = vmatpush3.bf16.msra.mxu0 %v4958_v50  ;;  %7494 = vmatmul.mubr.msk.bf16.vlgmr.msra.gmra.mrb[80].mxu1 %vm703_vm2, %v4896_v18 }
0x121c   :  { %7486 = vmatmul.mubr.msk.bf16.vlgmr.msra.gmra.mrb[76].mxu0 %vm703_vm2, %v4894_v39 }
0x12a0   :  { %v9144_v51 = vpop.f32.mrb[64].mxu0 }
0x12a1   :  { %v9146_v33 = vpop.f32.mrb[65].mxu0 }
0x12a2   :  { %v9148_v54 = vpop.f32.mrb[66].mxu0 }
0x12a3   :  { %v9150_v28 = vpop.f32.mrb[67].mxu0 }
0x12d3   :  { %v9152_v41 = vpop.f32.mrb[68].mxu1 }
0x12d4   :  { %v9154_v57 = vpop.f32.mrb[69].mxu1 }
0x12d5   :  { %v9156_v58 = vpop.f32.mrb[70].mxu1 }
0x12d6   :  { %v9158_v13 = vpop.f32.mrb[71].mxu1 }
0x12db   :  { %v9160_v49 = vpop.f32.mrb[72].mxu1 }
0x12dc   :  { %v9162_v24 = vpop.f32.mrb[73].mxu1 }
0x12dd   :  { %v9164_v25 = vpop.f32.mrb[74].mxu1 }
0x12de   :  { %v9166_v32 = vpop.f32.mrb[75].mxu1 }
0x12df   :  { %v9168_v3 = vpop.f32.mrb[68].mxu0 }
0x12e0   :  { %v9170_v40 = vpop.f32.mrb[69].mxu0 }
0x12e1   :  { %v9172_v52 = vpop.f32.mrb[70].mxu0 }
0x12e2   :  { %v9174_v29 = vpop.f32.mrb[71].mxu0 }
0x12e4   :  { %v5062_v23 = vpop.f32.mrb[76].mxu1 }
0x12e5   :  { %v7479_v5 = vpop.f32.mrb[77].mxu1  ;;  %v5159_v11 = vmul.f32 0.17677669, %v5062_v23 }
0x12e6   :  { %v5065_v37 = vpop.f32.mrb[78].mxu1 }
0x12e7   :  { %v5018_v7 = vpop.f32.mrb[72].mxu0  ;;  %v7480_v43 = vpop.f32.mrb[79].mxu1  ;;  %v5160_v15 = vmul.f32 0.17677669, %v5065_v37  ;;  %v5171_v17 = vsel %vm888_vm3, %v5159_v11, -inf }
0x12e8   :  { %v5157_v6 = vmul.f32 0.17677669, %v5018_v7  ;;  %v7471_v4 = vpop.f32.mrb[73].mxu0 }
0x12e9   :  { %v5021_v9 = vpop.f32.mrb[74].mxu0  ;;  %v5174_v2 = vsel %vm888_vm3, %v5160_v15, -inf }
0x12ea   :  { %v5158_v12 = vmul.f32 0.17677669, %v5021_v9  ;;  %v7472_v35 = vpop.f32.mrb[75].mxu0  ;;  %v5165_v60 = vsel %vm888_vm3, %v5157_v6, -inf }
0x12eb   :  { %5166 = vmax.xlane.f32.xlu0 %v5165_v60 }
0x12ec   :  { %v5150_v39 = vpop.f32.mrb[80].mxu1  ;;  %v5168_v34 = vsel %vm888_vm3, %v5158_v12, -inf }
0x12ed   :  { %v7495_v16 = vpop.f32.mrb[81].mxu1  ;;  %5169 = vmax.xlane.f32.xlu1 %v5168_v34  ;;  %v5163_v20 = vmul.f32 0.17677669, %v5150_v39 }
0x12ee   :  { %v5153_v56 = vpop.f32.mrb[82].mxu1 }
0x12ef   :  { %v7496_v18 = vpop.f32.mrb[83].mxu1  ;;  %5172 = vmax.xlane.f32.xlu0 %v5171_v17  ;;  %v5106_v0 = vpop.f32.mrb[76].mxu0  ;;  %v5164_v10 = vmul.f32 0.17677669, %v5153_v56  ;;  %v5183_v36 = vsel %vm888_vm3, %v5163_v20, -inf }
0x12f0   :  { %v5161_v30 = vmul.f32 0.17677669, %v5106_v0  ;;  %v7487_v19 = vpop.f32.mrb[77].mxu0 }
0x12f1   :  { %5175 = vmax.xlane.f32.xlu1 %v5174_v2  ;;  %v5109_v55 = vpop.f32.mrb[78].mxu0  ;;  %v5186_v46 = vsel %vm888_vm3, %v5164_v10, -inf }
0x12f2   :  { %v9180_v8 = vmul.f32 0.17677669, %v5109_v55  ;;  %v7488_v31 = vpop.f32.mrb[79].mxu0  ;;  %v5177_v44 = vsel %vm888_vm3, %v5161_v30, -inf }
0x12f3   :  { %5178 = vmax.xlane.f32.xlu0 %v5177_v44 }
0x12f4   :  { %v5180_v14 = vsel %vm888_vm3, %v9180_v8, -inf }
0x12f5   :  { %5181 = vmax.xlane.f32.xlu1 %v5180_v14 }
0x12f7   :  { %5184 = vmax.xlane.f32.xlu0 %v5183_v36 }
0x12f9   :  { %5187 = vmax.xlane.f32.xlu1 %v5186_v46 }
0x130d   :  { %4908 = vrot.lane.b32.xlu0 %v9022_v59, %s8032_s21 }
0x1311   :  { %4914 = vrot.lane.b32.xlu0 %v9022_v59, %s8034_s22 }
0x1378   :  { %v5167_v38 = vpop.xlane.xlu0 %5166 }
0x1379   :  { %v5189_v48 = vsub.f32 %v5157_v6, %v5167_v38 }
0x137a   :  { %v5170_v26 = vpop.xlane.xlu1 %5169 }
0x137b   :  { %v5197_v27 = vmul.f32 1.442695, %v5189_v48  ;;  %v5190_v45 = vsub.f32 %v5158_v12, %v5170_v26 }
0x137c   :  { %v5173_v50 = vpop.xlane.xlu0 %5172 }
0x137d   :  { %7942 = vpow2.f32 %v5197_v27  ;;  %v5191_v23 = vsub.f32 %v5159_v11, %v5173_v50  ;;  %v5199_v37 = vmul.f32 1.442695, %v5190_v45 }
0x137e   :  { %v5176_v5 = vpop.xlane.xlu1 %5175 }
0x137f   :  { %v5201_v7 = vmul.f32 1.442695, %v5191_v23  ;;  %v5192_v43 = vsub.f32 %v5160_v15, %v5176_v5 }
0x1380   :  { %v5179_v4 = vpop.xlane.xlu0 %5178 }
0x1381   :  { %7944 = vpow2.f32 %v5201_v7  ;;  %v5193_v9 = vsub.f32 %v5161_v30, %v5179_v4  ;;  %v5203_v60 = vmul.f32 1.442695, %v5192_v43 }
0x1382   :  { %v5182_v35 = vpop.xlane.xlu1 %5181  ;;  %7946 = vpow2.f32 %v5199_v37 }
0x1383   :  { %v5205_v39 = vmul.f32 1.442695, %v5193_v9  ;;  %v5194_v46 = vsub.f32 %v9180_v8, %v5182_v35 }
0x1384   :  { %v5185_v34 = vpop.xlane.xlu0 %5184 }
0x1385   :  { %7948 = vpow2.f32 %v5205_v39  ;;  %v5195_v6 = vsub.f32 %v5163_v20, %v5185_v34  ;;  %v5207_v38 = vmul.f32 1.442695, %v5194_v46 }
0x1386   :  { %v5188_v16 = vpop.xlane.xlu1 %5187  ;;  %7950 = vpow2.f32 %v5203_v60 }
0x1387   :  { %v9191_v56 = vpop.eup %7942  ;;  %v5209_v12 = vmul.f32 1.442695, %v5195_v6  ;;  %v5196_v11 = vsub.f32 %v5164_v10, %v5188_v16 }
0x1388   :  { %v5213_v17 = vsel %vm888_vm3, %v9191_v56, 0.0  ;;  %v4909_v27 = vpop.permute.xlu0 %4908 }
0x1389   :  { %7952 = vpow2.f32 %v5209_v12  ;;  %v5211_v15 = vmul.f32 1.442695, %v5196_v11  ;;  %5214 = vadd.xlane.f32.xlu1 %v5213_v17 }
0x138b   :  { %v9195_v18 = vpop.eup %7944  ;;  %7954 = vpow2.f32 %v5211_v15 }
0x138c   :  { %v5219_v0 = vsel %vm888_vm3, %v9195_v18, 0.0  ;;  %v7947_v30 = vpop.eup %7946  ;;  %7956 = vpow2.f32 %v5207_v38  ;;  %v4915_v45 = vpop.permute.xlu0 %4914 }
0x138d   :  { %5220 = vadd.xlane.f32.xlu1 %v5219_v0  ;;  %v5216_v2 = vsel %vm888_vm3, %v7947_v30, 0.0 }
0x138f   :  { %v9199_v19 = vpop.eup %7948 }
0x1390   :  { %v5225_v55 = vsel %vm888_vm3, %v9199_v19, 0.0  ;;  %v7951_v20 = vpop.eup %7950 }
0x1391   :  { %5217 = vadd.xlane.f32.xlu1 %v5216_v2  ;;  %5226 = vadd.xlane.f32.xlu0 %v5225_v55  ;;  %v5222_v44 = vsel %vm888_vm3, %v7951_v20, 0.0 }
0x1393   :  { %v9204_v31 = vpop.eup %7952 }
0x1394   :  { %v5231_v10 = vsel %vm888_vm3, %v9204_v31, 0.0 }
0x1395   :  { %v7955_v14 = vpop.eup %7954  ;;  %5223 = vadd.xlane.f32.xlu1 %v5222_v44  ;;  %5232 = vadd.xlane.f32.xlu0 %v5231_v10 }
0x1396   :  { %v5234_v36 = vsel %vm888_vm3, %v7955_v14, 0.0  ;;  %v9213_v48 = vpop.eup %7956 }
0x1397   :  { %v5228_v26 = vsel %vm888_vm3, %v9213_v48, 0.0 }
0x1399   :  { %5235 = vadd.xlane.f32.xlu0 %v5234_v36 }
0x13a6   :  { %4911 = vrot.lane.b32.xlu1 %v9022_v59, %s8031_s20 }
0x13c6   :  { %5257 = vxpose.xlu0.c.b16.start.end [1/1] (short) (narrow) %v9022_v59, 32 }
0x13ca   :  { %5229 = vadd.xlane.f32.xlu1 %v5228_v26 }
0x13f7   :  { %5273 = vxpose.xlu1.c.b16.start.end [1/1] (short) (narrow) %v4909_v27, 32 }
0x13fc   :  { %5305 = vxpose.xlu1.c.b16.start.end [1/1] (short) (narrow) %v4915_v45, 32 }
0x140a   :  { %4492 = vxpose.xlu1.b32.start [1/4] (short) (narrow) %v9154_v57, 16 }
0x140e   :  { %4493 = vxpose.xlu1.b32.cont [2/4] (short) (narrow) %v9158_v13, 16 }
0x1412   :  { %4494 = vxpose.xlu1.b32.cont [3/4] (short) (narrow) %v9152_v41, 16 }
0x1416   :  { %v5215_v8 = vpop.xlane.xlu1 %5214  ;;  %4495 = vxpose.xlu1.b32.end [4/4] (short) (narrow) %v9156_v58, 16 }
0x1417   :  { %7958 = vrcp.f32 %v5215_v8 }
0x141a   :  { %v5221_v50 = vpop.xlane.xlu1 %5220  ;;  %4556 = vxpose.xlu1.b32.start [1/4] (short) (narrow) %v9162_v24, 16 }
0x141e   :  { %v5218_v59 = vpop.xlane.xlu1 %5217  ;;  %4557 = vxpose.xlu1.b32.cont [2/4] (short) (narrow) %v9166_v32, 16  ;;  %v5227_v23 = vpop.xlane.xlu0 %5226 }
0x141f   :  { %7960 = vrcp.f32 %v5218_v59 }
0x1420   :  { %7962 = vrcp.f32 %v5221_v50 }
0x1421   :  { %v7959_v13 = vpop.eup %7958 }
0x1422   :  { %v5224_v5 = vpop.xlane.xlu1 %5223  ;;  %4558 = vxpose.xlu1.b32.cont [3/4] (short) (narrow) %v9160_v49, 16  ;;  %v5233_v57 = vpop.xlane.xlu0 %5232  ;;  %v5245_v37 = vmul.f32 %v7959_v13, %v9191_v56 }
0x1423   :  { %7964 = vrcp.f32 %v5224_v5 }
0x1424   :  { %7966 = vrcp.f32 %v5233_v57 }
0x1426   :  { %v4912_v41 = vpop.permute.xlu1 %4911  ;;  %4559 = vxpose.xlu1.b32.end [4/4] (short) (narrow) %v9164_v25, 16  ;;  %v5236_v58 = vpop.xlane.xlu0 %5235 }
0x1427   :  { %7968 = vrcp.f32 %v5236_v58  ;;  %5289 = vxpose.xlu0.c.b16.start.end [1/1] (short) (narrow) %v4912_v41, 32 }
0x1428   :  { %7970 = vrcp.f32 %v5227_v23 }
0x1429   :  { %v7961_v24 = vpop.eup %7960 }
0x142a   :  { %v5246_v32 = vmul.f32 %v7961_v24, %v7947_v30  ;;  %v7963_v7 = vpop.eup %7962 }
0x142b   :  { %v5247_v25 = vmul.f32 %v7963_v7, %v9195_v18 }
0x142c   :  { %v5253_v43 = vpack.c.bf16 %v5246_v32, %v5245_v37  ;;  %v5265_v4 = vpop.trf.xlu0 }
0x142d   :  { %v7965_v9 = vpop.eup %7964  ;;  %7499 = vmatprep.mubr.msk.bf16.mxu0 %vm888_vm3, %v5265_v4 }
0x142e   :  { %7553 = vmatprep.subr.msk.bf16.mxu0 %vm888_vm3, %v5253_v43  ;;  %v5328_v49 = vsel %vm888_vm3, %v5253_v43, 0  ;;  %v5248_v35 = vmul.f32 %v7965_v9, %v7951_v20  ;;  %v7967_v60 = vpop.eup %7966 }
0x142f   :  { %7498 = vmatpush3.bf16.xpose.msra.mxu0 %v5328_v49  ;;  %4460 = vxpose.xlu0.b32.start [1/4] (short) (narrow) %v9146_v33, 16  ;;  %v5251_v16 = vmul.f32 %v7967_v60, %v9204_v31 }
0x1430   :  { %v5254_v39 = vpack.c.bf16 %v5248_v35, %v5247_v25  ;;  %v5266_v12 = vpop.trf.xlu0 }
0x1431   :  { %v7969_v34 = vpop.eup %7968 }
0x1432   :  { %7554 = vmatprep.subr.msk.bf16.mxu1 %vm888_vm3, %v5254_v39  ;;  %v5386_v6 = vsel %vm888_vm3, %v5254_v39, 0  ;;  %v5252_v56 = vmul.f32 %v7969_v34, %v7955_v14  ;;  %v7971_v17 = vpop.eup %7970 }
0x1433   :  { %7504 = vmatpush3.bf16.xpose.msra.mxu1 %v5386_v6  ;;  %4461 = vxpose.xlu0.b32.cont [2/4] (short) (narrow) %v9150_v28, 16 }
0x1434   :  { %v5256_v11 = vpack.c.bf16 %v5252_v56, %v5251_v16 }
0x1436   :  { %7556 = vmatprep.subr.msk.bf16.mxu1 %vm888_vm3, %v5256_v11  ;;  %7500 = vmatmul.mubr.msk.bf16.vlgmr.msra.gmra.mrb[80].mxu0 %vm888_vm3, %v5266_v12 }
0x1437   :  { %4462 = vxpose.xlu0.b32.cont [3/4] (short) (narrow) %v9144_v51, 16  ;;  %v5502_v51 = vsel %vm888_vm3, %v5256_v11, 0 }
0x143b   :  { %4463 = vxpose.xlu0.b32.end [4/4] (short) (narrow) %v9148_v54, 16  ;;  %v5249_v54 = vmul.f32 %v7971_v17, %v9199_v19 }
0x143f   :  { %4524 = vxpose.xlu0.b32.start [1/4] (short) (narrow) %v9170_v40, 16 }
0x1443   :  { %4525 = vxpose.xlu0.b32.cont [2/4] (short) (narrow) %v9174_v29, 16 }
0x1447   :  { %4526 = vxpose.xlu0.b32.cont [3/4] (short) (narrow) %v9168_v3, 16 }
0x144b   :  { %4527 = vxpose.xlu0.b32.end [4/4] (short) (narrow) %v9172_v52, 16 }
0x1457   :  { %v5230_v33 = vpop.xlane.xlu1 %5229 }
0x1458   :  { %7972 = vrcp.f32 %v5230_v33 }
0x145d   :  { %v5281_v28 = vpop.trf.xlu1 }
0x145e   :  { %7505 = vmatprep.mubr.msk.bf16.mxu1 %vm888_vm3, %v5281_v28 }
0x1461   :  { %v5282_v15 = vpop.trf.xlu1 }
0x1462   :  { %v7973_v18 = vpop.eup %7972  ;;  %7506 = vmatmul.mubr.msk.bf16.vlgmr.msra.gmra.mrb[84].mxu1 %vm888_vm3, %v5282_v15 }
0x1463   :  { %7516 = vmatpush3.bf16.xpose.msra.mxu1 %v5502_v51  ;;  %v5250_v3 = vmul.f32 %v7973_v18, %v9213_v48 }
0x1465   :  { %v5255_v40 = vpack.c.bf16 %v5250_v3, %v5249_v54  ;;  %v5313_v52 = vpop.trf.xlu1 }
0x1466   :  { %7517 = vmatprep.mubr.msk.bf16.mxu1 %vm888_vm3, %v5313_v52 }
0x1467   :  { %7555 = vmatprep.subr.msk.bf16.mxu0 %vm888_vm3, %v5255_v40  ;;  %v5444_v29 = vsel %vm888_vm3, %v5255_v40, 0 }
0x1468   :  { %7510 = vmatpush3.bf16.xpose.msra.mxu0 %v5444_v29 }
0x1469   :  { %v5314_v0 = vpop.trf.xlu1 }
0x146a   :  { %7518 = vmatmul.mubr.msk.bf16.vlgmr.msra.gmra.mrb[88].mxu1 %vm888_vm3, %v5314_v0 }
0x146b   :  { %6331 = vmatprep.mubr.bf16.mxu1 %v8030_v1 }
0x148a   :  { %v4508_v44 = vpop.trf.xlu1 }
0x148d   :  { %v5297_v30 = vpop.trf.xlu0 }
0x148e   :  { %7511 = vmatprep.mubr.msk.bf16.mxu0 %vm888_vm3, %v5297_v30  ;;  %v4509_v48 = vpop.trf.xlu1 }
0x1491   :  { %v5298_v19 = vpop.trf.xlu0 }
0x1492   :  { %7512 = vmatmul.mubr.msk.bf16.vlgmr.msra.gmra.mrb[84].mxu0 %vm888_vm3, %v5298_v19 }
0x149a   :  { %v4572_v50 = vpop.trf.xlu1 }
0x149b   :  { %v4604_v41 = vcombine.low %v4508_v44, %v4572_v50  ;;  %v4605_v58 = vcombine.high %v4508_v44, %v4572_v50 }
0x149d   :  { %v4612_v4 = vrot.slane %v4604_v41, %v8576_v47  ;;  %v4619_v9 = vrot.slane %v4605_v58, %v8576_v47 }
0x149e   :  { %v4573_v5 = vpop.trf.xlu1 }
0x149f   :  { %v4672_v37 = vcombine.low %v4509_v48, %v4573_v5  ;;  %v4673_v32 = vcombine.high %v4509_v48, %v4573_v5 }
0x14a1   :  { %v4680_v35 = vrot.slane %v4672_v37, %v8576_v47  ;;  %v4687_v60 = vrot.slane %v4673_v32, %v8576_v47 }
0x14af   :  { %v4476_v10 = vpop.trf.xlu0 }
0x14b3   :  { %v4477_v26 = vpop.trf.xlu0 }
0x14bf   :  { %v4540_v23 = vpop.trf.xlu0 }
0x14c0   :  { %v4588_v13 = vcombine.low %v4476_v10, %v4540_v23  ;;  %v4589_v24 = vcombine.high %v4476_v10, %v4540_v23 }
0x14c2   :  { %v4596_v49 = vrot.slane %v4588_v13, %v8576_v47  ;;  %v4603_v25 = vrot.slane %v4589_v24, %v8576_v47 }
0x14c3   :  { %v4541_v57 = vpop.trf.xlu0 }
0x14c4   :  { %v4656_v7 = vcombine.low %v4477_v26, %v4541_v57  ;;  %v4657_v43 = vcombine.high %v4477_v26, %v4541_v57  ;;  %v4620_v6 = vcombine.low %v4596_v49, %v4612_v4  ;;  %v4621_v16 = vcombine.high %v4596_v49, %v4612_v4 }
0x14c5   :  { %v4636_v56 = vcombine.low %v4603_v25, %v4619_v9  ;;  %v4637_v12 = vcombine.high %v4603_v25, %v4619_v9 }
0x14c6   :  { %v4664_v39 = vrot.slane %v4656_v7, %v8576_v47  ;;  %v4671_v34 = vrot.slane %v4657_v43, %v8576_v47  ;;  %v4628_v15 = vrot.slane %v4620_v6, %v8587_v42  ;;  %v4635_v18 = vrot.slane %v4621_v16, %v8587_v42 }
0x14c7   :  { %v4644_v51 = vrot.slane %v4636_v56, %v8587_v42  ;;  %v4651_v54 = vrot.slane %v4637_v12, %v8587_v42 }
0x14c8   :  { %v4688_v11 = vcombine.low %v4664_v39, %v4680_v35  ;;  %v4689_v33 = vcombine.high %v4664_v39, %v4680_v35  ;;  %v4704_v28 = vcombine.low %v4671_v34, %v4687_v60  ;;  %v4705_v17 = vcombine.high %v4671_v34, %v4687_v60 }
0x14c9   :  { %v4724_v0 = vcombine.low %v4628_v15, %v4635_v18  ;;  %v6910_v30 = vcombine.high %v4628_v15, %v4635_v18  ;;  %v4740_v19 = vcombine.low %v4644_v51, %v4651_v54  ;;  %v7760_v15 = vld [vmem:[%s9600_s8 + $0x50] sm:$0xff]   ;;  %v7761_v18 = vld [vmem:[%s9600_s8 + $0x58] sm:$0xff]  }
0x14ca   :  { %v4696_v3 = vrot.slane %v4688_v11, %v8587_v42  ;;  %v4703_v40 = vrot.slane %v4689_v33, %v8587_v42  ;;  %v4712_v52 = vrot.slane %v4704_v28, %v8587_v42  ;;  %v4719_v29 = vrot.slane %v4705_v17, %v8587_v42  ;;  %v7758_v33 = vld [vmem:[%s9600_s8 + $0x40] sm:$0xff]   ;;  %v7759_v28 = vld [vmem:[%s9600_s8 + $0x48] sm:$0xff]  }
0x14cb   :  { %v4731_v10 = vrot.slane %v4724_v0, %v8576_v47  ;;  %7521 = vmatprep.subr.bf16.mxu0 %v7758_v33 }
0x14cc   :  { %v6913_v44 = vcombine.high %v4712_v52, %v4719_v29  ;;  %7522 = vmatpush3.bf16.msra.mxu0 %v7758_v33 }
0x14cd   :  { %7523 = vmatprep.subr.bf16.mxu0 %v7759_v28 }
0x14d0   :  { %7524 = vmatpush3.bf16.msra.mxu0 %v7759_v28 }
0x14d1   :  { %7525 = vmatprep.subr.bf16.mxu0 %v7760_v15 }
0x14d4   :  { %7526 = vmatpush3.bf16.msra.mxu0 %v7760_v15 }
0x14d5   :  { %7527 = vmatprep.subr.bf16.mxu0 %v7761_v18 }
0x14d8   :  { %7528 = vmatpush3.bf16.msra.mxu0 %v7761_v18 }
0x1509   :  { %v7501_v2 = vpop.f32.mrb[80].mxu0 }
0x150a   :  { %v5364_v55 = vpop.f32.mrb[81].mxu0 }
0x150b   :  { %5553 = vxpose.xlu0.b32.start [1/4] (short) (narrow) %v5364_v55, 16  ;;  %v7502_v20 = vpop.f32.mrb[82].mxu0  ;;  %v4792_v55 = vcombine.low %v4696_v3, %v4703_v40 }
0x150c   :  { %v5367_v31 = vpop.f32.mrb[83].mxu0 }
0x150f   :  { %5554 = vxpose.xlu0.b32.cont [2/4] (short) (narrow) %v5367_v31, 16  ;;  %v4808_v31 = vcombine.low %v4712_v52, %v4719_v29 }
0x1511   :  { %v4815_v26 = vrot.slane %v4808_v31, %v8576_v47 }
0x1513   :  { %5555 = vxpose.xlu0.b32.cont [3/4] (short) (narrow) %v7501_v2, 16  ;;  %v6911_v2 = vcombine.high %v4644_v51, %v4651_v54  ;;  %v7762_v51 = vld [vmem:[%s9600_s8 + $0x60] sm:$0xff]   ;;  %v7763_v54 = vld [vmem:[%s9600_s8 + $0x68] sm:$0xff]  }
0x1514   :  { %7529 = vmatprep.subr.bf16.mxu0 %v7762_v51 }
0x1515   :  { %7530 = vmatpush3.bf16.msra.mxu0 %v7762_v51 }
0x1516   :  { %7531 = vmatprep.subr.bf16.mxu0 %v7763_v54 }
0x1517   :  { %5556 = vxpose.xlu0.b32.end [4/4] (short) (narrow) %v7502_v20, 16  ;;  %v6912_v20 = vcombine.high %v4696_v3, %v4703_v40 }
0x1519   :  { %v4807_v48 = vrot.slane %v6912_v20, %v8576_v47  ;;  %7532 = vmatpush3.bf16.msra.mxu0 %v7763_v54 }
0x1535   :  { %v7507_v14 = vpop.f32.mrb[84].mxu1 }
0x1536   :  { %v5422_v36 = vpop.f32.mrb[85].mxu1 }
0x1537   :  { %5585 = vxpose.xlu1.b32.start [1/4] (short) (narrow) %v5422_v36, 16  ;;  %v7508_v46 = vpop.f32.mrb[86].mxu1  ;;  %v4747_v36 = vrot.slane %v4740_v19, %v8576_v47 }
0x1538   :  { %v5425_v38 = vpop.f32.mrb[87].mxu1 }
0x153b   :  { %5586 = vxpose.xlu1.b32.cont [2/4] (short) (narrow) %v5425_v38, 16  ;;  %v4799_v38 = vrot.slane %v4792_v55, %v8576_v47 }
0x153d   :  { %v7519_v27 = vpop.f32.mrb[88].mxu1  ;;  %v4825_v50 = vcombine.high %v4799_v38, %v4807_v48  ;;  %v4824_v49 = vcombine.low %v4799_v38, %v4807_v48 }
0x153e   :  { %v5538_v45 = vpop.f32.mrb[89].mxu1 }
0x153f   :  { %5587 = vxpose.xlu1.b32.cont [3/4] (short) (narrow) %v7507_v14, 16  ;;  %v7520_v8 = vpop.f32.mrb[90].mxu1  ;;  %v4739_v14 = vrot.slane %v6910_v30, %v8576_v47  ;;  %v4839_v41 = vrot.slane %v4825_v50, %v8587_v42  ;;  %v9292_v39 = vrot.slane %v4824_v49, %v8587_v42 }
0x1540   :  { %v5541_v59 = vpop.f32.mrb[91].mxu1 }
0x1541   :  { %v4756_v4 = vcombine.low %v4731_v10, %v4739_v14 }
0x1543   :  { %5588 = vxpose.xlu1.b32.end [4/4] (short) (narrow) %v7508_v46, 16  ;;  %v4755_v46 = vrot.slane %v6911_v2, %v8576_v47  ;;  %v9286_v35 = vrot.slane %v4756_v4, %v8587_v42 }
0x1545   :  { %v4772_v9 = vcombine.low %v4747_v36, %v4755_v46 }
0x1547   :  { %5649 = vxpose.xlu1.b32.start [1/4] (short) (narrow) %v5538_v45, 16  ;;  %v4757_v45 = vcombine.high %v4731_v10, %v4739_v14  ;;  %v9289_v60 = vrot.slane %v4772_v9, %v8587_v42 }
0x1549   :  { %v4771_v5 = vrot.slane %v4757_v45, %v8587_v42  ;;  %v4789_v6 = vcombine.high %v9286_v35, %v9289_v60 }
0x154b   :  { %5650 = vxpose.xlu1.b32.cont [2/4] (short) (narrow) %v5541_v59, 16 }
0x154f   :  { %5651 = vxpose.xlu1.b32.cont [3/4] (short) (narrow) %v7519_v27, 16  ;;  %v4823_v27 = vrot.slane %v6913_v44, %v8576_v47 }
0x1551   :  { %v4841_v59 = vcombine.high %v4815_v26, %v4823_v27  ;;  %v4840_v25 = vcombine.low %v4815_v26, %v4823_v27 }
0x1553   :  { %5652 = vxpose.xlu1.b32.end [4/4] (short) (narrow) %v7520_v8, 16  ;;  %v4773_v8 = vcombine.high %v4747_v36, %v4755_v46  ;;  %v4855_v58 = vrot.slane %v4841_v59, %v8587_v42  ;;  %v9295_v34 = vrot.slane %v4840_v25, %v8587_v42 }
0x1555   :  { %v4787_v57 = vrot.slane %v4773_v8, %v8587_v42  ;;  %v4858_v7 = vcombine.low %v4839_v41, %v4855_v58  ;;  %v4857_v16 = vcombine.high %v9292_v39, %v9295_v34  ;;  %v4859_v11 = vcombine.high %v4839_v41, %v4855_v58 }
0x1557   :  { %v4790_v32 = vcombine.low %v4771_v5, %v4787_v57  ;;  %v7598_v56 = vpack.i.bf16 %v4857_v16, %v4789_v6  ;;  %v4791_v12 = vcombine.high %v4771_v5, %v4787_v57 }
0x1559   :  { %v7603_v43 = vpack.i.bf16 %v4858_v7, %v4790_v32  ;;  %v7608_v17 = vpack.i.bf16 %v4859_v11, %v4791_v12 }
0x1565   :  { %v7513_v23 = vpop.f32.mrb[84].mxu0 }
0x1566   :  { %v5480_v13 = vpop.f32.mrb[85].mxu0 }
0x1567   :  { %5617 = vxpose.xlu0.b32.start [1/4] (short) (narrow) %v5480_v13, 16  ;;  %v7514_v24 = vpop.f32.mrb[86].mxu0 }
0x1568   :  { %v5483_v37 = vpop.f32.mrb[87].mxu0 }
0x156b   :  { %5618 = vxpose.xlu0.b32.cont [2/4] (short) (narrow) %v5483_v37, 16 }
0x156f   :  { %5619 = vxpose.xlu0.b32.cont [3/4] (short) (narrow) %v7513_v23, 16 }
0x1571   :  { %7604 = vrot.lane.b32.xlu1 %v7603_v43, %s8031_s20 }
0x1573   :  { %5620 = vxpose.xlu0.b32.end [4/4] (short) (narrow) %v7514_v24, 16 }
0x158b   :  { %v5569_v40 = vpop.trf.xlu0 }
0x158f   :  { %v5570_v29 = vpop.trf.xlu0 }
0x159c   :  { %7599 = vrot.lane.b32.xlu0 %v7598_v56, %s8034_s22 }
0x15a0   :  { %7609 = vrot.lane.b32.xlu0 %v7608_v17, %s8032_s21 }
0x15b7   :  { %v5601_v3 = vpop.trf.xlu1 }
0x15bb   :  { %v5602_v52 = vpop.trf.xlu1 }
0x15c7   :  { %v5665_v0 = vpop.trf.xlu1 }
0x15c8   :  { %v5697_v30 = vcombine.low %v5601_v3, %v5665_v0  ;;  %v5698_v19 = vcombine.high %v5601_v3, %v5665_v0 }
0x15ca   :  { %v5705_v44 = vrot.slane %v5697_v30, %v8576_v47  ;;  %v5712_v10 = vrot.slane %v5698_v19, %v8576_v47 }
0x15cb   :  { %v5666_v31 = vpop.trf.xlu1 }
0x15cc   :  { %v5765_v46 = vcombine.low %v5602_v52, %v5666_v31  ;;  %v5766_v38 = vcombine.high %v5602_v52, %v5666_v31 }
0x15ce   :  { %v5773_v58 = vrot.slane %v5765_v46, %v8576_v47  ;;  %v5780_v13 = vrot.slane %v5766_v38, %v8576_v47 }
0x15e7   :  { %v5633_v2 = vpop.trf.xlu0 }
0x15e8   :  { %v5681_v55 = vcombine.low %v5569_v40, %v5633_v2  ;;  %v5682_v20 = vcombine.high %v5569_v40, %v5633_v2  ;;  %v7764_v2 = vld [vmem:[%s9600_s8 + $0x70] sm:$0xff]  }
0x15e9   :  { %7533 = vmatprep.subr.bf16.mxu0 %v7764_v2 }
0x15ea   :  { %v5689_v14 = vrot.slane %v5681_v55, %v8576_v47  ;;  %v5696_v36 = vrot.slane %v5682_v20, %v8576_v47  ;;  %7534 = vmatpush3.bf16.msra.mxu0 %v7764_v2 }
0x15eb   :  { %v5634_v48 = vpop.trf.xlu0 }
0x15ec   :  { %v5713_v26 = vcombine.low %v5689_v14, %v5705_v44  ;;  %v5714_v27 = vcombine.high %v5689_v14, %v5705_v44  ;;  %v5729_v45 = vcombine.low %v5696_v36, %v5712_v10  ;;  %v5730_v8 = vcombine.high %v5696_v36, %v5712_v10 }
0x15ed   :  { %v5749_v50 = vcombine.low %v5570_v29, %v5634_v48  ;;  %v5750_v59 = vcombine.high %v5570_v29, %v5634_v48 }
0x15ee   :  { %v5721_v23 = vrot.slane %v5713_v26, %v8587_v42  ;;  %v5728_v5 = vrot.slane %v5714_v27, %v8587_v42  ;;  %v5737_v57 = vrot.slane %v5729_v45, %v8587_v42  ;;  %v5744_v41 = vrot.slane %v5730_v8, %v8587_v42  ;;  %v7765_v27 = vld [vmem:[%s9600_s8 + $0x78] sm:$0xff]  }
0x15ef   :  { %v5757_v24 = vrot.slane %v5749_v50, %v8576_v47  ;;  %v5764_v37 = vrot.slane %v5750_v59, %v8576_v47  ;;  %7535 = vmatprep.subr.bf16.mxu0 %v7765_v27 }
0x15f0   :  { %v5817_v32 = vcombine.low %v5721_v23, %v5728_v5  ;;  %v6926_v7 = vcombine.high %v5721_v23, %v5728_v5  ;;  %v5833_v43 = vcombine.low %v5737_v57, %v5744_v41  ;;  %v6927_v4 = vcombine.high %v5737_v57, %v5744_v41  ;;  %7536 = vmatpush3.bf16.msra.mxu0 %v7765_v27 }
0x15f1   :  { %v5781_v9 = vcombine.low %v5757_v24, %v5773_v58  ;;  %v5782_v49 = vcombine.high %v5757_v24, %v5773_v58  ;;  %v5797_v25 = vcombine.low %v5764_v37, %v5780_v13  ;;  %v5798_v6 = vcombine.high %v5764_v37, %v5780_v13 }
0x15f2   :  { %v5824_v16 = vrot.slane %v5817_v32, %v8576_v47  ;;  %v5832_v56 = vrot.slane %v6926_v7, %v8576_v47  ;;  %v5840_v12 = vrot.slane %v5833_v43, %v8576_v47  ;;  %v5848_v11 = vrot.slane %v6927_v4, %v8576_v47 }
0x15f3   :  { %v5789_v33 = vrot.slane %v5781_v9, %v8587_v42  ;;  %v5796_v28 = vrot.slane %v5782_v49, %v8587_v42  ;;  %v5805_v17 = vrot.slane %v5797_v25, %v8587_v42  ;;  %v5812_v15 = vrot.slane %v5798_v6, %v8587_v42 }
0x15f4   :  { %v5850_v18 = vcombine.high %v5824_v16, %v5832_v56  ;;  %v5866_v51 = vcombine.high %v5840_v12, %v5848_v11  ;;  %v5849_v54 = vcombine.low %v5824_v16, %v5832_v56  ;;  %v5865_v3 = vcombine.low %v5840_v12, %v5848_v11 }
0x15f5   :  { %v5885_v40 = vcombine.low %v5789_v33, %v5796_v28  ;;  %v6928_v52 = vcombine.high %v5789_v33, %v5796_v28  ;;  %v5901_v29 = vcombine.low %v5805_v17, %v5812_v15  ;;  %v6929_v0 = vcombine.high %v5805_v17, %v5812_v15 }
0x15f6   :  { %v9342_v30 = vrot.slane %v5849_v54, %v8587_v42  ;;  %v9345_v19 = vrot.slane %v5865_v3, %v8587_v42  ;;  %v5864_v10 = vrot.slane %v5850_v18, %v8587_v42  ;;  %v5880_v14 = vrot.slane %v5866_v51, %v8587_v42 }
0x15f7   :  { %v5892_v55 = vrot.slane %v5885_v40, %v8576_v47  ;;  %v5900_v20 = vrot.slane %v6928_v52, %v8576_v47  ;;  %v5908_v31 = vrot.slane %v5901_v29, %v8576_v47  ;;  %v5916_v44 = vrot.slane %v6929_v0, %v8576_v47 }
0x15f8   :  { %v5881_v36 = vcombine.low %v9342_v30, %v9345_v19  ;;  %v5884_v59 = vcombine.high %v5864_v10, %v5880_v14  ;;  %v5882_v5 = vcombine.high %v9342_v30, %v9345_v19  ;;  %v5883_v37 = vcombine.low %v5864_v10, %v5880_v14 }
0x15f9   :  { %v5918_v46 = vcombine.high %v5892_v55, %v5900_v20  ;;  %v5934_v38 = vcombine.high %v5908_v31, %v5916_v44  ;;  %v5917_v48 = vcombine.low %v5892_v55, %v5900_v20  ;;  %v5933_v26 = vcombine.low %v5908_v31, %v5916_v44  ;;  %v6947_v44 = vld [vmem:[%s9601_s9 + $0x1] ss:$0 sm:$0xff] }
0x15fa   :  { %v4788_v43 = vcombine.low %v9286_v35, %v9289_v60  ;;  %v4856_v4 = vcombine.low %v9292_v39, %v9295_v34 }
0x15fb   :  { %v5932_v45 = vrot.slane %v5918_v46, %v8587_v42  ;;  %v5948_v47 = vrot.slane %v5934_v38, %v8587_v42  ;;  %v5925_v8 = vrot.slane %v5917_v48, %v8587_v42  ;;  %v5941_v50 = vrot.slane %v5933_v26, %v8587_v42  ;;  %v7605_v42 = vpop.permute.xlu1 %7604 }
0x15fc   :  { %v7607_v25 = vunpack.i.h.bf16 %v7605_v42  ;;  %v7606_v6 = vunpack.i.l.bf16 %v7605_v42  ;;  %v7781_v42 = vld [vmem:[%s9604_s12 + $0xd0] ss:$8 sps:$4 sm:$0xff]  }
0x15fd   :  { %v5952_v23 = vcombine.high %v5932_v45, %v5948_v47  ;;  %v5950_v57 = vcombine.high %v5925_v8, %v5941_v50  ;;  %v5949_v41 = vcombine.low %v5925_v8, %v5941_v50  ;;  %v5951_v24 = vcombine.low %v5932_v45, %v5948_v47 }
0x15ff   :  { %v7623_v58 = vpack.i.bf16 %v5952_v23, %v5884_v59  ;;  %v7613_v13 = vpack.i.bf16 %v5950_v57, %v5882_v5  ;;  %v7618_v32 = vpack.i.bf16 %v5951_v24, %v5883_v37  ;;  %v7766_v23 = vld [vmem:[%s9604_s12 + $0x80] ss:$8 sps:$4 sm:$0xff]   ;;  %v7768_v5 = vld [vmem:[%s9604_s12 + $0x84] ss:$8 sps:$4 sm:$0xff]   ;;  %v7769_v57 = vld [vmem:[%s9604_s12 + $0x90] ss:$8 sps:$4 sm:$0xff]  }
0x1600   :  { %6299 = vmatprep.subr.bf16.mxu1 %v7768_v5  ;;  %v7777_v24 = vld [vmem:[%s9604_s12 + $0xb4] ss:$8 sps:$4 sm:$0xff]   ;;  %v7780_v37 = vld [vmem:[%s9604_s12 + $0xc4] ss:$8 sps:$4 sm:$0xff]  }
0x1601   :  { %7624 = vrot.lane.b32.xlu0 %v7623_v58, %s8032_s21  ;;  %7614 = vrot.lane.b32.xlu1 %v7613_v13, %s8034_s22  ;;  %v7772_v58 = vld [vmem:[%s9604_s12 + $0xa0] ss:$8 sps:$4 sm:$0xff]   ;;  %v7775_v13 = vld [vmem:[%s9604_s12 + $0xb0] ss:$8 sps:$4 sm:$0xff]  }
0x1602   :  { %6300 = vmatpush1.bf16.msra.mxu1 %v7766_v23 }
0x1605   :  { %7619 = vrot.lane.b32.xlu1 %v7618_v32, %s8031_s20  ;;  %v7778_v32 = vld [vmem:[%s9604_s12 + $0xc0] ss:$8 sps:$4 sm:$0xff]  }
0x160e   :  { %v7600_v7 = vpop.permute.xlu0 %7599 }
0x160f   :  { %v7602_v9 = vunpack.i.h.bf16 %v7600_v7  ;;  %v7601_v49 = vunpack.i.l.bf16 %v7600_v7  ;;  %v7783_v7 = vld [vmem:[%s9604_s12 + $0xd4] ss:$8 sps:$4 sm:$0xff]  }
0x1611   :  { %v4885_v16 = vsel %vm703_vm2, %v4856_v4, %v7602_v9  ;;  %v4884_v56 = vsel %vm703_vm2, %v4788_v43, %v7601_v49  ;;  %v7786_v43 = vld [vmem:[%s9604_s12 + $0xe4] ss:$8 sps:$4 sm:$0xff]   ;;  %v7784_v4 = vld [vmem:[%s9604_s12 + $0xe0] ss:$8 sps:$4 sm:$0xff]   ;;  %v7789_v9 = vld [vmem:[%s9604_s12 + $0xf4] ss:$8 sps:$4 sm:$0xff]  }
0x1612   :  { %v7610_v12 = vpop.permute.xlu0 %7609  ;;  %v4886_v28 = vsel %vm186_vm0, %v4884_v56, %v7606_v6  ;;  %v4887_v17 = vsel %vm186_vm0, %v4885_v16, %v7607_v25  ;;  %v7787_v49 = vld [vmem:[%s9604_s12 + $0xf0] ss:$8 sps:$4 sm:$0xff]  }
0x1613   :  { %v7612_v11 = vunpack.i.h.bf16 %v7610_v12  ;;  %v7611_v33 = vunpack.i.l.bf16 %v7610_v12 }
0x1615   :  { %v4888_v35 = vsel %vm1705_vm4, %v4886_v28, %v7611_v33  ;;  %v4889_v60 = vsel %vm1705_vm4, %v4887_v17, %v7612_v11 }
0x1616   :  { %v5983_v39 = vpack.c.bf16 %v4889_v60, %v4888_v35 }
0x1618   :  { %7537 = vmatprep.mubr.bf16.mxu0 %v5983_v39 }
0x1673   :  { %v7615_v34 = vpop.permute.xlu1 %7614  ;;  %v7625_v51 = vpop.permute.xlu0 %7624 }
0x1674   :  { %v7617_v15 = vunpack.i.h.bf16 %v7615_v34  ;;  %v7616_v18 = vunpack.i.l.bf16 %v7615_v34  ;;  %v7627_v0 = vunpack.i.h.bf16 %v7625_v51  ;;  %v7626_v30 = vunpack.i.l.bf16 %v7625_v51 }
0x1676   :  { %v5977_v52 = vsel %vm703_vm2, %v5881_v36, %v7616_v18  ;;  %v5978_v29 = vsel %vm703_vm2, %v5949_v41, %v7617_v15  ;;  %v7774_v41 = vld [vmem:[%s9604_s12 + $0xa4] ss:$8 sps:$4 sm:$0xff]  }
0x1677   :  { %v7620_v54 = vpop.permute.xlu1 %7619 }
0x1678   :  { %v7622_v3 = vunpack.i.h.bf16 %v7620_v54  ;;  %v7621_v40 = vunpack.i.l.bf16 %v7620_v54 }
0x167a   :  { %v5979_v19 = vsel %vm186_vm0, %v5977_v52, %v7621_v40  ;;  %v5980_v2 = vsel %vm186_vm0, %v5978_v29, %v7622_v3 }
0x167b   :  { %v5981_v55 = vsel %vm1705_vm4, %v5979_v19, %v7626_v30  ;;  %v5982_v20 = vsel %vm1705_vm4, %v5980_v2, %v7627_v0 }
0x167c   :  { %v5984_v31 = vpack.c.bf16 %v5982_v20, %v5981_v55 }
0x167e   :  { %7538 = vmatmul.mubr.bf16.vlgmr.msra.gmra.mrb[88].mxu0 %v5984_v31 }
0x1751   :  { %v7539_v10 = vpop.f32.mrb[88].mxu0 }
0x1752   :  { %v6092_v14 = vpop.f32.mrb[89].mxu0  ;;  %v6101_v48 = vadd.f32 %v7539_v10, %v6947_v44 }
0x1753   :  { %v6093_v36 = vadd.f32 %v6947_v44, %v6092_v14  ;;  %v7540_v46 = vpop.f32.mrb[90].mxu0 }
0x1754   :  { %v6095_v38 = vpop.f32.mrb[91].mxu0  ;;  %v9397_v47 = vadd.f32 %v6101_v48, %v8915_v62  ;;  %v6104_v50 = vadd.f32 %v7540_v46, %v6947_v44 }
0x1755   :  { %v9390_v26 = vadd.f32 %v6093_v36, %v8903_v21  ;;  %v6096_v27 = vadd.f32 %v6947_v44, %v6095_v38  ;;  %v6958_v36 = vld [vmem:[%s9602_s10 + $0x1] ss:$0 sm:$0xff] }
0x1756   :  { %v6129_v21 = vmul.f32 %v9397_v47, %v9397_v47  ;;  %v9408_v62 = vadd.f32 %v6104_v50, %v8918_v53  ;;  %v7771_v53 = vld [vmem:[%s9604_s12 + $0x94] ss:$8 sps:$4 sm:$0xff]  }
0x1757   :  { %v9393_v45 = vadd.f32 %v6096_v27, %v8906_v22  ;;  %6115 = vadd.xlane.f32.xlu1 %v9390_v26  ;;  %v6127_v8 = vmul.f32 %v9390_v26, %v9390_v26  ;;  %6301 = vmatprep.subr.bf16.mxu1 %v7771_v53 }
0x1758   :  { %v6130_v59 = vmul.f32 %v9408_v62, %v9408_v62  ;;  %6302 = vmatpush1.bf16.msra.mxu1 %v7769_v57 }
0x1759   :  { %6117 = vadd.xlane.f32.xlu0 %v9393_v45  ;;  %v6128_v22 = vmul.f32 %v9393_v45, %v9393_v45  ;;  %6303 = vmatprep.subr.bf16.mxu1 %v7774_v41 }
0x175b   :  { %6119 = vadd.xlane.f32.xlu1 %v9397_v47 }
0x175c   :  { %6304 = vmatpush1.bf16.msra.mxu1 %v7772_v58 }
0x175d   :  { %6131 = vadd.xlane.f32.xlu0 %v6127_v8  ;;  %6305 = vmatprep.subr.bf16.mxu1 %v7777_v24 }
0x175f   :  { %6135 = vadd.xlane.f32.xlu1 %v6129_v21  ;;  %v6959_v21 = vld [vmem:[%s9603_s11 + $0x1] ss:$0 sm:$0xff] }
0x1760   :  { %6306 = vmatpush1.bf16.msra.mxu1 %v7775_v13 }
0x1761   :  { %6133 = vadd.xlane.f32.xlu0 %v6128_v22  ;;  %6307 = vmatprep.subr.bf16.mxu1 %v7780_v37 }
0x1764   :  { %6308 = vmatpush1.bf16.msra.mxu1 %v7778_v32 }
0x1765   :  { %6121 = vadd.xlane.f32.xlu0 %v9408_v62  ;;  %6309 = vmatprep.subr.bf16.mxu1 %v7783_v7  ;;  %v7790_v7 = vld [vmem:[%s9606_s14 + $0xc0] sm:$0xff]  }
0x1766   :  { %7209 = vmatprep.subr.bf16.mxu0 %v7790_v7 }
0x1768   :  { %6310 = vmatpush1.bf16.msra.mxu1 %v7781_v42 }
0x1769   :  { %6137 = vadd.xlane.f32.xlu0 %v6130_v59  ;;  %6311 = vmatprep.subr.bf16.mxu1 %v7786_v43  ;;  %v7791_v43 = vld [vmem:[%s9606_s14 + $0x80] sm:$0xff]  }
0x176a   :  { %7210 = vmatpush3.bf16.msra.mxu0 %v7791_v43 }
0x176c   :  { %6312 = vmatpush1.bf16.msra.mxu1 %v7784_v4  ;;  %v7792_v4 = vld [vmem:[%s9606_s14 + $0xc8] sm:$0xff]  }
0x176d   :  { %6313 = vmatprep.subr.bf16.mxu1 %v7789_v9  ;;  %7211 = vmatprep.subr.bf16.mxu0 %v7792_v4  ;;  %v7794_v9 = vld [vmem:[%s9606_s14 + $0xd0] sm:$0xff]  }
0x1770   :  { %6314 = vmatpush1.bf16.msra.mxu1 %v7787_v49  ;;  %v7795_v49 = vld [vmem:[%s9606_s14 + $0x90] sm:$0xff]  }
0x17e4   :  { %v6116_v25 = vpop.xlane.xlu1 %6115 }
0x17e5   :  { %v6123_v16 = vmul.f32 0.0078125, %v6116_v25  ;;  %v7796_v25 = vld [vmem:[%s9606_s14 + $0xd8] sm:$0xff]  }
0x17e6   :  { %v6118_v6 = vpop.xlane.xlu0 %6117 }
0x17e7   :  { %v6143_v33 = vmul.f32 %v6123_v16, %v6123_v16  ;;  %v6124_v28 = vmul.f32 0.0078125, %v6118_v6  ;;  %v6151_v31 = vsub.f32 %v9390_v26, %v6123_v16  ;;  %v7797_v6 = vld [vmem:[%s9606_s14 + $0x98] sm:$0xff]   ;;  %v7798_v16 = vld [vmem:[%s9606_s14 + $0xe0] sm:$0xff]  }
0x17e8   :  { %v6120_v56 = vpop.xlane.xlu1 %6119 }
0x17e9   :  { %v6125_v12 = vmul.f32 0.0078125, %v6120_v56  ;;  %v6144_v18 = vmul.f32 %v6124_v28, %v6124_v28  ;;  %v6152_v46 = vsub.f32 %v9393_v45, %v6124_v28  ;;  %v7799_v56 = vld [vmem:[%s9606_s14 + $0xa0] sm:$0xff]   ;;  %v7803_v28 = vld [vmem:[%s9606_s14 + $0xb0] sm:$0xff]  }
0x17ea   :  { %v6132_v11 = vpop.xlane.xlu0 %6131 }
0x17eb   :  { %v6139_v17 = vmul.f32 0.0078125, %v6132_v11  ;;  %v6145_v60 = vmul.f32 %v6125_v12, %v6125_v12  ;;  %v6153_v50 = vsub.f32 %v9397_v47, %v6125_v12  ;;  %v7800_v12 = vld [vmem:[%s9606_s14 + $0xe8] sm:$0xff]  }
0x17ec   :  { %v6136_v35 = vpop.xlane.xlu1 %6135  ;;  %v7801_v11 = vld [vmem:[%s9606_s14 + $0xa8] sm:$0xff]  }
0x17ed   :  { %v6147_v39 = vsub.f32 %v6139_v17, %v6143_v33  ;;  %v6141_v34 = vmul.f32 0.0078125, %v6136_v35  ;;  %v7802_v33 = vld [vmem:[%s9606_s14 + $0xf0] sm:$0xff]   ;;  %v7804_v17 = vld [vmem:[%s9606_s14 + $0xf8] sm:$0xff]  }
0x17ee   :  { %v6134_v15 = vpop.xlane.xlu0 %6133  ;;  %v7805_v35 = vld [vmem:[%s9606_s14 + $0xb8] sm:$0xff]  }
0x17ef   :  { %v6155_v51 = vadd.f32 1e-06, %v6147_v39  ;;  %v6149_v54 = vsub.f32 %v6141_v34, %v6145_v60  ;;  %v6140_v3 = vmul.f32 0.0078125, %v6134_v15  ;;  %v6976_v60 = vld [vmem:[%s9605_s13 + $0x2] sm:$0x3] }
0x17f0   :  { %v6212_v39 = vrot.slane %v6976_v60, %v8320_v61  ;;  %v6216_v34 = vrot.slane %v6976_v60, %v8326_v63 }
0x17f1   :  { %7974 = vrsqrt.f32 %v6155_v51  ;;  %v6148_v40 = vsub.f32 %v6140_v3, %v6144_v18  ;;  %v6157_v29 = vadd.f32 1e-06, %v6149_v54 }
0x17f2   :  { %v6122_v52 = vpop.xlane.xlu0 %6121 }
0x17f3   :  { %v6156_v0 = vadd.f32 1e-06, %v6148_v40  ;;  %v6126_v30 = vmul.f32 0.0078125, %v6122_v52 }
0x17f5   :  { %7976 = vrsqrt.f32 %v6156_v0  ;;  %v6146_v2 = vmul.f32 %v6126_v30, %v6126_v30  ;;  %v6154_v53 = vsub.f32 %v9408_v62, %v6126_v30 }
0x17f6   :  { %v6138_v19 = vpop.xlane.xlu0 %6137  ;;  %7978 = vrsqrt.f32 %v6157_v29 }
0x17f7   :  { %v6142_v55 = vmul.f32 0.0078125, %v6138_v19 }
0x17f9   :  { %v6150_v20 = vsub.f32 %v6142_v55, %v6146_v2 }
0x17fb   :  { %v7975_v44 = vpop.eup %7974  ;;  %v6158_v10 = vadd.f32 1e-06, %v6150_v20 }
0x17fc   :  { %v6163_v14 = vmul.f32 %v7975_v44, %v6151_v31 }
0x17fd   :  { %7980 = vrsqrt.f32 %v6158_v10 }
0x17fe   :  { %v6173_v27 = vmul.f32 %v6958_v36, %v6163_v14 }
0x17ff   :  { %v7977_v38 = vpop.eup %7976 }
0x1800   :  { %v6164_v48 = vmul.f32 %v7977_v38, %v6152_v46  ;;  %v7979_v8 = vpop.eup %7978  ;;  %v6183_v59 = vadd.f32 %v6959_v21, %v6173_v27 }
0x1801   :  { %v6165_v5 = vmul.f32 %v7979_v8, %v6153_v50 }
0x1802   :  { %v6174_v22 = vmul.f32 %v6958_v36, %v6164_v48 }
0x1803   :  { %v6175_v13 = vmul.f32 %v6958_v36, %v6165_v5 }
0x1804   :  { %v6184_v23 = vadd.f32 %v6959_v21, %v6174_v22 }
0x1805   :  { %v6185_v37 = vadd.f32 %v6959_v21, %v6175_v13 }
0x1806   :  { %v6187_v57 = vpack.c.bf16 %v6184_v23, %v6183_v59 }
0x1807   :  { %v7981_v41 = vpop.eup %7980 }
0x1808   :  { %6332 = vmatmul.mubr.bf16.vlgmr.msra.gmra.mrb[92].mxu1 %v6187_v57  ;;  %v6166_v58 = vmul.f32 %v7981_v41, %v6154_v53 }
0x1809   :  { %6341 = vmatprep.mubr.bf16.mxu1 %v8030_v1  ;;  %v7793_v1 = vld [vmem:[%s9606_s14 + $0x88] sm:$0xff]  }
0x180a   :  { %v6176_v24 = vmul.f32 %v6958_v36, %v6166_v58  ;;  %7212 = vmatpush3.bf16.msra.mxu0 %v7793_v1 }
0x180b   :  { %7213 = vmatprep.subr.bf16.mxu0 %v7794_v9 }
0x180c   :  { %v6186_v32 = vadd.f32 %v6959_v21, %v6176_v24 }
0x180e   :  { %v6188_v42 = vpack.c.bf16 %v6186_v32, %v6185_v37  ;;  %7214 = vmatpush3.bf16.msra.mxu0 %v7795_v49 }
0x180f   :  { %7215 = vmatprep.subr.bf16.mxu0 %v7796_v25 }
0x1810   :  { %6342 = vmatmul.mubr.bf16.gmra.mrb[96].mxu1 %v6188_v42 }
0x1812   :  { %7216 = vmatpush3.bf16.msra.mxu0 %v7797_v6 }
0x1813   :  { %7217 = vmatprep.subr.bf16.mxu0 %v7798_v16 }
0x1816   :  { %7218 = vmatpush3.bf16.msra.mxu0 %v7799_v56 }
0x1817   :  { %7219 = vmatprep.subr.bf16.mxu0 %v7800_v12 }
0x181a   :  { %7220 = vmatpush3.bf16.msra.mxu0 %v7801_v11 }
0x181b   :  { %7221 = vmatprep.subr.bf16.mxu0 %v7802_v33 }
0x181e   :  { %7222 = vmatpush3.bf16.msra.mxu0 %v7803_v28 }
0x181f   :  { %7223 = vmatprep.subr.bf16.mxu0 %v7804_v17 }
0x1822   :  { %7224 = vmatpush3.bf16.msra.mxu0 %v7805_v35 }
0x18db   :  { %v6333_v15 = vpop.f32.mrb[92].mxu1 }
0x18dc   :  { %v9525_v18 = vadd.f32 %v6333_v15, %v6212_v39  ;;  %v6335_v51 = vpop.f32.mrb[93].mxu1 }
0x18dd   :  { %v9527_v54 = vadd.f32 %v6335_v51, %v6216_v34  ;;  %v6337_v3 = vpop.f32.mrb[94].mxu1 }
0x18de   :  { %v6360_v40 = vmul.f32 0.044715, %v9525_v18  ;;  %v9530_v52 = vadd.f32 %v6337_v3, %v6212_v39  ;;  %v6339_v29 = vpop.f32.mrb[95].mxu1  ;;  %v6352_v3 = vmul.f32 0.5, %v9525_v18 }
0x18df   :  { %v6361_v0 = vmul.f32 0.044715, %v9527_v54  ;;  %v9533_v30 = vadd.f32 %v6339_v29, %v6216_v34 }
0x18e0   :  { %v6368_v61 = vmul.f32 %v6360_v40, %v9525_v18  ;;  %v6362_v63 = vmul.f32 0.044715, %v9530_v52  ;;  %v6354_v40 = vmul.f32 0.5, %v9530_v52 }
0x18e1   :  { %v6369_v19 = vmul.f32 %v6361_v0, %v9527_v54  ;;  %v6363_v2 = vmul.f32 0.044715, %v9533_v30  ;;  %v6353_v0 = vmul.f32 0.5, %v9527_v54 }
0x18e2   :  { %v6376_v55 = vmul.f32 %v6368_v61, %v9525_v18  ;;  %v6370_v20 = vmul.f32 %v6362_v63, %v9530_v52  ;;  %v6355_v61 = vmul.f32 0.5, %v9533_v30 }
0x18e3   :  { %v6377_v31 = vmul.f32 %v6369_v19, %v9527_v54  ;;  %v6371_v44 = vmul.f32 %v6363_v2, %v9533_v30  ;;  %v6343_v10 = vpop.f32.mrb[96].mxu1 }
0x18e4   :  { %v6384_v14 = vadd.f32 %v6376_v55, %v9525_v18  ;;  %v6378_v36 = vmul.f32 %v6370_v20, %v9530_v52  ;;  %v9545_v46 = vadd.f32 %v6343_v10, %v6212_v39  ;;  %v6345_v38 = vpop.f32.mrb[97].mxu1 }
0x18e5   :  { %v6379_v48 = vmul.f32 %v6371_v44, %v9533_v30  ;;  %v9548_v27 = vadd.f32 %v6345_v38, %v6216_v34  ;;  %v6347_v8 = vpop.f32.mrb[98].mxu1  ;;  %v6385_v21 = vadd.f32 %v6377_v31, %v9527_v54 }
0x18e6   :  { %v6392_v50 = vmul.f32 0.7978846, %v6384_v14  ;;  %v6386_v22 = vadd.f32 %v6378_v36, %v9530_v52  ;;  %v6364_v59 = vmul.f32 0.044715, %v9545_v46  ;;  %v6348_v23 = vadd.f32 %v6347_v8, %v6212_v39  ;;  %v6349_v5 = vpop.f32.mrb[99].mxu1 }
0x18e7   :  { %v6365_v53 = vmul.f32 0.044715, %v9548_v27  ;;  %v6350_v57 = vadd.f32 %v6349_v5, %v6216_v34  ;;  %v6387_v41 = vadd.f32 %v6379_v48, %v9533_v30  ;;  %v6393_v58 = vmul.f32 0.7978846, %v6385_v21 }
0x18e8   :  { %7982 = vtanh.f32 %v6392_v50  ;;  %v6394_v13 = vmul.f32 0.7978846, %v6386_v22  ;;  %v6372_v24 = vmul.f32 %v6364_v59, %v9545_v46  ;;  %v6366_v37 = vmul.f32 0.044715, %v6348_v23 }
0x18e9   :  { %v6373_v32 = vmul.f32 %v6365_v53, %v9548_v27  ;;  %v6367_v42 = vmul.f32 0.044715, %v6350_v57  ;;  %v6395_v7 = vmul.f32 0.7978846, %v6387_v41  ;;  %7984 = vtanh.f32 %v6393_v58 }
0x18ea   :  { %7986 = vtanh.f32 %v6394_v13  ;;  %v6380_v43 = vmul.f32 %v6372_v24, %v9545_v46  ;;  %v6374_v4 = vmul.f32 %v6366_v37, %v6348_v23  ;;  %v6356_v52 = vmul.f32 0.5, %v9545_v46 }
0x18eb   :  { %v6381_v1 = vmul.f32 %v6373_v32, %v9548_v27  ;;  %v6375_v9 = vmul.f32 %v6367_v42, %v6350_v57  ;;  %7988 = vtanh.f32 %v6395_v7  ;;  %v6358_v54 = vmul.f32 0.5, %v6348_v23 }
0x18ec   :  { %v6382_v49 = vmul.f32 %v6374_v4, %v6348_v23  ;;  %v6388_v25 = vadd.f32 %v6380_v43, %v9545_v46  ;;  %v6357_v30 = vmul.f32 0.5, %v9548_v27  ;;  %v6359_v21 = vmul.f32 0.5, %v6350_v57  ;;  %v7042_v46 = vld [vmem:[%s9607_s15 + $0x1] ss:$0 sm:$0xff] }
0x18ed   :  { %v6383_v6 = vmul.f32 %v6375_v9, %v6350_v57  ;;  %v6389_v16 = vadd.f32 %v6381_v1, %v9548_v27 }
0x18ee   :  { %v6390_v56 = vadd.f32 %v6382_v49, %v6348_v23  ;;  %v6396_v12 = vmul.f32 0.7978846, %v6388_v25 }
0x18ef   :  { %v6391_v11 = vadd.f32 %v6383_v6, %v6350_v57  ;;  %v6397_v33 = vmul.f32 0.7978846, %v6389_v16 }
0x18f0   :  { %v6398_v28 = vmul.f32 0.7978846, %v6390_v56  ;;  %7990 = vtanh.f32 %v6396_v12 }
0x18f1   :  { %v6399_v17 = vmul.f32 0.7978846, %v6391_v11  ;;  %7992 = vtanh.f32 %v6397_v33 }
0x18f2   :  { %v7983_v35 = vpop.eup %7982  ;;  %7994 = vtanh.f32 %v6398_v28 }
0x18f3   :  { %v7985_v60 = vpop.eup %7984  ;;  %v6408_v39 = vadd.f32 1.0, %v7983_v35  ;;  %7996 = vtanh.f32 %v6399_v17 }
0x18f4   :  { %v7987_v34 = vpop.eup %7986  ;;  %v6409_v15 = vadd.f32 1.0, %v7985_v60 }
0x18f5   :  { %v7989_v51 = vpop.eup %7988  ;;  %v6410_v29 = vadd.f32 1.0, %v7987_v34  ;;  %v6416_v19 = vmul.f32 %v6408_v39, %v6352_v3 }
0x18f6   :  { %v6411_v63 = vadd.f32 1.0, %v7989_v51  ;;  %v6417_v55 = vmul.f32 %v6409_v15, %v6353_v0 }
0x18f7   :  { %v6418_v2 = vmul.f32 %v6410_v29, %v6354_v40 }
0x18f8   :  { %v6419_v20 = vmul.f32 %v6411_v63, %v6355_v61 }
0x18f9   :  { %v6424_v31 = vpack.c.bf16 %v6418_v2, %v6416_v19 }
0x18fa   :  { %v7991_v44 = vpop.eup %7990  ;;  %v6425_v10 = vpack.c.bf16 %v6419_v20, %v6417_v55 }
0x18fb   :  { %v7993_v14 = vpop.eup %7992  ;;  %v6412_v36 = vadd.f32 1.0, %v7991_v44 }
0x18fc   :  { %v7995_v38 = vpop.eup %7994  ;;  %6589 = vmatprep.mubr.bf16.mxu0 %v6425_v10  ;;  %v6413_v18 = vadd.f32 1.0, %v7993_v14 }
0x18fd   :  { %v7997_v48 = vpop.eup %7996  ;;  %6590 = vmatmul.mubr.bf16.vlgmr.msra.gmra.mrb[92].mxu0 %v6424_v31  ;;  %v6414_v8 = vadd.f32 1.0, %v7995_v38  ;;  %v6420_v22 = vmul.f32 %v6412_v36, %v6356_v52 }
0x18fe   :  { %v6415_v50 = vadd.f32 1.0, %v7997_v48  ;;  %v6421_v5 = vmul.f32 %v6413_v18, %v6357_v30  ;;  %v7043_v30 = vld [vmem:[%s9608_s16] ss:$0 sm:$0xff]  ;;  %s8038_s16 = smov [#allocation2]  }
0x18ff   :  { %v6422_v59 = vmul.f32 %v6414_v8, %v6358_v54  ;;  %s6705_s21 = sshll.u32 %s8038_s16, 4  ;;  %s6706_s21 = int_to_ptr.vmem [resolvable:$true] %s6705_s21 }
0x1900   :  { %v6423_v53 = vmul.f32 %v6415_v50, %v6359_v21  ;;  %p8011_p1 = scmp.lt.s32.totalorder %s6706_s21, %s6706_s21 }
0x1901   :  { %v6426_v41 = vpack.c.bf16 %v6422_v59, %v6420_v22  ;;  %v7044_v59 = vld [vmem:[%s9609_s17] ss:$0 sm:$0xff]  ;;  %s8006_s17 = scalar_lea.vmem %s6706_s21, 512 }
0x1902   :  { %v6427_v58 = vpack.c.bf16 %v6423_v53, %v6421_v5  ;;  %p8007_p0 = scmp.ne.s32.totalorder %s6706_s21, %s8006_s17  ;;  %p8012_p2 = scmp.lt.s32.totalorder %s8006_s17, %s8006_s17 }
0x1904   :  { %6597 = vmatprep.mubr.bf16.mxu0 %v6427_v58  ;;  %p8013_p3 = por %p8012_p2, %p8011_p1 }
0x1905   :  { %6598 = vmatmul.mubr.bf16.gmra.mrb[96].mxu0 %v6426_v41 }
0x1906   :  { %p8014_p4 = pnand %p8013_p3, %p8007_p0 }
0x19d0   :  { %v7225_v13 = vpop.f32.mrb[92].mxu0 }
0x19d1   :  { %v7226_v24 = vpop.f32.mrb[93].mxu0 }
0x19d2   :  { %v7227_v37 = vadd.f32 %v7226_v24, %v7225_v13  ;;  %v7228_v32 = vpop.f32.mrb[94].mxu0 }
0x19d3   :  { %v7229_v42 = vpop.f32.mrb[95].mxu0 }
0x19d4   :  { %v6606_v27 = vadd.f32 %v7227_v37, %v9390_v26  ;;  %v7230_v23 = vadd.f32 %v7229_v42, %v7228_v32 }
0x19d6   :  { %v6607_v57 = vadd.f32 %v7230_v23, %v9393_v45  ;;  %v6618_v7 = vadd.f32 %v7042_v46, %v6606_v27 }
0x19d8   :  { %6624 = vadd.xlane.f32.xlu1 %v6618_v7  ;;  %v7231_v43 = vpop.f32.mrb[96].mxu0  ;;  %v6619_v4 = vadd.f32 %v7042_v46, %v6607_v57  ;;  %v6636_v25 = vmul.f32 %v6618_v7, %v6618_v7 }
0x19d9   :  { %v7232_v1 = vpop.f32.mrb[97].mxu0 }
0x19da   :  { %v7233_v9 = vadd.f32 %v7232_v1, %v7231_v43  ;;  %6626 = vadd.xlane.f32.xlu0 %v6619_v4  ;;  %v7234_v49 = vpop.f32.mrb[98].mxu0  ;;  %v6637_v12 = vmul.f32 %v6619_v4, %v6619_v4 }
0x19db   :  { %v7235_v6 = vpop.f32.mrb[99].mxu0 }
0x19dc   :  { %v6608_v16 = vadd.f32 %v7233_v9, %v9397_v47  ;;  %v7236_v56 = vadd.f32 %v7235_v6, %v7234_v49  ;;  %6640 = vadd.xlane.f32.xlu1 %v6636_v25 }
0x19de   :  { %v6609_v26 = vadd.f32 %v7236_v56, %v9408_v62  ;;  %6642 = vadd.xlane.f32.xlu0 %v6637_v12  ;;  %v6620_v11 = vadd.f32 %v7042_v46, %v6608_v16 }
0x19e0   :  { %6628 = vadd.xlane.f32.xlu1 %v6620_v11  ;;  %v6621_v45 = vadd.f32 %v7042_v46, %v6609_v26  ;;  %v6638_v33 = vmul.f32 %v6620_v11, %v6620_v11 }
0x19e2   :  { %6630 = vadd.xlane.f32.xlu0 %v6621_v45  ;;  %v6639_v28 = vmul.f32 %v6621_v45, %v6621_v45 }
0x19e4   :  { %6644 = vadd.xlane.f32.xlu1 %v6638_v33 }
0x19e6   :  { %6646 = vadd.xlane.f32.xlu0 %v6639_v28 }
0x1a65   :  { %v6625_v17 = vpop.xlane.xlu1 %6624 }
0x1a66   :  { %v6632_v35 = vmul.f32 0.0078125, %v6625_v17 }
0x1a67   :  { %v6627_v60 = vpop.xlane.xlu0 %6626 }
0x1a68   :  { %v6633_v39 = vmul.f32 0.0078125, %v6627_v60  ;;  %v6652_v47 = vmul.f32 %v6632_v35, %v6632_v35  ;;  %v6660_v54 = vsub.f32 %v6618_v7, %v6632_v35 }
0x1a69   :  { %v6641_v34 = vpop.xlane.xlu1 %6640 }
0x1a6a   :  { %v6648_v15 = vmul.f32 0.0078125, %v6641_v34  ;;  %v6653_v3 = vmul.f32 %v6633_v39, %v6633_v39  ;;  %v6661_v21 = vsub.f32 %v6619_v4, %v6633_v39 }
0x1a6b   :  { %v6643_v51 = vpop.xlane.xlu0 %6642 }
0x1a6c   :  { %v6656_v40 = vsub.f32 %v6648_v15, %v6652_v47  ;;  %v6649_v62 = vmul.f32 0.0078125, %v6643_v51 }
0x1a6d   :  { %v6629_v29 = vpop.xlane.xlu1 %6628 }
0x1a6e   :  { %v6664_v0 = vadd.f32 1e-06, %v6656_v40  ;;  %v6657_v61 = vsub.f32 %v6649_v62, %v6653_v3  ;;  %v6634_v63 = vmul.f32 0.0078125, %v6629_v29 }
0x1a6f   :  { %v6631_v19 = vpop.xlane.xlu0 %6630 }
0x1a70   :  { %7998 = vrsqrt.f32 %v6664_v0  ;;  %v6665_v2 = vadd.f32 1e-06, %v6657_v61  ;;  %v6635_v55 = vmul.f32 0.0078125, %v6631_v19  ;;  %v6654_v31 = vmul.f32 %v6634_v63, %v6634_v63 }
0x1a71   :  { %v6645_v20 = vpop.xlane.xlu1 %6644  ;;  %v6662_v13 = vsub.f32 %v6620_v11, %v6634_v63 }
0x1a72   :  { %8000 = vrsqrt.f32 %v6665_v2  ;;  %v6650_v44 = vmul.f32 0.0078125, %v6645_v20  ;;  %v6655_v14 = vmul.f32 %v6635_v55, %v6635_v55  ;;  %v6663_v32 = vsub.f32 %v6621_v45, %v6635_v55 }
0x1a73   :  { %v6647_v10 = vpop.xlane.xlu0 %6646 }
0x1a74   :  { %v6658_v36 = vsub.f32 %v6650_v44, %v6654_v31  ;;  %v6651_v38 = vmul.f32 0.0078125, %v6647_v10 }
0x1a76   :  { %v6666_v18 = vadd.f32 1e-06, %v6658_v36  ;;  %v6659_v48 = vsub.f32 %v6651_v38, %v6655_v14 }
0x1a78   :  { %8002 = vrsqrt.f32 %v6666_v18  ;;  %v6667_v52 = vadd.f32 1e-06, %v6659_v48 }
0x1a7a   :  { %v7999_v8 = vpop.eup %7998  ;;  %8004 = vrsqrt.f32 %v6667_v52 }
0x1a7b   :  { %v6672_v50 = vmul.f32 %v7999_v8, %v6660_v54 }
0x1a7c   :  { %v8001_v22 = vpop.eup %8000 }
0x1a7d   :  { %v6682_v5 = vmul.f32 %v7043_v30, %v6672_v50  ;;  %v6673_v53 = vmul.f32 %v8001_v22, %v6661_v21 }
0x1a7f   :  { %v6683_v41 = vmul.f32 %v7043_v30, %v6673_v53  ;;  %v6692_v58 = vadd.f32 %v7044_v59, %v6682_v5 }
0x1a81   :  { %v6693_v24 = vadd.f32 %v7044_v59, %v6683_v41  ;;  %6696 = vst [vmem:[#allocation2] sm:$0xff] %v6692_v58 }
0x1a82   :  { %v8003_v37 = vpop.eup %8002 }
0x1a83   :  { %v6674_v42 = vmul.f32 %v8003_v37, %v6662_v13  ;;  %6697 = vst [vmem:[#allocation2 + $0x8] sm:$0xff] %v6693_v24 }
0x1a84   :  { %v8005_v46 = vpop.eup %8004 }
0x1a85   :  { %v6684_v27 = vmul.f32 %v7043_v30, %v6674_v42  ;;  %v6675_v23 = vmul.f32 %v8005_v46, %v6663_v32 }
0x1a87   :  { %v6685_v57 = vmul.f32 %v7043_v30, %v6675_v23  ;;  %v6694_v7 = vadd.f32 %v7044_v59, %v6684_v27 }
0x1a89   :  { %v6695_v43 = vadd.f32 %v7044_v59, %v6685_v57  ;;  %6698 = vst [vmem:[#allocation2 + $0x10] sm:$0xff] %v6694_v7 }
0x1a8b   :  { %6699 = vst [vmem:[#allocation2 + $0x18] sm:$0xff] %v6695_v43 }
0x1a8c   :  { %8017 = shalt.err (!%p8014_p4)
}
0x1a8d   :  { %s8018_s7 = scalar_lea.hbm %s9610_s18, 512 }
0x1a8e   :  { %p8019_p5 = scmp.ne.s32.totalorder %s9610_s18, %s8018_s7  ;;  %p8022_p6 = scmp.lt.u32.totalorder %s8018_s7, %s9610_s18 }
0x1a90   :  { %p8024_p7 = pnand %p8022_p6, %p8019_p5 }
0x1a92   :  { %8027 = shalt.err (!%p8024_p7)
}
0x1a93   :  { %s8039_s25 = smov 128   ;;  %s8040_s12 = smov 8  }
0x1a94   :  { %6711 = dma.vmem_to_hbm [thread:$0]  %s6706_s21, 512, %s9610_s18, [#allocation3], %s8039_s25, %s8039_s25, %s8040_s12  }
0x1a95   :  { %8028 = dma.done.wait [#allocation3], 512  }
0x1a96   :  { %8029 = vsyncadd [#allocation3], 4294966784 }
0x1a97   :  { %6715 = vsyncpa [#allocation3], 1 }

// kernel: _lambda_.1
= control target key start
LH: loop header
LB: loop body
LE: loop exit
PB: predicated region body
PF: predicated region fallthrough
CT: control target
= control target key end

     0   :  { %s9592_s0 = inlined_call_operand.vmem [shape: bf16[1,32,192], index: 0, kind: input, shape index: {}]   ;;  %s9593_s1 = inlined_call_operand.vmem [shape: bf16[192,128], index: 1, kind: input, shape index: {}]   ;;  %s9594_s2 = inlined_call_operand.vmem [shape: f32[1,128], index: 2, kind: input, shape index: {}]   ;;  %s9595_s3 = inlined_call_operand.vmem [shape: f32[32,128], index: 3, kind: input, shape index: {}]   ;;  %s9596_s4 = inlined_call_operand.vmem [shape: f32[2,1,128], index: 4, kind: input, shape index: {}]   ;;  %s9597_s5 = inlined_call_operand.vmem [shape: f32[2,1,128], index: 5, kind: input, shape index: {}]   ;;  %s9598_s6 = inlined_call_operand.vmem [shape: bf16[2,128,384], index: 6, kind: input, shape index: {}]   ;;  %s9599_s7 = inlined_call_operand.vmem [shape: f32[2,1,384], index: 7, kind: input, shape index: {}]   ;;  %s9600_s8 = inlined_call_operand.vmem [shape: bf16[2,128,128], index: 8, kind: input, shape index: {}]   ;;  %s9601_s9 = inlined_call_operand.vmem [shape: f32[2,1,128], index: 9, kind: input, shape index: {}]   ;;  %s9602_s10 = inlined_call_operand.vmem [shape: f32[2,1,128], index: 10, kind: input, shape index: {}]   ;;  %s9603_s11 = inlined_call_operand.vmem [shape: f32[2,1,128], index: 11, kind: input, shape index: {}]   ;;  %s9604_s12 = inlined_call_operand.vmem [shape: bf16[2,128,256], index: 12, kind: input, shape index: {}]   ;;  %s9605_s13 = inlined_call_operand.vmem [shape: f32[2,1,256], index: 13, kind: input, shape index: {}]   ;;  %s9606_s14 = inlined_call_operand.vmem [shape: bf16[2,256,128], index: 14, kind: input, shape index: {}]   ;;  %s9607_s15 = inlined_call_operand.vmem [shape: f32[2,1,128], index: 15, kind: input, shape index: {}]   ;;  %s9608_s16 = inlined_call_operand.vmem [shape: f32[1,128], index: 16, kind: input, shape index: {}]   ;;  %s9609_s17 = inlined_call_operand.vmem [shape: f32[1,128], index: 17, kind: input, shape index: {}]   ;;  %s9610_s18 = inlined_call_operand.hbm [shape: f32[1,32,128], index: 18, kind: output, shape index: {}]  }
   0x1   :  { %9613 = sst [smem:[#allocation5_spill]] %s9592_s0 }
   0x2   :  { %9614 = sst [smem:[#allocation6_spill]] %s9593_s1 }
   0x3   :  { %9615 = sst [smem:[#allocation7_spill]] %s9594_s2 }
   0x4   :  { %s9616_s29 = sld [smem:[#allocation6_spill]]  ;;  %v8030_v1 = vmov 0   ;;  %vm186_vm0 = vcmask 523264   ;;  %s9617_s23 = sld [smem:[#allocation5_spill]] }
   0x5   :  { %193 = vmatprep.subr.bf16.mxu0 %v8030_v1  ;;  %536 = vmatprep.mubr.bf16.mxu1 %v8030_v1 }
   0xa   :  { %v7628_v0 = vld [vmem:[%s9616_s29] sm:$0xff]   ;;  %v7629_v2 = vld [vmem:[%s9616_s29 + $0x8] sm:$0xff]   ;;  %v7630_v3 = vld [vmem:[%s9616_s29 + $0x10] sm:$0xff]  }
   0xb   :  { %194 = vmatpush1.bf16.msra.mxu0 %v7628_v0  ;;  %v7631_v4 = vld [vmem:[%s9616_s29 + $0x18] sm:$0xff]   ;;  %v7642_v5 = vld [vmem:[%s9617_s23 + $0x4] ss:$8 sps:$4 sm:$0xff]   ;;  %v7634_v8 = vld [vmem:[%s9616_s29 + $0x30] sm:$0xff]  }
   0xc   :  { %195 = vmatprep.subr.bf16.mxu0 %v8030_v1  ;;  %v7632_v6 = vld [vmem:[%s9616_s29 + $0x20] sm:$0xff]   ;;  %6733 = vmatprep.mubr.msk.bf16.mxu0 %vm186_vm0, %v7642_v5  ;;  %v7633_v7 = vld [vmem:[%s9616_s29 + $0x28] sm:$0xff]   ;;  %v7635_v9 = vld [vmem:[%s9616_s29 + $0x38] sm:$0xff]  }
   0xd   :  { %v7636_v10 = vld [vmem:[%s9616_s29 + $0x40] sm:$0xff]   ;;  %v7637_v11 = vld [vmem:[%s9616_s29 + $0x48] sm:$0xff]   ;;  %v7638_v12 = vld [vmem:[%s9616_s29 + $0x50] sm:$0xff]  }
   0xe   :  { %v7639_v13 = vld [vmem:[%s9616_s29 + $0x58] sm:$0xff]   ;;  %v7640_v14 = vld [vmem:[%s9617_s23] ss:$8 sps:$4 sm:$0xff]  }
   0xf   :  { %196 = vmatpush1.bf16.msra.mxu0 %v7629_v2  ;;  %v7643_v15 = vld [vmem:[%s9617_s23 + $0x14] ss:$8 sps:$4 sm:$0xff]   ;;  %v7645_v16 = vld [vmem:[%s9617_s23 + $0x10] ss:$8 sps:$4 sm:$0xff]  }
  0x10   :  { %197 = vmatprep.subr.bf16.mxu0 %v8030_v1 }
  0x13   :  { %198 = vmatpush1.bf16.msra.mxu0 %v7630_v3 }
  0x14   :  { %199 = vmatprep.subr.bf16.mxu0 %v8030_v1 }
  0x17   :  { %200 = vmatpush1.bf16.msra.mxu0 %v7631_v4 }
  0x18   :  { %201 = vmatprep.subr.bf16.mxu0 %v8030_v1 }
  0x1b   :  { %202 = vmatpush1.bf16.msra.mxu0 %v7632_v6 }
  0x1c   :  { %203 = vmatprep.subr.bf16.mxu0 %v8030_v1 }
  0x1f   :  { %204 = vmatpush1.bf16.msra.mxu0 %v7633_v7 }
  0x20   :  { %205 = vmatprep.subr.bf16.mxu0 %v8030_v1 }
  0x23   :  { %206 = vmatpush1.bf16.msra.mxu0 %v7634_v8 }
  0x24   :  { %207 = vmatprep.subr.bf16.mxu0 %v8030_v1 }
  0x27   :  { %208 = vmatpush1.bf16.msra.mxu0 %v7635_v9 }
  0x28   :  { %209 = vmatprep.subr.bf16.mxu0 %v8030_v1 }
  0x2b   :  { %210 = vmatpush1.bf16.msra.mxu0 %v7636_v10 }
  0x2c   :  { %211 = vmatprep.subr.bf16.mxu0 %v8030_v1 }
  0x2f   :  { %212 = vmatpush1.bf16.msra.mxu0 %v7637_v11 }
  0x30   :  { %213 = vmatprep.subr.bf16.mxu0 %v8030_v1 }
  0x33   :  { %214 = vmatpush1.bf16.msra.mxu0 %v7638_v12 }
  0x34   :  { %215 = vmatprep.subr.bf16.mxu0 %v8030_v1 }
  0x37   :  { %216 = vmatpush1.bf16.msra.mxu0 %v7639_v13 }
  0x3a   :  { %226 = vmatmul.mubr.bf16.vlgmr.msra.gmra.mrb[0].mxu0 %v7640_v14 }
  0x3b   :  { %6734 = vmatprep.mubr.msk.bf16.mxu0 %vm186_vm0, %v7643_v15 }
  0x42   :  { %234 = vmatmul.mubr.bf16.gmra.mrb[4].mxu0 %v7645_v16 }
  0x43   :  { %23 = vsyncpa [#allocation3], 0  ;;  %v7646_v17 = vld [vmem:[%s9598_s6 + $0x4] ss:$12 sps:$4 sm:$0xff]   ;;  %s9618_s2 = sld [smem:[#allocation7_spill]]  ;;  %v243_v24 = vld [vmem:[%s9595_s3 + $0x8] sm:$0xff] }
  0x44   :  { %504 = vmatprep.subr.bf16.mxu1 %v7646_v17  ;;  %v242_v20 = vld [vmem:[%s9595_s3] sm:$0xff]  ;;  %v244_v31 = vld [vmem:[%s9595_s3 + $0x10] sm:$0xff]  ;;  %v245_v36 = vld [vmem:[%s9595_s3 + $0x18] sm:$0xff]  ;;  %s8031_s20 = smov 64   ;;  %s8032_s21 = smov 96   ;;  %vm8035_vm1 = vmmov 0  }
  0x45   :  { %v7648_v43 = vld [vmem:[%s9598_s6] ss:$12 sps:$4 sm:$0xff]   ;;  %v7649_v44 = vld [vmem:[%s9598_s6 + $0x1c] ss:$12 sps:$4 sm:$0xff]   ;;  %v7651_v45 = vld [vmem:[%s9598_s6 + $0x18] ss:$12 sps:$4 sm:$0xff]  }
  0x46   :  { %505 = vmatpush1.bf16.msra.mxu1 %v7648_v43  ;;  %v7652_v46 = vld [vmem:[%s9598_s6 + $0x34] ss:$12 sps:$4 sm:$0xff]   ;;  %v7654_v47 = vld [vmem:[%s9598_s6 + $0x30] ss:$12 sps:$4 sm:$0xff]   ;;  %v7655_v48 = vld [vmem:[%s9598_s6 + $0x4c] ss:$12 sps:$4 sm:$0xff]  }
  0x47   :  { %506 = vmatprep.subr.bf16.mxu1 %v7649_v44  ;;  %v7657_v49 = vld [vmem:[%s9598_s6 + $0x48] ss:$12 sps:$4 sm:$0xff]   ;;  %v7658_v50 = vld [vmem:[%s9598_s6 + $0x64] ss:$12 sps:$4 sm:$0xff]   ;;  %v7660_v51 = vld [vmem:[%s9598_s6 + $0x60] ss:$12 sps:$4 sm:$0xff]  }
  0x48   :  { %v7661_v52 = vld [vmem:[%s9598_s6 + $0x7c] ss:$12 sps:$4 sm:$0xff]   ;;  %v7663_v53 = vld [vmem:[%s9598_s6 + $0x78] ss:$12 sps:$4 sm:$0xff]   ;;  %v7664_v54 = vld [vmem:[%s9598_s6 + $0x94] ss:$12 sps:$4 sm:$0xff]  }
  0x49   :  { %v6716_v18 = vld [vmem:[%s9618_s2] ss:$0 sm:$0xff]  ;;  %v7666_v55 = vld [vmem:[%s9598_s6 + $0x90] ss:$12 sps:$4 sm:$0xff]   ;;  %v7667_v56 = vld [vmem:[%s9598_s6 + $0xac] ss:$12 sps:$4 sm:$0xff]  }
  0x4a   :  { %507 = vmatpush1.bf16.msra.mxu1 %v7651_v45  ;;  %v7669_v57 = vld [vmem:[%s9598_s6 + $0xa8] ss:$12 sps:$4 sm:$0xff]   ;;  %v7671_v45 = vld [vmem:[%s9598_s6 + $0x20] ss:$12 sps:$4 sm:$0xff]   ;;  %s8034_s22 = smov 32   ;;  %vm703_vm2 = vcmask 261120  }
  0x4b   :  { %508 = vmatprep.subr.bf16.mxu1 %v7652_v46  ;;  %v7670_v58 = vld [vmem:[%s9598_s6 + $0x8] ss:$12 sps:$4 sm:$0xff]   ;;  %vm888_vm3 = vcmask 130048   ;;  %vm1705_vm4 = vcmask 785408  }
  0x4e   :  { %509 = vmatpush1.bf16.msra.mxu1 %v7654_v47 }
  0x4f   :  { %510 = vmatprep.subr.bf16.mxu1 %v7655_v48 }
  0x52   :  { %511 = vmatpush1.bf16.msra.mxu1 %v7657_v49 }
  0x53   :  { %512 = vmatprep.subr.bf16.mxu1 %v7658_v50 }
  0x56   :  { %513 = vmatpush1.bf16.msra.mxu1 %v7660_v51  ;;  %v7672_v51 = vld [vmem:[%s9598_s6 + $0x38] ss:$12 sps:$4 sm:$0xff]  }
  0x57   :  { %514 = vmatprep.subr.bf16.mxu1 %v7661_v52 }
  0x5a   :  { %515 = vmatpush1.bf16.msra.mxu1 %v7663_v53 }
  0x5b   :  { %516 = vmatprep.subr.bf16.mxu1 %v7664_v54  ;;  %v7673_v54 = vld [vmem:[%s9598_s6 + $0x50] ss:$12 sps:$4 sm:$0xff]  }
  0x5e   :  { %517 = vmatpush1.bf16.msra.mxu1 %v7666_v55  ;;  %v7674_v55 = vld [vmem:[%s9598_s6 + $0x68] ss:$12 sps:$4 sm:$0xff]  }
  0x5f   :  { %518 = vmatprep.subr.bf16.mxu1 %v7667_v56  ;;  %v7675_v56 = vld [vmem:[%s9598_s6 + $0x80] ss:$12 sps:$4 sm:$0xff]  }
  0x62   :  { %519 = vmatpush1.bf16.msra.mxu1 %v7669_v57  ;;  %v7676_v57 = vld [vmem:[%s9598_s6 + $0x98] ss:$12 sps:$4 sm:$0xff]  }
  0x63   :  { %7237 = vmatprep.subr.bf16.mxu1 %v7670_v58 }
 0x10d   :  { %v227_v19 = vpop.f32.mrb[0].mxu0 }
 0x10e   :  { %v228_v21 = vadd.f32 %v6716_v18, %v227_v19  ;;  %v229_v22 = vpop.f32.mrb[1].mxu0 }
 0x10f   :  { %v230_v23 = vpop.f32.mrb[2].mxu0 }
 0x110   :  { %v8211_v25 = vadd.f32 %v242_v20, %v228_v21  ;;  %v231_v26 = vadd.f32 %v6716_v18, %v230_v23  ;;  %v232_v27 = vpop.f32.mrb[3].mxu0 }
 0x112   :  { %v8213_v28 = vadd.f32 %v243_v24, %v231_v26  ;;  %252 = vadd.xlane.f32.xlu0 %v8211_v25  ;;  %v265_v29 = vmul.f32 %v8211_v25, %v8211_v25 }
 0x114   :  { %269 = vadd.xlane.f32.xlu1 %v265_v29  ;;  %v266_v34 = vmul.f32 %v8213_v28, %v8213_v28  ;;  %v6735_v29 = vld [vmem:[%s9596_s4] ss:$0 sm:$0xff] }
 0x115   :  { %v235_v30 = vpop.f32.mrb[4].mxu0 }
 0x116   :  { %v236_v32 = vadd.f32 %v6716_v18, %v235_v30  ;;  %v237_v33 = vpop.f32.mrb[5].mxu0  ;;  %254 = vadd.xlane.f32.xlu0 %v8213_v28 }
 0x117   :  { %v238_v35 = vpop.f32.mrb[6].mxu0 }
 0x118   :  { %v8227_v37 = vadd.f32 %v244_v31, %v236_v32  ;;  %v239_v38 = vadd.f32 %v6716_v18, %v238_v35  ;;  %271 = vadd.xlane.f32.xlu1 %v266_v34  ;;  %v240_v39 = vpop.f32.mrb[7].mxu0  ;;  %v6736_v34 = vld [vmem:[%s9597_s5] ss:$0 sm:$0xff] }
 0x11a   :  { %v8229_v40 = vadd.f32 %v245_v36, %v239_v38  ;;  %256 = vadd.xlane.f32.xlu0 %v8227_v37  ;;  %v267_v41 = vmul.f32 %v8227_v37, %v8227_v37 }
 0x11c   :  { %258 = vadd.xlane.f32.xlu1 %v8229_v40  ;;  %v268_v42 = vmul.f32 %v8229_v40, %v8229_v40 }
 0x11e   :  { %273 = vadd.xlane.f32.xlu0 %v267_v41 }
 0x120   :  { %275 = vadd.xlane.f32.xlu1 %v268_v42 }
 0x19f   :  { %v253_v59 = vpop.xlane.xlu0 %252 }
 0x1a0   :  { %v261_v60 = vmul.f32 0.0078125, %v253_v59  ;;  %v361_v59 = vlaneseq }
 0x1a1   :  { %v270_v61 = vpop.xlane.xlu1 %269 }
 0x1a2   :  { %v281_v62 = vmul.f32 %v261_v60, %v261_v60  ;;  %v277_v63 = vmul.f32 0.0078125, %v270_v61  ;;  %v289_v23 = vsub.f32 %v8211_v25, %v261_v60  ;;  %v8317_v60 = vshrl.u32 %v361_v59, 7 }
 0x1a3   :  { %v255_v0 = vpop.xlane.xlu0 %254 }
 0x1a4   :  { %v285_v2 = vsub.f32 %v277_v63, %v281_v62  ;;  %v262_v3 = vmul.f32 0.0078125, %v255_v0  ;;  %v8320_v61 = vsub.s32 0, %v8317_v60  ;;  %v359_v62 = vld [vmem:[%s9599_s7] sm:$0x7]  ;;  %v8326_v63 = vsub.s32 1, %v8317_v60 }
 0x1a5   :  { %v272_v4 = vpop.xlane.xlu1 %271 }
 0x1a6   :  { %v293_v5 = vadd.f32 1e-06, %v285_v2  ;;  %v282_v6 = vmul.f32 %v262_v3, %v262_v3  ;;  %v278_v7 = vmul.f32 0.0078125, %v272_v4  ;;  %v290_v30 = vsub.f32 %v8213_v28, %v262_v3 }
 0x1a7   :  { %v257_v8 = vpop.xlane.xlu0 %256  ;;  %v364_v0 = vrot.slane %v359_v62, %v8320_v61  ;;  %v368_v3 = vrot.slane %v359_v62, %v8326_v63 }
 0x1a8   :  { %7806 = vrsqrt.f32 %v293_v5  ;;  %v286_v9 = vsub.f32 %v278_v7, %v282_v6  ;;  %v263_v10 = vmul.f32 0.0078125, %v257_v8 }
 0x1a9   :  { %v259_v11 = vpop.xlane.xlu1 %258 }
 0x1aa   :  { %v294_v12 = vadd.f32 1e-06, %v286_v9  ;;  %v283_v13 = vmul.f32 %v263_v10, %v263_v10  ;;  %v264_v14 = vmul.f32 0.0078125, %v259_v11  ;;  %v291_v35 = vsub.f32 %v8227_v37, %v263_v10 }
 0x1ab   :  { %v274_v15 = vpop.xlane.xlu0 %273 }
 0x1ac   :  { %7808 = vrsqrt.f32 %v294_v12  ;;  %v284_v16 = vmul.f32 %v264_v14, %v264_v14  ;;  %v279_v17 = vmul.f32 0.0078125, %v274_v15  ;;  %v292_v38 = vsub.f32 %v8229_v40, %v264_v14 }
 0x1ad   :  { %v276_v18 = vpop.xlane.xlu1 %275 }
 0x1ae   :  { %v287_v19 = vsub.f32 %v279_v17, %v283_v13  ;;  %v280_v20 = vmul.f32 0.0078125, %v276_v18  ;;  %v8033_v13 = vmov 0.0  }
 0x1af   :  { %7281 = vmatprep.subr.bf16.mxu0 %v8033_v13  ;;  %7285 = vmatprep.mubr.msk.bf16.mxu0 %vm8035_vm1, %v8033_v13 }
 0x1b0   :  { %v295_v21 = vadd.f32 1e-06, %v287_v19  ;;  %v288_v22 = vsub.f32 %v280_v20, %v284_v16 }
 0x1b2   :  { %v7807_v24 = vpop.eup %7806  ;;  %7810 = vrsqrt.f32 %v295_v21  ;;  %v296_v26 = vadd.f32 1e-06, %v288_v22 }
 0x1b3   :  { %v301_v27 = vmul.f32 %v7807_v24, %v289_v23  ;;  %v371_v24 = vsub.s32 2, %v8317_v60 }
 0x1b4   :  { %7812 = vrsqrt.f32 %v296_v26 }
 0x1b5   :  { %v311_v33 = vmul.f32 %v6735_v29, %v301_v27  ;;  %v372_v26 = vrot.slane %v359_v62, %v371_v24 }
 0x1b6   :  { %v7809_v31 = vpop.eup %7808 }
 0x1b7   :  { %v302_v32 = vmul.f32 %v7809_v31, %v290_v30  ;;  %v321_v39 = vadd.f32 %v6736_v34, %v311_v33 }
 0x1b9   :  { %v312_v36 = vmul.f32 %v6735_v29, %v302_v32 }
 0x1bb   :  { %v322_v41 = vadd.f32 %v6736_v34, %v312_v36 }
 0x1bc   :  { %v7811_v42 = vpop.eup %7810 }
 0x1bd   :  { %v325_v43 = vpack.c.bf16 %v322_v41, %v321_v39  ;;  %v303_v44 = vmul.f32 %v7811_v42, %v291_v35 }
 0x1be   :  { %v7813_v46 = vpop.eup %7812 }
 0x1bf   :  { %537 = vmatmul.mubr.bf16.vlgmr.msra.gmra.mrb[0].mxu1 %v325_v43  ;;  %v304_v47 = vmul.f32 %v7813_v46, %v292_v38  ;;  %v313_v48 = vmul.f32 %v6735_v29, %v303_v44 }
 0x1c0   :  { %546 = vmatprep.mubr.bf16.mxu1 %v8030_v1  ;;  %7238 = vmatpush3.bf16.msra.mxu1 %v7670_v58  ;;  %v7677_v58 = vld [vmem:[%s9598_s6 + $0xb0] ss:$12 sps:$4 sm:$0xff]  }
 0x1c1   :  { %v314_v49 = vmul.f32 %v6735_v29, %v304_v47  ;;  %v323_v50 = vadd.f32 %v6736_v34, %v313_v48  ;;  %7239 = vmatprep.subr.bf16.mxu1 %v7671_v45 }
 0x1c3   :  { %v324_v52 = vadd.f32 %v6736_v34, %v314_v49 }
 0x1c4   :  { %7240 = vmatpush3.bf16.msra.mxu1 %v7671_v45 }
 0x1c5   :  { %v326_v53 = vpack.c.bf16 %v324_v52, %v323_v50  ;;  %7241 = vmatprep.subr.bf16.mxu1 %v7672_v51 }
 0x1c7   :  { %547 = vmatmul.mubr.bf16.gmra.mrb[4].mxu1 %v326_v53 }
 0x1c8   :  { %7253 = vmatprep.mubr.bf16.mxu1 %v325_v43  ;;  %7242 = vmatpush3.bf16.msra.mxu1 %v7672_v51 }
 0x1c9   :  { %7243 = vmatprep.subr.bf16.mxu1 %v7673_v54 }
 0x1cc   :  { %7244 = vmatpush3.bf16.msra.mxu1 %v7673_v54 }
 0x1cd   :  { %7245 = vmatprep.subr.bf16.mxu1 %v7674_v55 }
 0x1d0   :  { %7246 = vmatpush3.bf16.msra.mxu1 %v7674_v55 }
 0x1d1   :  { %7247 = vmatprep.subr.bf16.mxu1 %v7675_v56 }
 0x1d4   :  { %7248 = vmatpush3.bf16.msra.mxu1 %v7675_v56 }
 0x1d5   :  { %7249 = vmatprep.subr.bf16.mxu1 %v7676_v57 }
 0x1d8   :  { %7250 = vmatpush3.bf16.msra.mxu1 %v7676_v57 }
 0x1d9   :  { %7251 = vmatprep.subr.bf16.mxu1 %v7677_v58 }
 0x1dc   :  { %7252 = vmatpush3.bf16.msra.mxu1 %v7677_v58 }
 0x1dd   :  { %7257 = vmatprep.subr.bf16.mxu1 %v8033_v13 }
 0x1df   :  { %7254 = vmatmul.mubr.bf16.vlgmr.msra.gmra.mrb[8].mxu1 %v326_v53 }
 0x1e0   :  { %7261 = vmatprep.mubr.msk.bf16.mxu1 %vm8035_vm1, %v8033_v13 }
 0x292   :  { %v538_v2 = vpop.f32.mrb[0].mxu1 }
 0x293   :  { %v540_v4 = vpop.f32.mrb[1].mxu1  ;;  %v539_v6 = vadd.f32 %v538_v2, %v364_v0 }
 0x294   :  { %v542_v5 = vpop.f32.mrb[2].mxu1  ;;  %v541_v9 = vadd.f32 %v540_v4, %v368_v3 }
 0x295   :  { %v543_v7 = vadd.f32 %v542_v5, %v364_v0  ;;  %v544_v8 = vpop.f32.mrb[3].mxu1 }
 0x296   :  { %v545_v10 = vadd.f32 %v544_v8, %v368_v3 }
 0x297   :  { %v606_v11 = vpack.c.bf16 %v543_v7, %v539_v6 }
 0x298   :  { %v608_v12 = vpack.c.bf16 %v545_v10, %v541_v9 }
 0x29a   :  { %623 = vrot.lane.b32.xlu1 %v608_v12, %s8031_s20  ;;  %620 = vrot.lane.b32.xlu0 %v608_v12, %s8032_s21  ;;  %v548_v14 = vpop.f32.mrb[4].mxu1 }
 0x29b   :  { %v549_v15 = vadd.f32 %v548_v14, %v364_v0  ;;  %v550_v16 = vpop.f32.mrb[5].mxu1 }
 0x29c   :  { %v551_v17 = vadd.f32 %v550_v16, %v368_v3  ;;  %v552_v18 = vpop.f32.mrb[6].mxu1 }
 0x29d   :  { %v553_v19 = vadd.f32 %v552_v18, %v364_v0  ;;  %v554_v20 = vpop.f32.mrb[7].mxu1 }
 0x29e   :  { %626 = vrot.lane.b32.xlu1 %v608_v12, %s8034_s22  ;;  %v555_v21 = vadd.f32 %v554_v20, %v368_v3 }
 0x29f   :  { %v8342_v22 = vpack.c.bf16 %v553_v19, %v549_v15 }
 0x2a0   :  { %v8344_v23 = vpack.c.bf16 %v555_v21, %v551_v17 }
 0x2a2   :  { %613 = vrot.lane.b32.xlu1 %v606_v11, %s8032_s21 }
 0x2a6   :  { %615 = vrot.lane.b32.xlu1 %v606_v11, %s8031_s20 }
 0x2aa   :  { %617 = vrot.lane.b32.xlu1 %v606_v11, %s8034_s22 }
 0x2b2   :  { %v7255_v27 = vpop.f32.mrb[8].mxu1 }
 0x2b3   :  { %v600_v29 = vadd.f32 %v7255_v27, %v372_v26  ;;  %v591_v30 = vpop.f32.mrb[9].mxu1 }
 0x2b4   :  { %v592_v31 = vadd.f32 %v591_v30, %v372_v26  ;;  %v7256_v32 = vpop.f32.mrb[10].mxu1 }
 0x2b5   :  { %v603_v33 = vadd.f32 %v7256_v32, %v372_v26  ;;  %v594_v34 = vpop.f32.mrb[11].mxu1 }
 0x2b6   :  { %v595_v35 = vadd.f32 %v594_v34, %v372_v26 }
 0x2b7   :  { %v8349_v36 = vpack.c.bf16 %v603_v33, %v600_v29 }
 0x2b8   :  { %639 = vxpose.xlu0.c.b16.start.end [1/1] (short) (narrow) %v608_v12, 32  ;;  %v8351_v38 = vpack.c.bf16 %v595_v35, %v592_v31 }
 0x30c   :  { %v621_v39 = vpop.permute.xlu0 %620  ;;  %v624_v41 = vpop.permute.xlu1 %623 }
 0x30d   :  { %655 = vxpose.xlu1.c.b16.start.end [1/1] (short) (narrow) %v621_v39, 32  ;;  %671 = vxpose.xlu0.c.b16.start.end [1/1] (short) (narrow) %v624_v41, 32 }
 0x310   :  { %v627_v42 = vpop.permute.xlu1 %626 }
 0x312   :  { %687 = vxpose.xlu0.c.b16.start.end [1/1] (short) (narrow) %v627_v42, 32  ;;  %981 = vxpose.xlu1.c.b16.start.end [1/1] (short) (narrow) %v8351_v38, 32 }
 0x314   :  { %v614_v45 = vpop.permute.xlu1 %613 }
 0x318   :  { %v616_v46 = vpop.permute.xlu1 %615 }
 0x31a   :  { %630 = vrot.lane.b32.xlu1 %v8351_v38, %s8032_s21 }
 0x31c   :  { %v618_v47 = vpop.permute.xlu1 %617 }
 0x31e   :  { %v647_v43 = vpop.trf.xlu0 }
 0x31f   :  { %7258 = vmatpush3.bf16.msra.mxu1 %v647_v43 }
 0x320   :  { %7259 = vmatprep.subr.bf16.mxu1 %v8033_v13 }
 0x322   :  { %v648_v44 = vpop.trf.xlu0 }
 0x323   :  { %7260 = vmatpush3.bf16.msra.mxu1 %v648_v44 }
 0x324   :  { %7265 = vmatprep.subr.bf16.mxu1 %v8033_v13 }
 0x326   :  { %7262 = vmatmul.mubr.msk.bf16.vlgmr.msra.gmra.mrb[12].mxu1 %vm703_vm2, %v606_v11 }
 0x327   :  { %7269 = vmatprep.mubr.msk.bf16.mxu1 %vm8035_vm1, %v8033_v13 }
 0x373   :  { %v679_v48 = vpop.trf.xlu0  ;;  %v663_v49 = vpop.trf.xlu1 }
 0x374   :  { %7266 = vmatpush3.bf16.msra.mxu1 %v663_v49 }
 0x375   :  { %7267 = vmatprep.subr.bf16.mxu1 %v8033_v13 }
 0x377   :  { %v680_v50 = vpop.trf.xlu0  ;;  %v664_v51 = vpop.trf.xlu1 }
 0x378   :  { %7268 = vmatpush3.bf16.msra.mxu1 %v664_v51 }
 0x379   :  { %7273 = vmatprep.subr.bf16.mxu1 %v8033_v13 }
 0x37b   :  { %v695_v52 = vpop.trf.xlu0  ;;  %7270 = vmatmul.mubr.msk.bf16.vlgmr.msra.gmra.mrb[16].mxu1 %vm703_vm2, %v614_v45  ;;  %v989_v54 = vpop.trf.xlu1 }
 0x37c   :  { %7274 = vmatpush3.bf16.msra.mxu1 %v679_v48  ;;  %7282 = vmatpush3.bf16.msra.mxu0 %v695_v52 }
 0x37d   :  { %7283 = vmatprep.subr.bf16.mxu0 %v8033_v13  ;;  %7275 = vmatprep.subr.bf16.mxu1 %v8033_v13 }
 0x37e   :  { %7277 = vmatprep.mubr.msk.bf16.mxu1 %vm8035_vm1, %v8033_v13 }
 0x37f   :  { %v696_v53 = vpop.trf.xlu0  ;;  %v8387_v33 = vpop.trf.xlu1 }
 0x380   :  { %7276 = vmatpush3.bf16.msra.mxu1 %v680_v50  ;;  %7284 = vmatpush3.bf16.msra.mxu0 %v696_v53 }
 0x383   :  { %7278 = vmatmul.mubr.msk.bf16.vlgmr.msra.gmra.mrb[20].mxu1 %vm703_vm2, %v616_v46  ;;  %7286 = vmatmul.mubr.msk.bf16.vlgmr.msra.gmra.mrb[8].mxu0 %vm703_vm2, %v618_v47 }
 0x384   :  { %7291 = vmatprep.mubr.msk.bf16.mxu1 %vm888_vm3, %v989_v54 }
 0x38c   :  { %v631_v34 = vpop.permute.xlu1 %630 }
 0x3f9   :  { %v741_v55 = vpop.f32.mrb[12].mxu1 }
 0x3fa   :  { %v880_v56 = vmul.f32 0.17677669, %v741_v55  ;;  %v7263_v57 = vpop.f32.mrb[13].mxu1 }
 0x3fb   :  { %v744_v58 = vpop.f32.mrb[14].mxu1 }
 0x3fc   :  { %v881_v59 = vmul.f32 0.17677669, %v744_v58  ;;  %v7264_v62 = vpop.f32.mrb[15].mxu1  ;;  %v889_v0 = vsel %vm888_vm3, %v880_v56, -inf }
 0x3fd   :  { %890 = vmax.xlane.f32.xlu0 %v889_v0 }
 0x3fe   :  { %v892_v2 = vsel %vm888_vm3, %v881_v59, -inf }
 0x3ff   :  { %893 = vmax.xlane.f32.xlu1 %v892_v2 }
 0x44e   :  { %v785_v3 = vpop.f32.mrb[16].mxu1 }
 0x44f   :  { %v882_v4 = vmul.f32 0.17677669, %v785_v3  ;;  %v7271_v5 = vpop.f32.mrb[17].mxu1 }
 0x450   :  { %v788_v6 = vpop.f32.mrb[18].mxu1 }
 0x451   :  { %v883_v7 = vmul.f32 0.17677669, %v788_v6  ;;  %v7272_v8 = vpop.f32.mrb[19].mxu1  ;;  %v895_v9 = vsel %vm888_vm3, %v882_v4, -inf }
 0x452   :  { %896 = vmax.xlane.f32.xlu0 %v895_v9 }
 0x453   :  { %v898_v10 = vsel %vm888_vm3, %v883_v7, -inf }
 0x456   :  { %v873_v11 = vpop.f32.mrb[8].mxu0  ;;  %899 = vmax.xlane.f32.xlu0 %v898_v10  ;;  %v829_v12 = vpop.f32.mrb[20].mxu1 }
 0x457   :  { %v886_v14 = vmul.f32 0.17677669, %v873_v11  ;;  %v7279_v15 = vpop.f32.mrb[21].mxu1  ;;  %v7287_v16 = vpop.f32.mrb[9].mxu0  ;;  %v884_v26 = vmul.f32 0.17677669, %v829_v12 }
 0x458   :  { %v832_v17 = vpop.f32.mrb[22].mxu1  ;;  %v876_v18 = vpop.f32.mrb[10].mxu0 }
 0x459   :  { %v887_v19 = vmul.f32 0.17677669, %v876_v18  ;;  %v7280_v20 = vpop.f32.mrb[23].mxu1  ;;  %v7288_v21 = vpop.f32.mrb[11].mxu0  ;;  %v907_v27 = vsel %vm888_vm3, %v886_v14, -inf  ;;  %v901_v31 = vsel %vm888_vm3, %v884_v26, -inf }
 0x45a   :  { %v885_v29 = vmul.f32 0.17677669, %v832_v17  ;;  %908 = vmax.xlane.f32.xlu1 %v907_v27 }
 0x45b   :  { %v910_v30 = vsel %vm888_vm3, %v887_v19, -inf }
 0x45c   :  { %911 = vmax.xlane.f32.xlu0 %v910_v30  ;;  %v904_v32 = vsel %vm888_vm3, %v885_v29, -inf }
 0x45e   :  { %902 = vmax.xlane.f32.xlu1 %v901_v31 }
 0x460   :  { %905 = vmax.xlane.f32.xlu0 %v904_v32 }
 0x46f   :  { %633 = vrot.lane.b32.xlu1 %v8351_v38, %s8031_s20 }
 0x473   :  { %1716 = vrot.lane.b32.xlu1 %v8344_v23, %s8032_s21 }
 0x477   :  { %1722 = vrot.lane.b32.xlu1 %v8344_v23, %s8034_s22 }
 0x47b   :  { %1709 = vrot.lane.b32.xlu1 %v8342_v22, %s8032_s21 }
 0x48a   :  { %v891_v35 = vpop.xlane.xlu0 %890 }
 0x48b   :  { %v913_v39 = vsub.f32 %v880_v56, %v891_v35 }
 0x48c   :  { %v894_v41 = vpop.xlane.xlu1 %893 }
 0x48d   :  { %997 = vxpose.xlu0.c.b16.start.end [1/1] (short) (narrow) %v631_v34, 32  ;;  %v921_v42 = vmul.f32 1.442695, %v913_v39  ;;  %v914_v43 = vsub.f32 %v881_v59, %v894_v41 }
 0x48f   :  { %7814 = vpow2.f32 %v921_v42  ;;  %v923_v44 = vmul.f32 1.442695, %v914_v43 }
 0x491   :  { %7816 = vpow2.f32 %v923_v44 }
 0x499   :  { %v8393_v45 = vpop.eup %7814 }
 0x49a   :  { %636 = vrot.lane.b32.xlu0 %v8351_v38, %s8034_s22  ;;  %v937_v46 = vsel %vm888_vm3, %v8393_v45, 0.0 }
 0x49b   :  { %v8397_v47 = vpop.eup %7816 }
 0x49c   :  { %v940_v38 = vsel %vm888_vm3, %v8397_v47, 0.0 }
 0x49e   :  { %1719 = vrot.lane.b32.xlu0 %v8344_v23, %s8031_s20 }
 0x4bd   :  { %938 = vadd.xlane.f32.xlu0 %v937_v46 }
 0x4c1   :  { %941 = vadd.xlane.f32.xlu0 %v940_v38 }
 0x4df   :  { %v897_v48 = vpop.xlane.xlu0 %896 }
 0x4e0   :  { %v915_v49 = vsub.f32 %v882_v4, %v897_v48 }
 0x4e2   :  { %v925_v50 = vmul.f32 1.442695, %v915_v49 }
 0x4e3   :  { %v900_v51 = vpop.xlane.xlu0 %899 }
 0x4e4   :  { %7818 = vpow2.f32 %v925_v50  ;;  %v916_v52 = vsub.f32 %v883_v7, %v900_v51 }
 0x4e6   :  { %v927_v53 = vmul.f32 1.442695, %v916_v52 }
 0x4e7   :  { %v909_v54 = vpop.xlane.xlu1 %908 }
 0x4e8   :  { %7820 = vpow2.f32 %v927_v53  ;;  %v919_v55 = vsub.f32 %v886_v14, %v909_v54 }
 0x4e9   :  { %v912_v56 = vpop.xlane.xlu0 %911 }
 0x4ea   :  { %v920_v57 = vsub.f32 %v887_v19, %v912_v56  ;;  %v933_v58 = vmul.f32 1.442695, %v919_v55 }
 0x4eb   :  { %v903_v62 = vpop.xlane.xlu1 %902 }
 0x4ec   :  { %v935_v59 = vmul.f32 1.442695, %v920_v57  ;;  %7822 = vpow2.f32 %v933_v58  ;;  %v917_v0 = vsub.f32 %v884_v26, %v903_v62 }
 0x4ed   :  { %v906_v2 = vpop.xlane.xlu0 %905 }
 0x4ee   :  { %v8401_v3 = vpop.eup %7818  ;;  %v918_v5 = vsub.f32 %v885_v29, %v906_v2  ;;  %7824 = vpow2.f32 %v935_v59  ;;  %v929_v4 = vmul.f32 1.442695, %v917_v0 }
 0x4ef   :  { %v943_v6 = vsel %vm888_vm3, %v8401_v3, 0.0  ;;  %v634_v26 = vpop.permute.xlu1 %633 }
 0x4f0   :  { %v931_v7 = vmul.f32 1.442695, %v918_v5  ;;  %944 = vadd.xlane.f32.xlu0 %v943_v6 }
 0x4f2   :  { %v7821_v8 = vpop.eup %7820  ;;  %7826 = vpow2.f32 %v931_v7 }
 0x4f3   :  { %7828 = vpow2.f32 %v929_v4  ;;  %v946_v9 = vsel %vm888_vm3, %v7821_v8, 0.0  ;;  %v1005_v10 = vpop.trf.xlu0  ;;  %v1717_v27 = vpop.permute.xlu1 %1716 }
 0x4f4   :  { %947 = vadd.xlane.f32.xlu0 %v946_v9  ;;  %7297 = vmatprep.mubr.msk.bf16.mxu0 %vm888_vm3, %v1005_v10 }
 0x4f6   :  { %v8407_v11 = vpop.eup %7822 }
 0x4f7   :  { %v955_v12 = vsel %vm888_vm3, %v8407_v11, 0.0  ;;  %v1006_v20 = vpop.trf.xlu0  ;;  %v1723_v30 = vpop.permute.xlu1 %1722 }
 0x4f8   :  { %v7825_v14 = vpop.eup %7824  ;;  %956 = vadd.xlane.f32.xlu1 %v955_v12 }
 0x4f9   :  { %v958_v16 = vsel %vm888_vm3, %v7825_v14, 0.0 }
 0x4fb   :  { %v1710_v46 = vpop.permute.xlu1 %1709 }
 0x4fc   :  { %v8411_v15 = vpop.eup %7826  ;;  %959 = vadd.xlane.f32.xlu1 %v958_v16 }
 0x4fd   :  { %v8414_v17 = vpop.eup %7828  ;;  %v952_v18 = vsel %vm888_vm3, %v8411_v15, 0.0 }
 0x4fe   :  { %953 = vadd.xlane.f32.xlu0 %v952_v18  ;;  %v949_v19 = vsel %vm888_vm3, %v8414_v17, 0.0 }
 0x500   :  { %950 = vadd.xlane.f32.xlu1 %v949_v19 }
 0x50c   :  { %v637_v21 = vpop.permute.xlu0 %636 }
 0x510   :  { %v1720_v29 = vpop.permute.xlu0 %1719 }
 0x511   :  { %1713 = vrot.lane.b32.xlu1 %v8342_v22, %s8034_s22 }
 0x514   :  { %1711 = vrot.lane.b32.xlu0 %v8342_v22, %s8031_s20 }
 0x532   :  { %1029 = vxpose.xlu0.c.b16.start.end [1/1] (short) (narrow) %v637_v21, 32 }
 0x534   :  { %1013 = vxpose.xlu1.c.b16.start.end [1/1] (short) (narrow) %v634_v26, 32 }
 0x537   :  { %1735 = vxpose.xlu0.c.b16.start.end [1/1] (short) (narrow) %v8344_v23, 32 }
 0x539   :  { %1751 = vxpose.xlu1.c.b16.start.end [1/1] (short) (narrow) %v1717_v27, 32 }
 0x53c   :  { %1767 = vxpose.xlu0.c.b16.start.end [1/1] (short) (narrow) %v1720_v29, 32 }
 0x53e   :  { %1783 = vxpose.xlu1.c.b16.start.end [1/1] (short) (narrow) %v1723_v30, 32 }
 0x54a   :  { %v939_v31 = vpop.xlane.xlu0 %938 }
 0x54b   :  { %7830 = vrcp.f32 %v939_v31 }
 0x54e   :  { %v942_v32 = vpop.xlane.xlu0 %941 }
 0x54f   :  { %7832 = vrcp.f32 %v942_v32 }
 0x555   :  { %v7831_v34 = vpop.eup %7830 }
 0x556   :  { %v969_v39 = vmul.f32 %v7831_v34, %v8393_v45 }
 0x559   :  { %v7833_v35 = vpop.eup %7832 }
 0x55a   :  { %v970_v41 = vmul.f32 %v7833_v35, %v8397_v47 }
 0x55c   :  { %v977_v42 = vpack.c.bf16 %v970_v41, %v969_v39 }
 0x55e   :  { %7541 = vmatprep.subr.msk.bf16.mxu1 %vm888_vm3, %v977_v42  ;;  %v1052_v23 = vsel %vm888_vm3, %v977_v42, 0 }
 0x55f   :  { %7290 = vmatpush3.bf16.xpose.msra.mxu1 %v1052_v23 }
 0x566   :  { %7292 = vmatmul.mubr.msk.bf16.vlgmr.msra.gmra.mrb[24].mxu1 %vm888_vm3, %v8387_v33 }
 0x57d   :  { %v945_v43 = vpop.xlane.xlu0 %944 }
 0x57e   :  { %7834 = vrcp.f32 %v945_v43 }
 0x581   :  { %v948_v44 = vpop.xlane.xlu0 %947 }
 0x582   :  { %7836 = vrcp.f32 %v948_v44 }
 0x585   :  { %v957_v38 = vpop.xlane.xlu1 %956 }
 0x586   :  { %7838 = vrcp.f32 %v957_v38 }
 0x588   :  { %v7835_v48 = vpop.eup %7834 }
 0x589   :  { %v960_v45 = vpop.xlane.xlu1 %959  ;;  %v971_v50 = vmul.f32 %v7835_v48, %v8401_v3 }
 0x58a   :  { %7840 = vrcp.f32 %v960_v45 }
 0x58b   :  { %v954_v47 = vpop.xlane.xlu0 %953 }
 0x58c   :  { %v7837_v49 = vpop.eup %7836  ;;  %7842 = vrcp.f32 %v954_v47 }
 0x58d   :  { %v972_v51 = vmul.f32 %v7837_v49, %v7821_v8  ;;  %v951_v52 = vpop.xlane.xlu1 %950 }
 0x58e   :  { %7844 = vrcp.f32 %v951_v52 }
 0x58f   :  { %v978_v53 = vpack.c.bf16 %v972_v51, %v971_v50  ;;  %v1712_v55 = vpop.permute.xlu0 %1711 }
 0x590   :  { %v7839_v54 = vpop.eup %7838 }
 0x591   :  { %7542 = vmatprep.subr.msk.bf16.mxu0 %vm888_vm3, %v978_v53  ;;  %v1110_v33 = vsel %vm888_vm3, %v978_v53, 0  ;;  %v975_v57 = vmul.f32 %v7839_v54, %v8407_v11  ;;  %v1714_v62 = vpop.permute.xlu1 %1713 }
 0x592   :  { %7296 = vmatpush3.bf16.xpose.msra.mxu0 %v1110_v33 }
 0x594   :  { %v7841_v56 = vpop.eup %7840 }
 0x595   :  { %v976_v58 = vmul.f32 %v7841_v56, %v7825_v14 }
 0x596   :  { %v7843_v59 = vpop.eup %7842 }
 0x597   :  { %v980_v0 = vpack.c.bf16 %v976_v58, %v975_v57  ;;  %v974_v6 = vmul.f32 %v7843_v59, %v8411_v15 }
 0x598   :  { %v1037_v2 = vpop.trf.xlu0  ;;  %v7845_v3 = vpop.eup %7844 }
 0x599   :  { %7298 = vmatmul.mubr.msk.bf16.vlgmr.msra.gmra.mrb[12].mxu0 %vm888_vm3, %v1006_v20  ;;  %7544 = vmatprep.subr.msk.bf16.mxu0 %vm888_vm3, %v980_v0  ;;  %v1226_v5 = vsel %vm888_vm3, %v980_v0, 0  ;;  %v973_v4 = vmul.f32 %v7845_v3, %v8414_v17 }
 0x59a   :  { %7309 = vmatprep.mubr.msk.bf16.mxu0 %vm888_vm3, %v1037_v2  ;;  %7308 = vmatpush3.bf16.xpose.msra.mxu0 %v1226_v5  ;;  %v1021_v7 = vpop.trf.xlu1 }
 0x59b   :  { %v979_v8 = vpack.c.bf16 %v974_v6, %v973_v4  ;;  %7321 = vmatprep.subr.bf16.mxu0 %v8033_v13  ;;  %7303 = vmatprep.mubr.msk.bf16.mxu1 %vm888_vm3, %v1021_v7 }
 0x59c   :  { %v1038_v9 = vpop.trf.xlu0 }
 0x59d   :  { %7543 = vmatprep.subr.msk.bf16.mxu1 %vm888_vm3, %v979_v8  ;;  %v1168_v10 = vsel %vm888_vm3, %v979_v8, 0 }
 0x59e   :  { %7302 = vmatpush3.bf16.xpose.msra.mxu1 %v1168_v10  ;;  %v1022_v11 = vpop.trf.xlu1 }
 0x59f   :  { %7313 = vmatprep.subr.bf16.mxu1 %v8033_v13 }
 0x5a0   :  { %v1743_v12 = vpop.trf.xlu0 }
 0x5a1   :  { %7310 = vmatmul.mubr.msk.bf16.vlgmr.msra.gmra.mrb[16].mxu0 %vm888_vm3, %v1038_v9 }
 0x5a2   :  { %v1759_v14 = vpop.trf.xlu1  ;;  %7325 = vmatprep.mubr.msk.bf16.mxu0 %vm8035_vm1, %v8033_v13 }
 0x5a3   :  { %7322 = vmatpush3.bf16.msra.mxu0 %v1759_v14 }
 0x5a4   :  { %v1744_v15 = vpop.trf.xlu0  ;;  %7323 = vmatprep.subr.bf16.mxu0 %v8033_v13 }
 0x5a5   :  { %7304 = vmatmul.mubr.msk.bf16.vlgmr.msra.gmra.mrb[28].mxu1 %vm888_vm3, %v1022_v11 }
 0x5a6   :  { %7314 = vmatpush3.bf16.msra.mxu1 %v1743_v12  ;;  %v1760_v16 = vpop.trf.xlu1  ;;  %7317 = vmatprep.mubr.msk.bf16.mxu1 %vm8035_vm1, %v8033_v13 }
 0x5a7   :  { %7324 = vmatpush3.bf16.msra.mxu0 %v1760_v16  ;;  %7315 = vmatprep.subr.bf16.mxu1 %v8033_v13 }
 0x5a8   :  { %7337 = vmatprep.subr.bf16.mxu0 %v8033_v13  ;;  %v1775_v17 = vpop.trf.xlu0 }
 0x5aa   :  { %7316 = vmatpush3.bf16.msra.mxu1 %v1744_v15  ;;  %7326 = vmatmul.mubr.msk.bf16.vlgmr.msra.gmra.mrb[20].mxu0 %vm703_vm2, %v1710_v46  ;;  %v1791_v18 = vpop.trf.xlu1 }
 0x5ab   :  { %7338 = vmatpush3.bf16.msra.mxu0 %v1791_v18  ;;  %7329 = vmatprep.subr.bf16.mxu1 %v8033_v13 }
 0x5ac   :  { %7339 = vmatprep.subr.bf16.mxu0 %v8033_v13  ;;  %7341 = vmatprep.mubr.msk.bf16.mxu0 %vm8035_vm1, %v8033_v13  ;;  %v1776_v20 = vpop.trf.xlu0 }
 0x5ad   :  { %7318 = vmatmul.mubr.msk.bf16.vlgmr.msra.gmra.mrb[32].mxu1 %vm703_vm2, %v8342_v22 }
 0x5ae   :  { %7330 = vmatpush3.bf16.msra.mxu1 %v1775_v17  ;;  %v1792_v19 = vpop.trf.xlu1  ;;  %7333 = vmatprep.mubr.msk.bf16.mxu1 %vm8035_vm1, %v8033_v13 }
 0x5af   :  { %7340 = vmatpush3.bf16.msra.mxu0 %v1792_v19  ;;  %7331 = vmatprep.subr.bf16.mxu1 %v8033_v13 }
 0x5b2   :  { %7332 = vmatpush3.bf16.msra.mxu1 %v1776_v20  ;;  %7342 = vmatmul.mubr.msk.bf16.vlgmr.msra.gmra.mrb[24].mxu0 %vm703_vm2, %v1714_v62 }
 0x5b5   :  { %7334 = vmatmul.mubr.msk.bf16.vlgmr.msra.gmra.mrb[36].mxu1 %vm703_vm2, %v1712_v55 }
 0x639   :  { %v8467_v21 = vpop.f32.mrb[24].mxu1 }
 0x63a   :  { %v8469_v26 = vpop.f32.mrb[25].mxu1 }
 0x63b   :  { %v8471_v27 = vpop.f32.mrb[26].mxu1 }
 0x63c   :  { %v8473_v22 = vpop.f32.mrb[27].mxu1 }
 0x66c   :  { %v8475_v29 = vpop.f32.mrb[12].mxu0 }
 0x66d   :  { %v8477_v30 = vpop.f32.mrb[13].mxu0 }
 0x66e   :  { %v8479_v31 = vpop.f32.mrb[14].mxu0 }
 0x66f   :  { %v8481_v32 = vpop.f32.mrb[15].mxu0 }
 0x674   :  { %v8483_v34 = vpop.f32.mrb[16].mxu0 }
 0x675   :  { %v8485_v35 = vpop.f32.mrb[17].mxu0 }
 0x676   :  { %v8487_v39 = vpop.f32.mrb[18].mxu0 }
 0x677   :  { %v8489_v41 = vpop.f32.mrb[19].mxu0 }
 0x678   :  { %v8491_v42 = vpop.f32.mrb[28].mxu1 }
 0x679   :  { %v8493_v23 = vpop.f32.mrb[29].mxu1 }
 0x67a   :  { %v8495_v43 = vpop.f32.mrb[30].mxu1 }
 0x67b   :  { %v8497_v44 = vpop.f32.mrb[31].mxu1 }
 0x67d   :  { %v1880_v46 = vpop.f32.mrb[20].mxu0 }
 0x67e   :  { %v7327_v38 = vpop.f32.mrb[21].mxu0  ;;  %v1977_v52 = vmul.f32 0.17677669, %v1880_v46 }
 0x67f   :  { %v1883_v48 = vpop.f32.mrb[22].mxu0 }
 0x680   :  { %v1836_v45 = vpop.f32.mrb[32].mxu1  ;;  %v7328_v47 = vpop.f32.mrb[23].mxu0  ;;  %v1978_v55 = vmul.f32 0.17677669, %v1883_v48  ;;  %v1989_v62 = vsel %vm888_vm3, %v1977_v52, -inf }
 0x681   :  { %v1975_v49 = vmul.f32 0.17677669, %v1836_v45  ;;  %v7319_v50 = vpop.f32.mrb[33].mxu1 }
 0x682   :  { %v1839_v51 = vpop.f32.mrb[34].mxu1  ;;  %v1992_v4 = vsel %vm888_vm3, %v1978_v55, -inf }
 0x683   :  { %v1976_v53 = vmul.f32 0.17677669, %v1839_v51  ;;  %v7320_v33 = vpop.f32.mrb[35].mxu1  ;;  %v1983_v54 = vsel %vm888_vm3, %v1975_v49, -inf }
 0x684   :  { %1984 = vmax.xlane.f32.xlu0 %v1983_v54 }
 0x685   :  { %v1968_v56 = vpop.f32.mrb[24].mxu0  ;;  %v1986_v57 = vsel %vm888_vm3, %v1976_v53, -inf }
 0x686   :  { %1987 = vmax.xlane.f32.xlu1 %v1986_v57  ;;  %v7343_v58 = vpop.f32.mrb[25].mxu0  ;;  %v1981_v7 = vmul.f32 0.17677669, %v1968_v56 }
 0x687   :  { %v1971_v59 = vpop.f32.mrb[26].mxu0 }
 0x688   :  { %v1924_v0 = vpop.f32.mrb[36].mxu1  ;;  %1990 = vmax.xlane.f32.xlu0 %v1989_v62  ;;  %v7344_v2 = vpop.f32.mrb[27].mxu0  ;;  %v1982_v11 = vmul.f32 0.17677669, %v1971_v59  ;;  %v2001_v14 = vsel %vm888_vm3, %v1981_v7, -inf }
 0x689   :  { %v1979_v3 = vmul.f32 0.17677669, %v1924_v0  ;;  %v7335_v5 = vpop.f32.mrb[37].mxu1 }
 0x68a   :  { %v1927_v6 = vpop.f32.mrb[38].mxu1  ;;  %1993 = vmax.xlane.f32.xlu1 %v1992_v4  ;;  %v2004_v15 = vsel %vm888_vm3, %v1982_v11, -inf }
 0x68b   :  { %v8503_v8 = vmul.f32 0.17677669, %v1927_v6  ;;  %v7336_v9 = vpop.f32.mrb[39].mxu1  ;;  %v1995_v10 = vsel %vm888_vm3, %v1979_v3, -inf }
 0x68c   :  { %1996 = vmax.xlane.f32.xlu0 %v1995_v10 }
 0x68d   :  { %v1998_v12 = vsel %vm888_vm3, %v8503_v8, -inf }
 0x68e   :  { %1999 = vmax.xlane.f32.xlu1 %v1998_v12 }
 0x690   :  { %2002 = vmax.xlane.f32.xlu0 %v2001_v14 }
 0x692   :  { %2005 = vmax.xlane.f32.xlu1 %v2004_v15 }
 0x6a6   :  { %1726 = vrot.lane.b32.xlu0 %v8349_v36, %s8032_s21 }
 0x6aa   :  { %1732 = vrot.lane.b32.xlu0 %v8349_v36, %s8034_s22 }
 0x711   :  { %v1985_v16 = vpop.xlane.xlu0 %1984 }
 0x712   :  { %v2007_v17 = vsub.f32 %v1975_v49, %v1985_v16 }
 0x713   :  { %v1988_v18 = vpop.xlane.xlu1 %1987 }
 0x714   :  { %v2015_v19 = vmul.f32 1.442695, %v2007_v17  ;;  %v2008_v20 = vsub.f32 %v1976_v53, %v1988_v18 }
 0x715   :  { %v1991_v46 = vpop.xlane.xlu0 %1990 }
 0x716   :  { %7846 = vpow2.f32 %v2015_v19  ;;  %v2009_v38 = vsub.f32 %v1977_v52, %v1991_v46  ;;  %v2017_v45 = vmul.f32 1.442695, %v2008_v20 }
 0x717   :  { %v1994_v48 = vpop.xlane.xlu1 %1993 }
 0x718   :  { %v2019_v47 = vmul.f32 1.442695, %v2009_v38  ;;  %v2010_v50 = vsub.f32 %v1978_v55, %v1994_v48 }
 0x719   :  { %v1997_v51 = vpop.xlane.xlu0 %1996 }
 0x71a   :  { %7848 = vpow2.f32 %v2019_v47  ;;  %v2011_v33 = vsub.f32 %v1979_v3, %v1997_v51  ;;  %v2021_v56 = vmul.f32 1.442695, %v2010_v50 }
 0x71b   :  { %v2000_v54 = vpop.xlane.xlu1 %1999  ;;  %7850 = vpow2.f32 %v2017_v45 }
 0x71c   :  { %v2023_v57 = vmul.f32 1.442695, %v2011_v33  ;;  %v2012_v16 = vsub.f32 %v8503_v8, %v2000_v54 }
 0x71d   :  { %v2003_v58 = vpop.xlane.xlu0 %2002 }
 0x71e   :  { %7852 = vpow2.f32 %v2023_v57  ;;  %v2013_v49 = vsub.f32 %v1981_v7, %v2003_v58  ;;  %v2025_v17 = vmul.f32 1.442695, %v2012_v16 }
 0x71f   :  { %v2006_v59 = vpop.xlane.xlu1 %2005  ;;  %7854 = vpow2.f32 %v2021_v56 }
 0x720   :  { %v8514_v62 = vpop.eup %7846  ;;  %v2027_v53 = vmul.f32 1.442695, %v2013_v49  ;;  %v2014_v52 = vsub.f32 %v1982_v11, %v2006_v59 }
 0x721   :  { %v2031_v0 = vsel %vm888_vm3, %v8514_v62, 0.0  ;;  %v1727_v20 = vpop.permute.xlu0 %1726 }
 0x722   :  { %7856 = vpow2.f32 %v2027_v53  ;;  %v2029_v55 = vmul.f32 1.442695, %v2014_v52  ;;  %2032 = vadd.xlane.f32.xlu1 %v2031_v0 }
 0x724   :  { %v8518_v2 = vpop.eup %7848  ;;  %7858 = vpow2.f32 %v2029_v55 }
 0x725   :  { %v2037_v3 = vsel %vm888_vm3, %v8518_v2, 0.0  ;;  %v7851_v5 = vpop.eup %7850  ;;  %7860 = vpow2.f32 %v2025_v17 }
 0x726   :  { %2038 = vadd.xlane.f32.xlu1 %v2037_v3  ;;  %v2034_v7 = vsel %vm888_vm3, %v7851_v5, 0.0 }
 0x728   :  { %v8522_v4 = vpop.eup %7852 }
 0x729   :  { %v2043_v6 = vsel %vm888_vm3, %v8522_v4, 0.0  ;;  %v7855_v9 = vpop.eup %7854 }
 0x72a   :  { %2044 = vadd.xlane.f32.xlu0 %v2043_v6  ;;  %2035 = vadd.xlane.f32.xlu1 %v2034_v7  ;;  %v2040_v12 = vsel %vm888_vm3, %v7855_v9, 0.0 }
 0x72c   :  { %v7857_v10 = vpop.eup %7856 }
 0x72d   :  { %v2049_v11 = vsel %vm888_vm3, %v7857_v10, 0.0 }
 0x72e   :  { %v7859_v14 = vpop.eup %7858  ;;  %2050 = vadd.xlane.f32.xlu0 %v2049_v11  ;;  %2041 = vadd.xlane.f32.xlu1 %v2040_v12 }
 0x72f   :  { %v2052_v15 = vsel %vm888_vm3, %v7859_v14, 0.0  ;;  %v8533_v18 = vpop.eup %7860 }
 0x730   :  { %v2046_v19 = vsel %vm888_vm3, %v8533_v18, 0.0 }
 0x732   :  { %2053 = vadd.xlane.f32.xlu0 %v2052_v15 }
 0x73f   :  { %1729 = vrot.lane.b32.xlu1 %v8349_v36, %s8031_s20 }
 0x75f   :  { %2075 = vxpose.xlu0.c.b16.start.end [1/1] (short) (narrow) %v8349_v36, 32  ;;  %v1733_v36 = vpop.permute.xlu0 %1732 }
 0x763   :  { %2047 = vadd.xlane.f32.xlu1 %v2046_v19 }
 0x790   :  { %2091 = vxpose.xlu1.c.b16.start.end [1/1] (short) (narrow) %v1727_v20, 32 }
 0x79e   :  { %1277 = vxpose.xlu1.b32.start [1/4] (short) (narrow) %v8469_v26, 16 }
 0x7a2   :  { %1278 = vxpose.xlu1.b32.cont [2/4] (short) (narrow) %v8473_v22, 16 }
 0x7a6   :  { %1279 = vxpose.xlu1.b32.cont [3/4] (short) (narrow) %v8467_v21, 16 }
 0x7aa   :  { %1280 = vxpose.xlu1.b32.end [4/4] (short) (narrow) %v8471_v27, 16 }
 0x7ae   :  { %1373 = vxpose.xlu1.b32.start [1/4] (short) (narrow) %v8485_v35, 16 }
 0x7af   :  { %v2033_v8 = vpop.xlane.xlu1 %2032 }
 0x7b0   :  { %7862 = vrcp.f32 %v2033_v8 }
 0x7b2   :  { %1374 = vxpose.xlu1.b32.cont [2/4] (short) (narrow) %v8489_v41, 16 }
 0x7b3   :  { %v2039_v46 = vpop.xlane.xlu1 %2038 }
 0x7b6   :  { %1375 = vxpose.xlu1.b32.cont [3/4] (short) (narrow) %v8483_v34, 16 }
 0x7b7   :  { %v2045_v38 = vpop.xlane.xlu0 %2044  ;;  %v2036_v48 = vpop.xlane.xlu1 %2035 }
 0x7b8   :  { %7864 = vrcp.f32 %v2036_v48 }
 0x7b9   :  { %7866 = vrcp.f32 %v2039_v46  ;;  %v8036_v46 = vmov 1983009808  }
 0x7ba   :  { %1376 = vxpose.xlu1.b32.end [4/4] (short) (narrow) %v8487_v39, 16  ;;  %v7863_v35 = vpop.eup %7862 }
 0x7bb   :  { %v2051_v26 = vpop.xlane.xlu0 %2050  ;;  %v2042_v21 = vpop.xlane.xlu1 %2041  ;;  %v2063_v45 = vmul.f32 %v7863_v35, %v8514_v62 }
 0x7bc   :  { %7868 = vrcp.f32 %v2042_v21 }
 0x7bd   :  { %7870 = vrcp.f32 %v2051_v26 }
 0x7bf   :  { %v2054_v27 = vpop.xlane.xlu0 %2053  ;;  %v1730_v22 = vpop.permute.xlu1 %1729 }
 0x7c0   :  { %7872 = vrcp.f32 %v2054_v27  ;;  %2107 = vxpose.xlu0.c.b16.start.end [1/1] (short) (narrow) %v1730_v22, 32 }
 0x7c1   :  { %7874 = vrcp.f32 %v2045_v38  ;;  %v1408_v38 = vunpack.c.l.s4 %v8036_v46 }
 0x7c2   :  { %v7865_v41 = vpop.eup %7864 }
 0x7c3   :  { %v2064_v34 = vmul.f32 %v7865_v41, %v7851_v5  ;;  %v7867_v47 = vpop.eup %7866  ;;  %v1409_v22 = vunpack.c.0.s8 %v1408_v38 }
 0x7c4   :  { %v2065_v56 = vmul.f32 %v7867_v47, %v8518_v2 }
 0x7c5   :  { %2123 = vxpose.xlu0.c.b16.start.end [1/1] (short) (narrow) %v1733_v36, 32  ;;  %v2083_v50 = vpop.trf.xlu0  ;;  %v2071_v51 = vpack.c.bf16 %v2064_v34, %v2063_v45  ;;  %v8576_v47 = vsub.s32 %v1409_v22, %v8317_v60 }
 0x7c6   :  { %7347 = vmatprep.mubr.msk.bf16.mxu1 %vm888_vm3, %v2083_v50  ;;  %v7869_v39 = vpop.eup %7868  ;;  %v8037_v50 = vmov 1934713408  }
 0x7c7   :  { %v7871_v33 = vpop.eup %7870  ;;  %7545 = vmatprep.subr.msk.bf16.mxu1 %vm888_vm3, %v2071_v51  ;;  %v2146_v54 = vsel %vm888_vm3, %v2071_v51, 0  ;;  %v2066_v57 = vmul.f32 %v7869_v39, %v7855_v9  ;;  %v1440_v51 = vunpack.c.l.s4 %v8037_v50 }
 0x7c8   :  { %7346 = vmatpush3.bf16.xpose.msra.mxu1 %v2146_v54  ;;  %v2069_v59 = vmul.f32 %v7871_v33, %v7857_v10 }
 0x7c9   :  { %v2072_v49 = vpack.c.bf16 %v2066_v57, %v2065_v56  ;;  %v2084_v0 = vpop.trf.xlu0 }
 0x7ca   :  { %v7873_v58 = vpop.eup %7872 }
 0x7cb   :  { %v2070_v62 = vmul.f32 %v7873_v58, %v7859_v14  ;;  %7546 = vmatprep.subr.msk.bf16.mxu0 %vm888_vm3, %v2072_v49  ;;  %v2204_v53 = vsel %vm888_vm3, %v2072_v49, 0  ;;  %v7875_v2 = vpop.eup %7874 }
 0x7cc   :  { %7352 = vmatpush3.bf16.xpose.msra.mxu0 %v2204_v53 }
 0x7cd   :  { %1309 = vxpose.xlu0.b32.start [1/4] (short) (narrow) %v8477_v30, 16  ;;  %v2074_v52 = vpack.c.bf16 %v2070_v62, %v2069_v59 }
 0x7cf   :  { %7548 = vmatprep.subr.msk.bf16.mxu0 %vm888_vm3, %v2074_v52  ;;  %7348 = vmatmul.mubr.msk.bf16.vlgmr.msra.gmra.mrb[40].mxu1 %vm888_vm3, %v2084_v0 }
 0x7d1   :  { %1310 = vxpose.xlu0.b32.cont [2/4] (short) (narrow) %v8481_v32, 16 }
 0x7d5   :  { %1311 = vxpose.xlu0.b32.cont [3/4] (short) (narrow) %v8475_v29, 16  ;;  %v2320_v29 = vsel %vm888_vm3, %v2074_v52, 0  ;;  %v1441_v52 = vunpack.c.0.s8 %v1440_v51 }
 0x7d9   :  { %1312 = vxpose.xlu0.b32.end [4/4] (short) (narrow) %v8479_v31, 16  ;;  %v2067_v31 = vmul.f32 %v7875_v2, %v8522_v4 }
 0x7dd   :  { %1341 = vxpose.xlu0.b32.start [1/4] (short) (narrow) %v8493_v23, 16 }
 0x7e1   :  { %1342 = vxpose.xlu0.b32.cont [2/4] (short) (narrow) %v8497_v44, 16 }
 0x7e5   :  { %1343 = vxpose.xlu0.b32.cont [3/4] (short) (narrow) %v8491_v42, 16 }
 0x7e9   :  { %1344 = vxpose.xlu0.b32.end [4/4] (short) (narrow) %v8495_v43, 16 }
 0x7f0   :  { %v2048_v30 = vpop.xlane.xlu1 %2047 }
 0x7f1   :  { %7876 = vrcp.f32 %v2048_v30 }
 0x7f6   :  { %v2099_v55 = vpop.trf.xlu1 }
 0x7f7   :  { %7353 = vmatprep.mubr.msk.bf16.mxu0 %vm888_vm3, %v2099_v55 }
 0x7fa   :  { %v2100_v32 = vpop.trf.xlu1 }
 0x7fb   :  { %v7877_v3 = vpop.eup %7876  ;;  %7354 = vmatmul.mubr.msk.bf16.vlgmr.msra.gmra.mrb[28].mxu0 %vm888_vm3, %v2100_v32 }
 0x7fc   :  { %7364 = vmatpush3.bf16.xpose.msra.mxu0 %v2320_v29  ;;  %v2068_v42 = vmul.f32 %v7877_v3, %v8533_v18 }
 0x7fe   :  { %v2073_v23 = vpack.c.bf16 %v2068_v42, %v2067_v31  ;;  %v8587_v42 = vsub.s32 %v1441_v52, %v8317_v60 }
 0x800   :  { %7547 = vmatprep.subr.msk.bf16.mxu1 %vm888_vm3, %v2073_v23  ;;  %v2262_v43 = vsel %vm888_vm3, %v2073_v23, 0 }
 0x801   :  { %7358 = vmatpush3.bf16.xpose.msra.mxu1 %v2262_v43 }
 0x81e   :  { %v1293_v18 = vpop.trf.xlu1 }
 0x822   :  { %v1294_v20 = vpop.trf.xlu1 }
 0x826   :  { %v2115_v44 = vpop.trf.xlu0 }
 0x827   :  { %7359 = vmatprep.mubr.msk.bf16.mxu1 %vm888_vm3, %v2115_v44 }
 0x82a   :  { %v2116_v5 = vpop.trf.xlu0 }
 0x82b   :  { %7360 = vmatmul.mubr.msk.bf16.vlgmr.msra.gmra.mrb[44].mxu1 %vm888_vm3, %v2116_v5 }
 0x82e   :  { %v2131_v6 = vpop.trf.xlu0  ;;  %v1389_v27 = vpop.trf.xlu1 }
 0x82f   :  { %7365 = vmatprep.mubr.msk.bf16.mxu0 %vm888_vm3, %v2131_v6 }
 0x832   :  { %v2132_v7 = vpop.trf.xlu0  ;;  %v1390_v34 = vpop.trf.xlu1 }
 0x833   :  { %7366 = vmatmul.mubr.msk.bf16.vlgmr.msra.gmra.mrb[32].mxu0 %vm888_vm3, %v2132_v7 }
 0x834   :  { %3143 = vmatprep.mubr.bf16.mxu0 %v8030_v1 }
 0x84d   :  { %v1325_v17 = vpop.trf.xlu0 }
 0x84e   :  { %v1421_v57 = vcombine.low %v1325_v17, %v1389_v27  ;;  %v1422_v58 = vcombine.high %v1325_v17, %v1389_v27 }
 0x850   :  { %v1429_v55 = vrot.slane %v1421_v57, %v8576_v47  ;;  %v1436_v2 = vrot.slane %v1422_v58, %v8576_v47 }
 0x851   :  { %v1326_v19 = vpop.trf.xlu0 }
 0x852   :  { %v1489_v62 = vcombine.low %v1326_v19, %v1390_v34  ;;  %v1490_v53 = vcombine.high %v1326_v19, %v1390_v34 }
 0x854   :  { %v1497_v29 = vrot.slane %v1489_v62, %v8576_v47  ;;  %v1504_v31 = vrot.slane %v1490_v53, %v8576_v47 }
 0x85d   :  { %v1357_v26 = vpop.trf.xlu0 }
 0x85e   :  { %v1405_v54 = vcombine.low %v1293_v18, %v1357_v26  ;;  %v1406_v56 = vcombine.high %v1293_v18, %v1357_v26 }
 0x860   :  { %v1413_v0 = vrot.slane %v1405_v54, %v8576_v47  ;;  %v1420_v30 = vrot.slane %v1406_v56, %v8576_v47 }
 0x861   :  { %v1358_v41 = vpop.trf.xlu0 }
 0x862   :  { %v1473_v49 = vcombine.low %v1294_v20, %v1358_v41  ;;  %v1474_v59 = vcombine.high %v1294_v20, %v1358_v41  ;;  %v1437_v23 = vcombine.low %v1413_v0, %v1429_v55  ;;  %v1438_v43 = vcombine.high %v1413_v0, %v1429_v55 }
 0x863   :  { %v1453_v44 = vcombine.low %v1420_v30, %v1436_v2  ;;  %v1454_v5 = vcombine.high %v1420_v30, %v1436_v2 }
 0x864   :  { %v1481_v32 = vrot.slane %v1473_v49, %v8576_v47  ;;  %v1488_v3 = vrot.slane %v1474_v59, %v8576_v47 }
 0x866   :  { %v1505_v6 = vcombine.low %v1481_v32, %v1497_v29  ;;  %v1506_v7 = vcombine.high %v1481_v32, %v1497_v29 }
 0x8a2   :  { %v7349_v4 = vpop.f32.mrb[40].mxu1 }
 0x8a3   :  { %v2182_v9 = vpop.f32.mrb[41].mxu1 }
 0x8a4   :  { %2371 = vxpose.xlu0.b32.start [1/4] (short) (narrow) %v2182_v9, 16  ;;  %v7350_v10 = vpop.f32.mrb[42].mxu1  ;;  %v1522_v9 = vcombine.high %v1488_v3, %v1504_v31 }
 0x8a5   :  { %v2185_v11 = vpop.f32.mrb[43].mxu1 }
 0x8a6   :  { %v1536_v18 = vrot.slane %v1522_v9, %v8587_v42  ;;  %v7680_v9 = vld [vmem:[%s9600_s8 + $0x10] sm:$0xff]  }
 0x8a8   :  { %2372 = vxpose.xlu0.b32.cont [2/4] (short) (narrow) %v2185_v11, 16  ;;  %v1452_v11 = vrot.slane %v1438_v43, %v8587_v42 }
 0x8ac   :  { %2373 = vxpose.xlu0.b32.cont [3/4] (short) (narrow) %v7349_v4, 16  ;;  %v1521_v4 = vcombine.low %v1488_v3, %v1504_v31 }
 0x8ae   :  { %v1529_v17 = vrot.slane %v1521_v4, %v8587_v42 }
 0x8b0   :  { %2374 = vxpose.xlu0.b32.end [4/4] (short) (narrow) %v7350_v10, 16  ;;  %v1445_v10 = vrot.slane %v1437_v23, %v8587_v42  ;;  %v6776_v26 = vcombine.high %v1529_v17, %v1536_v18 }
 0x8b2   :  { %v1541_v19 = vcombine.low %v1445_v10, %v1452_v11  ;;  %v6773_v20 = vcombine.high %v1445_v10, %v1452_v11  ;;  %v1640_v50 = vrot.slane %v6776_v26, %v8576_v47  ;;  %v7681_v10 = vld [vmem:[%s9600_s8 + $0x18] sm:$0xff]   ;;  %v7682_v11 = vld [vmem:[%s9600_s8 + $0x20] sm:$0xff]  }
 0x8b4   :  { %v1556_v27 = vrot.slane %v6773_v20, %v8576_v47 }
 0x8ce   :  { %v7355_v12 = vpop.f32.mrb[28].mxu0 }
 0x8cf   :  { %v2240_v14 = vpop.f32.mrb[29].mxu0 }
 0x8d0   :  { %2403 = vxpose.xlu1.b32.start [1/4] (short) (narrow) %v2240_v14, 16  ;;  %v7356_v15 = vpop.f32.mrb[30].mxu0  ;;  %v1468_v14 = vrot.slane %v1454_v5, %v8587_v42  ;;  %v7678_v5 = vld [vmem:[%s9600_s8] sm:$0xff]  }
 0x8d1   :  { %v2243_v16 = vpop.f32.mrb[31].mxu0  ;;  %7369 = vmatprep.subr.bf16.mxu1 %v7678_v5 }
 0x8d2   :  { %7370 = vmatpush3.bf16.msra.mxu1 %v7678_v5 }
 0x8d4   :  { %2404 = vxpose.xlu1.b32.cont [2/4] (short) (narrow) %v2243_v16, 16  ;;  %v1520_v16 = vrot.slane %v1506_v7, %v8587_v42 }
 0x8d8   :  { %2405 = vxpose.xlu1.b32.cont [3/4] (short) (narrow) %v7355_v12, 16  ;;  %v1461_v12 = vrot.slane %v1453_v44, %v8587_v42 }
 0x8dc   :  { %2406 = vxpose.xlu1.b32.end [4/4] (short) (narrow) %v7356_v15, 16  ;;  %v1513_v15 = vrot.slane %v1505_v6, %v8587_v42  ;;  %v7679_v6 = vld [vmem:[%s9600_s8 + $0x8] sm:$0xff]  }
 0x8dd   :  { %7371 = vmatprep.subr.bf16.mxu1 %v7679_v6 }
 0x8de   :  { %v1609_v46 = vcombine.low %v1513_v15, %v1520_v16  ;;  %v6775_v38 = vcombine.high %v1513_v15, %v1520_v16  ;;  %7372 = vmatpush3.bf16.msra.mxu1 %v7679_v6 }
 0x8df   :  { %7373 = vmatprep.subr.bf16.mxu1 %v7680_v9 }
 0x8e0   :  { %v1616_v41 = vrot.slane %v1609_v46, %v8576_v47 }
 0x8e2   :  { %7374 = vmatpush3.bf16.msra.mxu1 %v7680_v9 }
 0x8e3   :  { %7375 = vmatprep.subr.bf16.mxu1 %v7681_v10 }
 0x8e6   :  { %7376 = vmatpush3.bf16.msra.mxu1 %v7681_v10 }
 0x8e7   :  { %7377 = vmatprep.subr.bf16.mxu1 %v7682_v11 }
 0x8ea   :  { %7378 = vmatpush3.bf16.msra.mxu1 %v7682_v11 }
 0x8fe   :  { %v7361_v8 = vpop.f32.mrb[44].mxu1 }
 0x8ff   :  { %v2298_v36 = vpop.f32.mrb[45].mxu1 }
 0x900   :  { %2435 = vxpose.xlu0.b32.start [1/4] (short) (narrow) %v2298_v36, 16  ;;  %v7362_v48 = vpop.f32.mrb[46].mxu1  ;;  %v6774_v36 = vcombine.high %v1461_v12, %v1468_v14 }
 0x901   :  { %v2301_v21 = vpop.f32.mrb[47].mxu1 }
 0x904   :  { %2436 = vxpose.xlu0.b32.cont [2/4] (short) (narrow) %v2301_v21, 16  ;;  %v1548_v21 = vrot.slane %v1541_v19, %v8576_v47 }
 0x906   :  { %v7367_v35 = vpop.f32.mrb[32].mxu0  ;;  %v1574_v51 = vcombine.high %v1548_v21, %v1556_v27  ;;  %v1573_v56 = vcombine.low %v1548_v21, %v1556_v27 }
 0x907   :  { %v2356_v45 = vpop.f32.mrb[33].mxu0 }
 0x908   :  { %2437 = vxpose.xlu0.b32.cont [3/4] (short) (narrow) %v7361_v8, 16  ;;  %2467 = vxpose.xlu1.b32.start [1/4] (short) (narrow) %v2356_v45, 16  ;;  %v7368_v39 = vpop.f32.mrb[34].mxu0  ;;  %v1557_v8 = vcombine.low %v1461_v12, %v1468_v14  ;;  %v1624_v45 = vrot.slane %v6775_v38, %v8576_v47  ;;  %v1588_v59 = vrot.slane %v1574_v51, %v8587_v42  ;;  %v7683_v12 = vld [vmem:[%s9600_s8 + $0x28] sm:$0xff]  }
 0x909   :  { %v2359_v33 = vpop.f32.mrb[35].mxu0  ;;  %v8610_v0 = vrot.slane %v1573_v56, %v8587_v42  ;;  %7379 = vmatprep.subr.bf16.mxu1 %v7683_v12 }
 0x90a   :  { %v1564_v22 = vrot.slane %v1557_v8, %v8576_v47  ;;  %v1641_v58 = vcombine.low %v1616_v41, %v1624_v45  ;;  %7380 = vmatpush3.bf16.msra.mxu1 %v7683_v12 }
 0x90c   :  { %2438 = vxpose.xlu0.b32.end [4/4] (short) (narrow) %v7362_v48, 16  ;;  %2468 = vxpose.xlu1.b32.cont [2/4] (short) (narrow) %v2359_v33, 16  ;;  %v1625_v48 = vcombine.low %v1529_v17, %v1536_v18  ;;  %v1642_v33 = vcombine.high %v1616_v41, %v1624_v45  ;;  %v8616_v55 = vrot.slane %v1641_v58, %v8587_v42 }
 0x90e   :  { %v1632_v34 = vrot.slane %v1625_v48, %v8576_v47  ;;  %v1656_v53 = vrot.slane %v1642_v33, %v8587_v42 }
 0x910   :  { %2469 = vxpose.xlu1.b32.cont [3/4] (short) (narrow) %v7367_v35, 16  ;;  %v1572_v35 = vrot.slane %v6774_v36, %v8576_v47  ;;  %v1658_v54 = vcombine.high %v1632_v34, %v1640_v50  ;;  %v1657_v49 = vcombine.low %v1632_v34, %v1640_v50 }
 0x912   :  { %v1589_v57 = vcombine.low %v1564_v22, %v1572_v35  ;;  %v1672_v52 = vrot.slane %v1658_v54, %v8587_v42  ;;  %v8619_v2 = vrot.slane %v1657_v49, %v8587_v42 }
 0x914   :  { %2470 = vxpose.xlu1.b32.end [4/4] (short) (narrow) %v7368_v39, 16  ;;  %v1590_v39 = vcombine.high %v1564_v22, %v1572_v35  ;;  %v8613_v30 = vrot.slane %v1589_v57, %v8587_v42  ;;  %v1675_v3 = vcombine.low %v1656_v53, %v1672_v52  ;;  %v1674_v31 = vcombine.high %v8616_v55, %v8619_v2 }
 0x915   :  { %v1676_v44 = vcombine.high %v1656_v53, %v1672_v52 }
 0x916   :  { %v1604_v62 = vrot.slane %v1590_v39, %v8587_v42  ;;  %v1606_v29 = vcombine.high %v8610_v0, %v8613_v30 }
 0x918   :  { %v1607_v32 = vcombine.low %v1588_v59, %v1604_v62  ;;  %v1608_v43 = vcombine.high %v1588_v59, %v1604_v62  ;;  %v7568_v7 = vpack.i.bf16 %v1674_v31, %v1606_v29 }
 0x91a   :  { %v7573_v23 = vpack.i.bf16 %v1675_v3, %v1607_v32  ;;  %v7578_v4 = vpack.i.bf16 %v1676_v44, %v1608_v43 }
 0x924   :  { %v2387_v14 = vpop.trf.xlu0 }
 0x928   :  { %v2388_v16 = vpop.trf.xlu0 }
 0x932   :  { %7574 = vrot.lane.b32.xlu1 %v7573_v23, %s8031_s20 }
 0x935   :  { %7569 = vrot.lane.b32.xlu0 %v7568_v7, %s8034_s22 }
 0x936   :  { %7579 = vrot.lane.b32.xlu1 %v7578_v4, %s8032_s21 }
 0x950   :  { %v2419_v15 = vpop.trf.xlu1 }
 0x954   :  { %v2420_v17 = vpop.trf.xlu1 }
 0x980   :  { %v2451_v18 = vpop.trf.xlu0 }
 0x981   :  { %v2499_v19 = vcombine.low %v2387_v14, %v2451_v18  ;;  %v2500_v20 = vcombine.high %v2387_v14, %v2451_v18  ;;  %v7684_v18 = vld [vmem:[%s9600_s8 + $0x30] sm:$0xff]  }
 0x982   :  { %7381 = vmatprep.subr.bf16.mxu1 %v7684_v18 }
 0x983   :  { %v2507_v48 = vrot.slane %v2499_v19, %v8576_v47  ;;  %v2514_v26 = vrot.slane %v2500_v20, %v8576_v47  ;;  %7382 = vmatpush3.bf16.msra.mxu1 %v7684_v18 }
 0x984   :  { %v2452_v38 = vpop.trf.xlu0 }
 0x985   :  { %v2567_v22 = vcombine.low %v2388_v16, %v2452_v38  ;;  %v2568_v35 = vcombine.high %v2388_v16, %v2452_v38 }
 0x987   :  { %v2575_v49 = vrot.slane %v2567_v22, %v8576_v47  ;;  %v2582_v59 = vrot.slane %v2568_v35, %v8576_v47 }
 0x988   :  { %v2483_v8 = vpop.trf.xlu1 }
 0x989   :  { %v2515_v36 = vcombine.low %v2419_v15, %v2483_v8  ;;  %v2516_v46 = vcombine.high %v2419_v15, %v2483_v8 }
 0x98b   :  { %v2523_v21 = vrot.slane %v2515_v36, %v8576_v47  ;;  %v2530_v27 = vrot.slane %v2516_v46, %v8576_v47 }
 0x98c   :  { %v2484_v41 = vpop.trf.xlu1 }
 0x98d   :  { %v2531_v45 = vcombine.low %v2507_v48, %v2523_v21  ;;  %v2532_v34 = vcombine.high %v2507_v48, %v2523_v21  ;;  %v2547_v50 = vcombine.low %v2514_v26, %v2530_v27  ;;  %v2548_v51 = vcombine.high %v2514_v26, %v2530_v27 }
 0x98e   :  { %v2583_v39 = vcombine.low %v2420_v17, %v2484_v41  ;;  %v2584_v33 = vcombine.high %v2420_v17, %v2484_v41 }
 0x98f   :  { %v2539_v54 = vrot.slane %v2531_v45, %v8587_v42  ;;  %v2546_v56 = vrot.slane %v2532_v34, %v8587_v42  ;;  %v2555_v57 = vrot.slane %v2547_v50, %v8587_v42  ;;  %v2562_v58 = vrot.slane %v2548_v51, %v8587_v42  ;;  %v7685_v45 = vld [vmem:[%s9600_s8 + $0x38] sm:$0xff]  }
 0x990   :  { %v2591_v62 = vrot.slane %v2583_v39, %v8576_v47  ;;  %v2598_v53 = vrot.slane %v2584_v33, %v8576_v47  ;;  %7383 = vmatprep.subr.bf16.mxu1 %v7685_v45 }
 0x991   :  { %v2635_v52 = vcombine.low %v2539_v54, %v2546_v56  ;;  %v6789_v32 = vcombine.high %v2539_v54, %v2546_v56  ;;  %v2651_v3 = vcombine.low %v2555_v57, %v2562_v58  ;;  %v6790_v29 = vcombine.high %v2555_v57, %v2562_v58  ;;  %7384 = vmatpush3.bf16.msra.mxu1 %v7685_v45 }
 0x992   :  { %v2599_v31 = vcombine.low %v2575_v49, %v2591_v62  ;;  %v2600_v23 = vcombine.high %v2575_v49, %v2591_v62  ;;  %v2615_v43 = vcombine.low %v2582_v59, %v2598_v53  ;;  %v2616_v44 = vcombine.high %v2582_v59, %v2598_v53 }
 0x993   :  { %v2642_v5 = vrot.slane %v2635_v52, %v8576_v47  ;;  %v2650_v6 = vrot.slane %v6789_v32, %v8576_v47  ;;  %v2658_v7 = vrot.slane %v2651_v3, %v8576_v47  ;;  %v2666_v4 = vrot.slane %v6790_v29, %v8576_v47 }
 0x994   :  { %v2607_v9 = vrot.slane %v2599_v31, %v8587_v42  ;;  %v2614_v10 = vrot.slane %v2600_v23, %v8587_v42  ;;  %v2623_v11 = vrot.slane %v2615_v43, %v8587_v42  ;;  %v2630_v12 = vrot.slane %v2616_v44, %v8587_v42 }
 0x995   :  { %v2668_v14 = vcombine.high %v2642_v5, %v2650_v6  ;;  %v2684_v15 = vcombine.high %v2658_v7, %v2666_v4  ;;  %v2667_v16 = vcombine.low %v2642_v5, %v2650_v6  ;;  %v2683_v17 = vcombine.low %v2658_v7, %v2666_v4 }
 0x996   :  { %v2703_v19 = vcombine.low %v2607_v9, %v2614_v10  ;;  %v6791_v20 = vcombine.high %v2607_v9, %v2614_v10  ;;  %v2719_v8 = vcombine.low %v2623_v11, %v2630_v12  ;;  %v6792_v36 = vcombine.high %v2623_v11, %v2630_v12 }
 0x997   :  { %v8670_v46 = vrot.slane %v2667_v16, %v8587_v42  ;;  %v8673_v38 = vrot.slane %v2683_v17, %v8587_v42  ;;  %v2682_v22 = vrot.slane %v2668_v14, %v8587_v42  ;;  %v2698_v35 = vrot.slane %v2684_v15, %v8587_v42 }
 0x998   :  { %v2710_v48 = vrot.slane %v2703_v19, %v8576_v47  ;;  %v2718_v26 = vrot.slane %v6791_v20, %v8576_v47  ;;  %v2726_v21 = vrot.slane %v2719_v8, %v8576_v47  ;;  %v2734_v27 = vrot.slane %v6792_v36, %v8576_v47 }
 0x999   :  { %v2699_v41 = vcombine.low %v8670_v46, %v8673_v38  ;;  %v2702_v58 = vcombine.high %v2682_v22, %v2698_v35  ;;  %v2700_v59 = vcombine.high %v8670_v46, %v8673_v38  ;;  %v2701_v29 = vcombine.low %v2682_v22, %v2698_v35 }
 0x99a   :  { %v2736_v34 = vcombine.high %v2710_v48, %v2718_v26  ;;  %v2752_v50 = vcombine.high %v2726_v21, %v2734_v27  ;;  %v2735_v51 = vcombine.low %v2710_v48, %v2718_v26  ;;  %v2751_v39 = vcombine.low %v2726_v21, %v2734_v27 }
 0x99b   :  { %v1605_v6 = vcombine.low %v8610_v0, %v8613_v30  ;;  %v1673_v9 = vcombine.low %v8616_v55, %v8619_v2 }
 0x99c   :  { %v2750_v33 = vrot.slane %v2736_v34, %v8587_v42  ;;  %v2766_v54 = vrot.slane %v2752_v50, %v8587_v42  ;;  %v2743_v56 = vrot.slane %v2735_v51, %v8587_v42  ;;  %v2759_v57 = vrot.slane %v2751_v39, %v8587_v42  ;;  %v6793_v50 = vld [vmem:[%s9601_s9] ss:$0 sm:$0xff] }
 0x99e   :  { %v2770_v49 = vcombine.high %v2750_v33, %v2766_v54  ;;  %v2768_v62 = vcombine.high %v2743_v56, %v2759_v57  ;;  %v2767_v53 = vcombine.low %v2743_v56, %v2759_v57  ;;  %v2769_v3 = vcombine.low %v2750_v33, %v2766_v54 }
 0x9a0   :  { %v7593_v52 = vpack.i.bf16 %v2770_v49, %v2702_v58  ;;  %v7583_v32 = vpack.i.bf16 %v2768_v62, %v2700_v59  ;;  %v7588_v31 = vpack.i.bf16 %v2769_v3, %v2701_v29  ;;  %v7686_v3 = vld [vmem:[%s9604_s12] ss:$8 sps:$4 sm:$0xff]   ;;  %v7689_v29 = vld [vmem:[%s9604_s12 + $0x10] ss:$8 sps:$4 sm:$0xff]  }
 0x9a2   :  { %7594 = vrot.lane.b32.xlu0 %v7593_v52, %s8032_s21  ;;  %7584 = vrot.lane.b32.xlu1 %v7583_v32, %s8034_s22  ;;  %v7688_v52 = vld [vmem:[%s9604_s12 + $0x4] ss:$8 sps:$4 sm:$0xff]  }
 0x9a3   :  { %3111 = vmatprep.subr.bf16.mxu0 %v7688_v52 }
 0x9a4   :  { %v7575_v23 = vpop.permute.xlu1 %7574  ;;  %3112 = vmatpush1.bf16.msra.mxu0 %v7686_v3  ;;  %v6803_v3 = vld [vmem:[%s9603_s11] ss:$0 sm:$0xff] }
 0x9a5   :  { %v7577_v43 = vunpack.i.h.bf16 %v7575_v23  ;;  %v7576_v44 = vunpack.i.l.bf16 %v7575_v23  ;;  %v7692_v23 = vld [vmem:[%s9604_s12 + $0x20] ss:$8 sps:$4 sm:$0xff]  }
 0x9a6   :  { %7589 = vrot.lane.b32.xlu1 %v7588_v31, %s8031_s20  ;;  %v7694_v31 = vld [vmem:[%s9604_s12 + $0x24] ss:$8 sps:$4 sm:$0xff]  }
 0x9a7   :  { %v7570_v5 = vpop.permute.xlu0 %7569 }
 0x9a8   :  { %v7572_v7 = vunpack.i.h.bf16 %v7570_v5  ;;  %v7571_v4 = vunpack.i.l.bf16 %v7570_v5  ;;  %v7580_v10 = vpop.permute.xlu1 %7579  ;;  %v7700_v5 = vld [vmem:[%s9604_s12 + $0x44] ss:$8 sps:$4 sm:$0xff]  }
 0x9a9   :  { %v7582_v11 = vunpack.i.h.bf16 %v7580_v10  ;;  %v7581_v12 = vunpack.i.l.bf16 %v7580_v10  ;;  %v7706_v10 = vld [vmem:[%s9604_s12 + $0x64] ss:$8 sps:$4 sm:$0xff]  }
 0x9aa   :  { %v1701_v14 = vsel %vm703_vm2, %v1605_v6, %v7571_v4  ;;  %v1702_v15 = vsel %vm703_vm2, %v1673_v9, %v7572_v7  ;;  %v7698_v6 = vld [vmem:[%s9604_s12 + $0x40] ss:$8 sps:$4 sm:$0xff]   ;;  %v7703_v7 = vld [vmem:[%s9604_s12 + $0x54] ss:$8 sps:$4 sm:$0xff]   ;;  %v7701_v4 = vld [vmem:[%s9604_s12 + $0x50] ss:$8 sps:$4 sm:$0xff]  }
 0x9ab   :  { %v1703_v16 = vsel %vm186_vm0, %v1701_v14, %v7576_v44  ;;  %v1704_v17 = vsel %vm186_vm0, %v1702_v15, %v7577_v43  ;;  %v7697_v43 = vld [vmem:[%s9604_s12 + $0x34] ss:$8 sps:$4 sm:$0xff]   ;;  %v7695_v44 = vld [vmem:[%s9604_s12 + $0x30] ss:$8 sps:$4 sm:$0xff]   ;;  %v7704_v9 = vld [vmem:[%s9604_s12 + $0x60] ss:$8 sps:$4 sm:$0xff]  }
 0x9ac   :  { %v1706_v18 = vsel %vm1705_vm4, %v1703_v16, %v7581_v12  ;;  %v1707_v0 = vsel %vm1705_vm4, %v1704_v17, %v7582_v11  ;;  %v7709_v11 = vld [vmem:[%s9604_s12 + $0x74] ss:$8 sps:$4 sm:$0xff]   ;;  %v7707_v12 = vld [vmem:[%s9604_s12 + $0x70] ss:$8 sps:$4 sm:$0xff]  }
 0x9ad   :  { %v2801_v30 = vpack.c.bf16 %v1707_v0, %v1706_v18 }
 0x9af   :  { %7385 = vmatprep.mubr.bf16.mxu1 %v2801_v30 }
 0xa14   :  { %v7585_v19 = vpop.permute.xlu1 %7584  ;;  %v7595_v20 = vpop.permute.xlu0 %7594 }
 0xa15   :  { %v7587_v55 = vunpack.i.h.bf16 %v7585_v19  ;;  %v7586_v2 = vunpack.i.l.bf16 %v7585_v19  ;;  %v7597_v38 = vunpack.i.h.bf16 %v7595_v20  ;;  %v7596_v48 = vunpack.i.l.bf16 %v7595_v20 }
 0xa17   :  { %v2796_v26 = vsel %vm703_vm2, %v2767_v53, %v7587_v55  ;;  %v2795_v21 = vsel %vm703_vm2, %v2699_v41, %v7586_v2 }
 0xa18   :  { %v7590_v8 = vpop.permute.xlu1 %7589 }
 0xa19   :  { %v7592_v36 = vunpack.i.h.bf16 %v7590_v8  ;;  %v7591_v46 = vunpack.i.l.bf16 %v7590_v8 }
 0xa1b   :  { %v2797_v27 = vsel %vm186_vm0, %v2795_v21, %v7591_v46  ;;  %v2798_v22 = vsel %vm186_vm0, %v2796_v26, %v7592_v36 }
 0xa1c   :  { %v2799_v35 = vsel %vm1705_vm4, %v2797_v27, %v7596_v48  ;;  %v2800_v45 = vsel %vm1705_vm4, %v2798_v22, %v7597_v38 }
 0xa1d   :  { %v2802_v34 = vpack.c.bf16 %v2800_v45, %v2799_v35 }
 0xa1f   :  { %7386 = vmatmul.mubr.bf16.vlgmr.msra.gmra.mrb[48].mxu1 %v2802_v34 }
 0xaf2   :  { %v7387_v51 = vpop.f32.mrb[48].mxu1 }
 0xaf3   :  { %v2908_v39 = vpop.f32.mrb[49].mxu1  ;;  %v2917_v41 = vadd.f32 %v7387_v51, %v6793_v50 }
 0xaf4   :  { %v2909_v33 = vadd.f32 %v6793_v50, %v2908_v39  ;;  %v7388_v54 = vpop.f32.mrb[50].mxu1 }
 0xaf5   :  { %v2911_v56 = vpop.f32.mrb[51].mxu1  ;;  %v8722_v59 = vadd.f32 %v2917_v41, %v8227_v37  ;;  %v2920_v53 = vadd.f32 %v7388_v54, %v6793_v50 }
 0xaf6   :  { %v8715_v57 = vadd.f32 %v2909_v33, %v8211_v25  ;;  %v2912_v58 = vadd.f32 %v6793_v50, %v2911_v56 }
 0xaf7   :  { %v2943_v25 = vmul.f32 %v8722_v59, %v8722_v59  ;;  %v8733_v37 = vadd.f32 %v2920_v53, %v8229_v40  ;;  %v7691_v40 = vld [vmem:[%s9604_s12 + $0x14] ss:$8 sps:$4 sm:$0xff]  }
 0xaf8   :  { %v8718_v49 = vadd.f32 %v2912_v58, %v8213_v28  ;;  %2929 = vadd.xlane.f32.xlu1 %v8715_v57  ;;  %v2941_v62 = vmul.f32 %v8715_v57, %v8715_v57  ;;  %3113 = vmatprep.subr.bf16.mxu0 %v7691_v40 }
 0xaf9   :  { %v2944_v32 = vmul.f32 %v8733_v37, %v8733_v37  ;;  %3114 = vmatpush1.bf16.msra.mxu0 %v7689_v29 }
 0xafa   :  { %2931 = vadd.xlane.f32.xlu0 %v8718_v49  ;;  %v2942_v28 = vmul.f32 %v8718_v49, %v8718_v49  ;;  %3115 = vmatprep.subr.bf16.mxu0 %v7694_v31 }
 0xafc   :  { %2933 = vadd.xlane.f32.xlu1 %v8722_v59 }
 0xafd   :  { %3116 = vmatpush1.bf16.msra.mxu0 %v7692_v23 }
 0xafe   :  { %2945 = vadd.xlane.f32.xlu0 %v2941_v62  ;;  %3117 = vmatprep.subr.bf16.mxu0 %v7697_v43  ;;  %v6802_v62 = vld [vmem:[%s9602_s10] ss:$0 sm:$0xff] }
 0xb00   :  { %2949 = vadd.xlane.f32.xlu1 %v2943_v25 }
 0xb01   :  { %3118 = vmatpush1.bf16.msra.mxu0 %v7695_v44 }
 0xb02   :  { %2947 = vadd.xlane.f32.xlu0 %v2942_v28  ;;  %3119 = vmatprep.subr.bf16.mxu0 %v7700_v5 }
 0xb05   :  { %3120 = vmatpush1.bf16.msra.mxu0 %v7698_v6 }
 0xb06   :  { %2935 = vadd.xlane.f32.xlu0 %v8733_v37  ;;  %3121 = vmatprep.subr.bf16.mxu0 %v7703_v7 }
 0xb09   :  { %3122 = vmatpush1.bf16.msra.mxu0 %v7701_v4 }
 0xb0a   :  { %2951 = vadd.xlane.f32.xlu0 %v2944_v32  ;;  %3123 = vmatprep.subr.bf16.mxu0 %v7706_v10 }
 0xb0d   :  { %3124 = vmatpush1.bf16.msra.mxu0 %v7704_v9 }
 0xb0e   :  { %3125 = vmatprep.subr.bf16.mxu0 %v7709_v11 }
 0xb11   :  { %3126 = vmatpush1.bf16.msra.mxu0 %v7707_v12 }
 0xb85   :  { %v2930_v14 = vpop.xlane.xlu1 %2929 }
 0xb86   :  { %v2937_v16 = vmul.f32 0.0078125, %v2930_v14  ;;  %v7710_v14 = vld [vmem:[%s9606_s14 + $0x40] sm:$0xff]  }
 0xb87   :  { %v2932_v15 = vpop.xlane.xlu0 %2931  ;;  %7113 = vmatprep.subr.bf16.mxu1 %v7710_v14 }
 0xb88   :  { %v2957_v30 = vmul.f32 %v2937_v16, %v2937_v16  ;;  %v2938_v19 = vmul.f32 0.0078125, %v2932_v15  ;;  %v2965_v54 = vsub.f32 %v8715_v57, %v2937_v16  ;;  %v7711_v15 = vld [vmem:[%s9606_s14] sm:$0xff]   ;;  %v7712_v16 = vld [vmem:[%s9606_s14 + $0x48] sm:$0xff]  }
 0xb89   :  { %v2934_v17 = vpop.xlane.xlu1 %2933  ;;  %7114 = vmatpush3.bf16.msra.mxu1 %v7711_v15 }
 0xb8a   :  { %v2939_v18 = vmul.f32 0.0078125, %v2934_v17  ;;  %v2958_v38 = vmul.f32 %v2938_v19, %v2938_v19  ;;  %v2966_v25 = vsub.f32 %v8718_v49, %v2938_v19  ;;  %v7713_v17 = vld [vmem:[%s9606_s14 + $0x8] sm:$0xff]   ;;  %7115 = vmatprep.subr.bf16.mxu1 %v7712_v16  ;;  %v7717_v19 = vld [vmem:[%s9606_s14 + $0x18] sm:$0xff]  }
 0xb8b   :  { %v2946_v0 = vpop.xlane.xlu0 %2945 }
 0xb8c   :  { %v2953_v55 = vmul.f32 0.0078125, %v2946_v0  ;;  %v2959_v20 = vmul.f32 %v2939_v18, %v2939_v18  ;;  %v2967_v40 = vsub.f32 %v8722_v59, %v2939_v18  ;;  %v7714_v18 = vld [vmem:[%s9606_s14 + $0x50] sm:$0xff]  }
 0xb8d   :  { %v2950_v2 = vpop.xlane.xlu1 %2949  ;;  %7116 = vmatpush3.bf16.msra.mxu1 %v7713_v17  ;;  %v7715_v0 = vld [vmem:[%s9606_s14 + $0x10] sm:$0xff]  }
 0xb8e   :  { %v2961_v8 = vsub.f32 %v2953_v55, %v2957_v30  ;;  %v2955_v36 = vmul.f32 0.0078125, %v2950_v2  ;;  %7117 = vmatprep.subr.bf16.mxu1 %v7714_v18  ;;  %v7716_v30 = vld [vmem:[%s9606_s14 + $0x58] sm:$0xff]   ;;  %v7718_v55 = vld [vmem:[%s9606_s14 + $0x60] sm:$0xff]  }
 0xb8f   :  { %v2948_v46 = vpop.xlane.xlu0 %2947  ;;  %v7719_v2 = vld [vmem:[%s9606_s14 + $0x20] sm:$0xff]  }
 0xb90   :  { %v2969_v48 = vadd.f32 1e-06, %v2961_v8  ;;  %v2963_v26 = vsub.f32 %v2955_v36, %v2959_v20  ;;  %v2954_v21 = vmul.f32 0.0078125, %v2948_v46  ;;  %v7720_v20 = vld [vmem:[%s9606_s14 + $0x68] sm:$0xff]   ;;  %v7722_v36 = vld [vmem:[%s9606_s14 + $0x70] sm:$0xff]  }
 0xb91   :  { %7118 = vmatpush3.bf16.msra.mxu1 %v7715_v0  ;;  %v7721_v8 = vld [vmem:[%s9606_s14 + $0x28] sm:$0xff]   ;;  %v7723_v46 = vld [vmem:[%s9606_s14 + $0x30] sm:$0xff]  }
 0xb92   :  { %7878 = vrsqrt.f32 %v2969_v48  ;;  %v2962_v27 = vsub.f32 %v2954_v21, %v2958_v38  ;;  %v2971_v35 = vadd.f32 1e-06, %v2963_v26  ;;  %7119 = vmatprep.subr.bf16.mxu1 %v7716_v30  ;;  %v7724_v38 = vld [vmem:[%s9606_s14 + $0x78] sm:$0xff]   ;;  %v3019_v26 = vld [vmem:[%s9605_s13] sm:$0x3] }
 0xb93   :  { %v2936_v22 = vpop.xlane.xlu0 %2935  ;;  %v7725_v48 = vld [vmem:[%s9606_s14 + $0x38] sm:$0xff]   ;;  %v3024_v21 = vrot.slane %v3019_v26, %v8320_v61 }
 0xb94   :  { %v2970_v45 = vadd.f32 1e-06, %v2962_v27  ;;  %v2940_v34 = vmul.f32 0.0078125, %v2936_v22  ;;  %v3028_v27 = vrot.slane %v3019_v26, %v8326_v63 }
 0xb95   :  { %7120 = vmatpush3.bf16.msra.mxu1 %v7717_v19 }
 0xb96   :  { %7880 = vrsqrt.f32 %v2970_v45  ;;  %v2960_v51 = vmul.f32 %v2940_v34, %v2940_v34  ;;  %v2968_v44 = vsub.f32 %v8733_v37, %v2940_v34  ;;  %7121 = vmatprep.subr.bf16.mxu1 %v7718_v55 }
 0xb97   :  { %v2952_v50 = vpop.xlane.xlu0 %2951  ;;  %7882 = vrsqrt.f32 %v2971_v35 }
 0xb98   :  { %v2956_v39 = vmul.f32 0.0078125, %v2952_v50 }
 0xb99   :  { %7122 = vmatpush3.bf16.msra.mxu1 %v7719_v2 }
 0xb9a   :  { %v2964_v33 = vsub.f32 %v2956_v39, %v2960_v51  ;;  %7123 = vmatprep.subr.bf16.mxu1 %v7720_v20 }
 0xb9c   :  { %v7879_v56 = vpop.eup %7878  ;;  %v2972_v41 = vadd.f32 1e-06, %v2964_v33 }
 0xb9d   :  { %v2977_v58 = vmul.f32 %v7879_v56, %v2965_v54  ;;  %7124 = vmatpush3.bf16.msra.mxu1 %v7721_v8 }
 0xb9e   :  { %7884 = vrsqrt.f32 %v2972_v41  ;;  %7125 = vmatprep.subr.bf16.mxu1 %v7722_v36 }
 0xb9f   :  { %v2987_v52 = vmul.f32 %v6802_v62, %v2977_v58 }
 0xba0   :  { %v7881_v53 = vpop.eup %7880 }
 0xba1   :  { %v2978_v28 = vmul.f32 %v7881_v53, %v2966_v25  ;;  %v7883_v32 = vpop.eup %7882  ;;  %v2997_v31 = vadd.f32 %v6803_v3, %v2987_v52  ;;  %7126 = vmatpush3.bf16.msra.mxu1 %v7723_v46 }
 0xba2   :  { %v2979_v43 = vmul.f32 %v7883_v32, %v2967_v40  ;;  %7127 = vmatprep.subr.bf16.mxu1 %v7724_v38 }
 0xba3   :  { %v2988_v29 = vmul.f32 %v6802_v62, %v2978_v28 }
 0xba4   :  { %v2989_v4 = vmul.f32 %v6802_v62, %v2979_v43 }
 0xba5   :  { %v2998_v23 = vadd.f32 %v6803_v3, %v2988_v29  ;;  %7128 = vmatpush3.bf16.msra.mxu1 %v7725_v48 }
 0xba6   :  { %v2999_v10 = vadd.f32 %v6803_v3, %v2989_v4 }
 0xba7   :  { %v3001_v5 = vpack.c.bf16 %v2998_v23, %v2997_v31 }
 0xba8   :  { %v7885_v6 = vpop.eup %7884 }
 0xba9   :  { %3144 = vmatmul.mubr.bf16.vlgmr.msra.gmra.mrb[36].mxu0 %v3001_v5  ;;  %v2980_v7 = vmul.f32 %v7885_v6, %v2968_v44 }
 0xbaa   :  { %3153 = vmatprep.mubr.bf16.mxu0 %v8030_v1 }
 0xbab   :  { %v2990_v9 = vmul.f32 %v6802_v62, %v2980_v7 }
 0xbad   :  { %v3000_v11 = vadd.f32 %v6803_v3, %v2990_v9 }
 0xbaf   :  { %v3002_v12 = vpack.c.bf16 %v3000_v11, %v2999_v10 }
 0xbb1   :  { %3154 = vmatmul.mubr.bf16.gmra.mrb[40].mxu0 %v3002_v12 }
 0xbb2   :  { %3721 = vmatprep.mubr.bf16.mxu0 %v8030_v1 }
 0xc7c   :  { %v3145_v22 = vpop.f32.mrb[36].mxu0 }
 0xc7d   :  { %v8851_v35 = vadd.f32 %v3145_v22, %v3024_v21  ;;  %v3147_v45 = vpop.f32.mrb[37].mxu0 }
 0xc7e   :  { %v8853_v34 = vadd.f32 %v3147_v45, %v3028_v27  ;;  %v3149_v50 = vpop.f32.mrb[38].mxu0 }
 0xc7f   :  { %v3172_v51 = vmul.f32 0.044715, %v8851_v35  ;;  %v8856_v39 = vadd.f32 %v3149_v50, %v3024_v21  ;;  %v3151_v33 = vpop.f32.mrb[39].mxu0 }
 0xc80   :  { %v3173_v54 = vmul.f32 0.044715, %v8853_v34  ;;  %v8859_v56 = vadd.f32 %v3151_v33, %v3028_v27 }
 0xc81   :  { %v3180_v41 = vmul.f32 %v3172_v51, %v8851_v35  ;;  %v3174_v58 = vmul.f32 0.044715, %v8856_v39 }
 0xc82   :  { %v3181_v62 = vmul.f32 %v3173_v54, %v8853_v34  ;;  %v3175_v25 = vmul.f32 0.044715, %v8859_v56 }
 0xc83   :  { %v3188_v53 = vmul.f32 %v3180_v41, %v8851_v35  ;;  %v3182_v28 = vmul.f32 %v3174_v58, %v8856_v39 }
 0xc84   :  { %v3189_v52 = vmul.f32 %v3181_v62, %v8853_v34  ;;  %v3183_v32 = vmul.f32 %v3175_v25, %v8859_v56  ;;  %v3155_v3 = vpop.f32.mrb[40].mxu0 }
 0xc85   :  { %v3196_v40 = vadd.f32 %v3188_v53, %v8851_v35  ;;  %v3190_v29 = vmul.f32 %v3182_v28, %v8856_v39  ;;  %v8871_v31 = vadd.f32 %v3155_v3, %v3024_v21  ;;  %v3157_v23 = vpop.f32.mrb[41].mxu0  ;;  %v3164_v53 = vmul.f32 0.5, %v8851_v35 }
 0xc86   :  { %v3191_v43 = vmul.f32 %v3183_v32, %v8859_v56  ;;  %v8874_v44 = vadd.f32 %v3157_v23, %v3028_v27  ;;  %v3159_v5 = vpop.f32.mrb[42].mxu0  ;;  %v3197_v6 = vadd.f32 %v3189_v52, %v8853_v34  ;;  %v3166_v28 = vmul.f32 0.5, %v8856_v39 }
 0xc87   :  { %v3204_v7 = vmul.f32 0.7978846, %v3196_v40  ;;  %v3198_v4 = vadd.f32 %v3190_v29, %v8856_v39  ;;  %v3176_v9 = vmul.f32 0.044715, %v8871_v31  ;;  %v3160_v10 = vadd.f32 %v3159_v5, %v3024_v21  ;;  %v3161_v11 = vpop.f32.mrb[43].mxu0 }
 0xc88   :  { %v3177_v12 = vmul.f32 0.044715, %v8874_v44  ;;  %v3162_v14 = vadd.f32 %v3161_v11, %v3028_v27  ;;  %v3199_v15 = vadd.f32 %v3191_v43, %v8859_v56  ;;  %v3205_v16 = vmul.f32 0.7978846, %v3197_v6 }
 0xc89   :  { %7886 = vtanh.f32 %v3204_v7  ;;  %v3206_v17 = vmul.f32 0.7978846, %v3198_v4  ;;  %v3184_v18 = vmul.f32 %v3176_v9, %v8871_v31  ;;  %v3178_v0 = vmul.f32 0.044715, %v3160_v10 }
 0xc8a   :  { %v3185_v30 = vmul.f32 %v3177_v12, %v8874_v44  ;;  %v3179_v19 = vmul.f32 0.044715, %v3162_v14  ;;  %v3207_v55 = vmul.f32 0.7978846, %v3199_v15  ;;  %7888 = vtanh.f32 %v3205_v16 }
 0xc8b   :  { %7890 = vtanh.f32 %v3206_v17  ;;  %v3192_v2 = vmul.f32 %v3184_v18, %v8871_v31  ;;  %v3186_v20 = vmul.f32 %v3178_v0, %v3160_v10  ;;  %v3165_v32 = vmul.f32 0.5, %v8853_v34 }
 0xc8c   :  { %v3193_v8 = vmul.f32 %v3185_v30, %v8874_v44  ;;  %v3187_v36 = vmul.f32 %v3179_v19, %v3162_v14  ;;  %7892 = vtanh.f32 %v3207_v55  ;;  %v3167_v3 = vmul.f32 0.5, %v8859_v56 }
 0xc8d   :  { %v3194_v46 = vmul.f32 %v3186_v20, %v3160_v10  ;;  %v3200_v38 = vadd.f32 %v3192_v2, %v8871_v31  ;;  %v3168_v39 = vmul.f32 0.5, %v8871_v31  ;;  %v3170_v34 = vmul.f32 0.5, %v3160_v10  ;;  %v7728_v31 = vld [vmem:[%s9598_s6 + $0xc4] ss:$12 sps:$4 sm:$0xff]  }
 0xc8e   :  { %v3195_v48 = vmul.f32 %v3187_v36, %v3162_v14  ;;  %v3201_v26 = vadd.f32 %v3193_v8, %v8874_v44  ;;  %v3169_v56 = vmul.f32 0.5, %v8874_v44  ;;  %v3171_v17 = vmul.f32 0.5, %v3162_v14  ;;  %v7726_v8 = vld [vmem:[%s9598_s6 + $0xc0] ss:$12 sps:$4 sm:$0xff]   ;;  %3689 = vmatprep.subr.bf16.mxu0 %v7728_v31 }
 0xc8f   :  { %v3202_v21 = vadd.f32 %v3194_v46, %v3160_v10  ;;  %v3208_v27 = vmul.f32 0.7978846, %v3200_v38  ;;  %3690 = vmatpush1.bf16.msra.mxu0 %v7726_v8  ;;  %v6836_v46 = vld [vmem:[%s9607_s15] ss:$0 sm:$0xff] }
 0xc90   :  { %v3203_v22 = vadd.f32 %v3195_v48, %v3162_v14  ;;  %v3209_v45 = vmul.f32 0.7978846, %v3201_v26 }
 0xc91   :  { %v3210_v50 = vmul.f32 0.7978846, %v3202_v21  ;;  %7894 = vtanh.f32 %v3208_v27 }
 0xc92   :  { %v3211_v51 = vmul.f32 0.7978846, %v3203_v22  ;;  %7896 = vtanh.f32 %v3209_v45 }
 0xc93   :  { %v7887_v33 = vpop.eup %7886  ;;  %7898 = vtanh.f32 %v3210_v50 }
 0xc94   :  { %v7889_v54 = vpop.eup %7888  ;;  %v3220_v41 = vadd.f32 1.0, %v7887_v33  ;;  %7900 = vtanh.f32 %v3211_v51 }
 0xc95   :  { %v7891_v58 = vpop.eup %7890  ;;  %v3221_v62 = vadd.f32 1.0, %v7889_v54 }
 0xc96   :  { %v7893_v25 = vpop.eup %7892  ;;  %v3222_v52 = vadd.f32 1.0, %v7891_v58  ;;  %v3228_v29 = vmul.f32 %v3220_v41, %v3164_v53 }
 0xc97   :  { %v3223_v40 = vadd.f32 1.0, %v7893_v25  ;;  %v3229_v43 = vmul.f32 %v3221_v62, %v3165_v32  ;;  %v7734_v32 = vld [vmem:[%s9598_s6 + $0xf4] ss:$12 sps:$4 sm:$0xff]  }
 0xc98   :  { %v3230_v23 = vmul.f32 %v3222_v52, %v3166_v28  ;;  %v7729_v52 = vld [vmem:[%s9598_s6 + $0xd8] ss:$12 sps:$4 sm:$0xff]  }
 0xc99   :  { %v3231_v5 = vmul.f32 %v3223_v40, %v3167_v3  ;;  %v7735_v3 = vld [vmem:[%s9598_s6 + $0xc8] ss:$12 sps:$4 sm:$0xff]   ;;  %v7732_v40 = vld [vmem:[%s9598_s6 + $0xf0] ss:$12 sps:$4 sm:$0xff]  }
 0xc9a   :  { %v3236_v6 = vpack.c.bf16 %v3230_v23, %v3228_v29  ;;  %7389 = vmatprep.subr.bf16.mxu1 %v7735_v3  ;;  %v7738_v29 = vld [vmem:[%s9598_s6 + $0x10c] ss:$12 sps:$4 sm:$0xff]  }
 0xc9b   :  { %v7895_v7 = vpop.eup %7894  ;;  %v3237_v4 = vpack.c.bf16 %v3231_v5, %v3229_v43  ;;  %v7739_v23 = vld [vmem:[%s9598_s6 + $0xe0] ss:$12 sps:$4 sm:$0xff]   ;;  %v7736_v43 = vld [vmem:[%s9598_s6 + $0x108] ss:$12 sps:$4 sm:$0xff]   ;;  %v7742_v5 = vld [vmem:[%s9598_s6 + $0x124] ss:$12 sps:$4 sm:$0xff]  }
 0xc9c   :  { %v7897_v9 = vpop.eup %7896  ;;  %v3224_v11 = vadd.f32 1.0, %v7895_v7  ;;  %v7740_v7 = vld [vmem:[%s9598_s6 + $0x120] ss:$12 sps:$4 sm:$0xff]  }
 0xc9d   :  { %v7899_v12 = vpop.eup %7898  ;;  %3400 = vmatprep.mubr.bf16.mxu1 %v3237_v4  ;;  %v3225_v35 = vadd.f32 1.0, %v7897_v9  ;;  %v7744_v4 = vld [vmem:[%s9598_s6 + $0x138] ss:$12 sps:$4 sm:$0xff]   ;;  %v7746_v9 = vld [vmem:[%s9598_s6 + $0x13c] ss:$12 sps:$4 sm:$0xff]  }
 0xc9e   :  { %v7901_v15 = vpop.eup %7900  ;;  %3401 = vmatmul.mubr.bf16.vlgmr.msra.gmra.mrb[52].mxu1 %v3236_v6  ;;  %v3226_v16 = vadd.f32 1.0, %v7899_v12  ;;  %v3232_v0 = vmul.f32 %v3224_v11, %v3168_v39  ;;  %v7743_v6 = vld [vmem:[%s9598_s6 + $0xf8] ss:$12 sps:$4 sm:$0xff]   ;;  %v7747_v11 = vld [vmem:[%s9598_s6 + $0x110] ss:$12 sps:$4 sm:$0xff]  }
 0xc9f   :  { %v3227_v18 = vadd.f32 1.0, %v7901_v15  ;;  %v3233_v19 = vmul.f32 %v3225_v35, %v3169_v56  ;;  %7390 = vmatpush3.bf16.msra.mxu1 %v7735_v3  ;;  %v7750_v12 = vld [vmem:[%s9598_s6 + $0x154] ss:$12 sps:$4 sm:$0xff]   ;;  %v7748_v15 = vld [vmem:[%s9598_s6 + $0x150] ss:$12 sps:$4 sm:$0xff]  }
 0xca0   :  { %v3234_v30 = vmul.f32 %v3226_v16, %v3170_v34  ;;  %7391 = vmatprep.subr.bf16.mxu1 %v7739_v23  ;;  %v7751_v35 = vld [vmem:[%s9598_s6 + $0x128] ss:$12 sps:$4 sm:$0xff]   ;;  %v7754_v39 = vld [vmem:[%s9598_s6 + $0x16c] ss:$12 sps:$4 sm:$0xff]  }
 0xca1   :  { %v3235_v55 = vmul.f32 %v3227_v18, %v3171_v17  ;;  %v7755_v34 = vld [vmem:[%s9598_s6 + $0x140] ss:$12 sps:$4 sm:$0xff]   ;;  %v7752_v16 = vld [vmem:[%s9598_s6 + $0x168] ss:$12 sps:$4 sm:$0xff]   ;;  %v7756_v56 = vld [vmem:[%s9598_s6 + $0x158] ss:$12 sps:$4 sm:$0xff]  }
 0xca2   :  { %v3238_v2 = vpack.c.bf16 %v3234_v30, %v3232_v0  ;;  %v7757_v17 = vld [vmem:[%s9598_s6 + $0x170] ss:$12 sps:$4 sm:$0xff]  }
 0xca3   :  { %v3239_v20 = vpack.c.bf16 %v3235_v55, %v3233_v19  ;;  %7392 = vmatpush3.bf16.msra.mxu1 %v7739_v23  ;;  %v6840_v23 = vld [vmem:[%s9597_s5 + $0x1] ss:$0 sm:$0xff] }
 0xca4   :  { %7393 = vmatprep.subr.bf16.mxu1 %v7743_v6 }
 0xca5   :  { %3408 = vmatprep.mubr.bf16.mxu1 %v3239_v20 }
 0xca6   :  { %3409 = vmatmul.mubr.bf16.gmra.mrb[56].mxu1 %v3238_v2 }
 0xca7   :  { %7394 = vmatpush3.bf16.msra.mxu1 %v7743_v6 }
 0xca8   :  { %7395 = vmatprep.subr.bf16.mxu1 %v7747_v11 }
 0xcab   :  { %7396 = vmatpush3.bf16.msra.mxu1 %v7747_v11 }
 0xcac   :  { %7397 = vmatprep.subr.bf16.mxu1 %v7751_v35 }
 0xcaf   :  { %7398 = vmatpush3.bf16.msra.mxu1 %v7751_v35 }
 0xcb0   :  { %7399 = vmatprep.subr.bf16.mxu1 %v7755_v34 }
 0xcb3   :  { %7400 = vmatpush3.bf16.msra.mxu1 %v7755_v34 }
 0xcb4   :  { %7401 = vmatprep.subr.bf16.mxu1 %v7756_v56 }
 0xcb7   :  { %7402 = vmatpush3.bf16.msra.mxu1 %v7756_v56 }
 0xcb8   :  { %7403 = vmatprep.subr.bf16.mxu1 %v7757_v17 }
 0xcbb   :  { %7404 = vmatpush3.bf16.msra.mxu1 %v7757_v17 }
 0xcbc   :  { %7433 = vmatprep.subr.bf16.mxu1 %v8033_v13 }
 0xd71   :  { %v7129_v44 = vpop.f32.mrb[52].mxu1 }
 0xd72   :  { %v7130_v10 = vpop.f32.mrb[53].mxu1 }
 0xd73   :  { %v7131_v14 = vadd.f32 %v7130_v10, %v7129_v44  ;;  %v7132_v36 = vpop.f32.mrb[54].mxu1 }
 0xd74   :  { %v7133_v38 = vpop.f32.mrb[55].mxu1 }
 0xd75   :  { %v3417_v48 = vadd.f32 %v7131_v14, %v8715_v57  ;;  %v7134_v26 = vadd.f32 %v7133_v38, %v7132_v36 }
 0xd77   :  { %v8903_v21 = vadd.f32 %v6836_v46, %v3417_v48  ;;  %v3418_v27 = vadd.f32 %v7134_v26, %v8718_v49 }
 0xd79   :  { %v8906_v22 = vadd.f32 %v6836_v46, %v3418_v27  ;;  %3436 = vadd.xlane.f32.xlu1 %v8903_v21  ;;  %v7135_v45 = vpop.f32.mrb[56].mxu1  ;;  %v3448_v54 = vmul.f32 %v8903_v21, %v8903_v21 }
 0xd7a   :  { %v7136_v50 = vpop.f32.mrb[57].mxu1 }
 0xd7b   :  { %v7137_v51 = vadd.f32 %v7136_v50, %v7135_v45  ;;  %3438 = vadd.xlane.f32.xlu0 %v8906_v22  ;;  %v7138_v33 = vpop.f32.mrb[58].mxu1  ;;  %v3449_v49 = vmul.f32 %v8906_v22, %v8906_v22 }
 0xd7c   :  { %v7139_v41 = vpop.f32.mrb[59].mxu1 }
 0xd7d   :  { %v3419_v57 = vadd.f32 %v7137_v51, %v8722_v59  ;;  %v7140_v58 = vadd.f32 %v7139_v41, %v7138_v33  ;;  %3452 = vadd.xlane.f32.xlu1 %v3448_v54 }
 0xd7f   :  { %v8915_v62 = vadd.f32 %v6836_v46, %v3419_v57  ;;  %v3420_v25 = vadd.f32 %v7140_v58, %v8733_v37  ;;  %3454 = vadd.xlane.f32.xlu0 %v3449_v49  ;;  %v7731_v37 = vld [vmem:[%s9598_s6 + $0xdc] ss:$12 sps:$4 sm:$0xff]  }
 0xd80   :  { %3691 = vmatprep.subr.bf16.mxu0 %v7731_v37 }
 0xd81   :  { %v8918_v53 = vadd.f32 %v6836_v46, %v3420_v25  ;;  %3440 = vadd.xlane.f32.xlu1 %v8915_v62  ;;  %v3450_v28 = vmul.f32 %v8915_v62, %v8915_v62  ;;  %3692 = vmatpush1.bf16.msra.mxu0 %v7729_v52  ;;  %v6839_v52 = vld [vmem:[%s9596_s4 + $0x1] ss:$0 sm:$0xff] }
 0xd82   :  { %3693 = vmatprep.subr.bf16.mxu0 %v7734_v32 }
 0xd83   :  { %3442 = vadd.xlane.f32.xlu0 %v8918_v53  ;;  %v3451_v59 = vmul.f32 %v8918_v53, %v8918_v53 }
 0xd85   :  { %3456 = vadd.xlane.f32.xlu1 %v3450_v28  ;;  %3694 = vmatpush1.bf16.msra.mxu0 %v7732_v40 }
 0xd86   :  { %3695 = vmatprep.subr.bf16.mxu0 %v7738_v29 }
 0xd87   :  { %3458 = vadd.xlane.f32.xlu0 %v3451_v59 }
 0xd89   :  { %3696 = vmatpush1.bf16.msra.mxu0 %v7736_v43 }
 0xd8a   :  { %3697 = vmatprep.subr.bf16.mxu0 %v7742_v5 }
 0xd8d   :  { %3698 = vmatpush1.bf16.msra.mxu0 %v7740_v7 }
 0xd8e   :  { %3699 = vmatprep.subr.bf16.mxu0 %v7746_v9 }
 0xd91   :  { %3700 = vmatpush1.bf16.msra.mxu0 %v7744_v4 }
 0xd92   :  { %3701 = vmatprep.subr.bf16.mxu0 %v7750_v12 }
 0xd95   :  { %3702 = vmatpush1.bf16.msra.mxu0 %v7748_v15 }
 0xd96   :  { %3703 = vmatprep.subr.bf16.mxu0 %v7754_v39 }
 0xd99   :  { %3704 = vmatpush1.bf16.msra.mxu0 %v7752_v16 }
 0xd9a   :  { %7409 = vmatprep.subr.bf16.mxu0 %v8033_v13 }
 0xe06   :  { %v3437_v18 = vpop.xlane.xlu1 %3436 }
 0xe07   :  { %v3444_v0 = vmul.f32 0.0078125, %v3437_v18  ;;  %v6873_v18 = vld [vmem:[%s9599_s7 + $0x3] sm:$0x7] }
 0xe08   :  { %v3439_v30 = vpop.xlane.xlu0 %3438 }
 0xe09   :  { %v3445_v19 = vmul.f32 0.0078125, %v3439_v30  ;;  %v3464_v2 = vmul.f32 %v3444_v0, %v3444_v0  ;;  %v3472_v28 = vsub.f32 %v8903_v21, %v3444_v0  ;;  %v3549_v0 = vrot.slane %v6873_v18, %v8320_v61 }
 0xe0a   :  { %v3453_v55 = vpop.xlane.xlu1 %3452 }
 0xe0b   :  { %v3460_v20 = vmul.f32 0.0078125, %v3453_v55  ;;  %v3465_v31 = vmul.f32 %v3445_v19, %v3445_v19  ;;  %v3473_v37 = vsub.f32 %v8906_v22, %v3445_v19  ;;  %v3553_v19 = vrot.slane %v6873_v18, %v8326_v63 }
 0xe0c   :  { %v3455_v8 = vpop.xlane.xlu0 %3454 }
 0xe0d   :  { %v3468_v44 = vsub.f32 %v3460_v20, %v3464_v2  ;;  %v3461_v10 = vmul.f32 0.0078125, %v3455_v8 }
 0xe0e   :  { %v3441_v14 = vpop.xlane.xlu1 %3440 }
 0xe0f   :  { %v3476_v36 = vadd.f32 1e-06, %v3468_v44  ;;  %v3469_v46 = vsub.f32 %v3461_v10, %v3465_v31  ;;  %v3446_v38 = vmul.f32 0.0078125, %v3441_v14 }
 0xe10   :  { %v3443_v48 = vpop.xlane.xlu0 %3442 }
 0xe11   :  { %7902 = vrsqrt.f32 %v3476_v36  ;;  %v3477_v26 = vadd.f32 1e-06, %v3469_v46  ;;  %v3447_v27 = vmul.f32 0.0078125, %v3443_v48  ;;  %v3466_v50 = vmul.f32 %v3446_v38, %v3446_v38 }
 0xe12   :  { %v3457_v45 = vpop.xlane.xlu1 %3456  ;;  %v3474_v5 = vsub.f32 %v8915_v62, %v3446_v38  ;;  %v3557_v36 = vrot.slane %v6873_v18, %v371_v24 }
 0xe13   :  { %7904 = vrsqrt.f32 %v3477_v26  ;;  %v3462_v51 = vmul.f32 0.0078125, %v3457_v45  ;;  %v3467_v54 = vmul.f32 %v3447_v27, %v3447_v27  ;;  %v3475_v9 = vsub.f32 %v8918_v53, %v3447_v27 }
 0xe14   :  { %v3459_v33 = vpop.xlane.xlu0 %3458 }
 0xe15   :  { %v3470_v41 = vsub.f32 %v3462_v51, %v3466_v50  ;;  %v3463_v57 = vmul.f32 0.0078125, %v3459_v33 }
 0xe17   :  { %v3478_v58 = vadd.f32 1e-06, %v3470_v41  ;;  %v3471_v49 = vsub.f32 %v3463_v57, %v3467_v54 }
 0xe19   :  { %7906 = vrsqrt.f32 %v3478_v58  ;;  %v3479_v25 = vadd.f32 1e-06, %v3471_v49 }
 0xe1b   :  { %v7903_v59 = vpop.eup %7902  ;;  %7908 = vrsqrt.f32 %v3479_v25 }
 0xe1c   :  { %v3484_v32 = vmul.f32 %v7903_v59, %v3472_v28 }
 0xe1d   :  { %v7905_v3 = vpop.eup %7904 }
 0xe1e   :  { %v3485_v40 = vmul.f32 %v7905_v3, %v3473_v37  ;;  %v3494_v29 = vmul.f32 %v6839_v52, %v3484_v32 }
 0xe20   :  { %v3495_v43 = vmul.f32 %v6839_v52, %v3485_v40  ;;  %v3504_v6 = vadd.f32 %v6840_v23, %v3494_v29 }
 0xe22   :  { %v3505_v7 = vadd.f32 %v6840_v23, %v3495_v43 }
 0xe23   :  { %v7907_v4 = vpop.eup %7906 }
 0xe24   :  { %v3508_v11 = vpack.c.bf16 %v3505_v7, %v3504_v6  ;;  %v3486_v12 = vmul.f32 %v7907_v4, %v3474_v5 }
 0xe25   :  { %v7909_v35 = vpop.eup %7908 }
 0xe26   :  { %3722 = vmatmul.mubr.bf16.vlgmr.msra.gmra.mrb[44].mxu0 %v3508_v11  ;;  %7405 = vmatprep.mubr.bf16.mxu1 %v3508_v11  ;;  %v3487_v15 = vmul.f32 %v7909_v35, %v3475_v9  ;;  %v3496_v39 = vmul.f32 %v6839_v52, %v3486_v12 }
 0xe27   :  { %3731 = vmatprep.mubr.bf16.mxu0 %v8030_v1 }
 0xe28   :  { %v3497_v34 = vmul.f32 %v6839_v52, %v3487_v15  ;;  %v3506_v16 = vadd.f32 %v6840_v23, %v3496_v39 }
 0xe2a   :  { %v3507_v56 = vadd.f32 %v6840_v23, %v3497_v34 }
 0xe2c   :  { %v3509_v17 = vpack.c.bf16 %v3507_v56, %v3506_v16 }
 0xe2e   :  { %3732 = vmatmul.mubr.bf16.gmra.mrb[48].mxu0 %v3509_v17  ;;  %7406 = vmatmul.mubr.bf16.vlgmr.msra.gmra.mrb[60].mxu1 %v3509_v17 }
 0xe2f   :  { %7413 = vmatprep.mubr.msk.bf16.mxu0 %vm8035_vm1, %v8033_v13  ;;  %7437 = vmatprep.mubr.msk.bf16.mxu1 %vm8035_vm1, %v8033_v13 }
 0xef9   :  { %v3723_v30 = vpop.f32.mrb[44].mxu0 }
 0xefa   :  { %v3725_v55 = vpop.f32.mrb[45].mxu0  ;;  %v3724_v20 = vadd.f32 %v3723_v30, %v3549_v0 }
 0xefb   :  { %v3727_v2 = vpop.f32.mrb[46].mxu0  ;;  %v3726_v44 = vadd.f32 %v3725_v55, %v3553_v19 }
 0xefc   :  { %v3728_v8 = vadd.f32 %v3727_v2, %v3549_v0  ;;  %v3729_v31 = vpop.f32.mrb[47].mxu0 }
 0xefd   :  { %v3730_v10 = vadd.f32 %v3729_v31, %v3553_v19 }
 0xefe   :  { %v3791_v14 = vpack.c.bf16 %v3728_v8, %v3724_v20 }
 0xeff   :  { %v3793_v46 = vpack.c.bf16 %v3730_v10, %v3726_v44 }
 0xf01   :  { %3808 = vrot.lane.b32.xlu0 %v3793_v46, %s8031_s20  ;;  %3805 = vrot.lane.b32.xlu1 %v3793_v46, %s8032_s21  ;;  %v3733_v38 = vpop.f32.mrb[48].mxu0  ;;  %v7407_v48 = vpop.f32.mrb[60].mxu1 }
 0xf02   :  { %v3734_v26 = vadd.f32 %v3733_v38, %v3549_v0  ;;  %v3785_v27 = vadd.f32 %v7407_v48, %v3557_v36  ;;  %v3735_v45 = vpop.f32.mrb[49].mxu0  ;;  %v3776_v50 = vpop.f32.mrb[61].mxu1 }
 0xf03   :  { %v3736_v51 = vadd.f32 %v3735_v45, %v3553_v19  ;;  %v3737_v33 = vpop.f32.mrb[50].mxu0  ;;  %v7408_v54 = vpop.f32.mrb[62].mxu1  ;;  %v3777_v60 = vadd.f32 %v3776_v50, %v3557_v36 }
 0xf04   :  { %v3738_v41 = vadd.f32 %v3737_v33, %v3549_v0  ;;  %v3788_v57 = vadd.f32 %v7408_v54, %v3557_v36  ;;  %v3739_v58 = vpop.f32.mrb[51].mxu0  ;;  %v3779_v49 = vpop.f32.mrb[63].mxu1 }
 0xf05   :  { %v3740_v24 = vadd.f32 %v3739_v58, %v3553_v19  ;;  %v3780_v25 = vadd.f32 %v3779_v49, %v3557_v36  ;;  %3811 = vrot.lane.b32.xlu1 %v3793_v46, %s8034_s22  ;;  %3800 = vrot.lane.b32.xlu0 %v3791_v14, %s8031_s20 }
 0xf06   :  { %v9020_v28 = vpack.c.bf16 %v3738_v41, %v3734_v26  ;;  %v9022_v59 = vpack.c.bf16 %v3788_v57, %v3785_v27 }
 0xf07   :  { %v9024_v52 = vpack.c.bf16 %v3740_v24, %v3736_v51  ;;  %v9026_v37 = vpack.c.bf16 %v3780_v25, %v3777_v60 }
 0xf09   :  { %3802 = vrot.lane.b32.xlu0 %v3791_v14, %s8034_s22  ;;  %3798 = vrot.lane.b32.xlu1 %v3791_v14, %s8032_s21 }
 0xf2c   :  { %3824 = vxpose.xlu1.c.b16.start.end [1/1] (short) (narrow) %v3793_v46, 32 }
 0xf73   :  { %v3806_v32 = vpop.permute.xlu1 %3805  ;;  %v3809_v3 = vpop.permute.xlu0 %3808 }
 0xf74   :  { %3840 = vxpose.xlu0.c.b16.start.end [1/1] (short) (narrow) %v3806_v32, 32  ;;  %3856 = vxpose.xlu1.c.b16.start.end [1/1] (short) (narrow) %v3809_v3, 32 }
 0xf77   :  { %v3812_v40 = vpop.permute.xlu1 %3811  ;;  %v3801_v5 = vpop.permute.xlu0 %3800 }
 0xf79   :  { %3872 = vxpose.xlu0.c.b16.start.end [1/1] (short) (narrow) %v3812_v40, 32  ;;  %4164 = vxpose.xlu1.c.b16.start.end [1/1] (short) (narrow) %v9026_v37, 32 }
 0xf7b   :  { %v3799_v29 = vpop.permute.xlu1 %3798  ;;  %v3803_v6 = vpop.permute.xlu0 %3802 }
 0xf81   :  { %3815 = vrot.lane.b32.xlu1 %v9026_v37, %s8032_s21 }
 0xf92   :  { %v3832_v23 = vpop.trf.xlu1 }
 0xf93   :  { %7410 = vmatpush3.bf16.msra.mxu0 %v3832_v23 }
 0xf94   :  { %7411 = vmatprep.subr.bf16.mxu0 %v8033_v13 }
 0xf96   :  { %v3833_v43 = vpop.trf.xlu1 }
 0xf97   :  { %7412 = vmatpush3.bf16.msra.mxu0 %v3833_v43 }
 0xf98   :  { %7417 = vmatprep.subr.bf16.mxu0 %v8033_v13 }
 0xf9a   :  { %7414 = vmatmul.mubr.msk.bf16.vlgmr.msra.gmra.mrb[52].mxu0 %vm703_vm2, %v3791_v14 }
 0xf9b   :  { %7421 = vmatprep.mubr.msk.bf16.mxu0 %vm8035_vm1, %v8033_v13 }
 0xfda   :  { %v3848_v7 = vpop.trf.xlu0  ;;  %v3864_v9 = vpop.trf.xlu1 }
 0xfdb   :  { %7418 = vmatpush3.bf16.msra.mxu0 %v3848_v7 }
 0xfdc   :  { %7419 = vmatprep.subr.bf16.mxu0 %v8033_v13 }
 0xfde   :  { %v3849_v4 = vpop.trf.xlu0  ;;  %v3865_v12 = vpop.trf.xlu1 }
 0xfdf   :  { %7420 = vmatpush3.bf16.msra.mxu0 %v3849_v4 }
 0xfe0   :  { %7425 = vmatprep.subr.bf16.mxu0 %v8033_v13 }
 0xfe2   :  { %7422 = vmatmul.mubr.msk.bf16.vlgmr.msra.gmra.mrb[56].mxu0 %vm703_vm2, %v3799_v29  ;;  %v3880_v11 = vpop.trf.xlu0  ;;  %v4172_v15 = vpop.trf.xlu1 }
 0xfe3   :  { %7426 = vmatpush3.bf16.msra.mxu0 %v3864_v9  ;;  %7434 = vmatpush3.bf16.msra.mxu1 %v3880_v11 }
 0xfe4   :  { %7427 = vmatprep.subr.bf16.mxu0 %v8033_v13  ;;  %7435 = vmatprep.subr.bf16.mxu1 %v8033_v13 }
 0xfe5   :  { %7429 = vmatprep.mubr.msk.bf16.mxu0 %vm8035_vm1, %v8033_v13 }
 0xfe6   :  { %v3881_v35 = vpop.trf.xlu0  ;;  %v9064_v60 = vpop.trf.xlu1 }
 0xfe7   :  { %7428 = vmatpush3.bf16.msra.mxu0 %v3865_v12  ;;  %7436 = vmatpush3.bf16.msra.mxu1 %v3881_v35 }
 0xfea   :  { %7430 = vmatmul.mubr.msk.bf16.vlgmr.msra.gmra.mrb[60].mxu0 %vm703_vm2, %v3801_v5  ;;  %7438 = vmatmul.mubr.msk.bf16.vlgmr.msra.gmra.mrb[64].mxu1 %vm703_vm2, %v3803_v6 }
 0xfeb   :  { %7443 = vmatprep.mubr.msk.bf16.mxu0 %vm888_vm3, %v4172_v15 }
 0xff3   :  { %v3816_v24 = vpop.permute.xlu1 %3815 }
0x106d   :  { %v3925_v39 = vpop.f32.mrb[52].mxu0 }
0x106e   :  { %v4064_v34 = vmul.f32 0.17677669, %v3925_v39  ;;  %v7415_v16 = vpop.f32.mrb[53].mxu0 }
0x106f   :  { %v3928_v56 = vpop.f32.mrb[54].mxu0 }
0x1070   :  { %v4065_v17 = vmul.f32 0.17677669, %v3928_v56  ;;  %v7416_v18 = vpop.f32.mrb[55].mxu0  ;;  %v4072_v0 = vsel %vm888_vm3, %v4064_v34, -inf }
0x1071   :  { %4073 = vmax.xlane.f32.xlu1 %v4072_v0 }
0x1072   :  { %v4075_v30 = vsel %vm888_vm3, %v4065_v17, -inf }
0x1073   :  { %4076 = vmax.xlane.f32.xlu0 %v4075_v30 }
0x10b5   :  { %v3969_v19 = vpop.f32.mrb[56].mxu0 }
0x10b6   :  { %v4066_v55 = vmul.f32 0.17677669, %v3969_v19  ;;  %v7423_v2 = vpop.f32.mrb[57].mxu0 }
0x10b7   :  { %v3972_v20 = vpop.f32.mrb[58].mxu0 }
0x10b8   :  { %v4067_v8 = vmul.f32 0.17677669, %v3972_v20  ;;  %v7424_v31 = vpop.f32.mrb[59].mxu0  ;;  %v4078_v44 = vsel %vm888_vm3, %v4066_v55, -inf }
0x10b9   :  { %4079 = vmax.xlane.f32.xlu1 %v4078_v44 }
0x10ba   :  { %v4081_v10 = vsel %vm888_vm3, %v4067_v8, -inf }
0x10bb   :  { %4082 = vmax.xlane.f32.xlu0 %v4081_v10 }
0x10bd   :  { %v4013_v14 = vpop.f32.mrb[60].mxu0  ;;  %v4057_v36 = vpop.f32.mrb[64].mxu1 }
0x10be   :  { %v4070_v46 = vmul.f32 0.17677669, %v4057_v36  ;;  %v7431_v38 = vpop.f32.mrb[61].mxu0  ;;  %v7439_v48 = vpop.f32.mrb[65].mxu1  ;;  %v4068_v33 = vmul.f32 0.17677669, %v4013_v14 }
0x10bf   :  { %v4016_v26 = vpop.f32.mrb[62].mxu0  ;;  %v4060_v27 = vpop.f32.mrb[66].mxu1 }
0x10c0   :  { %v4071_v45 = vmul.f32 0.17677669, %v4060_v27  ;;  %v7432_v50 = vpop.f32.mrb[63].mxu0  ;;  %v7440_v51 = vpop.f32.mrb[67].mxu1  ;;  %v4090_v54 = vsel %vm888_vm3, %v4070_v46, -inf  ;;  %v4084_v58 = vsel %vm888_vm3, %v4068_v33, -inf }
0x10c1   :  { %v4069_v41 = vmul.f32 0.17677669, %v4016_v26  ;;  %4091 = vmax.xlane.f32.xlu1 %v4090_v54 }
0x10c2   :  { %v4093_v57 = vsel %vm888_vm3, %v4071_v45, -inf }
0x10c3   :  { %4094 = vmax.xlane.f32.xlu0 %v4093_v57  ;;  %v4087_v49 = vsel %vm888_vm3, %v4069_v41, -inf }
0x10c5   :  { %4085 = vmax.xlane.f32.xlu1 %v4084_v58 }
0x10c7   :  { %4088 = vmax.xlane.f32.xlu0 %v4087_v49 }
0x10d6   :  { %3818 = vrot.lane.b32.xlu1 %v9026_v37, %s8031_s20 }
0x10da   :  { %4898 = vrot.lane.b32.xlu1 %v9024_v52, %s8032_s21 }
0x10de   :  { %4904 = vrot.lane.b32.xlu1 %v9024_v52, %s8034_s22 }
0x10e2   :  { %4891 = vrot.lane.b32.xlu1 %v9020_v28, %s8032_s21 }
0x10f4   :  { %4180 = vxpose.xlu0.c.b16.start.end [1/1] (short) (narrow) %v3816_v24, 32 }
0x10fe   :  { %v4074_v25 = vpop.xlane.xlu1 %4073 }
0x10ff   :  { %v4096_v32 = vsub.f32 %v4064_v34, %v4074_v25 }
0x1100   :  { %v4077_v3 = vpop.xlane.xlu0 %4076 }
0x1101   :  { %3821 = vrot.lane.b32.xlu0 %v9026_v37, %s8034_s22  ;;  %v4104_v40 = vmul.f32 1.442695, %v4096_v32  ;;  %v4097_v29 = vsub.f32 %v4065_v17, %v4077_v3 }
0x1103   :  { %7910 = vpow2.f32 %v4104_v40  ;;  %v4106_v23 = vmul.f32 1.442695, %v4097_v29 }
0x1105   :  { %4901 = vrot.lane.b32.xlu0 %v9024_v52, %s8031_s20  ;;  %7912 = vpow2.f32 %v4106_v23 }
0x110d   :  { %v9070_v43 = vpop.eup %7910 }
0x110e   :  { %v4120_v5 = vsel %vm888_vm3, %v9070_v43, 0.0 }
0x110f   :  { %v9074_v6 = vpop.eup %7912 }
0x1110   :  { %v4123_v37 = vsel %vm888_vm3, %v9074_v6, 0.0 }
0x1124   :  { %4121 = vadd.xlane.f32.xlu0 %v4120_v5 }
0x1128   :  { %4124 = vadd.xlane.f32.xlu0 %v4123_v37 }
0x1146   :  { %v4080_v7 = vpop.xlane.xlu1 %4079 }
0x1147   :  { %v4098_v4 = vsub.f32 %v4066_v55, %v4080_v7 }
0x1148   :  { %v4083_v9 = vpop.xlane.xlu0 %4082 }
0x1149   :  { %v4108_v11 = vmul.f32 1.442695, %v4098_v4  ;;  %v4099_v12 = vsub.f32 %v4067_v8, %v4083_v9 }
0x114b   :  { %7914 = vpow2.f32 %v4108_v11  ;;  %v4110_v35 = vmul.f32 1.442695, %v4099_v12 }
0x114d   :  { %7916 = vpow2.f32 %v4110_v35 }
0x114e   :  { %v4092_v15 = vpop.xlane.xlu1 %4091 }
0x114f   :  { %v4102_v39 = vsub.f32 %v4070_v46, %v4092_v15 }
0x1150   :  { %v4095_v34 = vpop.xlane.xlu0 %4094 }
0x1151   :  { %v4103_v16 = vsub.f32 %v4071_v45, %v4095_v34  ;;  %v4116_v56 = vmul.f32 1.442695, %v4102_v39 }
0x1152   :  { %v4086_v18 = vpop.xlane.xlu1 %4085 }
0x1153   :  { %v4118_v17 = vmul.f32 1.442695, %v4103_v16  ;;  %7918 = vpow2.f32 %v4116_v56  ;;  %v4100_v0 = vsub.f32 %v4068_v33, %v4086_v18 }
0x1154   :  { %v4089_v30 = vpop.xlane.xlu0 %4088 }
0x1155   :  { %v9078_v19 = vpop.eup %7914  ;;  %v4101_v2 = vsub.f32 %v4069_v41, %v4089_v30  ;;  %7920 = vpow2.f32 %v4118_v17  ;;  %v4112_v55 = vmul.f32 1.442695, %v4100_v0 }
0x1156   :  { %v4126_v20 = vsel %vm888_vm3, %v9078_v19, 0.0  ;;  %v3819_v33 = vpop.permute.xlu1 %3818 }
0x1157   :  { %v7917_v8 = vpop.eup %7916  ;;  %v4114_v31 = vmul.f32 1.442695, %v4101_v2  ;;  %4127 = vadd.xlane.f32.xlu0 %v4126_v20 }
0x1158   :  { %v4129_v44 = vsel %vm888_vm3, %v7917_v8, 0.0 }
0x1159   :  { %7922 = vpow2.f32 %v4114_v31 }
0x115a   :  { %7924 = vpow2.f32 %v4112_v55  ;;  %v4188_v10 = vpop.trf.xlu0  ;;  %v4899_v54 = vpop.permute.xlu1 %4898 }
0x115b   :  { %4130 = vadd.xlane.f32.xlu0 %v4129_v44  ;;  %7449 = vmatprep.mubr.msk.bf16.mxu1 %vm888_vm3, %v4188_v10 }
0x115d   :  { %v9084_v14 = vpop.eup %7918 }
0x115e   :  { %v4138_v36 = vsel %vm888_vm3, %v9084_v14, 0.0  ;;  %v4189_v50 = vpop.trf.xlu0  ;;  %v4905_v57 = vpop.permute.xlu1 %4904 }
0x115f   :  { %v7921_v46 = vpop.eup %7920  ;;  %4139 = vadd.xlane.f32.xlu1 %v4138_v36 }
0x1160   :  { %v4141_v48 = vsel %vm888_vm3, %v7921_v46, 0.0 }
0x1162   :  { %v4892_v5 = vpop.permute.xlu1 %4891 }
0x1163   :  { %v9088_v38 = vpop.eup %7922  ;;  %4142 = vadd.xlane.f32.xlu1 %v4141_v48 }
0x1164   :  { %v9091_v26 = vpop.eup %7924  ;;  %v4135_v27 = vsel %vm888_vm3, %v9088_v38, 0.0 }
0x1165   :  { %4136 = vadd.xlane.f32.xlu0 %v4135_v27  ;;  %v4132_v45 = vsel %vm888_vm3, %v9091_v26, 0.0 }
0x1167   :  { %4133 = vadd.xlane.f32.xlu1 %v4132_v45 }
0x1173   :  { %v3822_v51 = vpop.permute.xlu0 %3821 }
0x1177   :  { %v4902_v41 = vpop.permute.xlu0 %4901 }
0x1178   :  { %4895 = vrot.lane.b32.xlu1 %v9020_v28, %s8034_s22 }
0x117b   :  { %4893 = vrot.lane.b32.xlu0 %v9020_v28, %s8031_s20 }
0x1199   :  { %4212 = vxpose.xlu0.c.b16.start.end [1/1] (short) (narrow) %v3822_v51, 32 }
0x119b   :  { %4196 = vxpose.xlu1.c.b16.start.end [1/1] (short) (narrow) %v3819_v33, 32 }
0x119e   :  { %4917 = vxpose.xlu0.c.b16.start.end [1/1] (short) (narrow) %v9024_v52, 32 }
0x11a0   :  { %4933 = vxpose.xlu1.c.b16.start.end [1/1] (short) (narrow) %v4899_v54, 32 }
0x11a3   :  { %4949 = vxpose.xlu0.c.b16.start.end [1/1] (short) (narrow) %v4902_v41, 32 }
0x11a5   :  { %4965 = vxpose.xlu1.c.b16.start.end [1/1] (short) (narrow) %v4905_v57, 32 }
0x11b1   :  { %v4122_v58 = vpop.xlane.xlu0 %4121 }
0x11b2   :  { %7926 = vrcp.f32 %v4122_v58 }
0x11b5   :  { %v4125_v49 = vpop.xlane.xlu0 %4124 }
0x11b6   :  { %7928 = vrcp.f32 %v4125_v49 }
0x11bc   :  { %v7927_v24 = vpop.eup %7926 }
0x11bd   :  { %v4152_v32 = vmul.f32 %v7927_v24, %v9070_v43 }
0x11c0   :  { %v7929_v25 = vpop.eup %7928 }
0x11c1   :  { %v4153_v3 = vmul.f32 %v7929_v25, %v9074_v6 }
0x11c3   :  { %v4160_v40 = vpack.c.bf16 %v4153_v3, %v4152_v32 }
0x11c5   :  { %7549 = vmatprep.subr.msk.bf16.mxu0 %vm888_vm3, %v4160_v40  ;;  %v4235_v52 = vsel %vm888_vm3, %v4160_v40, 0 }
0x11c6   :  { %7442 = vmatpush3.bf16.xpose.msra.mxu0 %v4235_v52 }
0x11cd   :  { %7444 = vmatmul.mubr.msk.bf16.vlgmr.msra.gmra.mrb[64].mxu0 %vm888_vm3, %v9064_v60 }
0x11e4   :  { %v4128_v29 = vpop.xlane.xlu0 %4127 }
0x11e5   :  { %7930 = vrcp.f32 %v4128_v29 }
0x11e8   :  { %v4131_v23 = vpop.xlane.xlu0 %4130 }
0x11e9   :  { %7932 = vrcp.f32 %v4131_v23 }
0x11ec   :  { %v4140_v37 = vpop.xlane.xlu1 %4139 }
0x11ed   :  { %7934 = vrcp.f32 %v4140_v37 }
0x11ef   :  { %v7931_v7 = vpop.eup %7930 }
0x11f0   :  { %v4143_v43 = vpop.xlane.xlu1 %4142  ;;  %v4154_v9 = vmul.f32 %v7931_v7, %v9078_v19 }
0x11f1   :  { %7936 = vrcp.f32 %v4143_v43 }
0x11f2   :  { %v4137_v6 = vpop.xlane.xlu0 %4136 }
0x11f3   :  { %v7933_v4 = vpop.eup %7932  ;;  %7938 = vrcp.f32 %v4137_v6 }
0x11f4   :  { %v4155_v11 = vmul.f32 %v7933_v4, %v7917_v8  ;;  %v4134_v12 = vpop.xlane.xlu1 %4133 }
0x11f5   :  { %7940 = vrcp.f32 %v4134_v12 }
0x11f6   :  { %v4161_v35 = vpack.c.bf16 %v4155_v11, %v4154_v9  ;;  %v4894_v39 = vpop.permute.xlu0 %4893 }
0x11f7   :  { %v7935_v15 = vpop.eup %7934 }
0x11f8   :  { %7550 = vmatprep.subr.msk.bf16.mxu1 %vm888_vm3, %v4161_v35  ;;  %v4293_v60 = vsel %vm888_vm3, %v4161_v35, 0  ;;  %v4158_v16 = vmul.f32 %v7935_v15, %v9084_v14  ;;  %v4896_v18 = vpop.permute.xlu1 %4895 }
0x11f9   :  { %7448 = vmatpush3.bf16.xpose.msra.mxu1 %v4293_v60 }
0x11fb   :  { %v7937_v34 = vpop.eup %7936 }
0x11fc   :  { %v4159_v56 = vmul.f32 %v7937_v34, %v7921_v46 }
0x11fd   :  { %v7939_v17 = vpop.eup %7938 }
0x11fe   :  { %v4163_v0 = vpack.c.bf16 %v4159_v56, %v4158_v16  ;;  %v4157_v20 = vmul.f32 %v7939_v17, %v9088_v38 }
0x11ff   :  { %v4220_v30 = vpop.trf.xlu0  ;;  %v7941_v19 = vpop.eup %7940 }
0x1200   :  { %7450 = vmatmul.mubr.msk.bf16.vlgmr.msra.gmra.mrb[68].mxu1 %vm888_vm3, %v4189_v50  ;;  %7552 = vmatprep.subr.msk.bf16.mxu1 %vm888_vm3, %v4163_v0  ;;  %v4409_v2 = vsel %vm888_vm3, %v4163_v0, 0  ;;  %v4156_v55 = vmul.f32 %v7941_v19, %v9091_v26 }
0x1201   :  { %7461 = vmatprep.mubr.msk.bf16.mxu1 %vm888_vm3, %v4220_v30  ;;  %v4204_v8 = vpop.trf.xlu1  ;;  %7460 = vmatpush3.bf16.xpose.msra.mxu1 %v4409_v2 }
0x1202   :  { %v4162_v31 = vpack.c.bf16 %v4157_v20, %v4156_v55  ;;  %7473 = vmatprep.subr.bf16.mxu1 %v8033_v13  ;;  %7455 = vmatprep.mubr.msk.bf16.mxu0 %vm888_vm3, %v4204_v8 }
0x1203   :  { %v4221_v44 = vpop.trf.xlu0 }
0x1204   :  { %7551 = vmatprep.subr.msk.bf16.mxu0 %vm888_vm3, %v4162_v31  ;;  %v4351_v10 = vsel %vm888_vm3, %v4162_v31, 0 }
0x1205   :  { %v4205_v14 = vpop.trf.xlu1  ;;  %7454 = vmatpush3.bf16.xpose.msra.mxu0 %v4351_v10 }
0x1206   :  { %7465 = vmatprep.subr.bf16.mxu0 %v8033_v13 }
0x1207   :  { %v4925_v36 = vpop.trf.xlu0 }
0x1208   :  { %7462 = vmatmul.mubr.msk.bf16.vlgmr.msra.gmra.mrb[72].mxu1 %vm888_vm3, %v4221_v44 }
0x1209   :  { %v4941_v46 = vpop.trf.xlu1  ;;  %7477 = vmatprep.mubr.msk.bf16.mxu1 %vm8035_vm1, %v8033_v13 }
0x120a   :  { %7474 = vmatpush3.bf16.msra.mxu1 %v4941_v46 }
0x120b   :  { %v4926_v38 = vpop.trf.xlu0  ;;  %7475 = vmatprep.subr.bf16.mxu1 %v8033_v13 }
0x120c   :  { %7456 = vmatmul.mubr.msk.bf16.vlgmr.msra.gmra.mrb[68].mxu0 %vm888_vm3, %v4205_v14 }
0x120d   :  { %v4942_v48 = vpop.trf.xlu1  ;;  %7466 = vmatpush3.bf16.msra.mxu0 %v4925_v36  ;;  %7469 = vmatprep.mubr.msk.bf16.mxu0 %vm8035_vm1, %v8033_v13 }
0x120e   :  { %7476 = vmatpush3.bf16.msra.mxu1 %v4942_v48  ;;  %7467 = vmatprep.subr.bf16.mxu0 %v8033_v13 }
0x120f   :  { %7489 = vmatprep.subr.bf16.mxu1 %v8033_v13  ;;  %v4957_v26 = vpop.trf.xlu0 }
0x1211   :  { %v4973_v27 = vpop.trf.xlu1  ;;  %7468 = vmatpush3.bf16.msra.mxu0 %v4926_v38  ;;  %7478 = vmatmul.mubr.msk.bf16.vlgmr.msra.gmra.mrb[76].mxu1 %vm703_vm2, %v4892_v5 }
0x1212   :  { %7490 = vmatpush3.bf16.msra.mxu1 %v4973_v27  ;;  %7481 = vmatprep.subr.bf16.mxu0 %v8033_v13 }
0x1213   :  { %7491 = vmatprep.subr.bf16.mxu1 %v8033_v13  ;;  %7493 = vmatprep.mubr.msk.bf16.mxu1 %vm8035_vm1, %v8033_v13  ;;  %v4958_v50 = vpop.trf.xlu0 }
0x1214   :  { %7470 = vmatmul.mubr.msk.bf16.vlgmr.msra.gmra.mrb[72].mxu0 %vm703_vm2, %v9020_v28 }
0x1215   :  { %v4974_v45 = vpop.trf.xlu1  ;;  %7482 = vmatpush3.bf16.msra.mxu0 %v4957_v26  ;;  %7485 = vmatprep.mubr.msk.bf16.mxu0 %vm8035_vm1, %v8033_v13 }
0x1216   :  { %7492 = vmatpush3.bf16.msra.mxu1 %v4974_v45  ;;  %7483 = vmatprep.subr.bf16.mxu0 %v8033_v13 }
0x1219   :  { %7484 = vmatpush3.bf16.msra.mxu0 %v4958_v50  ;;  %7494 = vmatmul.mubr.msk.bf16.vlgmr.msra.gmra.mrb[80].mxu1 %vm703_vm2, %v4896_v18 }
0x121c   :  { %7486 = vmatmul.mubr.msk.bf16.vlgmr.msra.gmra.mrb[76].mxu0 %vm703_vm2, %v4894_v39 }
0x12a0   :  { %v9144_v51 = vpop.f32.mrb[64].mxu0 }
0x12a1   :  { %v9146_v33 = vpop.f32.mrb[65].mxu0 }
0x12a2   :  { %v9148_v54 = vpop.f32.mrb[66].mxu0 }
0x12a3   :  { %v9150_v28 = vpop.f32.mrb[67].mxu0 }
0x12d3   :  { %v9152_v41 = vpop.f32.mrb[68].mxu1 }
0x12d4   :  { %v9154_v57 = vpop.f32.mrb[69].mxu1 }
0x12d5   :  { %v9156_v58 = vpop.f32.mrb[70].mxu1 }
0x12d6   :  { %v9158_v13 = vpop.f32.mrb[71].mxu1 }
0x12db   :  { %v9160_v49 = vpop.f32.mrb[72].mxu1 }
0x12dc   :  { %v9162_v24 = vpop.f32.mrb[73].mxu1 }
0x12dd   :  { %v9164_v25 = vpop.f32.mrb[74].mxu1 }
0x12de   :  { %v9166_v32 = vpop.f32.mrb[75].mxu1 }
0x12df   :  { %v9168_v3 = vpop.f32.mrb[68].mxu0 }
0x12e0   :  { %v9170_v40 = vpop.f32.mrb[69].mxu0 }
0x12e1   :  { %v9172_v52 = vpop.f32.mrb[70].mxu0 }
0x12e2   :  { %v9174_v29 = vpop.f32.mrb[71].mxu0 }
0x12e4   :  { %v5062_v23 = vpop.f32.mrb[76].mxu1 }
0x12e5   :  { %v7479_v5 = vpop.f32.mrb[77].mxu1  ;;  %v5159_v11 = vmul.f32 0.17677669, %v5062_v23 }
0x12e6   :  { %v5065_v37 = vpop.f32.mrb[78].mxu1 }
0x12e7   :  { %v5018_v7 = vpop.f32.mrb[72].mxu0  ;;  %v7480_v43 = vpop.f32.mrb[79].mxu1  ;;  %v5160_v15 = vmul.f32 0.17677669, %v5065_v37  ;;  %v5171_v17 = vsel %vm888_vm3, %v5159_v11, -inf }
0x12e8   :  { %v5157_v6 = vmul.f32 0.17677669, %v5018_v7  ;;  %v7471_v4 = vpop.f32.mrb[73].mxu0 }
0x12e9   :  { %v5021_v9 = vpop.f32.mrb[74].mxu0  ;;  %v5174_v2 = vsel %vm888_vm3, %v5160_v15, -inf }
0x12ea   :  { %v5158_v12 = vmul.f32 0.17677669, %v5021_v9  ;;  %v7472_v35 = vpop.f32.mrb[75].mxu0  ;;  %v5165_v60 = vsel %vm888_vm3, %v5157_v6, -inf }
0x12eb   :  { %5166 = vmax.xlane.f32.xlu0 %v5165_v60 }
0x12ec   :  { %v5150_v39 = vpop.f32.mrb[80].mxu1  ;;  %v5168_v34 = vsel %vm888_vm3, %v5158_v12, -inf }
0x12ed   :  { %v7495_v16 = vpop.f32.mrb[81].mxu1  ;;  %5169 = vmax.xlane.f32.xlu1 %v5168_v34  ;;  %v5163_v20 = vmul.f32 0.17677669, %v5150_v39 }
0x12ee   :  { %v5153_v56 = vpop.f32.mrb[82].mxu1 }
0x12ef   :  { %v7496_v18 = vpop.f32.mrb[83].mxu1  ;;  %5172 = vmax.xlane.f32.xlu0 %v5171_v17  ;;  %v5106_v0 = vpop.f32.mrb[76].mxu0  ;;  %v5164_v10 = vmul.f32 0.17677669, %v5153_v56  ;;  %v5183_v36 = vsel %vm888_vm3, %v5163_v20, -inf }
0x12f0   :  { %v5161_v30 = vmul.f32 0.17677669, %v5106_v0  ;;  %v7487_v19 = vpop.f32.mrb[77].mxu0 }
0x12f1   :  { %5175 = vmax.xlane.f32.xlu1 %v5174_v2  ;;  %v5109_v55 = vpop.f32.mrb[78].mxu0  ;;  %v5186_v46 = vsel %vm888_vm3, %v5164_v10, -inf }
0x12f2   :  { %v9180_v8 = vmul.f32 0.17677669, %v5109_v55  ;;  %v7488_v31 = vpop.f32.mrb[79].mxu0  ;;  %v5177_v44 = vsel %vm888_vm3, %v5161_v30, -inf }
0x12f3   :  { %5178 = vmax.xlane.f32.xlu0 %v5177_v44 }
0x12f4   :  { %v5180_v14 = vsel %vm888_vm3, %v9180_v8, -inf }
0x12f5   :  { %5181 = vmax.xlane.f32.xlu1 %v5180_v14 }
0x12f7   :  { %5184 = vmax.xlane.f32.xlu0 %v5183_v36 }
0x12f9   :  { %5187 = vmax.xlane.f32.xlu1 %v5186_v46 }
0x130d   :  { %4908 = vrot.lane.b32.xlu0 %v9022_v59, %s8032_s21 }
0x1311   :  { %4914 = vrot.lane.b32.xlu0 %v9022_v59, %s8034_s22 }
0x1378   :  { %v5167_v38 = vpop.xlane.xlu0 %5166 }
0x1379   :  { %v5189_v48 = vsub.f32 %v5157_v6, %v5167_v38 }
0x137a   :  { %v5170_v26 = vpop.xlane.xlu1 %5169 }
0x137b   :  { %v5197_v27 = vmul.f32 1.442695, %v5189_v48  ;;  %v5190_v45 = vsub.f32 %v5158_v12, %v5170_v26 }
0x137c   :  { %v5173_v50 = vpop.xlane.xlu0 %5172 }
0x137d   :  { %7942 = vpow2.f32 %v5197_v27  ;;  %v5191_v23 = vsub.f32 %v5159_v11, %v5173_v50  ;;  %v5199_v37 = vmul.f32 1.442695, %v5190_v45 }
0x137e   :  { %v5176_v5 = vpop.xlane.xlu1 %5175 }
0x137f   :  { %v5201_v7 = vmul.f32 1.442695, %v5191_v23  ;;  %v5192_v43 = vsub.f32 %v5160_v15, %v5176_v5 }
0x1380   :  { %v5179_v4 = vpop.xlane.xlu0 %5178 }
0x1381   :  { %7944 = vpow2.f32 %v5201_v7  ;;  %v5193_v9 = vsub.f32 %v5161_v30, %v5179_v4  ;;  %v5203_v60 = vmul.f32 1.442695, %v5192_v43 }
0x1382   :  { %v5182_v35 = vpop.xlane.xlu1 %5181  ;;  %7946 = vpow2.f32 %v5199_v37 }
0x1383   :  { %v5205_v39 = vmul.f32 1.442695, %v5193_v9  ;;  %v5194_v46 = vsub.f32 %v9180_v8, %v5182_v35 }
0x1384   :  { %v5185_v34 = vpop.xlane.xlu0 %5184 }
0x1385   :  { %7948 = vpow2.f32 %v5205_v39  ;;  %v5195_v6 = vsub.f32 %v5163_v20, %v5185_v34  ;;  %v5207_v38 = vmul.f32 1.442695, %v5194_v46 }
0x1386   :  { %v5188_v16 = vpop.xlane.xlu1 %5187  ;;  %7950 = vpow2.f32 %v5203_v60 }
0x1387   :  { %v9191_v56 = vpop.eup %7942  ;;  %v5209_v12 = vmul.f32 1.442695, %v5195_v6  ;;  %v5196_v11 = vsub.f32 %v5164_v10, %v5188_v16 }
0x1388   :  { %v5213_v17 = vsel %vm888_vm3, %v9191_v56, 0.0  ;;  %v4909_v27 = vpop.permute.xlu0 %4908 }
0x1389   :  { %7952 = vpow2.f32 %v5209_v12  ;;  %v5211_v15 = vmul.f32 1.442695, %v5196_v11  ;;  %5214 = vadd.xlane.f32.xlu1 %v5213_v17 }
0x138b   :  { %v9195_v18 = vpop.eup %7944  ;;  %7954 = vpow2.f32 %v5211_v15 }
0x138c   :  { %v5219_v0 = vsel %vm888_vm3, %v9195_v18, 0.0  ;;  %v7947_v30 = vpop.eup %7946  ;;  %7956 = vpow2.f32 %v5207_v38  ;;  %v4915_v45 = vpop.permute.xlu0 %4914 }
0x138d   :  { %5220 = vadd.xlane.f32.xlu1 %v5219_v0  ;;  %v5216_v2 = vsel %vm888_vm3, %v7947_v30, 0.0 }
0x138f   :  { %v9199_v19 = vpop.eup %7948 }
0x1390   :  { %v5225_v55 = vsel %vm888_vm3, %v9199_v19, 0.0  ;;  %v7951_v20 = vpop.eup %7950 }
0x1391   :  { %5217 = vadd.xlane.f32.xlu1 %v5216_v2  ;;  %5226 = vadd.xlane.f32.xlu0 %v5225_v55  ;;  %v5222_v44 = vsel %vm888_vm3, %v7951_v20, 0.0 }
0x1393   :  { %v9204_v31 = vpop.eup %7952 }
0x1394   :  { %v5231_v10 = vsel %vm888_vm3, %v9204_v31, 0.0 }
0x1395   :  { %v7955_v14 = vpop.eup %7954  ;;  %5223 = vadd.xlane.f32.xlu1 %v5222_v44  ;;  %5232 = vadd.xlane.f32.xlu0 %v5231_v10 }
0x1396   :  { %v5234_v36 = vsel %vm888_vm3, %v7955_v14, 0.0  ;;  %v9213_v48 = vpop.eup %7956 }
0x1397   :  { %v5228_v26 = vsel %vm888_vm3, %v9213_v48, 0.0 }
0x1399   :  { %5235 = vadd.xlane.f32.xlu0 %v5234_v36 }
0x13a6   :  { %4911 = vrot.lane.b32.xlu1 %v9022_v59, %s8031_s20 }
0x13c6   :  { %5257 = vxpose.xlu0.c.b16.start.end [1/1] (short) (narrow) %v9022_v59, 32 }
0x13ca   :  { %5229 = vadd.xlane.f32.xlu1 %v5228_v26 }
0x13f7   :  { %5273 = vxpose.xlu1.c.b16.start.end [1/1] (short) (narrow) %v4909_v27, 32 }
0x13fc   :  { %5305 = vxpose.xlu1.c.b16.start.end [1/1] (short) (narrow) %v4915_v45, 32 }
0x140a   :  { %4492 = vxpose.xlu1.b32.start [1/4] (short) (narrow) %v9154_v57, 16 }
0x140e   :  { %4493 = vxpose.xlu1.b32.cont [2/4] (short) (narrow) %v9158_v13, 16 }
0x1412   :  { %4494 = vxpose.xlu1.b32.cont [3/4] (short) (narrow) %v9152_v41, 16 }
0x1416   :  { %v5215_v8 = vpop.xlane.xlu1 %5214  ;;  %4495 = vxpose.xlu1.b32.end [4/4] (short) (narrow) %v9156_v58, 16 }
0x1417   :  { %7958 = vrcp.f32 %v5215_v8 }
0x141a   :  { %v5221_v50 = vpop.xlane.xlu1 %5220  ;;  %4556 = vxpose.xlu1.b32.start [1/4] (short) (narrow) %v9162_v24, 16 }
0x141e   :  { %v5218_v59 = vpop.xlane.xlu1 %5217  ;;  %4557 = vxpose.xlu1.b32.cont [2/4] (short) (narrow) %v9166_v32, 16  ;;  %v5227_v23 = vpop.xlane.xlu0 %5226 }
0x141f   :  { %7960 = vrcp.f32 %v5218_v59 }
0x1420   :  { %7962 = vrcp.f32 %v5221_v50 }
0x1421   :  { %v7959_v13 = vpop.eup %7958 }
0x1422   :  { %v5224_v5 = vpop.xlane.xlu1 %5223  ;;  %4558 = vxpose.xlu1.b32.cont [3/4] (short) (narrow) %v9160_v49, 16  ;;  %v5233_v57 = vpop.xlane.xlu0 %5232  ;;  %v5245_v37 = vmul.f32 %v7959_v13, %v9191_v56 }
0x1423   :  { %7964 = vrcp.f32 %v5224_v5 }
0x1424   :  { %7966 = vrcp.f32 %v5233_v57 }
0x1426   :  { %v4912_v41 = vpop.permute.xlu1 %4911  ;;  %4559 = vxpose.xlu1.b32.end [4/4] (short) (narrow) %v9164_v25, 16  ;;  %v5236_v58 = vpop.xlane.xlu0 %5235 }
0x1427   :  { %7968 = vrcp.f32 %v5236_v58  ;;  %5289 = vxpose.xlu0.c.b16.start.end [1/1] (short) (narrow) %v4912_v41, 32 }
0x1428   :  { %7970 = vrcp.f32 %v5227_v23 }
0x1429   :  { %v7961_v24 = vpop.eup %7960 }
0x142a   :  { %v5246_v32 = vmul.f32 %v7961_v24, %v7947_v30  ;;  %v7963_v7 = vpop.eup %7962 }
0x142b   :  { %v5247_v25 = vmul.f32 %v7963_v7, %v9195_v18 }
0x142c   :  { %v5253_v43 = vpack.c.bf16 %v5246_v32, %v5245_v37  ;;  %v5265_v4 = vpop.trf.xlu0 }
0x142d   :  { %v7965_v9 = vpop.eup %7964  ;;  %7499 = vmatprep.mubr.msk.bf16.mxu0 %vm888_vm3, %v5265_v4 }
0x142e   :  { %7553 = vmatprep.subr.msk.bf16.mxu0 %vm888_vm3, %v5253_v43  ;;  %v5328_v49 = vsel %vm888_vm3, %v5253_v43, 0  ;;  %v5248_v35 = vmul.f32 %v7965_v9, %v7951_v20  ;;  %v7967_v60 = vpop.eup %7966 }
0x142f   :  { %7498 = vmatpush3.bf16.xpose.msra.mxu0 %v5328_v49  ;;  %4460 = vxpose.xlu0.b32.start [1/4] (short) (narrow) %v9146_v33, 16  ;;  %v5251_v16 = vmul.f32 %v7967_v60, %v9204_v31 }
0x1430   :  { %v5254_v39 = vpack.c.bf16 %v5248_v35, %v5247_v25  ;;  %v5266_v12 = vpop.trf.xlu0 }
0x1431   :  { %v7969_v34 = vpop.eup %7968 }
0x1432   :  { %7554 = vmatprep.subr.msk.bf16.mxu1 %vm888_vm3, %v5254_v39  ;;  %v5386_v6 = vsel %vm888_vm3, %v5254_v39, 0  ;;  %v5252_v56 = vmul.f32 %v7969_v34, %v7955_v14  ;;  %v7971_v17 = vpop.eup %7970 }
0x1433   :  { %7504 = vmatpush3.bf16.xpose.msra.mxu1 %v5386_v6  ;;  %4461 = vxpose.xlu0.b32.cont [2/4] (short) (narrow) %v9150_v28, 16 }
0x1434   :  { %v5256_v11 = vpack.c.bf16 %v5252_v56, %v5251_v16 }
0x1436   :  { %7556 = vmatprep.subr.msk.bf16.mxu1 %vm888_vm3, %v5256_v11  ;;  %7500 = vmatmul.mubr.msk.bf16.vlgmr.msra.gmra.mrb[80].mxu0 %vm888_vm3, %v5266_v12 }
0x1437   :  { %4462 = vxpose.xlu0.b32.cont [3/4] (short) (narrow) %v9144_v51, 16  ;;  %v5502_v51 = vsel %vm888_vm3, %v5256_v11, 0 }
0x143b   :  { %4463 = vxpose.xlu0.b32.end [4/4] (short) (narrow) %v9148_v54, 16  ;;  %v5249_v54 = vmul.f32 %v7971_v17, %v9199_v19 }
0x143f   :  { %4524 = vxpose.xlu0.b32.start [1/4] (short) (narrow) %v9170_v40, 16 }
0x1443   :  { %4525 = vxpose.xlu0.b32.cont [2/4] (short) (narrow) %v9174_v29, 16 }
0x1447   :  { %4526 = vxpose.xlu0.b32.cont [3/4] (short) (narrow) %v9168_v3, 16 }
0x144b   :  { %4527 = vxpose.xlu0.b32.end [4/4] (short) (narrow) %v9172_v52, 16 }
0x1457   :  { %v5230_v33 = vpop.xlane.xlu1 %5229 }
0x1458   :  { %7972 = vrcp.f32 %v5230_v33 }
0x145d   :  { %v5281_v28 = vpop.trf.xlu1 }
0x145e   :  { %7505 = vmatprep.mubr.msk.bf16.mxu1 %vm888_vm3, %v5281_v28 }
0x1461   :  { %v5282_v15 = vpop.trf.xlu1 }
0x1462   :  { %v7973_v18 = vpop.eup %7972  ;;  %7506 = vmatmul.mubr.msk.bf16.vlgmr.msra.gmra.mrb[84].mxu1 %vm888_vm3, %v5282_v15 }
0x1463   :  { %7516 = vmatpush3.bf16.xpose.msra.mxu1 %v5502_v51  ;;  %v5250_v3 = vmul.f32 %v7973_v18, %v9213_v48 }
0x1465   :  { %v5255_v40 = vpack.c.bf16 %v5250_v3, %v5249_v54  ;;  %v5313_v52 = vpop.trf.xlu1 }
0x1466   :  { %7517 = vmatprep.mubr.msk.bf16.mxu1 %vm888_vm3, %v5313_v52 }
0x1467   :  { %7555 = vmatprep.subr.msk.bf16.mxu0 %vm888_vm3, %v5255_v40  ;;  %v5444_v29 = vsel %vm888_vm3, %v5255_v40, 0 }
0x1468   :  { %7510 = vmatpush3.bf16.xpose.msra.mxu0 %v5444_v29 }
0x1469   :  { %v5314_v0 = vpop.trf.xlu1 }
0x146a   :  { %7518 = vmatmul.mubr.msk.bf16.vlgmr.msra.gmra.mrb[88].mxu1 %vm888_vm3, %v5314_v0 }
0x146b   :  { %6331 = vmatprep.mubr.bf16.mxu1 %v8030_v1 }
0x148a   :  { %v4508_v44 = vpop.trf.xlu1 }
0x148d   :  { %v5297_v30 = vpop.trf.xlu0 }
0x148e   :  { %7511 = vmatprep.mubr.msk.bf16.mxu0 %vm888_vm3, %v5297_v30  ;;  %v4509_v48 = vpop.trf.xlu1 }
0x1491   :  { %v5298_v19 = vpop.trf.xlu0 }
0x1492   :  { %7512 = vmatmul.mubr.msk.bf16.vlgmr.msra.gmra.mrb[84].mxu0 %vm888_vm3, %v5298_v19 }
0x149a   :  { %v4572_v50 = vpop.trf.xlu1 }
0x149b   :  { %v4604_v41 = vcombine.low %v4508_v44, %v4572_v50  ;;  %v4605_v58 = vcombine.high %v4508_v44, %v4572_v50 }
0x149d   :  { %v4612_v4 = vrot.slane %v4604_v41, %v8576_v47  ;;  %v4619_v9 = vrot.slane %v4605_v58, %v8576_v47 }
0x149e   :  { %v4573_v5 = vpop.trf.xlu1 }
0x149f   :  { %v4672_v37 = vcombine.low %v4509_v48, %v4573_v5  ;;  %v4673_v32 = vcombine.high %v4509_v48, %v4573_v5 }
0x14a1   :  { %v4680_v35 = vrot.slane %v4672_v37, %v8576_v47  ;;  %v4687_v60 = vrot.slane %v4673_v32, %v8576_v47 }
0x14af   :  { %v4476_v10 = vpop.trf.xlu0 }
0x14b3   :  { %v4477_v26 = vpop.trf.xlu0 }
0x14bf   :  { %v4540_v23 = vpop.trf.xlu0 }
0x14c0   :  { %v4588_v13 = vcombine.low %v4476_v10, %v4540_v23  ;;  %v4589_v24 = vcombine.high %v4476_v10, %v4540_v23 }
0x14c2   :  { %v4596_v49 = vrot.slane %v4588_v13, %v8576_v47  ;;  %v4603_v25 = vrot.slane %v4589_v24, %v8576_v47 }
0x14c3   :  { %v4541_v57 = vpop.trf.xlu0 }
0x14c4   :  { %v4656_v7 = vcombine.low %v4477_v26, %v4541_v57  ;;  %v4657_v43 = vcombine.high %v4477_v26, %v4541_v57  ;;  %v4620_v6 = vcombine.low %v4596_v49, %v4612_v4  ;;  %v4621_v16 = vcombine.high %v4596_v49, %v4612_v4 }
0x14c5   :  { %v4636_v56 = vcombine.low %v4603_v25, %v4619_v9  ;;  %v4637_v12 = vcombine.high %v4603_v25, %v4619_v9 }
0x14c6   :  { %v4664_v39 = vrot.slane %v4656_v7, %v8576_v47  ;;  %v4671_v34 = vrot.slane %v4657_v43, %v8576_v47  ;;  %v4628_v15 = vrot.slane %v4620_v6, %v8587_v42  ;;  %v4635_v18 = vrot.slane %v4621_v16, %v8587_v42 }
0x14c7   :  { %v4644_v51 = vrot.slane %v4636_v56, %v8587_v42  ;;  %v4651_v54 = vrot.slane %v4637_v12, %v8587_v42 }
0x14c8   :  { %v4688_v11 = vcombine.low %v4664_v39, %v4680_v35  ;;  %v4689_v33 = vcombine.high %v4664_v39, %v4680_v35  ;;  %v4704_v28 = vcombine.low %v4671_v34, %v4687_v60  ;;  %v4705_v17 = vcombine.high %v4671_v34, %v4687_v60 }
0x14c9   :  { %v4724_v0 = vcombine.low %v4628_v15, %v4635_v18  ;;  %v6910_v30 = vcombine.high %v4628_v15, %v4635_v18  ;;  %v4740_v19 = vcombine.low %v4644_v51, %v4651_v54  ;;  %v7760_v15 = vld [vmem:[%s9600_s8 + $0x50] sm:$0xff]   ;;  %v7761_v18 = vld [vmem:[%s9600_s8 + $0x58] sm:$0xff]  }
0x14ca   :  { %v4696_v3 = vrot.slane %v4688_v11, %v8587_v42  ;;  %v4703_v40 = vrot.slane %v4689_v33, %v8587_v42  ;;  %v4712_v52 = vrot.slane %v4704_v28, %v8587_v42  ;;  %v4719_v29 = vrot.slane %v4705_v17, %v8587_v42  ;;  %v7758_v33 = vld [vmem:[%s9600_s8 + $0x40] sm:$0xff]   ;;  %v7759_v28 = vld [vmem:[%s9600_s8 + $0x48] sm:$0xff]  }
0x14cb   :  { %v4731_v10 = vrot.slane %v4724_v0, %v8576_v47  ;;  %7521 = vmatprep.subr.bf16.mxu0 %v7758_v33 }
0x14cc   :  { %v6913_v44 = vcombine.high %v4712_v52, %v4719_v29  ;;  %7522 = vmatpush3.bf16.msra.mxu0 %v7758_v33 }
0x14cd   :  { %7523 = vmatprep.subr.bf16.mxu0 %v7759_v28 }
0x14d0   :  { %7524 = vmatpush3.bf16.msra.mxu0 %v7759_v28 }
0x14d1   :  { %7525 = vmatprep.subr.bf16.mxu0 %v7760_v15 }
0x14d4   :  { %7526 = vmatpush3.bf16.msra.mxu0 %v7760_v15 }
0x14d5   :  { %7527 = vmatprep.subr.bf16.mxu0 %v7761_v18 }
0x14d8   :  { %7528 = vmatpush3.bf16.msra.mxu0 %v7761_v18 }
0x1509   :  { %v7501_v2 = vpop.f32.mrb[80].mxu0 }
0x150a   :  { %v5364_v55 = vpop.f32.mrb[81].mxu0 }
0x150b   :  { %5553 = vxpose.xlu0.b32.start [1/4] (short) (narrow) %v5364_v55, 16  ;;  %v7502_v20 = vpop.f32.mrb[82].mxu0  ;;  %v4792_v55 = vcombine.low %v4696_v3, %v4703_v40 }
0x150c   :  { %v5367_v31 = vpop.f32.mrb[83].mxu0 }
0x150f   :  { %5554 = vxpose.xlu0.b32.cont [2/4] (short) (narrow) %v5367_v31, 16  ;;  %v4808_v31 = vcombine.low %v4712_v52, %v4719_v29 }
0x1511   :  { %v4815_v26 = vrot.slane %v4808_v31, %v8576_v47 }
0x1513   :  { %5555 = vxpose.xlu0.b32.cont [3/4] (short) (narrow) %v7501_v2, 16  ;;  %v6911_v2 = vcombine.high %v4644_v51, %v4651_v54  ;;  %v7762_v51 = vld [vmem:[%s9600_s8 + $0x60] sm:$0xff]   ;;  %v7763_v54 = vld [vmem:[%s9600_s8 + $0x68] sm:$0xff]  }
0x1514   :  { %7529 = vmatprep.subr.bf16.mxu0 %v7762_v51 }
0x1515   :  { %7530 = vmatpush3.bf16.msra.mxu0 %v7762_v51 }
0x1516   :  { %7531 = vmatprep.subr.bf16.mxu0 %v7763_v54 }
0x1517   :  { %5556 = vxpose.xlu0.b32.end [4/4] (short) (narrow) %v7502_v20, 16  ;;  %v6912_v20 = vcombine.high %v4696_v3, %v4703_v40 }
0x1519   :  { %v4807_v48 = vrot.slane %v6912_v20, %v8576_v47  ;;  %7532 = vmatpush3.bf16.msra.mxu0 %v7763_v54 }
0x1535   :  { %v7507_v14 = vpop.f32.mrb[84].mxu1 }
0x1536   :  { %v5422_v36 = vpop.f32.mrb[85].mxu1 }
0x1537   :  { %5585 = vxpose.xlu1.b32.start [1/4] (short) (narrow) %v5422_v36, 16  ;;  %v7508_v46 = vpop.f32.mrb[86].mxu1  ;;  %v4747_v36 = vrot.slane %v4740_v19, %v8576_v47 }
0x1538   :  { %v5425_v38 = vpop.f32.mrb[87].mxu1 }
0x153b   :  { %5586 = vxpose.xlu1.b32.cont [2/4] (short) (narrow) %v5425_v38, 16  ;;  %v4799_v38 = vrot.slane %v4792_v55, %v8576_v47 }
0x153d   :  { %v7519_v27 = vpop.f32.mrb[88].mxu1  ;;  %v4825_v50 = vcombine.high %v4799_v38, %v4807_v48  ;;  %v4824_v49 = vcombine.low %v4799_v38, %v4807_v48 }
0x153e   :  { %v5538_v45 = vpop.f32.mrb[89].mxu1 }
0x153f   :  { %5587 = vxpose.xlu1.b32.cont [3/4] (short) (narrow) %v7507_v14, 16  ;;  %v7520_v8 = vpop.f32.mrb[90].mxu1  ;;  %v4739_v14 = vrot.slane %v6910_v30, %v8576_v47  ;;  %v4839_v41 = vrot.slane %v4825_v50, %v8587_v42  ;;  %v9292_v39 = vrot.slane %v4824_v49, %v8587_v42 }
0x1540   :  { %v5541_v59 = vpop.f32.mrb[91].mxu1 }
0x1541   :  { %v4756_v4 = vcombine.low %v4731_v10, %v4739_v14 }
0x1543   :  { %5588 = vxpose.xlu1.b32.end [4/4] (short) (narrow) %v7508_v46, 16  ;;  %v4755_v46 = vrot.slane %v6911_v2, %v8576_v47  ;;  %v9286_v35 = vrot.slane %v4756_v4, %v8587_v42 }
0x1545   :  { %v4772_v9 = vcombine.low %v4747_v36, %v4755_v46 }
0x1547   :  { %5649 = vxpose.xlu1.b32.start [1/4] (short) (narrow) %v5538_v45, 16  ;;  %v4757_v45 = vcombine.high %v4731_v10, %v4739_v14  ;;  %v9289_v60 = vrot.slane %v4772_v9, %v8587_v42 }
0x1549   :  { %v4771_v5 = vrot.slane %v4757_v45, %v8587_v42  ;;  %v4789_v6 = vcombine.high %v9286_v35, %v9289_v60 }
0x154b   :  { %5650 = vxpose.xlu1.b32.cont [2/4] (short) (narrow) %v5541_v59, 16 }
0x154f   :  { %5651 = vxpose.xlu1.b32.cont [3/4] (short) (narrow) %v7519_v27, 16  ;;  %v4823_v27 = vrot.slane %v6913_v44, %v8576_v47 }
0x1551   :  { %v4841_v59 = vcombine.high %v4815_v26, %v4823_v27  ;;  %v4840_v25 = vcombine.low %v4815_v26, %v4823_v27 }
0x1553   :  { %5652 = vxpose.xlu1.b32.end [4/4] (short) (narrow) %v7520_v8, 16  ;;  %v4773_v8 = vcombine.high %v4747_v36, %v4755_v46  ;;  %v4855_v58 = vrot.slane %v4841_v59, %v8587_v42  ;;  %v9295_v34 = vrot.slane %v4840_v25, %v8587_v42 }
0x1555   :  { %v4787_v57 = vrot.slane %v4773_v8, %v8587_v42  ;;  %v4858_v7 = vcombine.low %v4839_v41, %v4855_v58  ;;  %v4857_v16 = vcombine.high %v9292_v39, %v9295_v34  ;;  %v4859_v11 = vcombine.high %v4839_v41, %v4855_v58 }
0x1557   :  { %v4790_v32 = vcombine.low %v4771_v5, %v4787_v57  ;;  %v7598_v56 = vpack.i.bf16 %v4857_v16, %v4789_v6  ;;  %v4791_v12 = vcombine.high %v4771_v5, %v4787_v57 }
0x1559   :  { %v7603_v43 = vpack.i.bf16 %v4858_v7, %v4790_v32  ;;  %v7608_v17 = vpack.i.bf16 %v4859_v11, %v4791_v12 }
0x1565   :  { %v7513_v23 = vpop.f32.mrb[84].mxu0 }
0x1566   :  { %v5480_v13 = vpop.f32.mrb[85].mxu0 }
0x1567   :  { %5617 = vxpose.xlu0.b32.start [1/4] (short) (narrow) %v5480_v13, 16  ;;  %v7514_v24 = vpop.f32.mrb[86].mxu0 }
0x1568   :  { %v5483_v37 = vpop.f32.mrb[87].mxu0 }
0x156b   :  { %5618 = vxpose.xlu0.b32.cont [2/4] (short) (narrow) %v5483_v37, 16 }
0x156f   :  { %5619 = vxpose.xlu0.b32.cont [3/4] (short) (narrow) %v7513_v23, 16 }
0x1571   :  { %7604 = vrot.lane.b32.xlu1 %v7603_v43, %s8031_s20 }
0x1573   :  { %5620 = vxpose.xlu0.b32.end [4/4] (short) (narrow) %v7514_v24, 16 }
0x158b   :  { %v5569_v40 = vpop.trf.xlu0 }
0x158f   :  { %v5570_v29 = vpop.trf.xlu0 }
0x159c   :  { %7599 = vrot.lane.b32.xlu0 %v7598_v56, %s8034_s22 }
0x15a0   :  { %7609 = vrot.lane.b32.xlu0 %v7608_v17, %s8032_s21 }
0x15b7   :  { %v5601_v3 = vpop.trf.xlu1 }
0x15bb   :  { %v5602_v52 = vpop.trf.xlu1 }
0x15c7   :  { %v5665_v0 = vpop.trf.xlu1 }
0x15c8   :  { %v5697_v30 = vcombine.low %v5601_v3, %v5665_v0  ;;  %v5698_v19 = vcombine.high %v5601_v3, %v5665_v0 }
0x15ca   :  { %v5705_v44 = vrot.slane %v5697_v30, %v8576_v47  ;;  %v5712_v10 = vrot.slane %v5698_v19, %v8576_v47 }
0x15cb   :  { %v5666_v31 = vpop.trf.xlu1 }
0x15cc   :  { %v5765_v46 = vcombine.low %v5602_v52, %v5666_v31  ;;  %v5766_v38 = vcombine.high %v5602_v52, %v5666_v31 }
0x15ce   :  { %v5773_v58 = vrot.slane %v5765_v46, %v8576_v47  ;;  %v5780_v13 = vrot.slane %v5766_v38, %v8576_v47 }
0x15e7   :  { %v5633_v2 = vpop.trf.xlu0 }
0x15e8   :  { %v5681_v55 = vcombine.low %v5569_v40, %v5633_v2  ;;  %v5682_v20 = vcombine.high %v5569_v40, %v5633_v2  ;;  %v7764_v2 = vld [vmem:[%s9600_s8 + $0x70] sm:$0xff]  }
0x15e9   :  { %7533 = vmatprep.subr.bf16.mxu0 %v7764_v2 }
0x15ea   :  { %v5689_v14 = vrot.slane %v5681_v55, %v8576_v47  ;;  %v5696_v36 = vrot.slane %v5682_v20, %v8576_v47  ;;  %7534 = vmatpush3.bf16.msra.mxu0 %v7764_v2 }
0x15eb   :  { %v5634_v48 = vpop.trf.xlu0 }
0x15ec   :  { %v5713_v26 = vcombine.low %v5689_v14, %v5705_v44  ;;  %v5714_v27 = vcombine.high %v5689_v14, %v5705_v44  ;;  %v5729_v45 = vcombine.low %v5696_v36, %v5712_v10  ;;  %v5730_v8 = vcombine.high %v5696_v36, %v5712_v10 }
0x15ed   :  { %v5749_v50 = vcombine.low %v5570_v29, %v5634_v48  ;;  %v5750_v59 = vcombine.high %v5570_v29, %v5634_v48 }
0x15ee   :  { %v5721_v23 = vrot.slane %v5713_v26, %v8587_v42  ;;  %v5728_v5 = vrot.slane %v5714_v27, %v8587_v42  ;;  %v5737_v57 = vrot.slane %v5729_v45, %v8587_v42  ;;  %v5744_v41 = vrot.slane %v5730_v8, %v8587_v42  ;;  %v7765_v27 = vld [vmem:[%s9600_s8 + $0x78] sm:$0xff]  }
0x15ef   :  { %v5757_v24 = vrot.slane %v5749_v50, %v8576_v47  ;;  %v5764_v37 = vrot.slane %v5750_v59, %v8576_v47  ;;  %7535 = vmatprep.subr.bf16.mxu0 %v7765_v27 }
0x15f0   :  { %v5817_v32 = vcombine.low %v5721_v23, %v5728_v5  ;;  %v6926_v7 = vcombine.high %v5721_v23, %v5728_v5  ;;  %v5833_v43 = vcombine.low %v5737_v57, %v5744_v41  ;;  %v6927_v4 = vcombine.high %v5737_v57, %v5744_v41  ;;  %7536 = vmatpush3.bf16.msra.mxu0 %v7765_v27 }
0x15f1   :  { %v5781_v9 = vcombine.low %v5757_v24, %v5773_v58  ;;  %v5782_v49 = vcombine.high %v5757_v24, %v5773_v58  ;;  %v5797_v25 = vcombine.low %v5764_v37, %v5780_v13  ;;  %v5798_v6 = vcombine.high %v5764_v37, %v5780_v13 }
0x15f2   :  { %v5824_v16 = vrot.slane %v5817_v32, %v8576_v47  ;;  %v5832_v56 = vrot.slane %v6926_v7, %v8576_v47  ;;  %v5840_v12 = vrot.slane %v5833_v43, %v8576_v47  ;;  %v5848_v11 = vrot.slane %v6927_v4, %v8576_v47 }
0x15f3   :  { %v5789_v33 = vrot.slane %v5781_v9, %v8587_v42  ;;  %v5796_v28 = vrot.slane %v5782_v49, %v8587_v42  ;;  %v5805_v17 = vrot.slane %v5797_v25, %v8587_v42  ;;  %v5812_v15 = vrot.slane %v5798_v6, %v8587_v42 }
0x15f4   :  { %v5850_v18 = vcombine.high %v5824_v16, %v5832_v56  ;;  %v5866_v51 = vcombine.high %v5840_v12, %v5848_v11  ;;  %v5849_v54 = vcombine.low %v5824_v16, %v5832_v56  ;;  %v5865_v3 = vcombine.low %v5840_v12, %v5848_v11 }
0x15f5   :  { %v5885_v40 = vcombine.low %v5789_v33, %v5796_v28  ;;  %v6928_v52 = vcombine.high %v5789_v33, %v5796_v28  ;;  %v5901_v29 = vcombine.low %v5805_v17, %v5812_v15  ;;  %v6929_v0 = vcombine.high %v5805_v17, %v5812_v15 }
0x15f6   :  { %v9342_v30 = vrot.slane %v5849_v54, %v8587_v42  ;;  %v9345_v19 = vrot.slane %v5865_v3, %v8587_v42  ;;  %v5864_v10 = vrot.slane %v5850_v18, %v8587_v42  ;;  %v5880_v14 = vrot.slane %v5866_v51, %v8587_v42 }
0x15f7   :  { %v5892_v55 = vrot.slane %v5885_v40, %v8576_v47  ;;  %v5900_v20 = vrot.slane %v6928_v52, %v8576_v47  ;;  %v5908_v31 = vrot.slane %v5901_v29, %v8576_v47  ;;  %v5916_v44 = vrot.slane %v6929_v0, %v8576_v47 }
0x15f8   :  { %v5881_v36 = vcombine.low %v9342_v30, %v9345_v19  ;;  %v5884_v59 = vcombine.high %v5864_v10, %v5880_v14  ;;  %v5882_v5 = vcombine.high %v9342_v30, %v9345_v19  ;;  %v5883_v37 = vcombine.low %v5864_v10, %v5880_v14 }
0x15f9   :  { %v5918_v46 = vcombine.high %v5892_v55, %v5900_v20  ;;  %v5934_v38 = vcombine.high %v5908_v31, %v5916_v44  ;;  %v5917_v48 = vcombine.low %v5892_v55, %v5900_v20  ;;  %v5933_v26 = vcombine.low %v5908_v31, %v5916_v44  ;;  %v6947_v44 = vld [vmem:[%s9601_s9 + $0x1] ss:$0 sm:$0xff] }
0x15fa   :  { %v4788_v43 = vcombine.low %v9286_v35, %v9289_v60  ;;  %v4856_v4 = vcombine.low %v9292_v39, %v9295_v34 }
0x15fb   :  { %v5932_v45 = vrot.slane %v5918_v46, %v8587_v42  ;;  %v5948_v47 = vrot.slane %v5934_v38, %v8587_v42  ;;  %v5925_v8 = vrot.slane %v5917_v48, %v8587_v42  ;;  %v5941_v50 = vrot.slane %v5933_v26, %v8587_v42  ;;  %v7605_v42 = vpop.permute.xlu1 %7604 }
0x15fc   :  { %v7607_v25 = vunpack.i.h.bf16 %v7605_v42  ;;  %v7606_v6 = vunpack.i.l.bf16 %v7605_v42  ;;  %v7781_v42 = vld [vmem:[%s9604_s12 + $0xd0] ss:$8 sps:$4 sm:$0xff]  }
0x15fd   :  { %v5952_v23 = vcombine.high %v5932_v45, %v5948_v47  ;;  %v5950_v57 = vcombine.high %v5925_v8, %v5941_v50  ;;  %v5949_v41 = vcombine.low %v5925_v8, %v5941_v50  ;;  %v5951_v24 = vcombine.low %v5932_v45, %v5948_v47 }
0x15ff   :  { %v7623_v58 = vpack.i.bf16 %v5952_v23, %v5884_v59  ;;  %v7613_v13 = vpack.i.bf16 %v5950_v57, %v5882_v5  ;;  %v7618_v32 = vpack.i.bf16 %v5951_v24, %v5883_v37  ;;  %v7766_v23 = vld [vmem:[%s9604_s12 + $0x80] ss:$8 sps:$4 sm:$0xff]   ;;  %v7768_v5 = vld [vmem:[%s9604_s12 + $0x84] ss:$8 sps:$4 sm:$0xff]   ;;  %v7769_v57 = vld [vmem:[%s9604_s12 + $0x90] ss:$8 sps:$4 sm:$0xff]  }
0x1600   :  { %6299 = vmatprep.subr.bf16.mxu1 %v7768_v5  ;;  %v7777_v24 = vld [vmem:[%s9604_s12 + $0xb4] ss:$8 sps:$4 sm:$0xff]   ;;  %v7780_v37 = vld [vmem:[%s9604_s12 + $0xc4] ss:$8 sps:$4 sm:$0xff]  }
0x1601   :  { %7624 = vrot.lane.b32.xlu0 %v7623_v58, %s8032_s21  ;;  %7614 = vrot.lane.b32.xlu1 %v7613_v13, %s8034_s22  ;;  %v7772_v58 = vld [vmem:[%s9604_s12 + $0xa0] ss:$8 sps:$4 sm:$0xff]   ;;  %v7775_v13 = vld [vmem:[%s9604_s12 + $0xb0] ss:$8 sps:$4 sm:$0xff]  }
0x1602   :  { %6300 = vmatpush1.bf16.msra.mxu1 %v7766_v23 }
0x1605   :  { %7619 = vrot.lane.b32.xlu1 %v7618_v32, %s8031_s20  ;;  %v7778_v32 = vld [vmem:[%s9604_s12 + $0xc0] ss:$8 sps:$4 sm:$0xff]  }
0x160e   :  { %v7600_v7 = vpop.permute.xlu0 %7599 }
0x160f   :  { %v7602_v9 = vunpack.i.h.bf16 %v7600_v7  ;;  %v7601_v49 = vunpack.i.l.bf16 %v7600_v7  ;;  %v7783_v7 = vld [vmem:[%s9604_s12 + $0xd4] ss:$8 sps:$4 sm:$0xff]  }
0x1611   :  { %v4885_v16 = vsel %vm703_vm2, %v4856_v4, %v7602_v9  ;;  %v4884_v56 = vsel %vm703_vm2, %v4788_v43, %v7601_v49  ;;  %v7786_v43 = vld [vmem:[%s9604_s12 + $0xe4] ss:$8 sps:$4 sm:$0xff]   ;;  %v7784_v4 = vld [vmem:[%s9604_s12 + $0xe0] ss:$8 sps:$4 sm:$0xff]   ;;  %v7789_v9 = vld [vmem:[%s9604_s12 + $0xf4] ss:$8 sps:$4 sm:$0xff]  }
0x1612   :  { %v7610_v12 = vpop.permute.xlu0 %7609  ;;  %v4886_v28 = vsel %vm186_vm0, %v4884_v56, %v7606_v6  ;;  %v4887_v17 = vsel %vm186_vm0, %v4885_v16, %v7607_v25  ;;  %v7787_v49 = vld [vmem:[%s9604_s12 + $0xf0] ss:$8 sps:$4 sm:$0xff]  }
0x1613   :  { %v7612_v11 = vunpack.i.h.bf16 %v7610_v12  ;;  %v7611_v33 = vunpack.i.l.bf16 %v7610_v12 }
0x1615   :  { %v4888_v35 = vsel %vm1705_vm4, %v4886_v28, %v7611_v33  ;;  %v4889_v60 = vsel %vm1705_vm4, %v4887_v17, %v7612_v11 }
0x1616   :  { %v5983_v39 = vpack.c.bf16 %v4889_v60, %v4888_v35 }
0x1618   :  { %7537 = vmatprep.mubr.bf16.mxu0 %v5983_v39 }
0x1673   :  { %v7615_v34 = vpop.permute.xlu1 %7614  ;;  %v7625_v51 = vpop.permute.xlu0 %7624 }
0x1674   :  { %v7617_v15 = vunpack.i.h.bf16 %v7615_v34  ;;  %v7616_v18 = vunpack.i.l.bf16 %v7615_v34  ;;  %v7627_v0 = vunpack.i.h.bf16 %v7625_v51  ;;  %v7626_v30 = vunpack.i.l.bf16 %v7625_v51 }
0x1676   :  { %v5977_v52 = vsel %vm703_vm2, %v5881_v36, %v7616_v18  ;;  %v5978_v29 = vsel %vm703_vm2, %v5949_v41, %v7617_v15  ;;  %v7774_v41 = vld [vmem:[%s9604_s12 + $0xa4] ss:$8 sps:$4 sm:$0xff]  }
0x1677   :  { %v7620_v54 = vpop.permute.xlu1 %7619 }
0x1678   :  { %v7622_v3 = vunpack.i.h.bf16 %v7620_v54  ;;  %v7621_v40 = vunpack.i.l.bf16 %v7620_v54 }
0x167a   :  { %v5979_v19 = vsel %vm186_vm0, %v5977_v52, %v7621_v40  ;;  %v5980_v2 = vsel %vm186_vm0, %v5978_v29, %v7622_v3 }
0x167b   :  { %v5981_v55 = vsel %vm1705_vm4, %v5979_v19, %v7626_v30  ;;  %v5982_v20 = vsel %vm1705_vm4, %v5980_v2, %v7627_v0 }
0x167c   :  { %v5984_v31 = vpack.c.bf16 %v5982_v20, %v5981_v55 }
0x167e   :  { %7538 = vmatmul.mubr.bf16.vlgmr.msra.gmra.mrb[88].mxu0 %v5984_v31 }
0x1751   :  { %v7539_v10 = vpop.f32.mrb[88].mxu0 }
0x1752   :  { %v6092_v14 = vpop.f32.mrb[89].mxu0  ;;  %v6101_v48 = vadd.f32 %v7539_v10, %v6947_v44 }
0x1753   :  { %v6093_v36 = vadd.f32 %v6947_v44, %v6092_v14  ;;  %v7540_v46 = vpop.f32.mrb[90].mxu0 }
0x1754   :  { %v6095_v38 = vpop.f32.mrb[91].mxu0  ;;  %v9397_v47 = vadd.f32 %v6101_v48, %v8915_v62  ;;  %v6104_v50 = vadd.f32 %v7540_v46, %v6947_v44 }
0x1755   :  { %v9390_v26 = vadd.f32 %v6093_v36, %v8903_v21  ;;  %v6096_v27 = vadd.f32 %v6947_v44, %v6095_v38  ;;  %v6958_v36 = vld [vmem:[%s9602_s10 + $0x1] ss:$0 sm:$0xff] }
0x1756   :  { %v6129_v21 = vmul.f32 %v9397_v47, %v9397_v47  ;;  %v9408_v62 = vadd.f32 %v6104_v50, %v8918_v53  ;;  %v7771_v53 = vld [vmem:[%s9604_s12 + $0x94] ss:$8 sps:$4 sm:$0xff]  }
0x1757   :  { %v9393_v45 = vadd.f32 %v6096_v27, %v8906_v22  ;;  %6115 = vadd.xlane.f32.xlu1 %v9390_v26  ;;  %v6127_v8 = vmul.f32 %v9390_v26, %v9390_v26  ;;  %6301 = vmatprep.subr.bf16.mxu1 %v7771_v53 }
0x1758   :  { %v6130_v59 = vmul.f32 %v9408_v62, %v9408_v62  ;;  %6302 = vmatpush1.bf16.msra.mxu1 %v7769_v57 }
0x1759   :  { %6117 = vadd.xlane.f32.xlu0 %v9393_v45  ;;  %v6128_v22 = vmul.f32 %v9393_v45, %v9393_v45  ;;  %6303 = vmatprep.subr.bf16.mxu1 %v7774_v41 }
0x175b   :  { %6119 = vadd.xlane.f32.xlu1 %v9397_v47 }
0x175c   :  { %6304 = vmatpush1.bf16.msra.mxu1 %v7772_v58 }
0x175d   :  { %6131 = vadd.xlane.f32.xlu0 %v6127_v8  ;;  %6305 = vmatprep.subr.bf16.mxu1 %v7777_v24 }
0x175f   :  { %6135 = vadd.xlane.f32.xlu1 %v6129_v21  ;;  %v6959_v21 = vld [vmem:[%s9603_s11 + $0x1] ss:$0 sm:$0xff] }
0x1760   :  { %6306 = vmatpush1.bf16.msra.mxu1 %v7775_v13 }
0x1761   :  { %6133 = vadd.xlane.f32.xlu0 %v6128_v22  ;;  %6307 = vmatprep.subr.bf16.mxu1 %v7780_v37 }
0x1764   :  { %6308 = vmatpush1.bf16.msra.mxu1 %v7778_v32 }
0x1765   :  { %6121 = vadd.xlane.f32.xlu0 %v9408_v62  ;;  %6309 = vmatprep.subr.bf16.mxu1 %v7783_v7  ;;  %v7790_v7 = vld [vmem:[%s9606_s14 + $0xc0] sm:$0xff]  }
0x1766   :  { %7209 = vmatprep.subr.bf16.mxu0 %v7790_v7 }
0x1768   :  { %6310 = vmatpush1.bf16.msra.mxu1 %v7781_v42 }
0x1769   :  { %6137 = vadd.xlane.f32.xlu0 %v6130_v59  ;;  %6311 = vmatprep.subr.bf16.mxu1 %v7786_v43  ;;  %v7791_v43 = vld [vmem:[%s9606_s14 + $0x80] sm:$0xff]  }
0x176a   :  { %7210 = vmatpush3.bf16.msra.mxu0 %v7791_v43 }
0x176c   :  { %6312 = vmatpush1.bf16.msra.mxu1 %v7784_v4  ;;  %v7792_v4 = vld [vmem:[%s9606_s14 + $0xc8] sm:$0xff]  }
0x176d   :  { %6313 = vmatprep.subr.bf16.mxu1 %v7789_v9  ;;  %7211 = vmatprep.subr.bf16.mxu0 %v7792_v4  ;;  %v7794_v9 = vld [vmem:[%s9606_s14 + $0xd0] sm:$0xff]  }
0x1770   :  { %6314 = vmatpush1.bf16.msra.mxu1 %v7787_v49  ;;  %v7795_v49 = vld [vmem:[%s9606_s14 + $0x90] sm:$0xff]  }
0x17e4   :  { %v6116_v25 = vpop.xlane.xlu1 %6115 }
0x17e5   :  { %v6123_v16 = vmul.f32 0.0078125, %v6116_v25  ;;  %v7796_v25 = vld [vmem:[%s9606_s14 + $0xd8] sm:$0xff]  }
0x17e6   :  { %v6118_v6 = vpop.xlane.xlu0 %6117 }
0x17e7   :  { %v6143_v33 = vmul.f32 %v6123_v16, %v6123_v16  ;;  %v6124_v28 = vmul.f32 0.0078125, %v6118_v6  ;;  %v6151_v31 = vsub.f32 %v9390_v26, %v6123_v16  ;;  %v7797_v6 = vld [vmem:[%s9606_s14 + $0x98] sm:$0xff]   ;;  %v7798_v16 = vld [vmem:[%s9606_s14 + $0xe0] sm:$0xff]  }
0x17e8   :  { %v6120_v56 = vpop.xlane.xlu1 %6119 }
0x17e9   :  { %v6125_v12 = vmul.f32 0.0078125, %v6120_v56  ;;  %v6144_v18 = vmul.f32 %v6124_v28, %v6124_v28  ;;  %v6152_v46 = vsub.f32 %v9393_v45, %v6124_v28  ;;  %v7799_v56 = vld [vmem:[%s9606_s14 + $0xa0] sm:$0xff]   ;;  %v7803_v28 = vld [vmem:[%s9606_s14 + $0xb0] sm:$0xff]  }
0x17ea   :  { %v6132_v11 = vpop.xlane.xlu0 %6131 }
0x17eb   :  { %v6139_v17 = vmul.f32 0.0078125, %v6132_v11  ;;  %v6145_v60 = vmul.f32 %v6125_v12, %v6125_v12  ;;  %v6153_v50 = vsub.f32 %v9397_v47, %v6125_v12  ;;  %v7800_v12 = vld [vmem:[%s9606_s14 + $0xe8] sm:$0xff]  }
0x17ec   :  { %v6136_v35 = vpop.xlane.xlu1 %6135  ;;  %v7801_v11 = vld [vmem:[%s9606_s14 + $0xa8] sm:$0xff]  }
0x17ed   :  { %v6147_v39 = vsub.f32 %v6139_v17, %v6143_v33  ;;  %v6141_v34 = vmul.f32 0.0078125, %v6136_v35  ;;  %v7802_v33 = vld [vmem:[%s9606_s14 + $0xf0] sm:$0xff]   ;;  %v7804_v17 = vld [vmem:[%s9606_s14 + $0xf8] sm:$0xff]  }
0x17ee   :  { %v6134_v15 = vpop.xlane.xlu0 %6133  ;;  %v7805_v35 = vld [vmem:[%s9606_s14 + $0xb8] sm:$0xff]  }
0x17ef   :  { %v6155_v51 = vadd.f32 1e-06, %v6147_v39  ;;  %v6149_v54 = vsub.f32 %v6141_v34, %v6145_v60  ;;  %v6140_v3 = vmul.f32 0.0078125, %v6134_v15  ;;  %v6976_v60 = vld [vmem:[%s9605_s13 + $0x2] sm:$0x3] }
0x17f0   :  { %v6212_v39 = vrot.slane %v6976_v60, %v8320_v61  ;;  %v6216_v34 = vrot.slane %v6976_v60, %v8326_v63 }
0x17f1   :  { %7974 = vrsqrt.f32 %v6155_v51  ;;  %v6148_v40 = vsub.f32 %v6140_v3, %v6144_v18  ;;  %v6157_v29 = vadd.f32 1e-06, %v6149_v54 }
0x17f2   :  { %v6122_v52 = vpop.xlane.xlu0 %6121 }
0x17f3   :  { %v6156_v0 = vadd.f32 1e-06, %v6148_v40  ;;  %v6126_v30 = vmul.f32 0.0078125, %v6122_v52 }
0x17f5   :  { %7976 = vrsqrt.f32 %v6156_v0  ;;  %v6146_v2 = vmul.f32 %v6126_v30, %v6126_v30  ;;  %v6154_v53 = vsub.f32 %v9408_v62, %v6126_v30 }
0x17f6   :  { %v6138_v19 = vpop.xlane.xlu0 %6137  ;;  %7978 = vrsqrt.f32 %v6157_v29 }
0x17f7   :  { %v6142_v55 = vmul.f32 0.0078125, %v6138_v19 }
0x17f9   :  { %v6150_v20 = vsub.f32 %v6142_v55, %v6146_v2 }
0x17fb   :  { %v7975_v44 = vpop.eup %7974  ;;  %v6158_v10 = vadd.f32 1e-06, %v6150_v20 }
0x17fc   :  { %v6163_v14 = vmul.f32 %v7975_v44, %v6151_v31 }
0x17fd   :  { %7980 = vrsqrt.f32 %v6158_v10 }
0x17fe   :  { %v6173_v27 = vmul.f32 %v6958_v36, %v6163_v14 }
0x17ff   :  { %v7977_v38 = vpop.eup %7976 }
0x1800   :  { %v6164_v48 = vmul.f32 %v7977_v38, %v6152_v46  ;;  %v7979_v8 = vpop.eup %7978  ;;  %v6183_v59 = vadd.f32 %v6959_v21, %v6173_v27 }
0x1801   :  { %v6165_v5 = vmul.f32 %v7979_v8, %v6153_v50 }
0x1802   :  { %v6174_v22 = vmul.f32 %v6958_v36, %v6164_v48 }
0x1803   :  { %v6175_v13 = vmul.f32 %v6958_v36, %v6165_v5 }
0x1804   :  { %v6184_v23 = vadd.f32 %v6959_v21, %v6174_v22 }
0x1805   :  { %v6185_v37 = vadd.f32 %v6959_v21, %v6175_v13 }
0x1806   :  { %v6187_v57 = vpack.c.bf16 %v6184_v23, %v6183_v59 }
0x1807   :  { %v7981_v41 = vpop.eup %7980 }
0x1808   :  { %6332 = vmatmul.mubr.bf16.vlgmr.msra.gmra.mrb[92].mxu1 %v6187_v57  ;;  %v6166_v58 = vmul.f32 %v7981_v41, %v6154_v53 }
0x1809   :  { %6341 = vmatprep.mubr.bf16.mxu1 %v8030_v1  ;;  %v7793_v1 = vld [vmem:[%s9606_s14 + $0x88] sm:$0xff]  }
0x180a   :  { %v6176_v24 = vmul.f32 %v6958_v36, %v6166_v58  ;;  %7212 = vmatpush3.bf16.msra.mxu0 %v7793_v1 }
0x180b   :  { %7213 = vmatprep.subr.bf16.mxu0 %v7794_v9 }
0x180c   :  { %v6186_v32 = vadd.f32 %v6959_v21, %v6176_v24 }
0x180e   :  { %v6188_v42 = vpack.c.bf16 %v6186_v32, %v6185_v37  ;;  %7214 = vmatpush3.bf16.msra.mxu0 %v7795_v49 }
0x180f   :  { %7215 = vmatprep.subr.bf16.mxu0 %v7796_v25 }
0x1810   :  { %6342 = vmatmul.mubr.bf16.gmra.mrb[96].mxu1 %v6188_v42 }
0x1812   :  { %7216 = vmatpush3.bf16.msra.mxu0 %v7797_v6 }
0x1813   :  { %7217 = vmatprep.subr.bf16.mxu0 %v7798_v16 }
0x1816   :  { %7218 = vmatpush3.bf16.msra.mxu0 %v7799_v56 }
0x1817   :  { %7219 = vmatprep.subr.bf16.mxu0 %v7800_v12 }
0x181a   :  { %7220 = vmatpush3.bf16.msra.mxu0 %v7801_v11 }
0x181b   :  { %7221 = vmatprep.subr.bf16.mxu0 %v7802_v33 }
0x181e   :  { %7222 = vmatpush3.bf16.msra.mxu0 %v7803_v28 }
0x181f   :  { %7223 = vmatprep.subr.bf16.mxu0 %v7804_v17 }
0x1822   :  { %7224 = vmatpush3.bf16.msra.mxu0 %v7805_v35 }
0x18db   :  { %v6333_v15 = vpop.f32.mrb[92].mxu1 }
0x18dc   :  { %v9525_v18 = vadd.f32 %v6333_v15, %v6212_v39  ;;  %v6335_v51 = vpop.f32.mrb[93].mxu1 }
0x18dd   :  { %v9527_v54 = vadd.f32 %v6335_v51, %v6216_v34  ;;  %v6337_v3 = vpop.f32.mrb[94].mxu1 }
0x18de   :  { %v6360_v40 = vmul.f32 0.044715, %v9525_v18  ;;  %v9530_v52 = vadd.f32 %v6337_v3, %v6212_v39  ;;  %v6339_v29 = vpop.f32.mrb[95].mxu1  ;;  %v6352_v3 = vmul.f32 0.5, %v9525_v18 }
0x18df   :  { %v6361_v0 = vmul.f32 0.044715, %v9527_v54  ;;  %v9533_v30 = vadd.f32 %v6339_v29, %v6216_v34 }
0x18e0   :  { %v6368_v61 = vmul.f32 %v6360_v40, %v9525_v18  ;;  %v6362_v63 = vmul.f32 0.044715, %v9530_v52  ;;  %v6354_v40 = vmul.f32 0.5, %v9530_v52 }
0x18e1   :  { %v6369_v19 = vmul.f32 %v6361_v0, %v9527_v54  ;;  %v6363_v2 = vmul.f32 0.044715, %v9533_v30  ;;  %v6353_v0 = vmul.f32 0.5, %v9527_v54 }
0x18e2   :  { %v6376_v55 = vmul.f32 %v6368_v61, %v9525_v18  ;;  %v6370_v20 = vmul.f32 %v6362_v63, %v9530_v52  ;;  %v6355_v61 = vmul.f32 0.5, %v9533_v30 }
0x18e3   :  { %v6377_v31 = vmul.f32 %v6369_v19, %v9527_v54  ;;  %v6371_v44 = vmul.f32 %v6363_v2, %v9533_v30  ;;  %v6343_v10 = vpop.f32.mrb[96].mxu1 }
0x18e4   :  { %v6384_v14 = vadd.f32 %v6376_v55, %v9525_v18  ;;  %v6378_v36 = vmul.f32 %v6370_v20, %v9530_v52  ;;  %v9545_v46 = vadd.f32 %v6343_v10, %v6212_v39  ;;  %v6345_v38 = vpop.f32.mrb[97].mxu1 }
0x18e5   :  { %v6379_v48 = vmul.f32 %v6371_v44, %v9533_v30  ;;  %v9548_v27 = vadd.f32 %v6345_v38, %v6216_v34  ;;  %v6347_v8 = vpop.f32.mrb[98].mxu1  ;;  %v6385_v21 = vadd.f32 %v6377_v31, %v9527_v54 }
0x18e6   :  { %v6392_v50 = vmul.f32 0.7978846, %v6384_v14  ;;  %v6386_v22 = vadd.f32 %v6378_v36, %v9530_v52  ;;  %v6364_v59 = vmul.f32 0.044715, %v9545_v46  ;;  %v6348_v23 = vadd.f32 %v6347_v8, %v6212_v39  ;;  %v6349_v5 = vpop.f32.mrb[99].mxu1 }
0x18e7   :  { %v6365_v53 = vmul.f32 0.044715, %v9548_v27  ;;  %v6350_v57 = vadd.f32 %v6349_v5, %v6216_v34  ;;  %v6387_v41 = vadd.f32 %v6379_v48, %v9533_v30  ;;  %v6393_v58 = vmul.f32 0.7978846, %v6385_v21 }
0x18e8   :  { %7982 = vtanh.f32 %v6392_v50  ;;  %v6394_v13 = vmul.f32 0.7978846, %v6386_v22  ;;  %v6372_v24 = vmul.f32 %v6364_v59, %v9545_v46  ;;  %v6366_v37 = vmul.f32 0.044715, %v6348_v23 }
0x18e9   :  { %v6373_v32 = vmul.f32 %v6365_v53, %v9548_v27  ;;  %v6367_v42 = vmul.f32 0.044715, %v6350_v57  ;;  %v6395_v7 = vmul.f32 0.7978846, %v6387_v41  ;;  %7984 = vtanh.f32 %v6393_v58 }
0x18ea   :  { %7986 = vtanh.f32 %v6394_v13  ;;  %v6380_v43 = vmul.f32 %v6372_v24, %v9545_v46  ;;  %v6374_v4 = vmul.f32 %v6366_v37, %v6348_v23  ;;  %v6356_v52 = vmul.f32 0.5, %v9545_v46 }
0x18eb   :  { %v6381_v1 = vmul.f32 %v6373_v32, %v9548_v27  ;;  %v6375_v9 = vmul.f32 %v6367_v42, %v6350_v57  ;;  %7988 = vtanh.f32 %v6395_v7  ;;  %v6358_v54 = vmul.f32 0.5, %v6348_v23 }
0x18ec   :  { %v6382_v49 = vmul.f32 %v6374_v4, %v6348_v23  ;;  %v6388_v25 = vadd.f32 %v6380_v43, %v9545_v46  ;;  %v6357_v30 = vmul.f32 0.5, %v9548_v27  ;;  %v6359_v21 = vmul.f32 0.5, %v6350_v57  ;;  %v7042_v46 = vld [vmem:[%s9607_s15 + $0x1] ss:$0 sm:$0xff] }
0x18ed   :  { %v6383_v6 = vmul.f32 %v6375_v9, %v6350_v57  ;;  %v6389_v16 = vadd.f32 %v6381_v1, %v9548_v27 }
0x18ee   :  { %v6390_v56 = vadd.f32 %v6382_v49, %v6348_v23  ;;  %v6396_v12 = vmul.f32 0.7978846, %v6388_v25 }
0x18ef   :  { %v6391_v11 = vadd.f32 %v6383_v6, %v6350_v57  ;;  %v6397_v33 = vmul.f32 0.7978846, %v6389_v16 }
0x18f0   :  { %v6398_v28 = vmul.f32 0.7978846, %v6390_v56  ;;  %7990 = vtanh.f32 %v6396_v12 }
0x18f1   :  { %v6399_v17 = vmul.f32 0.7978846, %v6391_v11  ;;  %7992 = vtanh.f32 %v6397_v33 }
0x18f2   :  { %v7983_v35 = vpop.eup %7982  ;;  %7994 = vtanh.f32 %v6398_v28 }
0x18f3   :  { %v7985_v60 = vpop.eup %7984  ;;  %v6408_v39 = vadd.f32 1.0, %v7983_v35  ;;  %7996 = vtanh.f32 %v6399_v17 }
0x18f4   :  { %v7987_v34 = vpop.eup %7986  ;;  %v6409_v15 = vadd.f32 1.0, %v7985_v60 }
0x18f5   :  { %v7989_v51 = vpop.eup %7988  ;;  %v6410_v29 = vadd.f32 1.0, %v7987_v34  ;;  %v6416_v19 = vmul.f32 %v6408_v39, %v6352_v3 }
0x18f6   :  { %v6411_v63 = vadd.f32 1.0, %v7989_v51  ;;  %v6417_v55 = vmul.f32 %v6409_v15, %v6353_v0 }
0x18f7   :  { %v6418_v2 = vmul.f32 %v6410_v29, %v6354_v40 }
0x18f8   :  { %v6419_v20 = vmul.f32 %v6411_v63, %v6355_v61 }
0x18f9   :  { %v6424_v31 = vpack.c.bf16 %v6418_v2, %v6416_v19 }
0x18fa   :  { %v7991_v44 = vpop.eup %7990  ;;  %v6425_v10 = vpack.c.bf16 %v6419_v20, %v6417_v55 }
0x18fb   :  { %v7993_v14 = vpop.eup %7992  ;;  %v6412_v36 = vadd.f32 1.0, %v7991_v44 }
0x18fc   :  { %v7995_v38 = vpop.eup %7994  ;;  %6589 = vmatprep.mubr.bf16.mxu0 %v6425_v10  ;;  %v6413_v18 = vadd.f32 1.0, %v7993_v14 }
0x18fd   :  { %v7997_v48 = vpop.eup %7996  ;;  %6590 = vmatmul.mubr.bf16.vlgmr.msra.gmra.mrb[92].mxu0 %v6424_v31  ;;  %v6414_v8 = vadd.f32 1.0, %v7995_v38  ;;  %v6420_v22 = vmul.f32 %v6412_v36, %v6356_v52 }
0x18fe   :  { %v6415_v50 = vadd.f32 1.0, %v7997_v48  ;;  %v6421_v5 = vmul.f32 %v6413_v18, %v6357_v30  ;;  %v7043_v30 = vld [vmem:[%s9608_s16] ss:$0 sm:$0xff]  ;;  %s8038_s16 = smov [#allocation2]  }
0x18ff   :  { %v6422_v59 = vmul.f32 %v6414_v8, %v6358_v54  ;;  %s6705_s21 = sshll.u32 %s8038_s16, 4  ;;  %s6706_s21 = int_to_ptr.vmem [resolvable:$true] %s6705_s21 }
0x1900   :  { %v6423_v53 = vmul.f32 %v6415_v50, %v6359_v21  ;;  %p8011_p1 = scmp.lt.s32.totalorder %s6706_s21, %s6706_s21 }
0x1901   :  { %v6426_v41 = vpack.c.bf16 %v6422_v59, %v6420_v22  ;;  %v7044_v59 = vld [vmem:[%s9609_s17] ss:$0 sm:$0xff]  ;;  %s8006_s17 = scalar_lea.vmem %s6706_s21, 512 }
0x1902   :  { %v6427_v58 = vpack.c.bf16 %v6423_v53, %v6421_v5  ;;  %p8007_p0 = scmp.ne.s32.totalorder %s6706_s21, %s8006_s17  ;;  %p8012_p2 = scmp.lt.s32.totalorder %s8006_s17, %s8006_s17 }
0x1904   :  { %6597 = vmatprep.mubr.bf16.mxu0 %v6427_v58  ;;  %p8013_p3 = por %p8012_p2, %p8011_p1 }
0x1905   :  { %6598 = vmatmul.mubr.bf16.gmra.mrb[96].mxu0 %v6426_v41 }
0x1906   :  { %p8014_p4 = pnand %p8013_p3, %p8007_p0 }
0x19d0   :  { %v7225_v13 = vpop.f32.mrb[92].mxu0 }
0x19d1   :  { %v7226_v24 = vpop.f32.mrb[93].mxu0 }
0x19d2   :  { %v7227_v37 = vadd.f32 %v7226_v24, %v7225_v13  ;;  %v7228_v32 = vpop.f32.mrb[94].mxu0 }
0x19d3   :  { %v7229_v42 = vpop.f32.mrb[95].mxu0 }
0x19d4   :  { %v6606_v27 = vadd.f32 %v7227_v37, %v9390_v26  ;;  %v7230_v23 = vadd.f32 %v7229_v42, %v7228_v32 }
0x19d6   :  { %v6607_v57 = vadd.f32 %v7230_v23, %v9393_v45  ;;  %v6618_v7 = vadd.f32 %v7042_v46, %v6606_v27 }
0x19d8   :  { %6624 = vadd.xlane.f32.xlu1 %v6618_v7  ;;  %v7231_v43 = vpop.f32.mrb[96].mxu0  ;;  %v6619_v4 = vadd.f32 %v7042_v46, %v6607_v57  ;;  %v6636_v25 = vmul.f32 %v6618_v7, %v6618_v7 }
0x19d9   :  { %v7232_v1 = vpop.f32.mrb[97].mxu0 }
0x19da   :  { %v7233_v9 = vadd.f32 %v7232_v1, %v7231_v43  ;;  %6626 = vadd.xlane.f32.xlu0 %v6619_v4  ;;  %v7234_v49 = vpop.f32.mrb[98].mxu0  ;;  %v6637_v12 = vmul.f32 %v6619_v4, %v6619_v4 }
0x19db   :  { %v7235_v6 = vpop.f32.mrb[99].mxu0 }
0x19dc   :  { %v6608_v16 = vadd.f32 %v7233_v9, %v9397_v47  ;;  %v7236_v56 = vadd.f32 %v7235_v6, %v7234_v49  ;;  %6640 = vadd.xlane.f32.xlu1 %v6636_v25 }
0x19de   :  { %v6609_v26 = vadd.f32 %v7236_v56, %v9408_v62  ;;  %6642 = vadd.xlane.f32.xlu0 %v6637_v12  ;;  %v6620_v11 = vadd.f32 %v7042_v46, %v6608_v16 }
0x19e0   :  { %6628 = vadd.xlane.f32.xlu1 %v6620_v11  ;;  %v6621_v45 = vadd.f32 %v7042_v46, %v6609_v26  ;;  %v6638_v33 = vmul.f32 %v6620_v11, %v6620_v11 }
0x19e2   :  { %6630 = vadd.xlane.f32.xlu0 %v6621_v45  ;;  %v6639_v28 = vmul.f32 %v6621_v45, %v6621_v45 }
0x19e4   :  { %6644 = vadd.xlane.f32.xlu1 %v6638_v33 }
0x19e6   :  { %6646 = vadd.xlane.f32.xlu0 %v6639_v28 }
0x1a65   :  { %v6625_v17 = vpop.xlane.xlu1 %6624 }
0x1a66   :  { %v6632_v35 = vmul.f32 0.0078125, %v6625_v17 }
0x1a67   :  { %v6627_v60 = vpop.xlane.xlu0 %6626 }
0x1a68   :  { %v6633_v39 = vmul.f32 0.0078125, %v6627_v60  ;;  %v6652_v47 = vmul.f32 %v6632_v35, %v6632_v35  ;;  %v6660_v54 = vsub.f32 %v6618_v7, %v6632_v35 }
0x1a69   :  { %v6641_v34 = vpop.xlane.xlu1 %6640 }
0x1a6a   :  { %v6648_v15 = vmul.f32 0.0078125, %v6641_v34  ;;  %v6653_v3 = vmul.f32 %v6633_v39, %v6633_v39  ;;  %v6661_v21 = vsub.f32 %v6619_v4, %v6633_v39 }
0x1a6b   :  { %v6643_v51 = vpop.xlane.xlu0 %6642 }
0x1a6c   :  { %v6656_v40 = vsub.f32 %v6648_v15, %v6652_v47  ;;  %v6649_v62 = vmul.f32 0.0078125, %v6643_v51 }
0x1a6d   :  { %v6629_v29 = vpop.xlane.xlu1 %6628 }
0x1a6e   :  { %v6664_v0 = vadd.f32 1e-06, %v6656_v40  ;;  %v6657_v61 = vsub.f32 %v6649_v62, %v6653_v3  ;;  %v6634_v63 = vmul.f32 0.0078125, %v6629_v29 }
0x1a6f   :  { %v6631_v19 = vpop.xlane.xlu0 %6630 }
0x1a70   :  { %7998 = vrsqrt.f32 %v6664_v0  ;;  %v6665_v2 = vadd.f32 1e-06, %v6657_v61  ;;  %v6635_v55 = vmul.f32 0.0078125, %v6631_v19  ;;  %v6654_v31 = vmul.f32 %v6634_v63, %v6634_v63 }
0x1a71   :  { %v6645_v20 = vpop.xlane.xlu1 %6644  ;;  %v6662_v13 = vsub.f32 %v6620_v11, %v6634_v63 }
0x1a72   :  { %8000 = vrsqrt.f32 %v6665_v2  ;;  %v6650_v44 = vmul.f32 0.0078125, %v6645_v20  ;;  %v6655_v14 = vmul.f32 %v6635_v55, %v6635_v55  ;;  %v6663_v32 = vsub.f32 %v6621_v45, %v6635_v55 }
0x1a73   :  { %v6647_v10 = vpop.xlane.xlu0 %6646 }
0x1a74   :  { %v6658_v36 = vsub.f32 %v6650_v44, %v6654_v31  ;;  %v6651_v38 = vmul.f32 0.0078125, %v6647_v10 }
0x1a76   :  { %v6666_v18 = vadd.f32 1e-06, %v6658_v36  ;;  %v6659_v48 = vsub.f32 %v6651_v38, %v6655_v14 }
0x1a78   :  { %8002 = vrsqrt.f32 %v6666_v18  ;;  %v6667_v52 = vadd.f32 1e-06, %v6659_v48 }
0x1a7a   :  { %v7999_v8 = vpop.eup %7998  ;;  %8004 = vrsqrt.f32 %v6667_v52 }
0x1a7b   :  { %v6672_v50 = vmul.f32 %v7999_v8, %v6660_v54 }
0x1a7c   :  { %v8001_v22 = vpop.eup %8000 }
0x1a7d   :  { %v6682_v5 = vmul.f32 %v7043_v30, %v6672_v50  ;;  %v6673_v53 = vmul.f32 %v8001_v22, %v6661_v21 }
0x1a7f   :  { %v6683_v41 = vmul.f32 %v7043_v30, %v6673_v53  ;;  %v6692_v58 = vadd.f32 %v7044_v59, %v6682_v5 }
0x1a81   :  { %v6693_v24 = vadd.f32 %v7044_v59, %v6683_v41  ;;  %6696 = vst [vmem:[#allocation2] sm:$0xff] %v6692_v58 }
0x1a82   :  { %v8003_v37 = vpop.eup %8002 }
0x1a83   :  { %v6674_v42 = vmul.f32 %v8003_v37, %v6662_v13  ;;  %6697 = vst [vmem:[#allocation2 + $0x8] sm:$0xff] %v6693_v24 }
0x1a84   :  { %v8005_v46 = vpop.eup %8004 }
0x1a85   :  { %v6684_v27 = vmul.f32 %v7043_v30, %v6674_v42  ;;  %v6675_v23 = vmul.f32 %v8005_v46, %v6663_v32 }
0x1a87   :  { %v6685_v57 = vmul.f32 %v7043_v30, %v6675_v23  ;;  %v6694_v7 = vadd.f32 %v7044_v59, %v6684_v27 }
0x1a89   :  { %v6695_v43 = vadd.f32 %v7044_v59, %v6685_v57  ;;  %6698 = vst [vmem:[#allocation2 + $0x10] sm:$0xff] %v6694_v7 }
0x1a8b   :  { %6699 = vst [vmem:[#allocation2 + $0x18] sm:$0xff] %v6695_v43 }
0x1a8c   :  { %8017 = shalt.err (!%p8014_p4)
}
0x1a8d   :  { %s8018_s7 = scalar_lea.hbm %s9610_s18, 512 }
0x1a8e   :  { %p8019_p5 = scmp.ne.s32.totalorder %s9610_s18, %s8018_s7  ;;  %p8022_p6 = scmp.lt.u32.totalorder %s8018_s7, %s9610_s18 }
0x1a90   :  { %p8024_p7 = pnand %p8022_p6, %p8019_p5 }
0x1a92   :  { %8027 = shalt.err (!%p8024_p7)
}
0x1a93   :  { %s8039_s25 = smov 128   ;;  %s8040_s12 = smov 8  }
0x1a94   :  { %6711 = dma.vmem_to_hbm [thread:$0]  %s6706_s21, 512, %s9610_s18, [#allocation3], %s8039_s25, %s8039_s25, %s8040_s12  }
0x1a95   :  { %8028 = dma.done.wait [#allocation3], 512  }
0x1a96   :  { %8029 = vsyncadd [#allocation3], 4294966784 }
0x1a97   :  { %6715 = vsyncpa [#allocation3], 1 }

</bundles_post_ra>
